<compile_context>
chip_gen: v7x
topology: tpu7x:2x2x1
jax: 0.10.0
libtpu: 0.0.40
codegen_flags: <defaults>
</compile_context>

<pallas_src>
import numpy as np
import jax
import jax.numpy as jnp
from jax.experimental import pallas as pl
from jax.experimental.pallas import tpu as pltpu

EPS = 1e-5  # nn.LayerNorm default


# ----------------------------- glue helpers -------------------------------- #

def get_window_size(x_size, window_size, shift_size=None):
    use_window_size = list(window_size)
    use_shift_size = list(shift_size) if shift_size is not None else None
    for i in range(len(x_size)):
        if x_size[i] <= window_size[i]:
            use_window_size[i] = x_size[i]
            if shift_size is not None:
                use_shift_size[i] = 0
    if shift_size is None:
        return tuple(use_window_size)
    return tuple(use_window_size), tuple(use_shift_size)


def window_partition(x, ws):
    B, D, H, W, C = x.shape
    x = x.reshape(B, D // ws[0], ws[0], H // ws[1], ws[1], W // ws[2], ws[2], C)
    x = x.transpose(0, 1, 3, 5, 2, 4, 6, 7)
    return x.reshape(-1, ws[0] * ws[1] * ws[2], C)


def window_reverse(windows, ws, B, D, H, W):
    x = windows.reshape(B, D // ws[0], H // ws[1], W // ws[2], ws[0], ws[1], ws[2], -1)
    x = x.transpose(0, 1, 4, 2, 5, 3, 6, 7)
    return x.reshape(B, D, H, W, -1)


def compute_mask_np(D, H, W, ws, ss):
    img = np.zeros((1, D, H, W, 1), np.float32)
    cnt = 0
    for d in (slice(-ws[0]), slice(-ws[0], -ss[0]), slice(-ss[0], None)):
        for h in (slice(-ws[1]), slice(-ws[1], -ss[1]), slice(-ss[1], None)):
            for w in (slice(-ws[2]), slice(-ws[2], -ss[2]), slice(-ss[2], None)):
                img[:, d, h, w, :] = cnt
                cnt += 1
    mw = np.asarray(window_partition(img, ws)).squeeze(-1)      # (nW, N)
    am = mw[:, None, :] - mw[:, :, None]
    am = np.where(am != 0, -100.0, 0.0).astype(np.float32)      # (nW, N, N)
    return am


def get_position_index(ws):
    coords = np.stack(np.meshgrid(np.arange(ws[0]), np.arange(ws[1]),
                                  np.arange(ws[2]), indexing='ij'))
    cf = coords.reshape(3, -1)
    rel = (cf[:, :, None] - cf[:, None, :]).transpose(1, 2, 0).astype(np.int64)
    rel[:, :, 0] += ws[0] - 1
    rel[:, :, 1] += ws[1] - 1
    rel[:, :, 2] += ws[2] - 1
    rel[:, :, 0] *= (2 * ws[1] - 1) * (2 * ws[2] - 1)
    rel[:, :, 1] *= (2 * ws[2] - 1)
    return rel.sum(-1).astype(np.int32)                          # (N, N)


def _largest_divisor(n, cap):
    cap = max(1, min(int(cap), int(n)))
    for d in range(cap, 0, -1):
        if n % d == 0:
            return d
    return 1


# ------------------ Pallas kernel 1: LN + window attention ------------------ #

def _attn_kernel(x_ref, bias_ref, g_ref, b_ref, wqkv_ref, bqkv_ref,
                 wp_ref, bp_ref, o_ref):
    WB, N, C = x_ref.shape
    num_heads = bias_ref.shape[1]
    hd = C // num_heads
    scale = float(hd) ** -0.5

    # LayerNorm (norm1): per-token, so it commutes with windowing/rolls.
    x = x_ref[...].astype(jnp.float32).reshape(WB * N, C)
    mu = jnp.mean(x, axis=-1, keepdims=True)
    var = jnp.mean(jnp.square(x - mu), axis=-1, keepdims=True)
    xn = (x - mu) * jax.lax.rsqrt(var + EPS) * g_ref[0] + b_ref[0]

    # One big QKV matmul over all WB windows (M = WB*N rows).
    qkv = jnp.dot(xn, wqkv_ref[...], preferred_element_type=jnp.float32) + bqkv_ref[0]

    heads_out = []
    for h in range(num_heads):
        q = qkv[:, h * hd:(h + 1) * hd].reshape(WB, N, hd)
        k = qkv[:, C + h * hd:C + (h + 1) * hd].reshape(WB, N, hd)
        v = qkv[:, 2 * C + h * hd:2 * C + (h + 1) * hd].reshape(WB, N, hd)
        s = jnp.einsum('wnd,wmd->wnm', q * scale, k,
                       preferred_element_type=jnp.float32)       # (WB, N, N)
        # single fused add: bias already contains rel-pos bias (+ mask if shifted)
        s = s + bias_ref[:, h]                                   # (1 or WB, N, N) broadcast
        s = s - jnp.max(s, axis=-1, keepdims=True)
        e = jnp.exp(s)
        p = e * pl.reciprocal(jnp.sum(e, axis=-1, keepdims=True), approx=False)
        oh = jnp.einsum('wnm,wmd->wnd', p, v,
                        preferred_element_type=jnp.float32)      # (WB, N, hd)
        heads_out.append(oh.reshape(WB * N, hd))

    # single K=C output projection over all windows
    ho = jnp.concatenate(heads_out, axis=-1)                     # (WB*N, C)
    out = jnp.dot(ho, wp_ref[...], preferred_element_type=jnp.float32) + bp_ref[0]
    o_ref[...] = out.reshape(WB, N, C).astype(o_ref.dtype)


def window_attention_pallas(xw, bias, blk, wb):
    """xw: (nWtot, N, C). bias: (1, heads, N, N) or (nW, heads, N, N)."""
    nWtot, N, C = xw.shape
    BM, num_heads = bias.shape[0], bias.shape[1]
    assert nWtot % wb == 0
    if BM == 1:
        bias_block = (1, num_heads, N, N)
        bias_map = lambda i: (0, 0, 0, 0)
    else:
        assert BM % wb == 0
        nblk = BM // wb
        bias_block = (wb, num_heads, N, N)
        bias_map = lambda i: (i % nblk, 0, 0, 0)   # window-id indexing, no B-tiling

    return pl.pallas_call(
        _attn_kernel,
        out_shape=jax.ShapeDtypeStruct((nWtot, N, C), xw.dtype),
        grid=(nWtot // wb,),
        in_specs=[
            pl.BlockSpec((wb, N, C), lambda i: (i, 0, 0)),
            pl.BlockSpec(bias_block, bias_map),
            pl.BlockSpec((1, C), lambda i: (0, 0)),
            pl.BlockSpec((1, C), lambda i: (0, 0)),
            pl.BlockSpec((C, 3 * C), lambda i: (0, 0)),
            pl.BlockSpec((1, 3 * C), lambda i: (0, 0)),
            pl.BlockSpec((C, C), lambda i: (0, 0)),
            pl.BlockSpec((1, C), lambda i: (0, 0)),
        ],
        out_specs=pl.BlockSpec((wb, N, C), lambda i: (i, 0, 0)),
        compiler_params=pltpu.CompilerParams(
            dimension_semantics=("parallel",),
            vmem_limit_bytes=32 * 1024 * 1024),      # explicit budget (safe on v7x 64 MiB)
    )(xw, bias, blk["g1"], blk["b1"], blk["wqkv"], blk["bqkv"],
      blk["wproj"], blk["bproj"])


# -- Pallas kernel 2: residual + LN + 1x1x1 conv + depthwise 3x3x3 + residual -- #

def _res_ln_pw_dw_kernel(s_ref, y_ref, slo_ref, ylo_ref, shi_ref, yhi_ref,
                         g_ref, b_ref, wpw_ref, bpw_ref, wdw_ref, bdw_ref,
                         o_ref, pw_ref):
    _, TD, H, W, C = s_ref.shape
    j = pl.program_id(1)
    nD = pl.num_programs(1)

    # Hoisted parameter loads (ln_pw is called up to 3x; JAX does not CSE the
    # broadcast_in_dims, so keep them out of the closure body).
    g = g_ref[0]
    b = b_ref[0]
    wpw = wpw_ref[...]
    bpw = bpw_ref[0]

    def ln_pw(x2d):
        mu = jnp.mean(x2d, axis=-1, keepdims=True)
        var = jnp.mean(jnp.square(x2d - mu), axis=-1, keepdims=True)
        xn = (x2d - mu) * jax.lax.rsqrt(var + EPS) * g + b
        return jnp.dot(xn, wpw, preferred_element_type=jnp.float32) + bpw

    # First residual fused in-kernel: x = shortcut + attention-branch output.
    xc = s_ref[0].astype(jnp.float32) + y_ref[0].astype(jnp.float32)   # (TD,H,W,C)

    # zero the haloed scratch (borders = Conv3d zero padding), fill interior
    pw_ref[...] = jnp.zeros_like(pw_ref)
    pw_c = ln_pw(xc.reshape(TD * H * W, C)).reshape(TD, H, W, C)
    pw_ref[1:TD + 1, 1:H + 1, 1:W + 1, :] = pw_c

    # D-halo planes: recompute their pointwise output in-kernel (cheap) instead
    # of an extra HBM round trip; skipped (left zero) at the volume boundaries.
    @pl.when(j > 0)
    def _():
        lo = slo_ref[0, 0].astype(jnp.float32) + ylo_ref[0, 0].astype(jnp.float32)
        pw_ref[0, 1:H + 1, 1:W + 1, :] = ln_pw(lo.reshape(H * W, C)).reshape(H, W, C)

    @pl.when(j < nD - 1)
    def _():
        hi = shi_ref[0, 0].astype(jnp.float32) + yhi_ref[0, 0].astype(jnp.float32)
        pw_ref[TD + 1, 1:H + 1, 1:W + 1, :] = ln_pw(hi.reshape(H * W, C)).reshape(H, W, C)

    # depthwise 3x3x3: 3 kw-shifted slabs reused across the 9 kd/kh taps
    acc = jnp.zeros((TD, H, W, C), jnp.float32)
    for kw in range(3):
        slab = pw_ref[:, :, kw:kw + W, :]                        # (TD+2, H+2, W, C)
        for kd in range(3):
            for kh in range(3):
                acc = acc + slab[kd:kd + TD, kh:kh + H] * wdw_ref[kd * 9 + kh * 3 + kw]
    acc = acc + bdw_ref[0]

    o_ref[0] = (xc + acc).astype(o_ref.dtype)                    # second residual fused


def res_ln_pw_dw_pallas(shortcut, y, blk, td=None):
    """out = x + dwconv(pwconv(LN(x))) with x = shortcut + y, all fused."""
    B, D, H, W, C = shortcut.shape
    if td is None:
        # ~<=4096 token rows per slab; keeps scratch + double-buffered blocks
        # comfortably inside v7x's 64 MiB VMEM at production sizes.
        td = _largest_divisor(D, max(1, 4096 // max(1, H * W)))
    assert D % td == 0
    nD = D // td

    center_map = lambda b, j: (b, j, 0, 0, 0)
    lo_map = lambda b, j: (b, jnp.maximum(j * td - 1, 0), 0, 0, 0)
    hi_map = lambda b, j: (b, jnp.minimum(j * td + td, D - 1), 0, 0, 0)
    rep2 = lambda b, j: (0, 0)

    return pl.pallas_call(
        _res_ln_pw_dw_kernel,
        out_shape=jax.ShapeDtypeStruct((B, D, H, W, C), shortcut.dtype),
        grid=(B, nD),
        in_specs=[
            pl.BlockSpec((1, td, H, W, C), center_map),   # shortcut, center slab
            pl.BlockSpec((1, td, H, W, C), center_map),   # attn branch, center slab
            pl.BlockSpec((1, 1, H, W, C), lo_map),        # shortcut, low D halo
            pl.BlockSpec((1, 1, H, W, C), lo_map),        # attn branch, low D halo
            pl.BlockSpec((1, 1, H, W, C), hi_map),        # shortcut, high D halo
            pl.BlockSpec((1, 1, H, W, C), hi_map),        # attn branch, high D halo
            pl.BlockSpec((1, C), rep2),
            pl.BlockSpec((1, C), rep2),
            pl.BlockSpec((C, C), rep2),
            pl.BlockSpec((1, C), rep2),
            pl.BlockSpec((27, C), rep2),
            pl.BlockSpec((1, C), rep2),
        ],
        out_specs=pl.BlockSpec((1, td, H, W, C), center_map),
        scratch_shapes=[pltpu.VMEM((td + 2, H + 2, W + 2, C), jnp.float32)],
        compiler_params=pltpu.CompilerParams(
            dimension_semantics=("parallel", "parallel"),
            vmem_limit_bytes=32 * 1024 * 1024),
    )(shortcut, y, shortcut, y, shortcut, y,
      blk["g2"], blk["b2"], blk["wpw"], blk["bpw"], blk["wdw"], blk["bdw"])


# ----------------------- pure-JAX references (for checking) ----------------- #

def window_attention_ref(xw, bias, blk, nW):
    B_, N, C = xw.shape
    heads = bias.shape[1]
    hd = C // heads
    x = xw.astype(jnp.float32)
    mu = x.mean(-1, keepdims=True)
    var = ((x - mu) ** 2).mean(-1, keepdims=True)
    xn = (x - mu) / jnp.sqrt(var + EPS) * blk["g1"][0] + blk["b1"][0]
    qkv = xn @ blk["wqkv"] + blk["bqkv"][0]
    qkv = qkv.reshape(B_, N, 3, heads, hd).transpose(2, 0, 3, 1, 4)
    q, k, v = qkv[0], qkv[1], qkv[2]
    attn = (q * hd ** -0.5) @ jnp.swapaxes(k, -2, -1)            # (B_, heads, N, N)
    if bias.shape[0] == 1:
        attn = attn + bias
    else:
        attn = attn.reshape(B_ // nW, nW, heads, N, N) + bias[None]
        attn = attn.reshape(B_, heads, N, N)
    attn = jax.nn.softmax(attn, axis=-1)
    out = (attn @ v).transpose(0, 2, 1, 3).reshape(B_, N, C)
    return out @ blk["wproj"] + blk["bproj"][0]


def ln_pw_dw_ref(x, blk):
    B, D, H, W, C = x.shape
    t = x.reshape(-1, C).astype(jnp.float32)
    mu = t.mean(-1, keepdims=True)
    var = ((t - mu) ** 2).mean(-1, keepdims=True)
    xn = (t - mu) / jnp.sqrt(var + EPS) * blk["g2"][0] + blk["b2"][0]
    pw = (xn @ blk["wpw"] + blk["bpw"][0]).reshape(B, D, H, W, C)
    xp = jnp.pad(pw, ((0, 0), (1, 1), (1, 1), (1, 1), (0, 0)))
    acc = jnp.zeros_like(pw)
    for kd in range(3):
        for kh in range(3):
            for kw in range(3):
                acc = acc + xp[:, kd:kd + D, kh:kh + H, kw:kw + W, :] * blk["wdw"][kd * 9 + kh * 3 + kw]
    return x + acc + blk["bdw"][0]


# --------------------------- block / RSTB forward --------------------------- #

def swin_block_forward(x, blk, window_size, shift_size, attn_mask_np,
                       use_pallas=True, attn_wb=None, fused_td=None):
    B, D, H, W, C = x.shape
    ws, ss = get_window_size((D, H, W), window_size, shift_size)
    N = ws[0] * ws[1] * ws[2]
    shortcut = x

    # check_seq_size: reflect pad H/W, flip-concat D
    pad_h = (-H) % ws[1]
    pad_w = (-W) % ws[2]
    pad_d1 = (-D) % ws[0]
    xp = x
    if pad_h or pad_w:
        xp = jnp.pad(xp, ((0, 0), (0, 0), (0, pad_h), (0, pad_w), (0, 0)), mode="reflect")
    if pad_d1:
        Dc = xp.shape[1]
        tail = xp[:, Dc - 1 - pad_d1:Dc - 1][:, ::-1]
        xp = jnp.concatenate([xp, tail], axis=1)
    _, Dp, Hp, Wp, _ = xp.shape

    shifted = any(s > 0 for s in ss)
    xs = jnp.roll(xp, shift=(-ss[0], -ss[1], -ss[2]), axis=(1, 2, 3)) if shifted else xp
    xw = window_partition(xs, ws)                    # (B*nW, N, C)
    nWtot = xw.shape[0]
    nW = nWtot // B

    rpi = get_position_index(ws)
    rel_bias = blk["rel_table"][rpi.reshape(-1)].reshape(N, N, -1).transpose(2, 0, 1)
    if shifted:
        mask = jnp.asarray(attn_mask_np[:, :N, :N])   # (nW, N, N)
        bias = rel_bias[None] + mask[:, None]         # (nW, heads, N, N)
    else:
        bias = rel_bias[None]                         # (1, heads, N, N): no mask DMA at all

    if use_pallas:
        navail = nW if shifted else nWtot
        cap = max(1, 1024 // N)                       # target ~>=256-1024 rows per grid step
        if attn_wb is not None:
            cap = min(cap, attn_wb)
        wb = _largest_divisor(navail, cap)
        aw = window_attention_pallas(xw, bias, blk, wb)
    else:
        aw = window_attention_ref(xw, bias, blk, nW)

    sx = window_reverse(aw, ws, B, Dp, Hp, Wp)
    x2 = jnp.roll(sx, shift=(ss[0], ss[1], ss[2]), axis=(1, 2, 3)) if shifted else sx
    x2 = x2[:, :D, :H, :W, :]                         # DropPath(p=0) == identity

    if use_pallas:
        # both residual adds + LN + pointwise + depthwise fused in one kernel
        return res_ln_pw_dw_pallas(shortcut, x2, blk, td=fused_td)
    x = shortcut + x2
    return ln_pw_dw_ref(x, blk)


def rstb_forward(x_ncdhw, params, window_size, depth, use_pallas=True,
                 attn_wb=None, fused_td=None):
    B, C, D, H, W = x_ncdhw.shape
    shift_size = tuple(j // 2 for j in window_size)
    ws, ss = get_window_size((D, H, W), window_size, shift_size)
    x = jnp.transpose(x_ncdhw, (0, 2, 3, 4, 1))        # -> (B, D, H, W, C)
    Dp = int(np.ceil(D / ws[0])) * ws[0]
    Hp = int(np.ceil(H / ws[1])) * ws[1]
    Wp = int(np.ceil(W / ws[2])) * ws[2]
    attn_mask = compute_mask_np(Dp, Hp, Wp, ws, ss)
    for i in range(depth):
        blk_shift = (0, 0, 0) if i % 2 == 0 else shift_size
        x = swin_block_forward(x, params[i], window_size, blk_shift, attn_mask,
                               use_pallas=use_pallas, attn_wb=attn_wb, fused_td=fused_td)
    return jnp.transpose(x, (0, 4, 1, 2, 3))           # -> (B, C, D, H, W)


# --------------------------- deterministic params --------------------------- #

def init_params(key, dim, depth, num_heads, window_size):
    nbias = (2 * window_size[0] - 1) * (2 * window_size[1] - 1) * (2 * window_size[2] - 1)
    params = []
    for _ in range(depth):
        key, *ks = jax.random.split(key, 10)
        params.append({
            "g1": jnp.ones((1, dim), jnp.float32),
            "b1": jnp.zeros((1, dim), jnp.float32),
            "rel_table": 0.02 * jax.random.normal(ks[0], (nbias, num_heads), jnp.float32),
            "wqkv": 0.05 * jax.random.normal(ks[1], (dim, 3 * dim), jnp.float32),   # = W_qkv.T
            "bqkv": 0.02 * jax.random.normal(ks[2], (1, 3 * dim), jnp.float32),
            "wproj": 0.05 * jax.random.normal(ks[3], (dim, dim), jnp.float32),      # = W_proj.T
            "bproj": 0.02 * jax.random.normal(ks[4], (1, dim), jnp.float32),
            "g2": jnp.ones((1, dim), jnp.float32),
            "b2": jnp.zeros((1, dim), jnp.float32),
            "wpw": 0.05 * jax.random.normal(ks[5], (dim, dim), jnp.float32),        # 1x1x1 conv (Cin,Cout)
            "bpw": 0.02 * jax.random.normal(ks[6], (1, dim), jnp.float32),
            "wdw": 0.1 * jax.random.normal(ks[7], (27, dim), jnp.float32),          # depthwise taps
            "bdw": 0.02 * jax.random.normal(ks[8], (1, dim), jnp.float32),
        })
    return params


# ----------------------------------- main ----------------------------------- #

if __name__ == "__main__":
    B, C, D, H, W = 2, 32, 4, 8, 8
    num_heads = 2
    window_size = (2, 4, 4)
    depth = 2                                          # block 0 unshifted, block 1 shifted

    key = jax.random.PRNGKey(0)
    kx, kp = jax.random.split(key)
    x = jax.random.normal(kx, (B, C, D, H, W), jnp.float32)
    params = init_params(kp, C, depth, num_heads, window_size)

    ref = jax.block_until_ready(rstb_forward(x, params, window_size, depth, use_pallas=False))

    # default tiling (largest window batch / largest D-slab)
    out = jax.block_until_ready(rstb_forward(x, params, window_size, depth, use_pallas=True))
    assert out.shape == (B, C, D, H, W)
    np.testing.assert_allclose(np.asarray(out), np.asarray(ref), rtol=2e-4, atol=2e-4)

    # forced small tiles: exercises the D-halo path (multiple slabs) and the
    # multi-step window batching / per-window mask indexing path.
    out_small = jax.block_until_ready(
        rstb_forward(x, params, window_size, depth, use_pallas=True, attn_wb=2, fused_td=1))
    np.testing.assert_allclose(np.asarray(out_small), np.asarray(ref), rtol=2e-4, atol=2e-4)

    print("KERNEL_OK")
</pallas_src>

<mosaic_0001>
module attributes {stable_mosaic.version = 11 : i64} {
  func.func @_attn_kernel(%arg0: i32, %arg1: memref<16x32x32xf32, #tpu.memory_space<vmem>>, %arg2: memref<1x2x32x32xf32, #tpu.memory_space<vmem>>, %arg3: memref<1x32xf32, #tpu.memory_space<vmem>>, %arg4: memref<1x32xf32, #tpu.memory_space<vmem>>, %arg5: memref<32x96xf32, #tpu.memory_space<vmem>>, %arg6: memref<1x96xf32, #tpu.memory_space<vmem>>, %arg7: memref<32x32xf32, #tpu.memory_space<vmem>>, %arg8: memref<1x32xf32, #tpu.memory_space<vmem>>, %arg9: memref<16x32x32xf32, #tpu.memory_space<vmem>>) attributes {dimension_semantics = [#tpu.dimension_semantics<parallel>], iteration_bounds = array<i64: 1>, scalar_prefetch = 0 : i64, scratch_operands = 0 : i64, tpu.core_type = #tpu.core_type<tc>, window_params = [{transform_indices = @transform_0, window_bounds = array<i64: 16, 32, 32>}, {pipeline_mode = #tpu.pipeline_mode<synchronous>, transform_indices = @transform_1, window_bounds = array<i64: 1, 2, 32, 32>}, {pipeline_mode = #tpu.pipeline_mode<synchronous>, transform_indices = @transform_2, window_bounds = array<i64: 1, 32>}, {pipeline_mode = #tpu.pipeline_mode<synchronous>, transform_indices = @transform_3, window_bounds = array<i64: 1, 32>}, {pipeline_mode = #tpu.pipeline_mode<synchronous>, transform_indices = @transform_4, window_bounds = array<i64: 32, 96>}, {pipeline_mode = #tpu.pipeline_mode<synchronous>, transform_indices = @transform_5, window_bounds = array<i64: 1, 96>}, {pipeline_mode = #tpu.pipeline_mode<synchronous>, transform_indices = @transform_6, window_bounds = array<i64: 32, 32>}, {pipeline_mode = #tpu.pipeline_mode<synchronous>, transform_indices = @transform_7, window_bounds = array<i64: 1, 32>}, {transform_indices = @transform_8, window_bounds = array<i64: 16, 32, 32>}]} {
    %c0 = arith.constant 0 : index
    %c0_0 = arith.constant 0 : index
    %c0_1 = arith.constant 0 : index
    %0 = vector.load %arg1[%c0, %c0_0, %c0_1] : memref<16x32x32xf32, #tpu.memory_space<vmem>>, vector<16x32x32xf32>
    %1 = vector.shape_cast %0 : vector<16x32x32xf32> to vector<512x32xf32>
    %cst = arith.constant dense<0.000000e+00> : vector<512xf32>
    %2 = vector.multi_reduction <add>, %1, %cst [1] : vector<512x32xf32> to vector<512xf32>
    %3 = vector.shape_cast %2 : vector<512xf32> to vector<512x1xf32>
    %cst_2 = arith.constant 3.200000e+01 : f32
    %4 = vector.broadcast %cst_2 : f32 to vector<512x1xf32>
    %5 = arith.divf %3, %4 : vector<512x1xf32>
    %6 = vector.broadcast %5 : vector<512x1xf32> to vector<512x32xf32>
    %7 = arith.subf %1, %6 : vector<512x32xf32>
    %8 = arith.mulf %7, %7 : vector<512x32xf32>
    %cst_3 = arith.constant dense<0.000000e+00> : vector<512xf32>
    %9 = vector.multi_reduction <add>, %8, %cst_3 [1] : vector<512x32xf32> to vector<512xf32>
    %10 = vector.shape_cast %9 : vector<512xf32> to vector<512x1xf32>
    %cst_4 = arith.constant 3.200000e+01 : f32
    %11 = vector.broadcast %cst_4 : f32 to vector<512x1xf32>
    %12 = arith.divf %10, %11 : vector<512x1xf32>
    %13 = vector.broadcast %5 : vector<512x1xf32> to vector<512x32xf32>
    %14 = arith.subf %1, %13 : vector<512x32xf32>
    %cst_5 = arith.constant 9.99999974E-6 : f32
    %15 = vector.broadcast %cst_5 : f32 to vector<512x1xf32>
    %16 = arith.addf %12, %15 : vector<512x1xf32>
    %17 = math.rsqrt %16 : vector<512x1xf32>
    %18 = vector.broadcast %17 : vector<512x1xf32> to vector<512x32xf32>
    %19 = arith.mulf %14, %18 : vector<512x32xf32>
    %c0_6 = arith.constant 0 : index
    %c0_7 = arith.constant 0 : index
    %20 = vector.load %arg3[%c0_6, %c0_7] : memref<1x32xf32, #tpu.memory_space<vmem>>, vector<1x32xf32>
    %21 = vector.shape_cast %20 : vector<1x32xf32> to vector<32xf32>
    %22 = vector.shape_cast %21 : vector<32xf32> to vector<1x32xf32>
    %23 = vector.broadcast %22 : vector<1x32xf32> to vector<512x32xf32>
    %24 = arith.mulf %19, %23 : vector<512x32xf32>
    %c0_8 = arith.constant 0 : index
    %c0_9 = arith.constant 0 : index
    %25 = vector.load %arg4[%c0_8, %c0_9] : memref<1x32xf32, #tpu.memory_space<vmem>>, vector<1x32xf32>
    %26 = vector.shape_cast %25 : vector<1x32xf32> to vector<32xf32>
    %27 = vector.shape_cast %26 : vector<32xf32> to vector<1x32xf32>
    %28 = vector.broadcast %27 : vector<1x32xf32> to vector<512x32xf32>
    %29 = arith.addf %24, %28 : vector<512x32xf32>
    %c0_10 = arith.constant 0 : index
    %c0_11 = arith.constant 0 : index
    %30 = vector.load %arg5[%c0_10, %c0_11] : memref<32x96xf32, #tpu.memory_space<vmem>>, vector<32x96xf32>
    %cst_12 = arith.constant dense<0.000000e+00> : vector<512x96xf32>
    %31 = tpu.matmul %29, %30, %cst_12 {dimension_numbers = #tpu.dot_dimension_numbers<[1], [0], [0], [1], [0, 0, 1, 1], [], []>} : vector<512x32xf32>, vector<32x96xf32>, vector<512x96xf32> -> vector<512x96xf32>
    %c0_13 = arith.constant 0 : index
    %c0_14 = arith.constant 0 : index
    %32 = vector.load %arg6[%c0_13, %c0_14] : memref<1x96xf32, #tpu.memory_space<vmem>>, vector<1x96xf32>
    %33 = vector.shape_cast %32 : vector<1x96xf32> to vector<96xf32>
    %34 = vector.shape_cast %33 : vector<96xf32> to vector<1x96xf32>
    %35 = vector.broadcast %34 : vector<1x96xf32> to vector<512x96xf32>
    %36 = arith.addf %31, %35 : vector<512x96xf32>
    %37 = vector.extract_strided_slice %36 {offsets = [0, 0], sizes = [512, 16], strides = [1, 1]} : vector<512x96xf32> to vector<512x16xf32>
    %38 = vector.shape_cast %37 : vector<512x16xf32> to vector<16x32x16xf32>
    %39 = vector.extract_strided_slice %36 {offsets = [0, 32], sizes = [512, 16], strides = [1, 1]} : vector<512x96xf32> to vector<512x16xf32>
    %40 = vector.shape_cast %39 : vector<512x16xf32> to vector<16x32x16xf32>
    %41 = vector.extract_strided_slice %36 {offsets = [0, 64], sizes = [512, 16], strides = [1, 1]} : vector<512x96xf32> to vector<512x16xf32>
    %42 = vector.shape_cast %41 : vector<512x16xf32> to vector<16x32x16xf32>
    %cst_15 = arith.constant 2.500000e-01 : f32
    %43 = vector.broadcast %cst_15 : f32 to vector<16x32x16xf32>
    %44 = arith.mulf %38, %43 : vector<16x32x16xf32>
    "tpu.trace_start"() <{level = 10 : i32, message = "wnd,wmd->wnm"}> : () -> ()
    %cst_16 = arith.constant dense<0.000000e+00> : vector<16x32x32xf32>
    %45 = tpu.matmul %44, %40, %cst_16 {dimension_numbers = #tpu.dot_dimension_numbers<[2], [2], [1], [1], [0, 0, 0, 1, 1, 1], [0], [0]>} : vector<16x32x16xf32>, vector<16x32x16xf32>, vector<16x32x32xf32> -> vector<16x32x32xf32>
    "tpu.trace_stop"() : () -> ()
    %c0_17 = arith.constant 0 : index
    %c0_18 = arith.constant 0 : index
    %c0_19 = arith.constant 0 : index
    %c0_20 = arith.constant 0 : index
    %46 = vector.load %arg2[%c0_17, %c0_18, %c0_19, %c0_20] : memref<1x2x32x32xf32, #tpu.memory_space<vmem>>, vector<1x1x32x32xf32>
    %47 = vector.shape_cast %46 : vector<1x1x32x32xf32> to vector<1x32x32xf32>
    %48 = vector.broadcast %47 : vector<1x32x32xf32> to vector<16x32x32xf32>
    %49 = arith.addf %45, %48 : vector<16x32x32xf32>
    %cst_21 = arith.constant dense<0xFF800000> : vector<16x32xf32>
    %50 = vector.multi_reduction <maximumf>, %49, %cst_21 [2] : vector<16x32x32xf32> to vector<16x32xf32>
    %51 = vector.shape_cast %50 : vector<16x32xf32> to vector<16x32x1xf32>
    %52 = vector.broadcast %51 : vector<16x32x1xf32> to vector<16x32x32xf32>
    %53 = arith.subf %49, %52 : vector<16x32x32xf32>
    %54 = math.exp %53 : vector<16x32x32xf32>
    %cst_22 = arith.constant dense<0.000000e+00> : vector<16x32xf32>
    %55 = vector.multi_reduction <add>, %54, %cst_22 [2] : vector<16x32x32xf32> to vector<16x32xf32>
    %56 = vector.shape_cast %55 : vector<16x32xf32> to vector<16x32x1xf32>
    %57 = tpu.reciprocal %56 : vector<16x32x1xf32> -> vector<16x32x1xf32>
    %58 = vector.broadcast %57 : vector<16x32x1xf32> to vector<16x32x32xf32>
    %59 = arith.mulf %54, %58 : vector<16x32x32xf32>
    "tpu.trace_start"() <{level = 10 : i32, message = "wnm,wmd->wnd"}> : () -> ()
    %cst_23 = arith.constant dense<0.000000e+00> : vector<16x32x16xf32>
    %60 = tpu.matmul %59, %42, %cst_23 {dimension_numbers = #tpu.dot_dimension_numbers<[2], [1], [1], [2], [0, 0, 0, 1, 1, 2], [0], [0]>} : vector<16x32x32xf32>, vector<16x32x16xf32>, vector<16x32x16xf32> -> vector<16x32x16xf32>
    "tpu.trace_stop"() : () -> ()
    %61 = vector.shape_cast %60 : vector<16x32x16xf32> to vector<512x16xf32>
    %62 = vector.extract_strided_slice %36 {offsets = [0, 16], sizes = [512, 16], strides = [1, 1]} : vector<512x96xf32> to vector<512x16xf32>
    %63 = vector.shape_cast %62 : vector<512x16xf32> to vector<16x32x16xf32>
    %64 = vector.extract_strided_slice %36 {offsets = [0, 48], sizes = [512, 16], strides = [1, 1]} : vector<512x96xf32> to vector<512x16xf32>
    %65 = vector.shape_cast %64 : vector<512x16xf32> to vector<16x32x16xf32>
    %66 = vector.extract_strided_slice %36 {offsets = [0, 80], sizes = [512, 16], strides = [1, 1]} : vector<512x96xf32> to vector<512x16xf32>
    %67 = vector.shape_cast %66 : vector<512x16xf32> to vector<16x32x16xf32>
    %cst_24 = arith.constant 2.500000e-01 : f32
    %68 = vector.broadcast %cst_24 : f32 to vector<16x32x16xf32>
    %69 = arith.mulf %63, %68 : vector<16x32x16xf32>
    "tpu.trace_start"() <{level = 10 : i32, message = "wnd,wmd->wnm"}> : () -> ()
    %cst_25 = arith.constant dense<0.000000e+00> : vector<16x32x32xf32>
    %70 = tpu.matmul %69, %65, %cst_25 {dimension_numbers = #tpu.dot_dimension_numbers<[2], [2], [1], [1], [0, 0, 0, 1, 1, 1], [0], [0]>} : vector<16x32x16xf32>, vector<16x32x16xf32>, vector<16x32x32xf32> -> vector<16x32x32xf32>
    "tpu.trace_stop"() : () -> ()
    %c0_26 = arith.constant 0 : index
    %c1 = arith.constant 1 : index
    %c0_27 = arith.constant 0 : index
    %c0_28 = arith.constant 0 : index
    %71 = vector.load %arg2[%c0_26, %c1, %c0_27, %c0_28] : memref<1x2x32x32xf32, #tpu.memory_space<vmem>>, vector<1x1x32x32xf32>
    %72 = vector.shape_cast %71 : vector<1x1x32x32xf32> to vector<1x32x32xf32>
    %73 = vector.broadcast %72 : vector<1x32x32xf32> to vector<16x32x32xf32>
    %74 = arith.addf %70, %73 : vector<16x32x32xf32>
    %cst_29 = arith.constant dense<0xFF800000> : vector<16x32xf32>
    %75 = vector.multi_reduction <maximumf>, %74, %cst_29 [2] : vector<16x32x32xf32> to vector<16x32xf32>
    %76 = vector.shape_cast %75 : vector<16x32xf32> to vector<16x32x1xf32>
    %77 = vector.broadcast %76 : vector<16x32x1xf32> to vector<16x32x32xf32>
    %78 = arith.subf %74, %77 : vector<16x32x32xf32>
    %79 = math.exp %78 : vector<16x32x32xf32>
    %cst_30 = arith.constant dense<0.000000e+00> : vector<16x32xf32>
    %80 = vector.multi_reduction <add>, %79, %cst_30 [2] : vector<16x32x32xf32> to vector<16x32xf32>
    %81 = vector.shape_cast %80 : vector<16x32xf32> to vector<16x32x1xf32>
    %82 = tpu.reciprocal %81 : vector<16x32x1xf32> -> vector<16x32x1xf32>
    %83 = vector.broadcast %82 : vector<16x32x1xf32> to vector<16x32x32xf32>
    %84 = arith.mulf %79, %83 : vector<16x32x32xf32>
    "tpu.trace_start"() <{level = 10 : i32, message = "wnm,wmd->wnd"}> : () -> ()
    %cst_31 = arith.constant dense<0.000000e+00> : vector<16x32x16xf32>
    %85 = tpu.matmul %84, %67, %cst_31 {dimension_numbers = #tpu.dot_dimension_numbers<[2], [1], [1], [2], [0, 0, 0, 1, 1, 2], [0], [0]>} : vector<16x32x32xf32>, vector<16x32x16xf32>, vector<16x32x16xf32> -> vector<16x32x16xf32>
    "tpu.trace_stop"() : () -> ()
    %86 = vector.shape_cast %85 : vector<16x32x16xf32> to vector<512x16xf32>
    %87 = tpu.concatenate %61, %86 in 1 : vector<512x16xf32>, vector<512x16xf32> -> vector<512x32xf32>
    %c0_32 = arith.constant 0 : index
    %c0_33 = arith.constant 0 : index
    %88 = vector.load %arg7[%c0_32, %c0_33] : memref<32x32xf32, #tpu.memory_space<vmem>>, vector<32x32xf32>
    %cst_34 = arith.constant dense<0.000000e+00> : vector<512x32xf32>
    %89 = tpu.matmul %87, %88, %cst_34 {dimension_numbers = #tpu.dot_dimension_numbers<[1], [0], [0], [1], [0, 0, 1, 1], [], []>} : vector<512x32xf32>, vector<32x32xf32>, vector<512x32xf32> -> vector<512x32xf32>
    %c0_35 = arith.constant 0 : index
    %c0_36 = arith.constant 0 : index
    %90 = vector.load %arg8[%c0_35, %c0_36] : memref<1x32xf32, #tpu.memory_space<vmem>>, vector<1x32xf32>
    %91 = vector.shape_cast %90 : vector<1x32xf32> to vector<32xf32>
    %92 = vector.shape_cast %91 : vector<32xf32> to vector<1x32xf32>
    %93 = vector.broadcast %92 : vector<1x32xf32> to vector<512x32xf32>
    %94 = arith.addf %89, %93 : vector<512x32xf32>
    %95 = vector.shape_cast %94 : vector<512x32xf32> to vector<16x32x32xf32>
    %c0_37 = arith.constant 0 : index
    %c0_38 = arith.constant 0 : index
    %c0_39 = arith.constant 0 : index
    %96 = vector.load %arg9[%c0_37, %c0_38, %c0_39] : memref<16x32x32xf32, #tpu.memory_space<vmem>>, vector<16x32x32xf32>
    tpu.vector_store %arg9[%c0_37, %c0_38, %c0_39], %95 {strides = array<i32>} : memref<16x32x32xf32, #tpu.memory_space<vmem>>, vector<16x32x32xf32>,
    return
  }
  func.func @transform_0(%arg0: i32) -> (i32, i32, i32) {
    %c0_i32 = arith.constant 0 : i32
    %c0_i32_0 = arith.constant 0 : i32
    %c0_i32_1 = arith.constant 0 : i32
    return %arg0, %c0_i32, %c0_i32_0 : i32, i32, i32
  }
  func.func @transform_1(%arg0: i32) -> (i32, i32, i32, i32) {
    %c0_i32 = arith.constant 0 : i32
    %c0_i32_0 = arith.constant 0 : i32
    %c0_i32_1 = arith.constant 0 : i32
    %c0_i32_2 = arith.constant 0 : i32
    %c0_i32_3 = arith.constant 0 : i32
    return %c0_i32, %c0_i32_0, %c0_i32_1, %c0_i32_2 : i32, i32, i32, i32
  }
  func.func @transform_2(%arg0: i32) -> (i32, i32) {
    %c0_i32 = arith.constant 0 : i32
    %c0_i32_0 = arith.constant 0 : i32
    %c0_i32_1 = arith.constant 0 : i32
    return %c0_i32, %c0_i32_0 : i32, i32
  }
  func.func @transform_3(%arg0: i32) -> (i32, i32) {
    %c0_i32 = arith.constant 0 : i32
    %c0_i32_0 = arith.constant 0 : i32
    %c0_i32_1 = arith.constant 0 : i32
    return %c0_i32, %c0_i32_0 : i32, i32
  }
  func.func @transform_4(%arg0: i32) -> (i32, i32) {
    %c0_i32 = arith.constant 0 : i32
    %c0_i32_0 = arith.constant 0 : i32
    %c0_i32_1 = arith.constant 0 : i32
    return %c0_i32, %c0_i32_0 : i32, i32
  }
  func.func @transform_5(%arg0: i32) -> (i32, i32) {
    %c0_i32 = arith.constant 0 : i32
    %c0_i32_0 = arith.constant 0 : i32
    %c0_i32_1 = arith.constant 0 : i32
    return %c0_i32, %c0_i32_0 : i32, i32
  }
  func.func @transform_6(%arg0: i32) -> (i32, i32) {
    %c0_i32 = arith.constant 0 : i32
    %c0_i32_0 = arith.constant 0 : i32
    %c0_i32_1 = arith.constant 0 : i32
    return %c0_i32, %c0_i32_0 : i32, i32
  }
  func.func @transform_7(%arg0: i32) -> (i32, i32) {
    %c0_i32 = arith.constant 0 : i32
    %c0_i32_0 = arith.constant 0 : i32
    %c0_i32_1 = arith.constant 0 : i32
    return %c0_i32, %c0_i32_0 : i32, i32
  }
  func.func @transform_8(%arg0: i32) -> (i32, i32, i32) {
    %c0_i32 = arith.constant 0 : i32
    %c0_i32_0 = arith.constant 0 : i32
    %c0_i32_1 = arith.constant 0 : i32
    return %arg0, %c0_i32, %c0_i32_0 : i32, i32, i32
  }
}

</mosaic_0001>

<bundles_post_ra>
// kernel: tpu_custom_call.1
= control target key start
LH: loop header
LB: loop body
LE: loop exit
PB: predicated region body
PF: predicated region fallthrough
CT: control target
= control target key end

     0   :  { %13 = vsyncpa [#allocation3], 0  ;;  %s21020_s0 = inlined_call_operand.hbm [shape: f32[16,32,32], index: 0, kind: input, shape index: {}]   ;;  %s21021_s1 = inlined_call_operand.hbm [shape: f32[1,2,32,32], index: 1, kind: input, shape index: {}]   ;;  %s21022_s2 = inlined_call_operand.vmem [shape: f32[1,32], index: 2, kind: input, shape index: {}]   ;;  %s21023_s3 = inlined_call_operand.vmem [shape: f32[1,32], index: 3, kind: input, shape index: {}]   ;;  %s21024_s4 = inlined_call_operand.hbm [shape: f32[32,96], index: 4, kind: input, shape index: {}]   ;;  %s21025_s5 = inlined_call_operand.vmem [shape: f32[1,96], index: 5, kind: input, shape index: {}]   ;;  %s21026_s6 = inlined_call_operand.hbm [shape: f32[32,32], index: 6, kind: input, shape index: {}]   ;;  %s21027_s7 = inlined_call_operand.vmem [shape: f32[1,32], index: 7, kind: input, shape index: {}]   ;;  %s21028_s8 = inlined_call_operand.hbm [shape: f32[16,32,32], index: 8, kind: output, shape index: {}]  }
   0x1   :  { %14 = vsyncpa [#allocation6], 0 }
   0x2   :  { %15 = vsyncpa [#allocation9], 0 }
   0x3   :  { %16 = vsyncpa [#allocation4], 0  ;;  %s15762_s27 = smov [#allocation5]   ;;  %s15763_s29 = smov [#allocation2]  }
   0x4   :  { %s34_s28 = sshll.u32 %s15762_s27, 4  ;;  %s22_s30 = sshll.u32 %s15763_s29, 4  ;;  %s35_s28 = int_to_ptr.vmem [resolvable:$true] %s34_s28  ;;  %s15820_s30 = int_to_ptr.vmem [resolvable:$true] %s22_s30 }
   0x5   :  { %s15644_s11 = scalar_lea.hbm %s21021_s1, 1024 }
   0x6   :  { %p15645_p0 = scmp.ne.s32.totalorder %s21021_s1, %s15644_s11  ;;  %p15648_p1 = scmp.lt.u32.totalorder %s15644_s11, %s21021_s1 }
   0x8   :  { %p15650_p2 = pnand %p15648_p1, %p15645_p0 }
   0xa   :  { %15653 = shalt.err (!%p15650_p2)
}
   0xb   :  { %s15654_s16 = scalar_lea.vmem %s35_s28, 1024  ;;  %p15659_p4 = scmp.lt.s32.totalorder %s35_s28, %s35_s28 }
   0xc   :  { %p15655_p3 = scmp.ne.s32.totalorder %s35_s28, %s15654_s16  ;;  %p15660_p5 = scmp.lt.s32.totalorder %s15654_s16, %s15654_s16 }
   0xe   :  { %p15661_p6 = por %p15660_p5, %p15659_p4 }
  0x10   :  { %p15662_p7 = pnand %p15661_p6, %p15655_p3 }
  0x12   :  { %15665 = shalt.err (!%p15662_p7)
}
  0x13   :  { %s15764_s17 = smov 128   ;;  %s15765_s18 = smov 8  }
  0x14   :  { %40 = dma.hbm_to_vmem [thread:$0]  %s21021_s1, 1024, %s35_s28, [#allocation6], %s15764_s17, %s15764_s17, %s15765_s18  }
  0x15   :  { %s15666_s23 = scalar_lea.hbm %s21020_s0, 8192 }
  0x16   :  { %p15667_p8 = scmp.ne.s32.totalorder %s21020_s0, %s15666_s23  ;;  %p15670_p9 = scmp.lt.u32.totalorder %s15666_s23, %s21020_s0 }
  0x18   :  { %p15672_p10 = pnand %p15670_p9, %p15667_p8 }
  0x1a   :  { %15675 = shalt.err (!%p15672_p10)
}
  0x1b   :  { %s15676_s29 = scalar_lea.vmem %s15820_s30, 8192  ;;  %p15681_p12 = scmp.lt.s32.totalorder %s15820_s30, %s15820_s30 }
  0x1c   :  { %p15677_p11 = scmp.ne.s32.totalorder %s15820_s30, %s15676_s29  ;;  %p15682_p13 = scmp.lt.s32.totalorder %s15676_s29, %s15676_s29 }
  0x1e   :  { %p15683_p0 = por %p15682_p13, %p15681_p12 }
  0x20   :  { %p15684_p1 = pnand %p15683_p0, %p15677_p11 }
  0x22   :  { %15687 = shalt.err (!%p15684_p1)
}
  0x23   :  { %28 = dma.hbm_to_vmem [thread:$0]  %s21020_s0, 8192, %s15820_s30, [#allocation3], %s15764_s17, %s15764_s17, %s15765_s18  }
  0x24   :  { %s15766_s9 = smov [#allocation7]   ;;  %s15767_s11 = smov [#allocation8]  }
  0x25   :  { %s50_s10 = sshll.u32 %s15766_s9, 4  ;;  %s64_s12 = sshll.u32 %s15767_s11, 4  ;;  %s51_s10 = int_to_ptr.vmem [resolvable:$true] %s50_s10  ;;  %s15857_s12 = int_to_ptr.vmem [resolvable:$true] %s64_s12 }
  0x26   :  { %s15688_s15 = scalar_lea.hbm %s21024_s4, 512 }
  0x27   :  { %p15689_p2 = scmp.ne.s32.totalorder %s21024_s4, %s15688_s15  ;;  %p15692_p3 = scmp.lt.u32.totalorder %s15688_s15, %s21024_s4 }
  0x29   :  { %p15694_p4 = pnand %p15692_p3, %p15689_p2 }
  0x2b   :  { %15697 = shalt.err (!%p15694_p4)
}
  0x2c   :  { %s15698_s0 = scalar_lea.vmem %s51_s10, 512  ;;  %p15703_p6 = scmp.lt.s32.totalorder %s51_s10, %s51_s10 }
  0x2d   :  { %p15699_p5 = scmp.ne.s32.totalorder %s51_s10, %s15698_s0  ;;  %p15704_p7 = scmp.lt.s32.totalorder %s15698_s0, %s15698_s0 }
  0x2f   :  { %p15705_p8 = por %p15704_p7, %p15703_p6 }
  0x31   :  { %p15706_p9 = pnand %p15705_p8, %p15699_p5 }
  0x33   :  { %15709 = shalt.err (!%p15706_p9)
}
  0x34   :  { %56 = dma.hbm_to_vmem [thread:$0]  %s21024_s4, 512, %s51_s10, [#allocation6], %s15764_s17, %s15764_s17, %s15765_s18  }
  0x35   :  { %s15710_s25 = scalar_lea.hbm %s21026_s6, 512 }
  0x36   :  { %p15711_p10 = scmp.ne.s32.totalorder %s21026_s6, %s15710_s25  ;;  %p15714_p11 = scmp.lt.u32.totalorder %s15710_s25, %s21026_s6 }
  0x38   :  { %p15716_p12 = pnand %p15714_p11, %p15711_p10 }
  0x3a   :  { %15719 = shalt.err (!%p15716_p12)
}
  0x3b   :  { %s15720_s28 = scalar_lea.vmem %s15857_s12, 512  ;;  %p15725_p0 = scmp.lt.s32.totalorder %s15857_s12, %s15857_s12 }
  0x3c   :  { %p15721_p13 = scmp.ne.s32.totalorder %s15857_s12, %s15720_s28  ;;  %p15726_p1 = scmp.lt.s32.totalorder %s15720_s28, %s15720_s28 }
  0x3e   :  { %p15727_p2 = por %p15726_p1, %p15725_p0 }
  0x40   :  { %p15728_p3 = pnand %p15727_p2, %p15721_p13 }
  0x42   :  { %15731 = shalt.err (!%p15728_p3)
}
  0x43   :  { %70 = dma.hbm_to_vmem [thread:$0]  %s21026_s6, 512, %s15857_s12, [#allocation9], %s15764_s17, %s15764_s17, %s15765_s18  }
  0x44   :  { %15754 = dma.done.wait [#allocation3], 8192  }
  0x45   :  { %15755 = vsyncadd [#allocation3], 4294959104 }
  0x46   :  { %15756 = dma.done.wait [#allocation6], 1536  }
  0x47   :  { %15757 = vsyncadd [#allocation6], 4294965760 }
  0x48   :  { %15758 = dma.done.wait [#allocation9], 512  }
  0x49   :  { %15759 = vsyncadd [#allocation9], 4294966784  ;;  %vm149_vm0 = vcmask 261120   ;;  %v15894_v0 = vld [vmem:[#allocation2 + $0x10] sm:$0xff]  ;;  %v15896_v1 = vld [vmem:[#allocation2] sm:$0xff]  ;;  %vm1793_vm1 = vcmask 130048  }
  0x4a   :  { %v15898_v2 = vld [vmem:[#allocation2 + $0x18] sm:$0xff]  ;;  %v156_v3 = vsel %vm149_vm0, %v15894_v0, 0.0  ;;  %v150_v4 = vsel %vm149_vm0, %v15896_v1, 0.0  ;;  %v15904_v5 = vld [vmem:[#allocation2 + $0x8] sm:$0xff]  ;;  %v15912_v9 = vld [vmem:[#allocation2 + $0x20] sm:$0xff]  ;;  %s15768_s19 = smov 96  }
  0x4b   :  { %157 = vadd.xlane.f32.xlu1 %v156_v3  ;;  %151 = vadd.xlane.f32.xlu0 %v150_v4  ;;  %v159_v6 = vsel %vm149_vm0, %v15898_v2, 0.0  ;;  %v153_v7 = vsel %vm149_vm0, %v15904_v5, 0.0  ;;  %v15910_v8 = vld [vmem:[#allocation2 + $0x28] sm:$0xff]  ;;  %v162_v11 = vsel %vm149_vm0, %v15912_v9, 0.0  ;;  %v15918_v12 = vld [vmem:[#allocation2 + $0x38] sm:$0xff]  ;;  %v15920_v13 = vld [vmem:[#allocation2 + $0x30] sm:$0xff] }
  0x4c   :  { %v165_v10 = vsel %vm149_vm0, %v15910_v8, 0.0  ;;  %v171_v14 = vsel %vm149_vm0, %v15918_v12, 0.0  ;;  %v168_v15 = vsel %vm149_vm0, %v15920_v13, 0.0  ;;  %v15926_v16 = vld [vmem:[#allocation2 + $0x48] sm:$0xff]  ;;  %v15928_v17 = vld [vmem:[#allocation2 + $0x40] sm:$0xff]  ;;  %v15934_v20 = vld [vmem:[#allocation2 + $0x58] sm:$0xff] }
  0x4d   :  { %v177_v18 = vsel %vm149_vm0, %v15926_v16, 0.0  ;;  %v174_v19 = vsel %vm149_vm0, %v15928_v17, 0.0  ;;  %v15936_v21 = vld [vmem:[#allocation2 + $0x50] sm:$0xff]  ;;  %v183_v22 = vsel %vm149_vm0, %v15934_v20, 0.0  ;;  %v15942_v24 = vld [vmem:[#allocation2 + $0x68] sm:$0xff]  ;;  %v15944_v25 = vld [vmem:[#allocation2 + $0x60] sm:$0xff] }
  0x4e   :  { %v180_v23 = vsel %vm149_vm0, %v15936_v21, 0.0  ;;  %v189_v26 = vsel %vm149_vm0, %v15942_v24, 0.0  ;;  %v186_v27 = vsel %vm149_vm0, %v15944_v25, 0.0  ;;  %v15950_v28 = vld [vmem:[#allocation2 + $0x78] sm:$0xff]  ;;  %v15952_v29 = vld [vmem:[#allocation2 + $0x70] sm:$0xff]  ;;  %v15958_v32 = vld [vmem:[#allocation2 + $0x88] sm:$0xff] }
  0x4f   :  { %160 = vadd.xlane.f32.xlu1 %v159_v6  ;;  %154 = vadd.xlane.f32.xlu0 %v153_v7  ;;  %v195_v30 = vsel %vm149_vm0, %v15950_v28, 0.0  ;;  %v192_v31 = vsel %vm149_vm0, %v15952_v29, 0.0  ;;  %v15960_v33 = vld [vmem:[#allocation2 + $0x80] sm:$0xff]  ;;  %v201_v34 = vsel %vm149_vm0, %v15958_v32, 0.0  ;;  %v15966_v36 = vld [vmem:[#allocation2 + $0x98] sm:$0xff]  ;;  %v15968_v37 = vld [vmem:[#allocation2 + $0x90] sm:$0xff] }
  0x50   :  { %v198_v35 = vsel %vm149_vm0, %v15960_v33, 0.0  ;;  %v207_v38 = vsel %vm149_vm0, %v15966_v36, 0.0  ;;  %v204_v39 = vsel %vm149_vm0, %v15968_v37, 0.0  ;;  %v15974_v40 = vld [vmem:[#allocation2 + $0xa0] sm:$0xff]  ;;  %v15976_v41 = vld [vmem:[#allocation2 + $0xf0] sm:$0xff]  ;;  %v15982_v44 = vld [vmem:[#allocation2 + $0xa8] sm:$0xff] }
  0x51   :  { %v210_v42 = vsel %vm149_vm0, %v15974_v40, 0.0  ;;  %v240_v43 = vsel %vm149_vm0, %v15976_v41, 0.0  ;;  %v15984_v45 = vld [vmem:[#allocation2 + $0x110] sm:$0xff]  ;;  %v213_v46 = vsel %vm149_vm0, %v15982_v44, 0.0  ;;  %v15998_v52 = vld [vmem:[#allocation2 + $0xb8] sm:$0xff]  ;;  %v16006_v56 = vld [vmem:[#allocation2 + $0xc0] sm:$0xff] }
  0x52   :  { %v252_v47 = vsel %vm149_vm0, %v15984_v45, 0.0  ;;  %v15990_v48 = vld [vmem:[#allocation2 + $0xb0] sm:$0xff]  ;;  %v219_v54 = vsel %vm149_vm0, %v15998_v52, 0.0  ;;  %v222_v58 = vsel %vm149_vm0, %v16006_v56, 0.0  ;;  %v16014_v60 = vld [vmem:[#allocation2 + $0xc8] sm:$0xff]  ;;  %s15769_s20 = smov 64   ;;  %vm17058_vm2 = vmpackc.low %vm1793_vm1, %vm1793_vm1 }
  0x53   :  { %166 = vadd.xlane.f32.xlu1 %v165_v10  ;;  %163 = vadd.xlane.f32.xlu0 %v162_v11  ;;  %v15992_v49 = vld [vmem:[#allocation2 + $0x130] sm:$0xff]  ;;  %v216_v50 = vsel %vm149_vm0, %v15990_v48, 0.0  ;;  %v225_v62 = vsel %vm149_vm0, %v16014_v60, 0.0  ;;  %v16030_v10 = vld [vmem:[#allocation2 + $0xd8] sm:$0xff]  ;;  %s15771_s30 = smov 112   ;;  %s15772_s22 = smov 48  }
  0x54   :  { %v264_v51 = vsel %vm149_vm0, %v15992_v49, 0.0  ;;  %v16000_v53 = vld [vmem:[#allocation2 + $0x150] sm:$0xff]  ;;  %v231_v11 = vsel %vm149_vm0, %v16030_v10, 0.0  ;;  %s15773_s23 = smov 16  }
  0x55   :  { %v276_v55 = vsel %vm149_vm0, %v16000_v53, 0.0  ;;  %v16008_v57 = vld [vmem:[#allocation2 + $0x170] sm:$0xff] }
  0x56   :  { %v288_v59 = vsel %vm149_vm0, %v16008_v57, 0.0  ;;  %v16016_v61 = vld [vmem:[#allocation2 + $0x190] sm:$0xff] }
  0x57   :  { %172 = vadd.xlane.f32.xlu1 %v171_v14  ;;  %169 = vadd.xlane.f32.xlu0 %v168_v15  ;;  %21299 = vst [vmem:[#allocation15_spill] sm:$0xff] %v16016_v61  ;;  %v300_v63 = vsel %vm149_vm0, %v16016_v61, 0.0  ;;  %v16022_v3 = vld [vmem:[#allocation2 + $0xd0] sm:$0xff]  ;;  %v16034_v14 = vld [vmem:[#allocation2 + $0xe0] sm:$0xff] }
  0x58   :  { %v16024_v4 = vld [vmem:[#allocation2 + $0x1b0] sm:$0xff]  ;;  %v228_v6 = vsel %vm149_vm0, %v16022_v3, 0.0  ;;  %v234_v15 = vsel %vm149_vm0, %v16034_v14, 0.0 }
  0x59   :  { %21300 = vst [vmem:[#allocation16_spill] sm:$0xff] %v16024_v4  ;;  %v312_v7 = vsel %vm149_vm0, %v16024_v4, 0.0 }
  0x5b   :  { %178 = vadd.xlane.f32.xlu1 %v177_v18  ;;  %175 = vadd.xlane.f32.xlu0 %v174_v19  ;;  %v16038_v18 = vld [vmem:[#allocation2 + $0xe8] sm:$0xff] }
  0x5c   :  { %v237_v19 = vsel %vm149_vm0, %v16038_v18, 0.0 }
  0x5f   :  { %184 = vadd.xlane.f32.xlu1 %v183_v22  ;;  %181 = vadd.xlane.f32.xlu0 %v180_v23  ;;  %v16042_v22 = vld [vmem:[#allocation2 + $0xf8] sm:$0xff] }
  0x60   :  { %v243_v23 = vsel %vm149_vm0, %v16042_v22, 0.0 }
  0x63   :  { %190 = vadd.xlane.f32.xlu1 %v189_v26  ;;  %187 = vadd.xlane.f32.xlu0 %v186_v27  ;;  %v16046_v26 = vld [vmem:[#allocation2 + $0x100] sm:$0xff] }
  0x64   :  { %v246_v27 = vsel %vm149_vm0, %v16046_v26, 0.0 }
  0x67   :  { %196 = vadd.xlane.f32.xlu1 %v195_v30  ;;  %193 = vadd.xlane.f32.xlu0 %v192_v31  ;;  %v16050_v30 = vld [vmem:[#allocation2 + $0x108] sm:$0xff] }
  0x68   :  { %v249_v31 = vsel %vm149_vm0, %v16050_v30, 0.0 }
  0x6b   :  { %202 = vadd.xlane.f32.xlu1 %v201_v34  ;;  %199 = vadd.xlane.f32.xlu0 %v198_v35  ;;  %v16054_v34 = vld [vmem:[#allocation2 + $0x118] sm:$0xff] }
  0x6c   :  { %v255_v35 = vsel %vm149_vm0, %v16054_v34, 0.0 }
  0x6f   :  { %208 = vadd.xlane.f32.xlu1 %v207_v38  ;;  %205 = vadd.xlane.f32.xlu0 %v204_v39  ;;  %v16058_v38 = vld [vmem:[#allocation2 + $0x120] sm:$0xff] }
  0x70   :  { %v258_v39 = vsel %vm149_vm0, %v16058_v38, 0.0 }
  0x73   :  { %211 = vadd.xlane.f32.xlu1 %v210_v42  ;;  %241 = vadd.xlane.f32.xlu0 %v240_v43  ;;  %v16062_v42 = vld [vmem:[#allocation2 + $0x128] sm:$0xff] }
  0x74   :  { %v261_v43 = vsel %vm149_vm0, %v16062_v42, 0.0 }
  0x77   :  { %214 = vadd.xlane.f32.xlu1 %v213_v46  ;;  %253 = vadd.xlane.f32.xlu0 %v252_v47  ;;  %v16066_v46 = vld [vmem:[#allocation2 + $0x138] sm:$0xff] }
  0x78   :  { %v267_v47 = vsel %vm149_vm0, %v16066_v46, 0.0 }
  0x7b   :  { %217 = vadd.xlane.f32.xlu1 %v216_v50  ;;  %265 = vadd.xlane.f32.xlu0 %v264_v51  ;;  %v16070_v50 = vld [vmem:[#allocation2 + $0x140] sm:$0xff] }
  0x7c   :  { %v270_v51 = vsel %vm149_vm0, %v16070_v50, 0.0 }
  0x7f   :  { %220 = vadd.xlane.f32.xlu1 %v219_v54  ;;  %277 = vadd.xlane.f32.xlu0 %v276_v55  ;;  %v16074_v54 = vld [vmem:[#allocation2 + $0x148] sm:$0xff] }
  0x80   :  { %v273_v55 = vsel %vm149_vm0, %v16074_v54, 0.0 }
  0x83   :  { %223 = vadd.xlane.f32.xlu1 %v222_v58  ;;  %289 = vadd.xlane.f32.xlu0 %v288_v59  ;;  %v16078_v58 = vld [vmem:[#allocation2 + $0x158] sm:$0xff] }
  0x84   :  { %v279_v59 = vsel %vm149_vm0, %v16078_v58, 0.0 }
  0x87   :  { %226 = vadd.xlane.f32.xlu1 %v225_v62  ;;  %301 = vadd.xlane.f32.xlu0 %v300_v63  ;;  %v16082_v62 = vld [vmem:[#allocation2 + $0x160] sm:$0xff] }
  0x88   :  { %v282_v63 = vsel %vm149_vm0, %v16082_v62, 0.0 }
  0x8b   :  { %229 = vadd.xlane.f32.xlu1 %v228_v6  ;;  %313 = vadd.xlane.f32.xlu0 %v312_v7  ;;  %v16086_v6 = vld [vmem:[#allocation2 + $0x168] sm:$0xff] }
  0x8c   :  { %v285_v7 = vsel %vm149_vm0, %v16086_v6, 0.0 }
  0x8f   :  { %232 = vadd.xlane.f32.xlu1 %v231_v11  ;;  %v16090_v11 = vld [vmem:[#allocation2 + $0x178] sm:$0xff] }
  0x93   :  { %235 = vadd.xlane.f32.xlu1 %v234_v15  ;;  %v291_v15 = vsel %vm149_vm0, %v16090_v11, 0.0 }
  0x97   :  { %238 = vadd.xlane.f32.xlu1 %v237_v19  ;;  %v16094_v19 = vld [vmem:[#allocation2 + $0x180] sm:$0xff] }
  0x98   :  { %21301 = vst [vmem:[#allocation17_spill] sm:$0xff] %v16094_v19 }
  0x9b   :  { %244 = vadd.xlane.f32.xlu1 %v243_v23  ;;  %v294_v23 = vsel %vm149_vm0, %v16094_v19, 0.0 }
  0x9f   :  { %247 = vadd.xlane.f32.xlu1 %v246_v27  ;;  %v16098_v27 = vld [vmem:[#allocation2 + $0x188] sm:$0xff] }
  0xa3   :  { %250 = vadd.xlane.f32.xlu1 %v249_v31  ;;  %v297_v31 = vsel %vm149_vm0, %v16098_v27, 0.0 }
  0xa7   :  { %256 = vadd.xlane.f32.xlu1 %v255_v35  ;;  %v16102_v35 = vld [vmem:[#allocation2 + $0x198] sm:$0xff] }
  0xab   :  { %259 = vadd.xlane.f32.xlu1 %v258_v39  ;;  %v303_v39 = vsel %vm149_vm0, %v16102_v35, 0.0 }
  0xaf   :  { %262 = vadd.xlane.f32.xlu1 %v261_v43  ;;  %v16106_v43 = vld [vmem:[#allocation2 + $0x1a0] sm:$0xff] }
  0xb0   :  { %21302 = vst [vmem:[#allocation18_spill] sm:$0xff] %v16106_v43 }
  0xb3   :  { %268 = vadd.xlane.f32.xlu1 %v267_v47 }
  0xb7   :  { %271 = vadd.xlane.f32.xlu1 %v270_v51 }
  0xbb   :  { %274 = vadd.xlane.f32.xlu1 %v273_v55  ;;  %v306_v55 = vsel %vm149_vm0, %v16106_v43, 0.0 }
  0xbf   :  { %280 = vadd.xlane.f32.xlu1 %v279_v59 }
  0xc3   :  { %283 = vadd.xlane.f32.xlu1 %v282_v63 }
  0xc7   :  { %286 = vadd.xlane.f32.xlu1 %v285_v7  ;;  %v16110_v7 = vld [vmem:[#allocation2 + $0x1a8] sm:$0xff] }
  0xc8   :  { %v309_v4 = vsel %vm149_vm0, %v16110_v7, 0.0 }
  0xcb   :  { %292 = vadd.xlane.f32.xlu1 %v291_v15 }
  0xcf   :  { %295 = vadd.xlane.f32.xlu1 %v294_v23 }
  0xd3   :  { %298 = vadd.xlane.f32.xlu1 %v297_v31 }
  0xd7   :  { %304 = vadd.xlane.f32.xlu1 %v303_v39 }
  0xd8   :  { %v158_v47 = vpop.xlane.xlu1 %157  ;;  %v152_v51 = vpop.xlane.xlu0 %151 }
  0xd9   :  { %v345_v59 = vmul.f32 0.03125, %v158_v47  ;;  %v343_v63 = vmul.f32 0.03125, %v152_v51  ;;  %v16122_v51 = vld [vmem:[#allocation2 + $0x1b8] sm:$0xff] }
  0xdb   :  { %v16113_v15 = vsub.f32 %v15896_v1, %v343_v63  ;;  %307 = vadd.xlane.f32.xlu1 %v306_v55  ;;  %v16118_v39 = vsub.f32 %v15894_v0, %v345_v59  ;;  %v315_v63 = vsel %vm149_vm0, %v16122_v51, 0.0 }
  0xdc   :  { %v161_v23 = vpop.xlane.xlu1 %160  ;;  %v155_v31 = vpop.xlane.xlu0 %154 }
  0xdd   :  { %21303 = vst [vmem:[#allocation19_spill] sm:$0xff] %v16113_v15  ;;  %21304 = vst [vmem:[#allocation20_spill] sm:$0xff] %v16118_v39  ;;  %v346_v61 = vmul.f32 0.03125, %v161_v23  ;;  %v344_v19 = vmul.f32 0.03125, %v155_v31  ;;  %v471_v47 = vmul.f32 %v16113_v15, %v16113_v15  ;;  %v16135_v31 = vld [vmem:[#allocation2 + $0x1c0] sm:$0xff] }
  0xde   :  { %21307 = vst [vmem:[#allocation23_spill] sm:$0xff] %v16135_v31 }
  0xdf   :  { %v16125_v43 = vsub.f32 %v15904_v5, %v344_v19  ;;  %310 = vadd.xlane.f32.xlu1 %v309_v4  ;;  %v535_v1 = vsel %vm149_vm0, %v471_v47, 0.0  ;;  %v16131_v59 = vsub.f32 %v15898_v2, %v346_v61  ;;  %v473_v5 = vmul.f32 %v16118_v39, %v16118_v39 }
  0xe0   :  { %v167_v55 = vpop.xlane.xlu1 %166  ;;  %536 = vadd.xlane.f32.xlu0 %v535_v1  ;;  %v164_v0 = vpop.xlane.xlu0 %163  ;;  %v318_v1 = vsel %vm149_vm0, %v16135_v31, 0.0 }
  0xe1   :  { %21305 = vst [vmem:[#allocation21_spill] sm:$0xff] %v16125_v43  ;;  %21306 = vst [vmem:[#allocation22_spill] sm:$0xff] %v16131_v59  ;;  %v472_v23 = vmul.f32 %v16125_v43, %v16125_v43  ;;  %v347_v4 = vmul.f32 0.03125, %v164_v0  ;;  %v348_v15 = vmul.f32 0.03125, %v167_v55  ;;  %v541_v2 = vsel %vm149_vm0, %v473_v5, 0.0  ;;  %v16146_v43 = vld [vmem:[#allocation2 + $0x1c8] sm:$0xff] }
  0xe2   :  { %21309 = vst [vmem:[#allocation25_spill] sm:$0xff] %v16146_v43  ;;  %v474_v39 = vmul.f32 %v16131_v59, %v16131_v59  ;;  %v16156_v5 = vld [vmem:[#allocation2 + $0x1d8] sm:$0xff] }
  0xe3   :  { %316 = vadd.xlane.f32.xlu1 %v315_v63  ;;  %v538_v19 = vsel %vm149_vm0, %v472_v23, 0.0  ;;  %v16144_v61 = vsub.f32 %v15912_v9, %v347_v4  ;;  %v321_v23 = vsel %vm149_vm0, %v16146_v43, 0.0 }
  0xe4   :  { %v173_v47 = vpop.xlane.xlu1 %172  ;;  %539 = vadd.xlane.f32.xlu0 %v538_v19  ;;  %v170_v0 = vpop.xlane.xlu0 %169  ;;  %v16153_v19 = vsub.f32 %v15910_v8, %v348_v15  ;;  %v544_v55 = vsel %vm149_vm0, %v474_v39, 0.0  ;;  %v145_v15 = vld [vmem:[#allocation2 + $0x1e0] sm:$0xff] }
  0xe5   :  { %21308 = vst [vmem:[#allocation24_spill] sm:$0xff] %v16144_v61  ;;  %v475_v9 = vmul.f32 %v16144_v61, %v16144_v61  ;;  %v349_v4 = vmul.f32 0.03125, %v170_v0  ;;  %v330_v0 = vsel %vm149_vm0, %v145_v15, 0.0 }
  0xe6   :  { %21310 = vst [vmem:[#allocation26_spill] sm:$0xff] %v16153_v19  ;;  %v476_v39 = vmul.f32 %v16153_v19, %v16153_v19 }
  0xe7   :  { %319 = vadd.xlane.f32.xlu1 %v318_v1  ;;  %v327_v1 = vsel %vm149_vm0, %v16156_v5, 0.0  ;;  %v547_v31 = vsel %vm149_vm0, %v475_v9, 0.0  ;;  %v16164_v8 = vsub.f32 %v15920_v13, %v349_v4 }
  0xe8   :  { %v179_v63 = vpop.xlane.xlu1 %178  ;;  %542 = vadd.xlane.f32.xlu0 %v541_v2  ;;  %v350_v2 = vmul.f32 0.03125, %v173_v47  ;;  %v176_v43 = vpop.xlane.xlu0 %175  ;;  %v550_v47 = vsel %vm149_vm0, %v476_v39, 0.0 }
  0xe9   :  { %21311 = vst [vmem:[#allocation27_spill] sm:$0xff] %v16164_v8  ;;  %v477_v13 = vmul.f32 %v16164_v8, %v16164_v8  ;;  %v351_v9 = vmul.f32 0.03125, %v176_v43 }
  0xeb   :  { %322 = vadd.xlane.f32.xlu1 %v321_v23  ;;  %v16170_v23 = vsub.f32 %v15918_v12, %v350_v2  ;;  %v553_v15 = vsel %vm149_vm0, %v477_v13, 0.0  ;;  %v16181_v12 = vsub.f32 %v15928_v17, %v351_v9  ;;  %v147_v2 = vld [vmem:[#allocation2 + $0x1f0] sm:$0xff] }
  0xec   :  { %v185_v59 = vpop.xlane.xlu1 %184  ;;  %545 = vadd.xlane.f32.xlu0 %v544_v55  ;;  %v16173_v55 = vld [vmem:[#allocation2 + $0x1e8] sm:$0xff]  ;;  %v182_v19 = vpop.xlane.xlu0 %181  ;;  %v336_v43 = vsel %vm149_vm0, %v147_v2, 0.0 }
  0xed   :  { %21312 = vst [vmem:[#allocation28_spill] sm:$0xff] %v16170_v23  ;;  %21313 = vst [vmem:[#allocation29_spill] sm:$0xff] %v16173_v55  ;;  %v478_v39 = vmul.f32 %v16170_v23, %v16170_v23  ;;  %v479_v17 = vmul.f32 %v16181_v12, %v16181_v12  ;;  %v353_v13 = vmul.f32 0.03125, %v182_v19  ;;  %v1126_v2 = vld [vmem:[#allocation7 + $0x8] sm:$0xff]  ;;  %v354_v23 = vmul.f32 0.03125, %v185_v59 }
  0xee   :  { %21314 = vst [vmem:[#allocation30_spill] sm:$0xff] %v16181_v12 }
  0xef   :  { %328 = vadd.xlane.f32.xlu1 %v327_v1  ;;  %v333_v1 = vsel %vm149_vm0, %v16173_v55, 0.0  ;;  %v1128_v55 = vld [vmem:[#allocation7 + $0x18] sm:$0xff] }
  0xf0   :  { %v191_v61 = vpop.xlane.xlu1 %190  ;;  %548 = vadd.xlane.f32.xlu0 %v547_v31  ;;  %v352_v31 = vmul.f32 0.03125, %v179_v63  ;;  %v556_v63 = vsel %vm149_vm0, %v478_v39, 0.0  ;;  %v188_v12 = vpop.xlane.xlu0 %187 }
  0xf3   :  { %331 = vadd.xlane.f32.xlu1 %v330_v0  ;;  %v16187_v0 = vsub.f32 %v15926_v16, %v352_v31  ;;  %v559_v16 = vsel %vm149_vm0, %v479_v17, 0.0  ;;  %v16200_v31 = vsub.f32 %v15936_v21, %v353_v13  ;;  %v355_v17 = vmul.f32 0.03125, %v188_v12 }
  0xf4   :  { %v197_v4 = vpop.xlane.xlu1 %196  ;;  %551 = vadd.xlane.f32.xlu0 %v550_v47  ;;  %v16190_v47 = vld [vmem:[#allocation2 + $0x1f8] sm:$0xff] }
  0xf5   :  { %21315 = vst [vmem:[#allocation31_spill] sm:$0xff] %v16187_v0  ;;  %21316 = vst [vmem:[#allocation32_spill] sm:$0xff] %v16190_v47  ;;  %v480_v39 = vmul.f32 %v16187_v0, %v16187_v0  ;;  %v481_v21 = vmul.f32 %v16200_v31, %v16200_v31 }
  0xf7   :  { %334 = vadd.xlane.f32.xlu1 %v333_v1  ;;  %v339_v1 = vsel %vm149_vm0, %v16190_v47, 0.0  ;;  %v16205_v47 = vsub.f32 %v15934_v20, %v354_v23  ;;  %v562_v59 = vsel %vm149_vm0, %v480_v39, 0.0  ;;  %v194_v23 = vpop.xlane.xlu0 %193 }
  0xf8   :  { %v203_v8 = vpop.xlane.xlu1 %202  ;;  %554 = vadd.xlane.f32.xlu0 %v553_v15  ;;  %v1125_v15 = vld [vmem:[#allocation7] sm:$0xff]  ;;  %v357_v39 = vmul.f32 0.03125, %v194_v23 }
  0xf9   :  { %v13686_v19 = vpack.c.bf16 %v1126_v2, %v1125_v15  ;;  %v565_v15 = vsel %vm149_vm0, %v481_v21, 0.0  ;;  %v16212_v2 = vsub.f32 %v15944_v25, %v355_v17  ;;  %v482_v20 = vmul.f32 %v16205_v47, %v16205_v47 }
  0xfa   :  { %v358_v25 = vmul.f32 0.03125, %v197_v4 }
  0xfb   :  { %337 = vadd.xlane.f32.xlu1 %v336_v43  ;;  %13687 = vmatprep.subr.bf16.mxu0 %v13686_v19  ;;  %v200_v17 = vpop.xlane.xlu0 %199 }
  0xfc   :  { %v16194_v9 = vpop.xlane.xlu1 %208  ;;  %557 = vadd.xlane.f32.xlu0 %v556_v63  ;;  %v1127_v63 = vld [vmem:[#allocation7 + $0x10] sm:$0xff]  ;;  %13689 = vmatpush3.bf16.msra.mxu0 %v13686_v19 }
  0xfd   :  { %v13690_v13 = vpack.c.bf16 %v1128_v55, %v1127_v63  ;;  %v568_v55 = vsel %vm149_vm0, %v482_v20, 0.0 }
  0xff   :  { %340 = vadd.xlane.f32.xlu1 %v339_v1  ;;  %13691 = vmatprep.subr.bf16.mxu0 %v13690_v13  ;;  %v356_v1 = vmul.f32 0.03125, %v191_v61  ;;  %v483_v61 = vmul.f32 %v16212_v2, %v16212_v2 }
 0x100   :  { %v212_v43 = vpop.xlane.xlu1 %211  ;;  %560 = vadd.xlane.f32.xlu0 %v559_v16  ;;  %13693 = vmatpush3.bf16.msra.mxu0 %v13690_v13  ;;  %v16231_v13 = vsub.f32 %v15950_v28, %v358_v25  ;;  %v206_v28 = vpop.xlane.xlu0 %205 }
 0x101   :  { %v16217_v12 = vsub.f32 %v15942_v24, %v356_v1  ;;  %v571_v63 = vsel %vm149_vm0, %v483_v61, 0.0 }
 0x102   :  { %v486_v61 = vmul.f32 %v16231_v13, %v16231_v13 }
 0x103   :  { %v484_v21 = vmul.f32 %v16217_v12, %v16217_v12 }
 0x104   :  { %v215_v0 = vpop.xlane.xlu1 %214  ;;  %563 = vadd.xlane.f32.xlu0 %v562_v59  ;;  %v16224_v59 = vsub.f32 %v15952_v29, %v357_v39  ;;  %v360_v29 = vmul.f32 0.03125, %v203_v8 }
 0x105   :  { %v574_v1 = vsel %vm149_vm0, %v484_v21, 0.0  ;;  %v361_v21 = vmul.f32 0.03125, %v206_v28 }
 0x106   :  { %v485_v4 = vmul.f32 %v16224_v59, %v16224_v59  ;;  %v16247_v25 = vsub.f32 %v15958_v32, %v360_v29  ;;  %v363_v29 = vmul.f32 0.03125, %v212_v43 }
 0x108   :  { %v218_v16 = vpop.xlane.xlu1 %217  ;;  %566 = vadd.xlane.f32.xlu0 %v565_v15  ;;  %v359_v15 = vmul.f32 0.03125, %v200_v17  ;;  %v577_v23 = vsel %vm149_vm0, %v485_v4, 0.0  ;;  %v362_v17 = vmul.f32 0.03125, %v16194_v9  ;;  %v16257_v4 = vsub.f32 %v15968_v37, %v361_v21 }
 0x109   :  { %v488_v32 = vmul.f32 %v16247_v25, %v16247_v25  ;;  %v16270_v28 = vsub.f32 %v15974_v40, %v363_v29  ;;  %v365_v29 = vmul.f32 0.03125, %v218_v16 }
 0x10b   :  { %v586_v9 = vsel %vm149_vm0, %v488_v32, 0.0  ;;  %v491_v40 = vmul.f32 %v16270_v28, %v16270_v28 }
 0x10c   :  { %v221_v19 = vpop.xlane.xlu1 %220  ;;  %569 = vadd.xlane.f32.xlu0 %v568_v55  ;;  %v16240_v55 = vsub.f32 %v15960_v33, %v359_v15  ;;  %v16262_v15 = vsub.f32 %v15966_v36, %v362_v17 }
 0x10e   :  { %v487_v8 = vmul.f32 %v16240_v55, %v16240_v55 }
 0x110   :  { %v16228_v24 = vpop.xlane.xlu1 %223  ;;  %572 = vadd.xlane.f32.xlu0 %v571_v63  ;;  %v580_v63 = vsel %vm149_vm0, %v486_v61, 0.0  ;;  %v489_v61 = vmul.f32 %v16257_v4, %v16257_v4 }
 0x112   :  { %v589_v43 = vsel %vm149_vm0, %v489_v61, 0.0 }
 0x114   :  { %v16236_v20 = vpop.xlane.xlu1 %226  ;;  %575 = vadd.xlane.f32.xlu0 %v574_v1  ;;  %v583_v1 = vsel %vm149_vm0, %v487_v8, 0.0  ;;  %v364_v8 = vmul.f32 0.03125, %v215_v0 }
 0x116   :  { %v16282_v32 = vsub.f32 %v15982_v44, %v364_v8  ;;  %v366_v44 = vmul.f32 0.03125, %v221_v19 }
 0x118   :  { %v16244_v39 = vpop.xlane.xlu1 %229  ;;  %578 = vadd.xlane.f32.xlu0 %v577_v23  ;;  %v492_v8 = vmul.f32 %v16282_v32, %v16282_v32 }
 0x11c   :  { %v16253_v33 = vpop.xlane.xlu1 %232  ;;  %581 = vadd.xlane.f32.xlu0 %v580_v63  ;;  %v490_v63 = vmul.f32 %v16262_v15, %v16262_v15 }
 0x120   :  { %v16264_v23 = vpop.xlane.xlu1 %235  ;;  %584 = vadd.xlane.f32.xlu0 %v583_v1  ;;  %v592_v1 = vsel %vm149_vm0, %v490_v63, 0.0  ;;  %v595_v63 = vsel %vm149_vm0, %v491_v40, 0.0  ;;  %v598_v40 = vsel %vm149_vm0, %v492_v8, 0.0  ;;  %v368_v8 = vmul.f32 0.03125, %v16236_v20 }
 0x121   :  { %v369_v20 = vmul.f32 0.03125, %v16244_v39 }
 0x124   :  { %v239_v37 = vpop.xlane.xlu1 %238  ;;  %587 = vadd.xlane.f32.xlu0 %v586_v9 }
 0x125   :  { %v372_v36 = vmul.f32 0.03125, %v239_v37 }
 0x127   :  { %v16276_v21 = vsub.f32 %v16038_v18, %v372_v36  ;;  %v16294_v36 = vsub.f32 %v15990_v48, %v365_v29  ;;  %v367_v29 = vmul.f32 0.03125, %v16228_v24 }
 0x128   :  { %v245_v17 = vpop.xlane.xlu1 %244  ;;  %590 = vadd.xlane.f32.xlu0 %v589_v43 }
 0x129   :  { %v374_v9 = vmul.f32 0.03125, %v245_v17  ;;  %v500_v0 = vmul.f32 %v16276_v21, %v16276_v21  ;;  %v16302_v17 = vsub.f32 %v15998_v52, %v366_v44  ;;  %v493_v48 = vmul.f32 %v16294_v36, %v16294_v36 }
 0x12b   :  { %v16287_v61 = vsub.f32 %v16042_v22, %v374_v9  ;;  %v622_v18 = vsel %vm149_vm0, %v500_v0, 0.0  ;;  %v601_v52 = vsel %vm149_vm0, %v493_v48, 0.0  ;;  %v16335_v48 = vsub.f32 %v16014_v60, %v368_v8 }
 0x12c   :  { %623 = vadd.xlane.f32.xlu1 %v622_v18  ;;  %v16290_v37 = vpop.xlane.xlu1 %247  ;;  %593 = vadd.xlane.f32.xlu0 %v592_v1 }
 0x12d   :  { %v502_v16 = vmul.f32 %v16287_v61, %v16287_v61  ;;  %v496_v8 = vmul.f32 %v16335_v48, %v16335_v48 }
 0x12f   :  { %v628_v22 = vsel %vm149_vm0, %v502_v16, 0.0 }
 0x130   :  { %629 = vadd.xlane.f32.xlu1 %v628_v22  ;;  %v251_v43 = vpop.xlane.xlu1 %250  ;;  %596 = vadd.xlane.f32.xlu0 %v595_v63  ;;  %v494_v63 = vmul.f32 %v16302_v17, %v16302_v17 }
 0x131   :  { %v376_v1 = vmul.f32 0.03125, %v251_v43 }
 0x132   :  { %v604_v43 = vsel %vm149_vm0, %v494_v63, 0.0 }
 0x133   :  { %v16308_v19 = vsub.f32 %v16050_v30, %v376_v1  ;;  %v16321_v30 = vsub.f32 %v16006_v56, %v367_v29  ;;  %v16329_v1 = vld [vmem:[#allocation2 + $0x1d0] sm:$0xff] }
 0x134   :  { %v257_v9 = vpop.xlane.xlu1 %256  ;;  %599 = vadd.xlane.f32.xlu0 %v598_v40 }
 0x135   :  { %v378_v0 = vmul.f32 0.03125, %v257_v9  ;;  %v504_v18 = vmul.f32 %v16308_v19, %v16308_v19  ;;  %v495_v56 = vmul.f32 %v16321_v30, %v16321_v30  ;;  %v324_v9 = vsel %vm149_vm0, %v16329_v1, 0.0 }
 0x137   :  { %v16317_v44 = vsub.f32 %v16054_v34, %v378_v0  ;;  %v634_v16 = vsel %vm149_vm0, %v504_v18, 0.0  ;;  %v370_v18 = vmul.f32 0.03125, %v16253_v33  ;;  %v607_v63 = vsel %vm149_vm0, %v495_v56, 0.0  ;;  %v242_v33 = vpop.xlane.xlu0 %241 }
 0x138   :  { %635 = vadd.xlane.f32.xlu1 %v634_v16  ;;  %v16323_v24 = vpop.xlane.xlu1 %259  ;;  %602 = vadd.xlane.f32.xlu0 %v601_v52  ;;  %v16346_v16 = vsub.f32 %v16022_v3, %v369_v20  ;;  %v371_v3 = vmul.f32 0.03125, %v16264_v23  ;;  %v610_v56 = vsel %vm149_vm0, %v496_v8, 0.0 }
 0x139   :  { %v506_v22 = vmul.f32 %v16317_v44, %v16317_v44 }
 0x13b   :  { %v640_v34 = vsel %vm149_vm0, %v506_v22, 0.0 }
 0x13c   :  { %641 = vadd.xlane.f32.xlu1 %v640_v34  ;;  %v263_v40 = vpop.xlane.xlu1 %262  ;;  %605 = vadd.xlane.f32.xlu0 %v604_v43  ;;  %v16357_v43 = vsub.f32 %v16030_v10, %v370_v18  ;;  %v16369_v18 = vsub.f32 %v16034_v14, %v371_v3 }
 0x13d   :  { %v380_v29 = vmul.f32 0.03125, %v263_v40 }
 0x13e   :  { %v498_v10 = vmul.f32 %v16357_v43, %v16357_v43  ;;  %v499_v3 = vmul.f32 %v16369_v18, %v16369_v18 }
 0x13f   :  { %v16341_v0 = vsub.f32 %v16062_v42, %v380_v29 }
 0x140   :  { %v269_v52 = vpop.xlane.xlu1 %268  ;;  %325 = vadd.xlane.f32.xlu0 %v324_v9  ;;  %v373_v9 = vmul.f32 0.03125, %v242_v33  ;;  %v616_v8 = vsel %vm149_vm0, %v498_v10, 0.0 }
 0x141   :  { %v382_v60 = vmul.f32 0.03125, %v269_v52  ;;  %v508_v39 = vmul.f32 %v16341_v0, %v16341_v0 }
 0x143   :  { %v16353_v22 = vsub.f32 %v16066_v46, %v382_v60  ;;  %v646_v42 = vsel %vm149_vm0, %v508_v39, 0.0  ;;  %v497_v46 = vmul.f32 %v16346_v16, %v16346_v16 }
 0x144   :  { %647 = vadd.xlane.f32.xlu1 %v646_v42  ;;  %v272_v34 = vpop.xlane.xlu1 %271  ;;  %608 = vadd.xlane.f32.xlu0 %v607_v63  ;;  %v254_v63 = vpop.xlane.xlu0 %253  ;;  %v16377_v42 = vsub.f32 %v15976_v41, %v373_v9 }
 0x145   :  { %v510_v40 = vmul.f32 %v16353_v22, %v16353_v22  ;;  %v613_v52 = vsel %vm149_vm0, %v497_v46, 0.0  ;;  %v377_v9 = vmul.f32 0.03125, %v254_v63 }
 0x146   :  { %v501_v10 = vmul.f32 %v16377_v42, %v16377_v42 }
 0x147   :  { %v652_v20 = vsel %vm149_vm0, %v510_v40, 0.0  ;;  %v375_v40 = vmul.f32 0.03125, %v16290_v37 }
 0x148   :  { %653 = vadd.xlane.f32.xlu1 %v652_v20  ;;  %v275_v29 = vpop.xlane.xlu1 %274  ;;  %611 = vadd.xlane.f32.xlu0 %v610_v56  ;;  %v266_v46 = vpop.xlane.xlu0 %265 }
 0x149   :  { %v384_v23 = vmul.f32 0.03125, %v275_v29  ;;  %v16389_v41 = vsub.f32 %v16046_v26, %v375_v40  ;;  %v619_v29 = vsel %vm149_vm0, %v499_v3, 0.0  ;;  %v625_v26 = vsel %vm149_vm0, %v501_v10, 0.0 }
 0x14a   :  { %v381_v10 = vmul.f32 0.03125, %v266_v46 }
 0x14b   :  { %v16373_v60 = vsub.f32 %v16074_v54, %v384_v23 }
 0x14c   :  { %v281_v39 = vpop.xlane.xlu1 %280  ;;  %614 = vadd.xlane.f32.xlu0 %v613_v52  ;;  %v379_v52 = vmul.f32 0.03125, %v16323_v24  ;;  %v278_v40 = vpop.xlane.xlu0 %277 }
 0x14d   :  { %v386_v33 = vmul.f32 0.03125, %v281_v39  ;;  %v512_v14 = vmul.f32 %v16373_v60, %v16373_v60 }
 0x14e   :  { %v16408_v63 = vsub.f32 %v16058_v38, %v379_v52  ;;  %v383_v38 = vmul.f32 0.03125, %v272_v34 }
 0x14f   :  { %v16385_v56 = vsub.f32 %v16078_v58, %v386_v33  ;;  %v658_v54 = vsel %vm149_vm0, %v512_v14, 0.0  ;;  %v16405_v14 = vsub.f32 %v15984_v45, %v377_v9 }
 0x150   :  { %659 = vadd.xlane.f32.xlu1 %v658_v54  ;;  %v284_v20 = vpop.xlane.xlu1 %283  ;;  %617 = vadd.xlane.f32.xlu0 %v616_v8  ;;  %v503_v8 = vmul.f32 %v16389_v41, %v16389_v41  ;;  %v507_v52 = vmul.f32 %v16408_v63, %v16408_v63 }
 0x151   :  { %v514_v37 = vmul.f32 %v16385_v56, %v16385_v56  ;;  %v505_v45 = vmul.f32 %v16405_v14, %v16405_v14 }
 0x153   :  { %v664_v58 = vsel %vm149_vm0, %v514_v37, 0.0  ;;  %v631_v37 = vsel %vm149_vm0, %v503_v8, 0.0  ;;  %v16429_v8 = vsub.f32 %v16070_v50, %v383_v38 }
 0x154   :  { %665 = vadd.xlane.f32.xlu1 %v664_v58  ;;  %v287_v23 = vpop.xlane.xlu1 %286  ;;  %620 = vadd.xlane.f32.xlu0 %v619_v29  ;;  %v290_v58 = vpop.xlane.xlu0 %289 }
 0x155   :  { %v388_v39 = vmul.f32 0.03125, %v287_v23  ;;  %v511_v50 = vmul.f32 %v16429_v8, %v16429_v8 }
 0x157   :  { %v16402_v33 = vsub.f32 %v16086_v6, %v388_v39  ;;  %v637_v39 = vsel %vm149_vm0, %v505_v45, 0.0 }
 0x158   :  { %v293_v3 = vpop.xlane.xlu1 %292  ;;  %626 = vadd.xlane.f32.xlu0 %v625_v26 }
 0x159   :  { %v390_v54 = vmul.f32 0.03125, %v293_v3  ;;  %v516_v24 = vmul.f32 %v16402_v33, %v16402_v33  ;;  %v643_v3 = vsel %vm149_vm0, %v507_v52, 0.0 }
 0x15b   :  { %v16414_v29 = vsub.f32 %v16090_v11, %v390_v54  ;;  %v670_v6 = vsel %vm149_vm0, %v516_v24, 0.0  ;;  %v16424_v11 = vsub.f32 %v15992_v49, %v381_v10  ;;  %v302_v54 = vpop.xlane.xlu0 %301  ;;  %v385_v24 = vmul.f32 0.03125, %v278_v40 }
 0x15c   :  { %671 = vadd.xlane.f32.xlu1 %v670_v6  ;;  %v296_v9 = vpop.xlane.xlu1 %295  ;;  %632 = vadd.xlane.f32.xlu0 %v631_v37  ;;  %v387_v6 = vmul.f32 0.03125, %v284_v20 }
 0x15d   :  { %v518_v23 = vmul.f32 %v16414_v29, %v16414_v29  ;;  %v509_v49 = vmul.f32 %v16424_v11, %v16424_v11  ;;  %v16442_v38 = vsub.f32 %v16000_v53, %v385_v24  ;;  %v655_v53 = vsel %vm149_vm0, %v511_v50, 0.0 }
 0x15f   :  { %v676_v46 = vsel %vm149_vm0, %v518_v23, 0.0  ;;  %v649_v52 = vsel %vm149_vm0, %v509_v49, 0.0  ;;  %v391_v49 = vmul.f32 0.03125, %v296_v9 }
 0x160   :  { %677 = vadd.xlane.f32.xlu1 %v676_v46  ;;  %v299_v26 = vpop.xlane.xlu1 %298  ;;  %638 = vadd.xlane.f32.xlu0 %v637_v39  ;;  %v314_v46 = vpop.xlane.xlu0 %313  ;;  %v16450_v39 = vsub.f32 %v16082_v62, %v387_v6 }
 0x161   :  { %v392_v34 = vmul.f32 0.03125, %v299_v26 }
 0x162   :  { %v515_v62 = vmul.f32 %v16450_v39, %v16450_v39 }
 0x163   :  { %v16433_v37 = vsub.f32 %v16098_v27, %v392_v34  ;;  %v389_v34 = vmul.f32 0.03125, %v290_v58 }
 0x164   :  { %v305_v10 = vpop.xlane.xlu1 %304  ;;  %644 = vadd.xlane.f32.xlu0 %v643_v3  ;;  %v513_v3 = vmul.f32 %v16442_v38, %v16442_v38 }
 0x165   :  { %v394_v45 = vmul.f32 0.03125, %v305_v10  ;;  %v520_v23 = vmul.f32 %v16433_v37, %v16433_v37 }
 0x166   :  { %v661_v50 = vsel %vm149_vm0, %v513_v3, 0.0 }
 0x167   :  { %v16445_v40 = vsub.f32 %v16102_v35, %v394_v45  ;;  %v682_v27 = vsel %vm149_vm0, %v520_v23, 0.0  ;;  %v16461_v23 = vsub.f32 %v16008_v57, %v389_v34  ;;  %v393_v34 = vmul.f32 0.03125, %v302_v54 }
 0x168   :  { %683 = vadd.xlane.f32.xlu1 %v682_v27  ;;  %v308_v20 = vpop.xlane.xlu1 %307  ;;  %650 = vadd.xlane.f32.xlu0 %v649_v52 }
 0x169   :  { %21317 = vst [vmem:[#allocation33_spill] sm:$0xff] %v16445_v40  ;;  %v522_v26 = vmul.f32 %v16445_v40, %v16445_v40 }
 0x16b   :  { %v688_v35 = vsel %vm149_vm0, %v522_v26, 0.0  ;;  %v21319_v26 = vld [vmem:[#allocation17_spill] sm:$0xff] }
 0x16c   :  { %689 = vadd.xlane.f32.xlu1 %v688_v35  ;;  %v311_v24 = vpop.xlane.xlu1 %310  ;;  %656 = vadd.xlane.f32.xlu0 %v655_v53  ;;  %v16468_v53 = vsub.f32 %v21319_v26, %v391_v49  ;;  %v395_v49 = vmul.f32 0.03125, %v308_v20 }
 0x16d   :  { %v396_v10 = vmul.f32 0.03125, %v311_v24  ;;  %v537_v45 = vpop.xlane.xlu0 %536 }
 0x16e   :  { %v727_v6 = vmul.f32 0.03125, %v537_v45  ;;  %v667_v45 = vsel %vm149_vm0, %v515_v62, 0.0  ;;  %v519_v54 = vmul.f32 %v16468_v53, %v16468_v53 }
 0x16f   :  { %v16464_v58 = vsub.f32 %v16110_v7, %v396_v10  ;;  %v517_v10 = vmul.f32 %v16461_v23, %v16461_v23 }
 0x170   :  { %v791_v27 = vadd.f32 1e-05, %v727_v6  ;;  %v317_v52 = vpop.xlane.xlu1 %316  ;;  %662 = vadd.xlane.f32.xlu0 %v661_v50 }
 0x171   :  { %21318 = vst [vmem:[#allocation34_spill] sm:$0xff] %v16464_v58  ;;  %v398_v9 = vmul.f32 0.03125, %v317_v52  ;;  %v540_v35 = vpop.xlane.xlu0 %539  ;;  %v524_v24 = vmul.f32 %v16464_v58, %v16464_v58  ;;  %v673_v20 = vsel %vm149_vm0, %v517_v10, 0.0  ;;  %v679_v58 = vsel %vm149_vm0, %v519_v54, 0.0 }
 0x172   :  { %14999 = vrsqrt.f32 %v791_v27  ;;  %v728_v57 = vmul.f32 0.03125, %v540_v35  ;;  %v21321_v27 = vld [vmem:[#allocation15_spill] sm:$0xff]  ;;  %v21323_v35 = vld [vmem:[#allocation18_spill] sm:$0xff] }
 0x173   :  { %v16474_v7 = vsub.f32 %v16122_v51, %v398_v9  ;;  %v694_v3 = vsel %vm149_vm0, %v524_v24, 0.0  ;;  %v16484_v26 = vsub.f32 %v21321_v27, %v393_v34  ;;  %v16489_v24 = vsub.f32 %v21323_v35, %v395_v49  ;;  %v21325_v34 = vld [vmem:[#allocation25_spill] sm:$0xff] }
 0x174   :  { %v792_v6 = vadd.f32 1e-05, %v728_v57  ;;  %695 = vadd.xlane.f32.xlu1 %v694_v3  ;;  %v320_v50 = vpop.xlane.xlu1 %319  ;;  %668 = vadd.xlane.f32.xlu0 %v667_v45 }
 0x175   :  { %21320 = vst [vmem:[#allocation17_spill] sm:$0xff] %v16474_v7  ;;  %v543_v52 = vpop.xlane.xlu0 %542  ;;  %v526_v62 = vmul.f32 %v16474_v7, %v16474_v7  ;;  %21322 = vst [vmem:[#allocation15_spill] sm:$0xff] %v16484_v26  ;;  %v521_v10 = vmul.f32 %v16484_v26, %v16484_v26  ;;  %v399_v54 = vmul.f32 0.03125, %v320_v50 }
 0x176   :  { %15001 = vrsqrt.f32 %v792_v6  ;;  %v729_v51 = vmul.f32 0.03125, %v543_v52  ;;  %21324 = vst [vmem:[#allocation18_spill] sm:$0xff] %v16489_v24  ;;  %v397_v6 = vmul.f32 0.03125, %v314_v46  ;;  %v523_v46 = vmul.f32 %v16489_v24, %v16489_v24 }
 0x177   :  { %v700_v9 = vsel %vm149_vm0, %v526_v62, 0.0 }
 0x178   :  { %v793_v45 = vadd.f32 1e-05, %v729_v51  ;;  %701 = vadd.xlane.f32.xlu1 %v700_v9  ;;  %v323_v57 = vpop.xlane.xlu1 %322  ;;  %674 = vadd.xlane.f32.xlu0 %v673_v20  ;;  %v16500_v51 = vld [vmem:[%s21022_s2] ss:$0 sm:$0xff] }
 0x179   :  { %v400_v3 = vmul.f32 0.03125, %v323_v57  ;;  %v546_v7 = vpop.xlane.xlu0 %545 }
 0x17a   :  { %15003 = vrsqrt.f32 %v793_v45  ;;  %v730_v52 = vmul.f32 0.03125, %v546_v7  ;;  %v21327_v45 = vld [vmem:[#allocation19_spill] sm:$0xff] }
 0x17b   :  { %v16493_v27 = vsub.f32 %v21325_v34, %v400_v3  ;;  %v21328_v3 = vld [vmem:[#allocation16_spill] sm:$0xff]  ;;  %v16513_v34 = vld [vmem:[%s21023_s3] ss:$0 sm:$0xff] }
 0x17c   :  { %v15000_v62 = vpop.eup %14999  ;;  %v794_v49 = vadd.f32 1e-05, %v730_v52  ;;  %v329_v35 = vpop.xlane.xlu1 %328  ;;  %680 = vadd.xlane.f32.xlu0 %v679_v58  ;;  %v16508_v52 = vsub.f32 %v21328_v3, %v397_v6 }
 0x17d   :  { %21326 = vst [vmem:[#allocation25_spill] sm:$0xff] %v16493_v27  ;;  %v402_v7 = vmul.f32 0.03125, %v329_v35  ;;  %v549_v9 = vpop.xlane.xlu0 %548  ;;  %v528_v20 = vmul.f32 %v16493_v27, %v16493_v27  ;;  %v919_v57 = vmul.f32 %v15000_v62, %v21327_v45  ;;  %v685_v35 = vsel %vm149_vm0, %v521_v10, 0.0  ;;  %v21333_v10 = vld [vmem:[#allocation21_spill] sm:$0xff] }
 0x17e   :  { %21329 = vst [vmem:[#allocation19_spill] sm:$0xff] %v16508_v52  ;;  %15005 = vrsqrt.f32 %v794_v49  ;;  %v731_v58 = vmul.f32 0.03125, %v549_v9  ;;  %v691_v49 = vsel %vm149_vm0, %v523_v46, 0.0  ;;  %v21331_v9 = vld [vmem:[#allocation23_spill] sm:$0xff]  ;;  %v525_v46 = vmul.f32 %v16508_v52, %v16508_v52 }
 0x17f   :  { %v16516_v24 = vsub.f32 %v16156_v5, %v402_v7  ;;  %v706_v50 = vsel %vm149_vm0, %v528_v20, 0.0  ;;  %v990_v27 = vmul.f32 %v16500_v51, %v919_v57  ;;  %v16525_v3 = vsub.f32 %v21331_v9, %v399_v54 }
 0x180   :  { %v15002_v62 = vpop.eup %15001  ;;  %v795_v45 = vadd.f32 1e-05, %v731_v58  ;;  %707 = vadd.xlane.f32.xlu1 %v706_v50  ;;  %v16521_v6 = vpop.xlane.xlu1 %331  ;;  %686 = vadd.xlane.f32.xlu0 %v685_v35 }
 0x181   :  { %21330 = vst [vmem:[#allocation16_spill] sm:$0xff] %v16516_v24  ;;  %21332 = vst [vmem:[#allocation23_spill] sm:$0xff] %v16525_v3  ;;  %v552_v26 = vpop.xlane.xlu0 %551  ;;  %v1061_v5 = vadd.f32 %v16513_v34, %v990_v27  ;;  %v530_v7 = vmul.f32 %v16516_v24, %v16516_v24  ;;  %v920_v20 = vmul.f32 %v15002_v62, %v21333_v10  ;;  %v21335_v10 = vld [vmem:[#allocation29_spill] sm:$0xff] }
 0x182   :  { %15007 = vrsqrt.f32 %v795_v45  ;;  %v732_v57 = vmul.f32 0.03125, %v552_v26  ;;  %v21334_v45 = vld [vmem:[#allocation20_spill] sm:$0xff] }
 0x183   :  { %12590 = vmatprep.mubr.msk.f32.mxu0 %vm149_vm0, %v1061_v5  ;;  %v712_v58 = vsel %vm149_vm0, %v530_v7, 0.0  ;;  %v991_v50 = vmul.f32 %v16500_v51, %v920_v20  ;;  %v527_v5 = vmul.f32 %v16525_v3, %v16525_v3 }
 0x184   :  { %v15004_v54 = vpop.eup %15003  ;;  %v796_v35 = vadd.f32 1e-05, %v732_v57  ;;  %713 = vadd.xlane.f32.xlu1 %v712_v58  ;;  %v335_v27 = vpop.xlane.xlu1 %334  ;;  %692 = vadd.xlane.f32.xlu0 %v691_v49  ;;  %v697_v57 = vsel %vm149_vm0, %v525_v46, 0.0 }
 0x185   :  { %v404_v9 = vmul.f32 0.03125, %v335_v27  ;;  %v555_v24 = vpop.xlane.xlu0 %554  ;;  %v1062_v62 = vadd.f32 %v16513_v34, %v991_v50  ;;  %v921_v26 = vmul.f32 %v15004_v54, %v21334_v45 }
 0x186   :  { %15009 = vrsqrt.f32 %v796_v35  ;;  %v733_v7 = vmul.f32 0.03125, %v555_v24  ;;  %v703_v35 = vsel %vm149_vm0, %v527_v5, 0.0  ;;  %v21338_v5 = vld [vmem:[#allocation24_spill] sm:$0xff] }
 0x187   :  { %v16541_v20 = vsub.f32 %v21335_v10, %v404_v9  ;;  %12591 = vmatmul.mubr.msk.f32.vlgmr.msra.gmra.mrb[0].mxu0 %vm149_vm0, %v1062_v62  ;;  %v992_v49 = vmul.f32 %v16500_v51, %v921_v26  ;;  %v21337_v9 = vld [vmem:[#allocation22_spill] sm:$0xff] }
 0x188   :  { %v15006_v58 = vpop.eup %15005  ;;  %v797_v27 = vadd.f32 1e-05, %v733_v7  ;;  %v16546_v52 = vpop.xlane.xlu1 %337  ;;  %698 = vadd.xlane.f32.xlu0 %v697_v57 }
 0x189   :  { %21336 = vst [vmem:[#allocation21_spill] sm:$0xff] %v16541_v20  ;;  %v558_v50 = vpop.xlane.xlu0 %557  ;;  %v1063_v54 = vadd.f32 %v16513_v34, %v992_v49  ;;  %v532_v24 = vmul.f32 %v16541_v20, %v16541_v20  ;;  %v922_v45 = vmul.f32 %v15006_v58, %v21337_v9 }
 0x18a   :  { %15011 = vrsqrt.f32 %v797_v27  ;;  %v734_v62 = vmul.f32 0.03125, %v558_v50  ;;  %v21339_v27 = vld [vmem:[#allocation32_spill] sm:$0xff] }
 0x18b   :  { %12593 = vmatprep.mubr.msk.f32.mxu0 %vm149_vm0, %v1063_v54  ;;  %v718_v46 = vsel %vm149_vm0, %v532_v24, 0.0  ;;  %v993_v26 = vmul.f32 %v16500_v51, %v922_v45 }
 0x18c   :  { %v15008_v7 = vpop.eup %15007  ;;  %v798_v10 = vadd.f32 1e-05, %v734_v62  ;;  %719 = vadd.xlane.f32.xlu1 %v718_v46  ;;  %v341_v57 = vpop.xlane.xlu1 %340  ;;  %704 = vadd.xlane.f32.xlu0 %v703_v35  ;;  %v21340_v46 = vld [vmem:[#allocation26_spill] sm:$0xff] }
 0x18d   :  { %v406_v49 = vmul.f32 0.03125, %v341_v57  ;;  %v561_v3 = vpop.xlane.xlu0 %560  ;;  %v1064_v20 = vadd.f32 %v16513_v34, %v993_v26  ;;  %v923_v40 = vmul.f32 %v15008_v7, %v21338_v5  ;;  %v21341_v5 = vld [vmem:[#allocation27_spill] sm:$0xff] }
 0x18e   :  { %15013 = vrsqrt.f32 %v798_v10  ;;  %v735_v58 = vmul.f32 0.03125, %v561_v3 }
 0x18f   :  { %v16559_v50 = vsub.f32 %v21339_v27, %v406_v49  ;;  %12594 = vmatmul.mubr.msk.f32.gmra.mrb[2].mxu0 %vm149_vm0, %v1064_v20  ;;  %v994_v54 = vmul.f32 %v16500_v51, %v923_v40 }
 0x190   :  { %v15010_v24 = vpop.eup %15009  ;;  %v799_v9 = vadd.f32 1e-05, %v735_v58 }
 0x191   :  { %v564_v45 = vpop.xlane.xlu0 %563  ;;  %v1065_v35 = vadd.f32 %v16513_v34, %v994_v54  ;;  %v534_v62 = vmul.f32 %v16559_v50, %v16559_v50  ;;  %v924_v26 = vmul.f32 %v15010_v24, %v21340_v46 }
 0x192   :  { %15015 = vrsqrt.f32 %v799_v9  ;;  %v736_v7 = vmul.f32 0.03125, %v564_v45 }
 0x193   :  { %12596 = vmatprep.mubr.msk.f32.mxu0 %vm149_vm0, %v1065_v35  ;;  %v724_v3 = vsel %vm149_vm0, %v534_v62, 0.0  ;;  %v995_v20 = vmul.f32 %v16500_v51, %v924_v26  ;;  %v21342_v62 = vld [vmem:[#allocation28_spill] sm:$0xff] }
 0x194   :  { %v15012_v10 = vpop.eup %15011  ;;  %v800_v40 = vadd.f32 1e-05, %v736_v7  ;;  %725 = vadd.xlane.f32.xlu1 %v724_v3 }
 0x195   :  { %v567_v57 = vpop.xlane.xlu0 %566  ;;  %v1066_v49 = vadd.f32 %v16513_v34, %v995_v20  ;;  %v925_v58 = vmul.f32 %v15012_v10, %v21341_v5 }
 0x196   :  { %15017 = vrsqrt.f32 %v800_v40  ;;  %v737_v27 = vmul.f32 0.03125, %v567_v57  ;;  %v21343_v57 = vld [vmem:[#allocation30_spill] sm:$0xff] }
 0x197   :  { %12597 = vmatmul.mubr.msk.f32.gmra.mrb[4].mxu0 %vm149_vm0, %v1066_v49  ;;  %v996_v54 = vmul.f32 %v16500_v51, %v925_v58 }
 0x198   :  { %v15014_v24 = vpop.eup %15013  ;;  %v801_v9 = vadd.f32 1e-05, %v737_v27 }
 0x199   :  { %v570_v45 = vpop.xlane.xlu0 %569  ;;  %v1067_v35 = vadd.f32 %v16513_v34, %v996_v54  ;;  %v926_v46 = vmul.f32 %v15014_v24, %v21342_v62 }
 0x19a   :  { %15019 = vrsqrt.f32 %v801_v9  ;;  %v738_v26 = vmul.f32 0.03125, %v570_v45  ;;  %v21344_v45 = vld [vmem:[#allocation31_spill] sm:$0xff] }
 0x19b   :  { %12599 = vmatprep.mubr.msk.f32.mxu0 %vm149_vm0, %v1067_v35  ;;  %v997_v7 = vmul.f32 %v16500_v51, %v926_v46 }
 0x19c   :  { %v15016_v3 = vpop.eup %15015  ;;  %v802_v20 = vadd.f32 1e-05, %v738_v26 }
 0x19d   :  { %v573_v10 = vpop.xlane.xlu0 %572  ;;  %v1068_v40 = vadd.f32 %v16513_v34, %v997_v7  ;;  %v927_v49 = vmul.f32 %v15016_v3, %v21343_v57 }
 0x19e   :  { %15021 = vrsqrt.f32 %v802_v20  ;;  %v739_v5 = vmul.f32 0.03125, %v573_v10 }
 0x19f   :  { %12600 = vmatmul.mubr.msk.f32.gmra.mrb[6].mxu0 %vm149_vm0, %v1068_v40  ;;  %v998_v58 = vmul.f32 %v16500_v51, %v927_v49 }
 0x1a0   :  { %v15018_v27 = vpop.eup %15017  ;;  %v803_v54 = vadd.f32 1e-05, %v739_v5 }
 0x1a1   :  { %v576_v24 = vpop.xlane.xlu0 %575  ;;  %v1069_v9 = vadd.f32 %v16513_v34, %v998_v58  ;;  %v928_v35 = vmul.f32 %v15018_v27, %v21344_v45 }
 0x1a2   :  { %15023 = vrsqrt.f32 %v803_v54  ;;  %v740_v62 = vmul.f32 0.03125, %v576_v24 }
 0x1a3   :  { %12602 = vmatprep.mubr.msk.f32.mxu0 %vm149_vm0, %v1069_v9  ;;  %v999_v46 = vmul.f32 %v16500_v51, %v928_v35 }
 0x1a4   :  { %v15020_v26 = vpop.eup %15019  ;;  %v804_v7 = vadd.f32 1e-05, %v740_v62 }
 0x1a5   :  { %v579_v3 = vpop.xlane.xlu0 %578  ;;  %v1070_v20 = vadd.f32 %v16513_v34, %v999_v46  ;;  %v929_v10 = vmul.f32 %v15020_v26, %v16200_v31 }
 0x1a6   :  { %15025 = vrsqrt.f32 %v804_v7  ;;  %v741_v40 = vmul.f32 0.03125, %v579_v3 }
 0x1a7   :  { %12603 = vmatmul.mubr.msk.f32.gmra.mrb[8].mxu0 %vm149_vm0, %v1070_v20  ;;  %v1000_v57 = vmul.f32 %v16500_v51, %v929_v10 }
 0x1a8   :  { %v15022_v49 = vpop.eup %15021  ;;  %v805_v5 = vadd.f32 1e-05, %v741_v40 }
 0x1a9   :  { %v582_v58 = vpop.xlane.xlu0 %581  ;;  %v1071_v27 = vadd.f32 %v16513_v34, %v1000_v57  ;;  %v930_v54 = vmul.f32 %v15022_v49, %v16205_v47 }
 0x1aa   :  { %15027 = vrsqrt.f32 %v805_v5  ;;  %v742_v24 = vmul.f32 0.03125, %v582_v58 }
 0x1ab   :  { %12605 = vmatprep.mubr.msk.f32.mxu0 %vm149_vm0, %v1071_v27  ;;  %v1001_v9 = vmul.f32 %v16500_v51, %v930_v54 }
 0x1ac   :  { %v15024_v31 = vpop.eup %15023  ;;  %v806_v45 = vadd.f32 1e-05, %v742_v24 }
 0x1ad   :  { %v585_v35 = vpop.xlane.xlu0 %584  ;;  %v1072_v62 = vadd.f32 %v16513_v34, %v1001_v9  ;;  %v931_v46 = vmul.f32 %v15024_v31, %v16212_v2 }
 0x1ae   :  { %15029 = vrsqrt.f32 %v806_v45  ;;  %v743_v26 = vmul.f32 0.03125, %v585_v35 }
 0x1af   :  { %12606 = vmatmul.mubr.msk.f32.gmra.mrb[10].mxu0 %vm149_vm0, %v1072_v62  ;;  %v1002_v7 = vmul.f32 %v16500_v51, %v931_v46 }
 0x1b0   :  { %v15026_v47 = vpop.eup %15025  ;;  %v807_v3 = vadd.f32 1e-05, %v743_v26 }
 0x1b1   :  { %v588_v20 = vpop.xlane.xlu0 %587  ;;  %v1073_v10 = vadd.f32 %v16513_v34, %v1002_v7  ;;  %v932_v40 = vmul.f32 %v15026_v47, %v16217_v12 }
 0x1b2   :  { %15031 = vrsqrt.f32 %v807_v3  ;;  %v744_v57 = vmul.f32 0.03125, %v588_v20 }
 0x1b3   :  { %12608 = vmatprep.mubr.msk.f32.mxu0 %vm149_vm0, %v1073_v10  ;;  %v1003_v49 = vmul.f32 %v16500_v51, %v932_v40 }
 0x1b4   :  { %v15028_v2 = vpop.eup %15027  ;;  %v808_v5 = vadd.f32 1e-05, %v744_v57 }
 0x1b5   :  { %v591_v58 = vpop.xlane.xlu0 %590  ;;  %v1074_v27 = vadd.f32 %v16513_v34, %v1003_v49  ;;  %v933_v54 = vmul.f32 %v15028_v2, %v16224_v59 }
 0x1b6   :  { %15033 = vrsqrt.f32 %v808_v5  ;;  %v745_v24 = vmul.f32 0.03125, %v591_v58 }
 0x1b7   :  { %12609 = vmatmul.mubr.msk.f32.gmra.mrb[12].mxu0 %vm149_vm0, %v1074_v27  ;;  %v1004_v9 = vmul.f32 %v16500_v51, %v933_v54 }
 0x1b8   :  { %v15030_v12 = vpop.eup %15029  ;;  %v809_v31 = vadd.f32 1e-05, %v745_v24 }
 0x1b9   :  { %v594_v45 = vpop.xlane.xlu0 %593  ;;  %v1075_v35 = vadd.f32 %v16513_v34, %v1004_v9  ;;  %v934_v62 = vmul.f32 %v15030_v12, %v16231_v13 }
 0x1ba   :  { %15035 = vrsqrt.f32 %v809_v31  ;;  %v746_v46 = vmul.f32 0.03125, %v594_v45 }
 0x1bb   :  { %12611 = vmatprep.mubr.msk.f32.mxu0 %vm149_vm0, %v1075_v35  ;;  %v1005_v26 = vmul.f32 %v16500_v51, %v934_v62 }
 0x1bc   :  { %v15032_v59 = vpop.eup %15031  ;;  %v810_v7 = vadd.f32 1e-05, %v746_v46  ;;  %v403_v46 = vmul.f32 0.03125, %v16521_v6 }
 0x1bd   :  { %v597_v47 = vpop.xlane.xlu0 %596  ;;  %v1076_v3 = vadd.f32 %v16513_v34, %v1005_v26  ;;  %v935_v20 = vmul.f32 %v15032_v59, %v16240_v55 }
 0x1be   :  { %v747_v10 = vmul.f32 0.03125, %v597_v47  ;;  %15037 = vrsqrt.f32 %v810_v7 }
 0x1bf   :  { %12612 = vmatmul.mubr.msk.f32.gmra.mrb[14].mxu0 %vm149_vm0, %v1076_v3  ;;  %v1006_v40 = vmul.f32 %v16500_v51, %v935_v20 }
 0x1c0   :  { %v15034_v13 = vpop.eup %15033  ;;  %v811_v57 = vadd.f32 1e-05, %v747_v10  ;;  %v15639_v10 = vld [vmem:[#allocation2 + $0x1e0] sm:$0xff] }
 0x1c1   :  { %v600_v49 = vpop.xlane.xlu0 %599  ;;  %v1077_v2 = vadd.f32 %v16513_v34, %v1006_v40  ;;  %v936_v5 = vmul.f32 %v15034_v13, %v16247_v25  ;;  %v624_v25 = vpop.xlane.xlu1 %623  ;;  %v16627_v40 = vsub.f32 %v15639_v10, %v403_v46 }
 0x1c2   :  { %v748_v58 = vmul.f32 0.03125, %v600_v49  ;;  %15039 = vrsqrt.f32 %v811_v57  ;;  %v405_v57 = vmul.f32 0.03125, %v16546_v52 }
 0x1c3   :  { %12614 = vmatprep.mubr.msk.f32.mxu0 %vm149_vm0, %v1077_v2  ;;  %v1007_v27 = vmul.f32 %v16500_v51, %v936_v5  ;;  %v531_v52 = vmul.f32 %v16627_v40, %v16627_v40 }
 0x1c4   :  { %v15036_v55 = vpop.eup %15035  ;;  %v812_v54 = vadd.f32 1e-05, %v748_v58 }
 0x1c5   :  { %v603_v24 = vpop.xlane.xlu0 %602  ;;  %v1078_v9 = vadd.f32 %v16513_v34, %v1007_v27  ;;  %v937_v12 = vmul.f32 %v15036_v55, %v16257_v4  ;;  %v630_v6 = vpop.xlane.xlu1 %629 }
 0x1c6   :  { %15041 = vrsqrt.f32 %v812_v54  ;;  %v749_v31 = vmul.f32 0.03125, %v603_v24  ;;  %v15640_v24 = vld [vmem:[#allocation2 + $0x1f0] sm:$0xff] }
 0x1c7   :  { %12615 = vmatmul.mubr.msk.f32.gmra.mrb[16].mxu0 %vm149_vm0, %v1078_v9  ;;  %v1008_v45 = vmul.f32 %v16500_v51, %v937_v12  ;;  %v16640_v9 = vsub.f32 %v15640_v24, %v405_v57  ;;  %v756_v57 = vmul.f32 0.03125, %v624_v25  ;;  %v758_v25 = vmul.f32 0.03125, %v630_v6 }
 0x1c8   :  { %v813_v35 = vadd.f32 1e-05, %v749_v31  ;;  %v15038_v62 = vpop.eup %15037 }
 0x1c9   :  { %v606_v26 = vpop.xlane.xlu0 %605  ;;  %v1079_v59 = vadd.f32 %v16513_v34, %v1008_v45  ;;  %v938_v47 = vmul.f32 %v15038_v62, %v16262_v15  ;;  %v636_v12 = vpop.xlane.xlu1 %635 }
 0x1ca   :  { %v750_v7 = vmul.f32 0.03125, %v606_v26  ;;  %15043 = vrsqrt.f32 %v813_v35 }
 0x1cb   :  { %12617 = vmatprep.mubr.msk.f32.mxu0 %vm149_vm0, %v1079_v59  ;;  %v1009_v3 = vmul.f32 %v16500_v51, %v938_v47 }
 0x1cc   :  { %v814_v4 = vadd.f32 1e-05, %v750_v7  ;;  %v15040_v20 = vpop.eup %15039  ;;  %v715_v7 = vsel %vm149_vm0, %v531_v52, 0.0  ;;  %v820_v52 = vadd.f32 1e-05, %v756_v57 }
 0x1cd   :  { %v326_v13 = vpop.xlane.xlu0 %325  ;;  %v1080_v2 = vadd.f32 %v16513_v34, %v1009_v3  ;;  %v939_v5 = vmul.f32 %v15040_v20, %v16270_v28  ;;  %v642_v3 = vpop.xlane.xlu1 %641 }
 0x1ce   :  { %v401_v49 = vmul.f32 0.03125, %v326_v13  ;;  %15045 = vrsqrt.f32 %v814_v4  ;;  %v533_v4 = vmul.f32 %v16640_v9, %v16640_v9 }
 0x1cf   :  { %12618 = vmatmul.mubr.msk.f32.gmra.mrb[18].mxu0 %vm149_vm0, %v1080_v2  ;;  %v1010_v27 = vmul.f32 %v16500_v51, %v939_v5 }
 0x1d0   :  { %v15042_v15 = vpop.eup %15041  ;;  %v16633_v58 = vsub.f32 %v16329_v1, %v401_v49 }
 0x1d1   :  { %v609_v55 = vpop.xlane.xlu0 %608  ;;  %v940_v54 = vmul.f32 %v15042_v15, %v16282_v32  ;;  %v1081_v31 = vadd.f32 %v16513_v34, %v1010_v27  ;;  %v721_v15 = vsel %vm149_vm0, %v533_v4, 0.0  ;;  %v648_v27 = vpop.xlane.xlu1 %647  ;;  %v762_v4 = vmul.f32 0.03125, %v642_v3 }
 0x1d2   :  { %v751_v28 = vmul.f32 0.03125, %v609_v55  ;;  %v529_v1 = vmul.f32 %v16633_v58, %v16633_v58 }
 0x1d3   :  { %v1011_v45 = vmul.f32 %v16500_v51, %v940_v54  ;;  %12620 = vmatprep.mubr.msk.f32.mxu0 %vm149_vm0, %v1081_v31 }
 0x1d4   :  { %v815_v35 = vadd.f32 1e-05, %v751_v28  ;;  %v709_v32 = vsel %vm149_vm0, %v529_v1, 0.0  ;;  %v15044_v62 = vpop.eup %15043 }
 0x1d5   :  { %710 = vadd.xlane.f32.xlu0 %v709_v32  ;;  %v612_v46 = vpop.xlane.xlu0 %611  ;;  %v1082_v26 = vadd.f32 %v16513_v34, %v1011_v45  ;;  %v941_v47 = vmul.f32 %v15044_v62, %v16294_v36  ;;  %v822_v32 = vadd.f32 1e-05, %v758_v25  ;;  %v654_v62 = vpop.xlane.xlu1 %653 }
 0x1d6   :  { %v752_v59 = vmul.f32 0.03125, %v612_v46  ;;  %15047 = vrsqrt.f32 %v815_v35 }
 0x1d7   :  { %12621 = vmatmul.mubr.msk.f32.gmra.mrb[20].mxu0 %vm149_vm0, %v1082_v26  ;;  %v1012_v10 = vmul.f32 %v16500_v51, %v941_v47 }
 0x1d8   :  { %v816_v20 = vadd.f32 1e-05, %v752_v59  ;;  %v15046_v13 = vpop.eup %15045 }
 0x1d9   :  { %716 = vadd.xlane.f32.xlu0 %v715_v7  ;;  %v615_v49 = vpop.xlane.xlu0 %614  ;;  %v1083_v5 = vadd.f32 %v16513_v34, %v1012_v10  ;;  %v942_v36 = vmul.f32 %v15046_v13, %v16302_v17  ;;  %v760_v17 = vmul.f32 0.03125, %v636_v12 }
 0x1da   :  { %v753_v2 = vmul.f32 0.03125, %v615_v49  ;;  %15049 = vrsqrt.f32 %v816_v20 }
 0x1db   :  { %12623 = vmatprep.mubr.msk.f32.mxu0 %vm149_vm0, %v1083_v5  ;;  %v1013_v54 = vmul.f32 %v16500_v51, %v942_v36  ;;  %v824_v47 = vadd.f32 1e-05, %v760_v17  ;;  %v826_v5 = vadd.f32 1e-05, %v762_v4  ;;  %v764_v36 = vmul.f32 0.03125, %v648_v27 }
 0x1dc   :  { %v817_v55 = vadd.f32 1e-05, %v753_v2 }
 0x1dd   :  { %722 = vadd.xlane.f32.xlu0 %v721_v15  ;;  %v618_v24 = vpop.xlane.xlu0 %617  ;;  %v1084_v31 = vadd.f32 %v16513_v34, %v1013_v54  ;;  %v660_v10 = vpop.xlane.xlu1 %659  ;;  %v828_v17 = vadd.f32 1e-05, %v764_v36 }
 0x1de   :  { %15051 = vrsqrt.f32 %v817_v55  ;;  %v754_v28 = vmul.f32 0.03125, %v618_v24 }
 0x1df   :  { %12624 = vmatmul.mubr.msk.f32.gmra.mrb[22].mxu0 %vm149_vm0, %v1084_v31  ;;  %15053 = vrsqrt.f32 %v820_v52  ;;  %v766_v31 = vmul.f32 0.03125, %v654_v62 }
 0x1e0   :  { %v818_v1 = vadd.f32 1e-05, %v754_v28  ;;  %v15048_v45 = vpop.eup %15047 }
 0x1e1   :  { %v621_v35 = vpop.xlane.xlu0 %620  ;;  %v943_v26 = vmul.f32 %v15048_v45, %v16321_v30  ;;  %v666_v24 = vpop.xlane.xlu1 %665  ;;  %v830_v62 = vadd.f32 1e-05, %v766_v31 }
 0x1e2   :  { %v755_v46 = vmul.f32 0.03125, %v621_v35  ;;  %15055 = vrsqrt.f32 %v818_v1 }
 0x1e3   :  { %v1014_v6 = vmul.f32 %v16500_v51, %v943_v26  ;;  %15057 = vrsqrt.f32 %v822_v32 }
 0x1e4   :  { %v819_v59 = vadd.f32 1e-05, %v755_v46  ;;  %v15050_v7 = vpop.eup %15049 }
 0x1e5   :  { %v627_v20 = vpop.xlane.xlu0 %626  ;;  %v1085_v12 = vadd.f32 %v16513_v34, %v1014_v6  ;;  %v944_v57 = vmul.f32 %v15050_v7, %v16335_v48  ;;  %v768_v7 = vmul.f32 0.03125, %v660_v10 }
 0x1e6   :  { %v757_v13 = vmul.f32 0.03125, %v627_v20  ;;  %15059 = vrsqrt.f32 %v819_v59 }
 0x1e7   :  { %12626 = vmatprep.mubr.msk.f32.mxu0 %vm149_vm0, %v1085_v12  ;;  %v1015_v30 = vmul.f32 %v16500_v51, %v944_v57  ;;  %15061 = vrsqrt.f32 %v824_v47  ;;  %v832_v10 = vadd.f32 1e-05, %v768_v7 }
 0x1e8   :  { %v15052_v49 = vpop.eup %15051  ;;  %v821_v2 = vadd.f32 1e-05, %v757_v13 }
 0x1e9   :  { %v633_v15 = vpop.xlane.xlu0 %632  ;;  %v945_v3 = vmul.f32 %v15052_v49, %v16346_v16  ;;  %v1086_v54 = vadd.f32 %v16513_v34, %v1015_v30  ;;  %v15054_v48 = vpop.eup %15053 }
 0x1ea   :  { %15063 = vrsqrt.f32 %v821_v2  ;;  %v759_v55 = vmul.f32 0.03125, %v633_v15  ;;  %v948_v35 = vmul.f32 %v15054_v48, %v16276_v21  ;;  %v672_v46 = vpop.xlane.xlu1 %671  ;;  %v770_v15 = vmul.f32 0.03125, %v666_v24 }
 0x1eb   :  { %v1016_v52 = vmul.f32 %v16500_v51, %v945_v3  ;;  %12627 = vmatmul.mubr.msk.f32.gmra.mrb[24].mxu0 %vm149_vm0, %v1086_v54  ;;  %15065 = vrsqrt.f32 %v826_v5 }
 0x1ec   :  { %v823_v25 = vadd.f32 1e-05, %v759_v55  ;;  %v15056_v28 = vpop.eup %15055  ;;  %v1019_v12 = vmul.f32 %v16500_v51, %v948_v35 }
 0x1ed   :  { %v639_v1 = vpop.xlane.xlu0 %638  ;;  %v1087_v45 = vadd.f32 %v16513_v34, %v1016_v52  ;;  %v946_v27 = vmul.f32 %v15056_v28, %v16357_v43  ;;  %v15058_v32 = vpop.eup %15057 }
 0x1ee   :  { %v761_v16 = vmul.f32 0.03125, %v639_v1  ;;  %15067 = vrsqrt.f32 %v823_v25  ;;  %v950_v21 = vmul.f32 %v15058_v32, %v16287_v61  ;;  %v678_v3 = vpop.xlane.xlu1 %677  ;;  %v1090_v55 = vadd.f32 %v16513_v34, %v1019_v12 }
 0x1ef   :  { %12629 = vmatprep.mubr.msk.f32.mxu0 %vm149_vm0, %v1087_v45  ;;  %v1017_v59 = vmul.f32 %v16500_v51, %v946_v27  ;;  %15069 = vrsqrt.f32 %v828_v17  ;;  %v834_v1 = vadd.f32 1e-05, %v770_v15 }
 0x1f0   :  { %v825_v26 = vadd.f32 1e-05, %v761_v16  ;;  %v15060_v6 = vpop.eup %15059  ;;  %v1021_v54 = vmul.f32 %v16500_v51, %v950_v21 }
 0x1f1   :  { %v645_v47 = vpop.xlane.xlu0 %644  ;;  %v1088_v20 = vadd.f32 %v16513_v34, %v1017_v59  ;;  %v947_v43 = vmul.f32 %v15060_v6, %v16369_v18  ;;  %v15062_v13 = vpop.eup %15061 }
 0x1f2   :  { %v763_v4 = vmul.f32 0.03125, %v645_v47  ;;  %15071 = vrsqrt.f32 %v825_v26  ;;  %v952_v52 = vmul.f32 %v15062_v13, %v16308_v19  ;;  %v1092_v19 = vadd.f32 %v16513_v34, %v1021_v54 }
 0x1f3   :  { %12630 = vmatmul.mubr.msk.f32.gmra.mrb[26].mxu0 %vm149_vm0, %v1088_v20  ;;  %v1018_v2 = vmul.f32 %v16500_v51, %v947_v43  ;;  %15073 = vrsqrt.f32 %v830_v62  ;;  %v774_v62 = vmul.f32 0.03125, %v678_v3 }
 0x1f4   :  { %v15064_v57 = vpop.eup %15063  ;;  %v827_v49 = vadd.f32 1e-05, %v763_v4  ;;  %v1023_v27 = vmul.f32 %v16500_v51, %v952_v52 }
 0x1f5   :  { %v651_v30 = vpop.xlane.xlu0 %650  ;;  %v949_v5 = vmul.f32 %v15064_v57, %v16377_v42  ;;  %v1089_v36 = vadd.f32 %v16513_v34, %v1018_v2  ;;  %v15066_v48 = vpop.eup %15065  ;;  %v772_v42 = vmul.f32 0.03125, %v672_v46  ;;  %v838_v2 = vadd.f32 1e-05, %v774_v62 }
 0x1f6   :  { %15075 = vrsqrt.f32 %v827_v49  ;;  %v765_v18 = vmul.f32 0.03125, %v651_v30  ;;  %v684_v45 = vpop.xlane.xlu1 %683  ;;  %v954_v35 = vmul.f32 %v15066_v48, %v16317_v44  ;;  %v1094_v44 = vadd.f32 %v16513_v34, %v1023_v27 }
 0x1f7   :  { %v1020_v61 = vmul.f32 %v16500_v51, %v949_v5  ;;  %12632 = vmatprep.mubr.msk.f32.mxu0 %vm149_vm0, %v1089_v36  ;;  %15077 = vrsqrt.f32 %v832_v10  ;;  %v836_v6 = vadd.f32 1e-05, %v772_v42  ;;  %v776_v30 = vmul.f32 0.03125, %v684_v45 }
 0x1f8   :  { %v829_v25 = vadd.f32 1e-05, %v765_v18  ;;  %v15068_v28 = vpop.eup %15067  ;;  %12633 = vmatmul.mubr.msk.f32.gmra.mrb[28].mxu0 %vm149_vm0, %v1090_v55  ;;  %v1025_v43 = vmul.f32 %v16500_v51, %v954_v35 }
 0x1f9   :  { %v657_v24 = vpop.xlane.xlu0 %656  ;;  %v1091_v31 = vadd.f32 %v16513_v34, %v1020_v61  ;;  %v951_v16 = vmul.f32 %v15068_v28, %v16389_v41  ;;  %v15070_v32 = vpop.eup %15069  ;;  %v840_v28 = vadd.f32 1e-05, %v776_v30 }
 0x1fa   :  { %v767_v17 = vmul.f32 0.03125, %v657_v24  ;;  %15079 = vrsqrt.f32 %v829_v25  ;;  %v956_v13 = vmul.f32 %v15070_v32, %v16341_v0  ;;  %v690_v21 = vpop.xlane.xlu1 %689  ;;  %v1096_v0 = vadd.f32 %v16513_v34, %v1025_v43 }
 0x1fb   :  { %12635 = vmatprep.mubr.msk.f32.mxu0 %vm149_vm0, %v1091_v31  ;;  %v1022_v26 = vmul.f32 %v16500_v51, %v951_v16  ;;  %15081 = vrsqrt.f32 %v834_v1 }
 0x1fc   :  { %v831_v46 = vadd.f32 1e-05, %v767_v17  ;;  %v15072_v59 = vpop.eup %15071  ;;  %12636 = vmatmul.mubr.msk.f32.gmra.mrb[30].mxu0 %vm149_vm0, %v1092_v19  ;;  %v1027_v18 = vmul.f32 %v16500_v51, %v956_v13 }
 0x1fd   :  { %v663_v7 = vpop.xlane.xlu0 %662  ;;  %v1093_v47 = vadd.f32 %v16513_v34, %v1022_v26  ;;  %v953_v4 = vmul.f32 %v15072_v59, %v16405_v14  ;;  %v15074_v20 = vpop.eup %15073 }
 0x1fe   :  { %v769_v41 = vmul.f32 0.03125, %v663_v7  ;;  %15083 = vrsqrt.f32 %v831_v46  ;;  %v958_v36 = vmul.f32 %v15074_v20, %v16353_v22  ;;  %v1098_v22 = vadd.f32 %v16513_v34, %v1027_v18 }
 0x1ff   :  { %12638 = vmatprep.mubr.msk.f32.mxu0 %vm149_vm0, %v1093_v47  ;;  %v1024_v49 = vmul.f32 %v16500_v51, %v953_v4  ;;  %15085 = vrsqrt.f32 %v836_v6 }
 0x200   :  { %v15076_v12 = vpop.eup %15075  ;;  %v833_v57 = vadd.f32 1e-05, %v769_v41  ;;  %12639 = vmatmul.mubr.msk.f32.gmra.mrb[32].mxu0 %vm149_vm0, %v1094_v44  ;;  %v1029_v31 = vmul.f32 %v16500_v51, %v958_v36 }
 0x201   :  { %v669_v14 = vpop.xlane.xlu0 %668  ;;  %v955_v10 = vmul.f32 %v15076_v12, %v16408_v63  ;;  %v1095_v15 = vadd.f32 %v16513_v34, %v1024_v49  ;;  %v15078_v55 = vpop.eup %15077  ;;  %v778_v63 = vmul.f32 0.03125, %v690_v21 }
 0x202   :  { %15087 = vrsqrt.f32 %v833_v57  ;;  %v771_v5 = vmul.f32 0.03125, %v669_v14  ;;  %v696_v61 = vpop.xlane.xlu1 %695  ;;  %v960_v1 = vmul.f32 %v15078_v55, %v16373_v60  ;;  %v1100_v60 = vadd.f32 %v16513_v34, %v1029_v31 }
 0x203   :  { %v1026_v3 = vmul.f32 %v16500_v51, %v955_v10  ;;  %12641 = vmatprep.mubr.msk.f32.mxu0 %vm149_vm0, %v1095_v15  ;;  %15089 = vrsqrt.f32 %v838_v2  ;;  %v842_v27 = vadd.f32 1e-05, %v778_v63  ;;  %v780_v35 = vmul.f32 0.03125, %v696_v61 }
 0x204   :  { %v835_v54 = vadd.f32 1e-05, %v771_v5  ;;  %v15080_v52 = vpop.eup %15079  ;;  %12642 = vmatmul.mubr.msk.f32.gmra.mrb[34].mxu0 %vm149_vm0, %v1096_v0  ;;  %v1031_v62 = vmul.f32 %v16500_v51, %v960_v1 }
 0x205   :  { %v675_v48 = vpop.xlane.xlu0 %674  ;;  %v1097_v25 = vadd.f32 %v16513_v34, %v1026_v3  ;;  %v957_v24 = vmul.f32 %v15080_v52, %v16424_v11  ;;  %v15082_v45 = vpop.eup %15081  ;;  %v844_v20 = vadd.f32 1e-05, %v780_v35 }
 0x206   :  { %v773_v42 = vmul.f32 0.03125, %v675_v48  ;;  %15091 = vrsqrt.f32 %v835_v54  ;;  %v702_v11 = vpop.xlane.xlu1 %701  ;;  %v962_v7 = vmul.f32 %v15082_v45, %v16385_v56  ;;  %v1102_v56 = vadd.f32 %v16513_v34, %v1031_v62  ;;  %v21346_v62 = vld [vmem:[#allocation15_spill] sm:$0xff] }
 0x207   :  { %12644 = vmatprep.mubr.msk.f32.mxu0 %vm149_vm0, %v1097_v25  ;;  %v1028_v16 = vmul.f32 %v16500_v51, %v957_v24  ;;  %15093 = vrsqrt.f32 %v840_v28  ;;  %v782_v43 = vmul.f32 0.03125, %v702_v11 }
 0x208   :  { %v837_v17 = vadd.f32 1e-05, %v773_v42  ;;  %v15084_v19 = vpop.eup %15083  ;;  %12645 = vmatmul.mubr.msk.f32.gmra.mrb[36].mxu0 %vm149_vm0, %v1098_v22  ;;  %v1033_v49 = vmul.f32 %v16500_v51, %v962_v7  ;;  %v16774_v7 = vld [vmem:[%s21023_s3] ss:$0 sm:$0xff] }
 0x209   :  { %v681_v32 = vpop.xlane.xlu0 %680  ;;  %v1099_v26 = vadd.f32 %v16513_v34, %v1028_v16  ;;  %v959_v59 = vmul.f32 %v15084_v19, %v16429_v8  ;;  %v15086_v6 = vpop.eup %15085  ;;  %v846_v0 = vadd.f32 1e-05, %v782_v43 }
 0x20a   :  { %v775_v46 = vmul.f32 0.03125, %v681_v32  ;;  %15095 = vrsqrt.f32 %v837_v17  ;;  %v964_v2 = vmul.f32 %v15086_v6, %v16402_v33  ;;  %v1104_v33 = vadd.f32 %v16513_v34, %v1033_v49  ;;  %v16762_v32 = vld [vmem:[%s21022_s2] ss:$0 sm:$0xff]  ;;  %v21349_v49 = vld [vmem:[#allocation17_spill] sm:$0xff] }
 0x20b   :  { %12647 = vmatprep.mubr.msk.f32.mxu0 %vm149_vm0, %v1099_v26  ;;  %v1030_v4 = vmul.f32 %v16500_v51, %v959_v59  ;;  %15097 = vrsqrt.f32 %v842_v27 }
 0x20c   :  { %v15088_v41 = vpop.eup %15087  ;;  %v839_v47 = vadd.f32 1e-05, %v775_v46  ;;  %12648 = vmatmul.mubr.msk.f32.gmra.mrb[38].mxu0 %vm149_vm0, %v1100_v60  ;;  %v1035_v36 = vmul.f32 %v16500_v51, %v964_v2  ;;  %v21345_v46 = vld [vmem:[#allocation33_spill] sm:$0xff] }
 0x20d   :  { %v687_v44 = vpop.xlane.xlu0 %686  ;;  %v961_v8 = vmul.f32 %v15088_v41, %v16442_v38  ;;  %v708_v13 = vpop.xlane.xlu1 %707  ;;  %v1101_v21 = vadd.f32 %v16513_v34, %v1030_v4  ;;  %v21347_v4 = vld [vmem:[#allocation34_spill] sm:$0xff] }
 0x20e   :  { %15099 = vrsqrt.f32 %v839_v47  ;;  %v777_v12 = vmul.f32 0.03125, %v687_v44  ;;  %v15090_v14 = vpop.eup %15089  ;;  %v784_v38 = vmul.f32 0.03125, %v708_v13  ;;  %v1106_v22 = vadd.f32 %v16513_v34, %v1035_v36  ;;  %v21348_v13 = vld [vmem:[#allocation18_spill] sm:$0xff] }
 0x20f   :  { %v1032_v57 = vmul.f32 %v16500_v51, %v961_v8  ;;  %12650 = vmatprep.mubr.msk.f32.mxu0 %vm149_vm0, %v1101_v21  ;;  %15101 = vrsqrt.f32 %v844_v20  ;;  %v966_v55 = vmul.f32 %v15090_v14, %v16414_v29 }
 0x210   :  { %v841_v10 = vadd.f32 1e-05, %v777_v12  ;;  %v15092_v30 = vpop.eup %15091  ;;  %12651 = vmatmul.mubr.msk.f32.gmra.mrb[40].mxu0 %vm149_vm0, %v1102_v56  ;;  %v848_v48 = vadd.f32 1e-05, %v784_v38 }
 0x211   :  { %v693_v5 = vpop.xlane.xlu0 %692  ;;  %v1103_v15 = vadd.f32 %v16513_v34, %v1032_v57  ;;  %v963_v18 = vmul.f32 %v15092_v30, %v16450_v39  ;;  %v15094_v61 = vpop.eup %15093  ;;  %v1037_v29 = vmul.f32 %v16500_v51, %v966_v55  ;;  %v21350_v30 = vld [vmem:[#allocation19_spill] sm:$0xff] }
 0x212   :  { %v779_v3 = vmul.f32 0.03125, %v693_v5  ;;  %15103 = vrsqrt.f32 %v841_v10  ;;  %v968_v31 = vmul.f32 %v15094_v61, %v16433_v37  ;;  %v21352_v61 = vld [vmem:[#allocation23_spill] sm:$0xff] }
 0x213   :  { %12653 = vmatprep.mubr.msk.f32.mxu0 %vm149_vm0, %v1103_v15  ;;  %v1034_v52 = vmul.f32 %v16500_v51, %v963_v18  ;;  %15105 = vrsqrt.f32 %v846_v0  ;;  %v1108_v35 = vadd.f32 %v16513_v34, %v1037_v29  ;;  %v21351_v18 = vld [vmem:[#allocation25_spill] sm:$0xff] }
 0x214   :  { %v843_v54 = vadd.f32 1e-05, %v779_v3  ;;  %v15096_v63 = vpop.eup %15095  ;;  %12654 = vmatmul.mubr.msk.f32.gmra.mrb[42].mxu0 %vm149_vm0, %v1104_v33  ;;  %v1039_v11 = vmul.f32 %v16762_v32, %v968_v31 }
 0x215   :  { %v699_v25 = vpop.xlane.xlu0 %698  ;;  %v1105_v28 = vadd.f32 %v16513_v34, %v1034_v52  ;;  %v965_v42 = vmul.f32 %v15096_v63, %v16461_v23  ;;  %v15098_v24 = vpop.eup %15097 }
 0x216   :  { %v781_v39 = vmul.f32 0.03125, %v699_v25  ;;  %15107 = vrsqrt.f32 %v843_v54  ;;  %v970_v26 = vmul.f32 %v15098_v24, %v21345_v46  ;;  %v1110_v41 = vadd.f32 %v16774_v7, %v1039_v11 }
 0x217   :  { %12656 = vmatprep.mubr.msk.f32.mxu0 %vm149_vm0, %v1105_v28  ;;  %v1036_v17 = vmul.f32 %v16500_v51, %v965_v42  ;;  %15109 = vrsqrt.f32 %v848_v48  ;;  %v714_v28 = vpop.xlane.xlu1 %713  ;;  %v16811_v42 = vld [vmem:[%s21025_s5] ss:$0 sm:$0xff] }
 0x218   :  { %v15100_v1 = vpop.eup %15099  ;;  %v845_v45 = vadd.f32 1e-05, %v781_v39  ;;  %12657 = vmatmul.mubr.msk.f32.gmra.mrb[44].mxu0 %vm149_vm0, %v1106_v22  ;;  %v1041_v47 = vmul.f32 %v16762_v32, %v970_v26  ;;  %v786_v24 = vmul.f32 0.03125, %v714_v28 }
 0x219   :  { %v705_v16 = vpop.xlane.xlu0 %704  ;;  %v967_v23 = vmul.f32 %v15100_v1, %v16468_v53  ;;  %v1107_v27 = vadd.f32 %v16513_v34, %v1036_v17  ;;  %v15102_v59 = vpop.eup %15101 }
 0x21a   :  { %15111 = vrsqrt.f32 %v845_v45  ;;  %v783_v19 = vmul.f32 0.03125, %v705_v16  ;;  %v972_v20 = vmul.f32 %v15102_v59, %v21347_v4  ;;  %v1112_v56 = vadd.f32 %v16774_v7, %v1041_v47 }
 0x21b   :  { %v1038_v37 = vmul.f32 %v16500_v51, %v967_v23  ;;  %12659 = vmatprep.mubr.msk.f32.mxu0 %vm149_vm0, %v1107_v27  ;;  %v720_v22 = vpop.xlane.xlu1 %719  ;;  %v850_v17 = vadd.f32 1e-05, %v786_v24 }
 0x21c   :  { %v847_v6 = vadd.f32 1e-05, %v783_v19  ;;  %v15104_v53 = vpop.eup %15103  ;;  %12660 = vmatmul.mubr.msk.f32.gmra.mrb[46].mxu0 %vm149_vm0, %v1108_v35  ;;  %v1043_v57 = vmul.f32 %v16762_v32, %v972_v20  ;;  %v788_v16 = vmul.f32 0.03125, %v720_v22 }
 0x21d   :  { %v1109_v60 = vadd.f32 %v16513_v34, %v1038_v37  ;;  %v969_v51 = vmul.f32 %v15104_v53, %v21346_v62  ;;  %v15106_v44 = vpop.eup %15105 }
 0x21e   :  { %15113 = vrsqrt.f32 %v847_v6  ;;  %v974_v2 = vmul.f32 %v15106_v44, %v21349_v49  ;;  %v1114_v15 = vadd.f32 %v16774_v7, %v1043_v57  ;;  %v852_v35 = vadd.f32 1e-05, %v788_v16  ;;  %v21357_v49 = vld [vmem:[#allocation16_spill] sm:$0xff] }
 0x21f   :  { %12662 = vmatprep.mubr.msk.f32.mxu0 %vm149_vm0, %v1109_v60  ;;  %v1040_v8 = vmul.f32 %v16762_v32, %v969_v51  ;;  %15115 = vrsqrt.f32 %v850_v17 }
 0x220   :  { %v15108_v34 = vpop.eup %15107  ;;  %12663 = vmatmul.mubr.msk.f32.gmra.mrb[48].mxu0 %vm149_vm0, %v1110_v41  ;;  %v1045_v3 = vmul.f32 %v16762_v32, %v974_v2  ;;  %15117 = vrsqrt.f32 %v852_v35 }
 0x221   :  { %v1111_v43 = vadd.f32 %v16774_v7, %v1040_v8  ;;  %v971_v12 = vmul.f32 %v15108_v34, %v21348_v13  ;;  %v15110_v21 = vpop.eup %15109  ;;  %v726_v27 = vpop.xlane.xlu1 %725 }
 0x222   :  { %v976_v33 = vmul.f32 %v15110_v21, %v21351_v18  ;;  %v1116_v52 = vadd.f32 %v16774_v7, %v1045_v3  ;;  %v790_v37 = vmul.f32 0.03125, %v726_v27 }
 0x223   :  { %12665 = vmatprep.mubr.msk.f32.mxu0 %vm149_vm0, %v1111_v43  ;;  %v1042_v10 = vmul.f32 %v16762_v32, %v971_v12 }
 0x224   :  { %v15112_v14 = vpop.eup %15111  ;;  %12666 = vmatmul.mubr.msk.f32.gmra.mrb[50].mxu0 %vm149_vm0, %v1112_v56  ;;  %v1047_v63 = vmul.f32 %v16762_v32, %v976_v33  ;;  %v854_v62 = vadd.f32 1e-05, %v790_v37  ;;  %v21358_v33 = vld [vmem:[#allocation21_spill] sm:$0xff] }
 0x225   :  { %v973_v38 = vmul.f32 %v15112_v14, %v21350_v30  ;;  %v1113_v5 = vadd.f32 %v16774_v7, %v1042_v10 }
 0x226   :  { %v1118_v39 = vadd.f32 %v16774_v7, %v1047_v63 }
 0x227   :  { %v1044_v0 = vmul.f32 %v16762_v32, %v973_v38  ;;  %12668 = vmatprep.mubr.msk.f32.mxu0 %vm149_vm0, %v1113_v5 }
 0x228   :  { %v15114_v36 = vpop.eup %15113  ;;  %12669 = vmatmul.mubr.msk.f32.gmra.mrb[52].mxu0 %vm149_vm0, %v1114_v15 }
 0x229   :  { %v1115_v55 = vadd.f32 %v16774_v7, %v1044_v0  ;;  %v975_v54 = vmul.f32 %v15114_v36, %v21352_v61  ;;  %v15116_v13 = vpop.eup %15115 }
 0x22a   :  { %v15118_v57 = vpop.eup %15117  ;;  %v978_v2 = vmul.f32 %v15116_v13, %v21357_v49 }
 0x22b   :  { %12671 = vmatprep.mubr.msk.f32.mxu0 %vm149_vm0, %v1115_v55  ;;  %v1046_v48 = vmul.f32 %v16762_v32, %v975_v54  ;;  %v980_v36 = vmul.f32 %v15118_v57, %v21358_v33 }
 0x22c   :  { %12672 = vmatmul.mubr.msk.f32.gmra.mrb[54].mxu0 %vm149_vm0, %v1116_v52  ;;  %v1049_v15 = vmul.f32 %v16762_v32, %v978_v2 }
 0x22d   :  { %v1117_v25 = vadd.f32 %v16774_v7, %v1046_v48  ;;  %v1051_v48 = vmul.f32 %v16762_v32, %v980_v36 }
 0x22e   :  { %v1120_v52 = vadd.f32 %v16774_v7, %v1049_v15 }
 0x22f   :  { %12674 = vmatprep.mubr.msk.f32.mxu0 %vm149_vm0, %v1117_v25 }
 0x230   :  { %12675 = vmatmul.mubr.msk.f32.gmra.mrb[56].mxu0 %vm149_vm0, %v1118_v39 }
 0x25a   :  { %v12592_v29 = vpop.f32.mrb[0].mxu0 }
 0x25b   :  { %v16814_v31 = vadd.f32 %v12592_v29, %v16811_v42  ;;  %v1394_v1 = vpop.f32.mrb[1].mxu0 }
 0x25c   :  { %v1395_v45 = vadd.f32 %v16811_v42, %v1394_v1 }
 0x25e   :  { %v16817_v23 = vmul.f32 0.25, %v1395_v45  ;;  %v16820_v19 = vpack.i.bf16 %v16814_v31, %v1395_v45 }
 0x260   :  { %21353 = vst [vmem:[#allocation20_spill] sm:$0xff] %v16817_v23  ;;  %21354 = vst [vmem:[#allocation29_spill] sm:$0xff] %v16820_v19  ;;  %12694 = vmatprep.mubr.msk.f32.mxu1 %vm1793_vm1, %v16817_v23  ;;  %14360 = vrot.lane.b32.xlu0 %v16820_v19, %s15768_s19 }
 0x262   :  { %v12595_v11 = vpop.f32.mrb[2].mxu0  ;;  %v711_v46 = vpop.xlane.xlu0 %710 }
 0x263   :  { %v16827_v26 = vadd.f32 %v12595_v11, %v16811_v42  ;;  %v785_v59 = vmul.f32 0.03125, %v711_v46  ;;  %v1404_v6 = vpop.f32.mrb[3].mxu0 }
 0x264   :  { %v16830_v53 = vadd.f32 %v16811_v42, %v1404_v6  ;;  %14365 = vrot.lane.b32.xlu0 %v16820_v19, %s15769_s20 }
 0x265   :  { %v849_v60 = vadd.f32 1e-05, %v785_v59 }
 0x266   :  { %v717_v51 = vpop.xlane.xlu0 %716  ;;  %v16836_v41 = vpack.i.bf16 %v16827_v26, %v16830_v53 }
 0x267   :  { %15119 = vrsqrt.f32 %v849_v60  ;;  %v787_v47 = vmul.f32 0.03125, %v717_v51 }
 0x268   :  { %21355 = vst [vmem:[#allocation22_spill] sm:$0xff] %v16836_v41  ;;  %14370 = vrot.lane.b32.xlu1 %v16836_v41, %s15768_s19  ;;  %15121 = vrsqrt.f32 %v854_v62 }
 0x269   :  { %v851_v4 = vadd.f32 1e-05, %v787_v47 }
 0x26a   :  { %v12598_v20 = vpop.f32.mrb[4].mxu0  ;;  %v723_v44 = vpop.xlane.xlu0 %722 }
 0x26b   :  { %15123 = vrsqrt.f32 %v851_v4  ;;  %v16841_v8 = vadd.f32 %v12598_v20, %v16811_v42  ;;  %v789_v34 = vmul.f32 0.03125, %v723_v44  ;;  %v1414_v43 = vpop.f32.mrb[5].mxu0 }
 0x26c   :  { %v16844_v12 = vadd.f32 %v16811_v42, %v1414_v43  ;;  %14375 = vrot.lane.b32.xlu1 %v16836_v41, %s15769_s20 }
 0x26d   :  { %v853_v21 = vadd.f32 1e-05, %v789_v34 }
 0x26e   :  { %v16850_v56 = vpack.i.bf16 %v16841_v8, %v16844_v12 }
 0x26f   :  { %15125 = vrsqrt.f32 %v853_v21 }
 0x270   :  { %21356 = vst [vmem:[#allocation24_spill] sm:$0xff] %v16850_v56  ;;  %14380 = vrot.lane.b32.xlu1 %v16850_v56, %s15768_s19  ;;  %14385 = vrot.lane.b32.xlu0 %v16850_v56, %s15769_s20 }
 0x271   :  { %v15120_v14 = vpop.eup %15119 }
 0x272   :  { %v12601_v10 = vpop.f32.mrb[6].mxu0  ;;  %v977_v30 = vmul.f32 %v15120_v14, %v16633_v58  ;;  %v15122_v0 = vpop.eup %15121 }
 0x273   :  { %v16859_v38 = vadd.f32 %v12601_v10, %v16811_v42  ;;  %v1424_v5 = vpop.f32.mrb[7].mxu0  ;;  %v982_v25 = vmul.f32 %v15122_v0, %v16559_v50  ;;  %v1122_v50 = vadd.f32 %v16774_v7, %v1051_v48 }
 0x274   :  { %v16863_v3 = vadd.f32 %v16811_v42, %v1424_v5  ;;  %v1048_v18 = vmul.f32 %v16762_v32, %v977_v30 }
 0x275   :  { %v15124_v55 = vpop.eup %15123  ;;  %v1053_v17 = vmul.f32 %v16762_v32, %v982_v25 }
 0x276   :  { %v16869_v61 = vpack.i.bf16 %v16859_v38, %v16863_v3  ;;  %v1119_v58 = vadd.f32 %v16774_v7, %v1048_v18  ;;  %v979_v54 = vmul.f32 %v15124_v55, %v16627_v40 }
 0x277   :  { %v1124_v27 = vadd.f32 %v16774_v7, %v1053_v17 }
 0x278   :  { %21359 = vst [vmem:[#allocation32_spill] sm:$0xff] %v16869_v61  ;;  %14390 = vrot.lane.b32.xlu1 %v16869_v61, %s15768_s19  ;;  %14395 = vrot.lane.b32.xlu0 %v16869_v61, %s15769_s20  ;;  %v1050_v63 = vmul.f32 %v16762_v32, %v979_v54 }
 0x279   :  { %v15126_v39 = vpop.eup %15125  ;;  %12677 = vmatprep.mubr.msk.f32.mxu0 %vm149_vm0, %v1119_v58 }
 0x27a   :  { %12678 = vmatmul.mubr.msk.f32.gmra.mrb[58].mxu0 %vm149_vm0, %v1120_v52  ;;  %v12604_v40 = vpop.f32.mrb[8].mxu0  ;;  %v1121_v28 = vadd.f32 %v16774_v7, %v1050_v63  ;;  %v981_v24 = vmul.f32 %v15126_v39, %v16640_v9 }
 0x27b   :  { %v16886_v22 = vadd.f32 %v12604_v40, %v16811_v42  ;;  %v1434_v29 = vpop.f32.mrb[9].mxu0 }
 0x27c   :  { %v16889_v1 = vadd.f32 %v16811_v42, %v1434_v29  ;;  %12680 = vmatprep.mubr.msk.f32.mxu0 %vm149_vm0, %v1121_v28  ;;  %v1052_v45 = vmul.f32 %v16762_v32, %v981_v24 }
 0x27d   :  { %v17302_v19 = vmul.f32 0.25, %v16886_v22 }
 0x27e   :  { %12681 = vmatmul.mubr.msk.f32.gmra.mrb[60].mxu0 %vm149_vm0, %v1122_v50  ;;  %v16898_v9 = vpack.i.bf16 %v16886_v22, %v16889_v1  ;;  %v1123_v16 = vadd.f32 %v16774_v7, %v1052_v45 }
 0x27f   :  { %21397 = vst [vmem:[#allocation55_spill] sm:$0xff] %v17302_v19 }
 0x280   :  { %21360 = vst [vmem:[#allocation26_spill] sm:$0xff] %v16898_v9  ;;  %14405 = vrot.lane.b32.xlu1 %v16898_v9, %s15769_s20  ;;  %14400 = vrot.lane.b32.xlu0 %v16898_v9, %s15768_s19 }
 0x281   :  { %12683 = vmatprep.mubr.msk.f32.mxu0 %vm149_vm0, %v1123_v16 }
 0x282   :  { %12684 = vmatmul.mubr.msk.f32.gmra.mrb[62].mxu0 %vm149_vm0, %v1124_v27  ;;  %v12607_v32 = vpop.f32.mrb[10].mxu0 }
 0x283   :  { %v16909_v35 = vadd.f32 %v12607_v32, %v16811_v42  ;;  %v1444_v37 = vpop.f32.mrb[11].mxu0 }
 0x284   :  { %v16912_v11 = vadd.f32 %v16811_v42, %v1444_v37 }
 0x286   :  { %v16916_v46 = vpack.i.bf16 %v16909_v35, %v16912_v11 }
 0x288   :  { %21361 = vst [vmem:[#allocation27_spill] sm:$0xff] %v16916_v46  ;;  %14410 = vrot.lane.b32.xlu1 %v16916_v46, %s15768_s19 }
 0x28a   :  { %v12610_v7 = vpop.f32.mrb[12].mxu0 }
 0x28b   :  { %v16921_v59 = vadd.f32 %v12610_v7, %v16811_v42  ;;  %v1454_v6 = vpop.f32.mrb[13].mxu0 }
 0x28c   :  { %v16924_v60 = vadd.f32 %v16811_v42, %v1454_v6  ;;  %14415 = vrot.lane.b32.xlu1 %v16916_v46, %s15769_s20 }
 0x28e   :  { %v16930_v62 = vpack.i.bf16 %v16921_v59, %v16924_v60 }
 0x290   :  { %21362 = vst [vmem:[#allocation28_spill] sm:$0xff] %v16930_v62  ;;  %14420 = vrot.lane.b32.xlu0 %v16930_v62, %s15768_s19 }
 0x292   :  { %v12613_v51 = vpop.f32.mrb[14].mxu0 }
 0x293   :  { %v16935_v47 = vadd.f32 %v12613_v51, %v16811_v42  ;;  %v1464_v4 = vpop.f32.mrb[15].mxu0 }
 0x294   :  { %v16938_v20 = vadd.f32 %v16811_v42, %v1464_v4  ;;  %14425 = vrot.lane.b32.xlu0 %v16930_v62, %s15769_s20 }
 0x296   :  { %v16944_v44 = vpack.i.bf16 %v16935_v47, %v16938_v20 }
 0x298   :  { %21363 = vst [vmem:[#allocation30_spill] sm:$0xff] %v16944_v44  ;;  %14430 = vrot.lane.b32.xlu1 %v16944_v44, %s15768_s19  ;;  %14435 = vrot.lane.b32.xlu0 %v16944_v44, %s15769_s20 }
 0x29a   :  { %v12616_v34 = vpop.f32.mrb[16].mxu0 }
 0x29b   :  { %v16951_v43 = vadd.f32 %v12616_v34, %v16811_v42  ;;  %v1474_v13 = vpop.f32.mrb[17].mxu0 }
 0x29c   :  { %v16954_v21 = vadd.f32 %v16811_v42, %v1474_v13 }
 0x29e   :  { %v16958_v57 = vpack.i.bf16 %v16951_v43, %v16954_v21 }
 0x2a0   :  { %21364 = vst [vmem:[#allocation31_spill] sm:$0xff] %v16958_v57  ;;  %14445 = vrot.lane.b32.xlu1 %v16958_v57, %s15769_s20  ;;  %14440 = vrot.lane.b32.xlu0 %v16958_v57, %s15768_s19 }
 0x2a2   :  { %v12619_v49 = vpop.f32.mrb[18].mxu0 }
 0x2a3   :  { %v16965_v2 = vadd.f32 %v12619_v49, %v16811_v42  ;;  %v1484_v14 = vpop.f32.mrb[19].mxu0 }
 0x2a4   :  { %v16968_v10 = vadd.f32 %v16811_v42, %v1484_v14 }
 0x2a6   :  { %v16972_v30 = vpack.i.bf16 %v16965_v2, %v16968_v10 }
 0x2a8   :  { %21365 = vst [vmem:[#allocation33_spill] sm:$0xff] %v16972_v30  ;;  %14450 = vrot.lane.b32.xlu1 %v16972_v30, %s15768_s19 }
 0x2aa   :  { %v12622_v5 = vpop.f32.mrb[20].mxu0 }
 0x2ab   :  { %v16977_v15 = vadd.f32 %v12622_v5, %v16811_v42  ;;  %v1494_v0 = vpop.f32.mrb[21].mxu0 }
 0x2ac   :  { %v16980_v18 = vadd.f32 %v16811_v42, %v1494_v0  ;;  %14455 = vrot.lane.b32.xlu1 %v16972_v30, %s15769_s20  ;;  %v21372_v0 = vmov 0 }
 0x2ad   :  { %v21373_v0 = vsel %vm17058_vm2, 4294967295, %v21372_v0 }
 0x2ae   :  { %v16986_v33 = vpack.i.bf16 %v16977_v15, %v16980_v18  ;;  %21374 = vst [vmem:[#allocation23_spill] sm:$0xff] %v21373_v0 }
 0x2b0   :  { %21366 = vst [vmem:[#allocation15_spill] sm:$0xff] %v16986_v33  ;;  %14460 = vrot.lane.b32.xlu0 %v16986_v33, %s15768_s19 }
 0x2b2   :  { %v12625_v36 = vpop.f32.mrb[22].mxu0 }
 0x2b3   :  { %v16991_v55 = vadd.f32 %v12625_v36, %v16811_v42  ;;  %v1504_v58 = vpop.f32.mrb[23].mxu0 }
 0x2b4   :  { %14465 = vrot.lane.b32.xlu0 %v16986_v33, %s15769_s20  ;;  %v16996_v54 = vadd.f32 %v16811_v42, %v1504_v58  ;;  %v17173_v33 = vmul.f32 0.25, %v16844_v12 }
 0x2b6   :  { %v17000_v52 = vpack.i.bf16 %v16991_v55, %v16996_v54  ;;  %21384 = vst [vmem:[#allocation42_spill] sm:$0xff] %v17173_v33 }
 0x2b8   :  { %21367 = vst [vmem:[#allocation34_spill] sm:$0xff] %v17000_v52  ;;  %14470 = vrot.lane.b32.xlu1 %v17000_v52, %s15768_s19  ;;  %14475 = vrot.lane.b32.xlu0 %v17000_v52, %s15769_s20 }
 0x2be   :  { %v12628_v63 = vpop.f32.mrb[24].mxu0 }
 0x2bf   :  { %v17007_v48 = vadd.f32 %v12628_v63, %v16811_v42  ;;  %v1514_v25 = vpop.f32.mrb[25].mxu0 }
 0x2c0   :  { %v17010_v39 = vadd.f32 %v16811_v42, %v1514_v25 }
 0x2c2   :  { %v17014_v40 = vpack.i.bf16 %v17007_v48, %v17010_v39 }
 0x2c4   :  { %21368 = vst [vmem:[#allocation18_spill] sm:$0xff] %v17014_v40  ;;  %14485 = vrot.lane.b32.xlu1 %v17014_v40, %s15769_s20  ;;  %14480 = vrot.lane.b32.xlu0 %v17014_v40, %s15768_s19  ;;  %v17133_v40 = vmul.f32 0.25, %v16814_v31 }
 0x2c6   :  { %v12631_v28 = vpop.f32.mrb[26].mxu0  ;;  %21380 = vst [vmem:[#allocation38_spill] sm:$0xff] %v17133_v40 }
 0x2c7   :  { %v17021_v24 = vadd.f32 %v12631_v28, %v16811_v42  ;;  %v1524_v29 = vpop.f32.mrb[27].mxu0 }
 0x2c8   :  { %v17024_v50 = vadd.f32 %v16811_v42, %v1524_v29 }
 0x2ca   :  { %v17028_v45 = vpack.i.bf16 %v17021_v24, %v17024_v50 }
 0x2cb   :  { %v12634_v17 = vpop.f32.mrb[28].mxu0 }
 0x2cc   :  { %21369 = vst [vmem:[#allocation17_spill] sm:$0xff] %v17028_v45  ;;  %v17031_v16 = vadd.f32 %v12634_v17, %v16811_v42  ;;  %14490 = vrot.lane.b32.xlu1 %v17028_v45, %s15768_s19  ;;  %v1534_v27 = vpop.f32.mrb[29].mxu0 }
 0x2cd   :  { %v17036_v32 = vadd.f32 %v16811_v42, %v1534_v27 }
 0x2cf   :  { %v12637_v37 = vpop.f32.mrb[30].mxu0  ;;  %v17040_v7 = vpack.i.bf16 %v17031_v16, %v17036_v32 }
 0x2d0   :  { %v17043_v6 = vadd.f32 %v12637_v37, %v16811_v42  ;;  %14495 = vrot.lane.b32.xlu1 %v17028_v45, %s15769_s20  ;;  %v1544_v51 = vpop.f32.mrb[31].mxu0 }
 0x2d1   :  { %21370 = vst [vmem:[#allocation19_spill] sm:$0xff] %v17040_v7  ;;  %v17048_v4 = vadd.f32 %v16811_v42, %v1544_v51  ;;  %14500 = vrot.lane.b32.xlu0 %v17040_v7, %s15768_s19 }
 0x2d2   :  { %v14361_v34 = vpop.permute.xlu0 %14360 }
 0x2d3   :  { %v14363_v13 = vunpack.i.h.bf16 %v14361_v34  ;;  %v14362_v49 = vunpack.i.l.bf16 %v14361_v34  ;;  %v12640_v14 = vpop.f32.mrb[32].mxu0  ;;  %v17054_v5 = vpack.i.bf16 %v17043_v6, %v17048_v4 }
 0x2d4   :  { %v17063_v36 = vadd.f32 %v12640_v14, %v16811_v42  ;;  %v1554_v58 = vpop.f32.mrb[33].mxu0 }
 0x2d5   :  { %21371 = vst [vmem:[#allocation25_spill] sm:$0xff] %v17054_v5  ;;  %v13694_v63 = vpack.c.bf16 %v14363_v13, %v14362_v49  ;;  %v1555_v25 = vadd.f32 %v16811_v42, %v1554_v58  ;;  %14505 = vrot.lane.b32.xlu0 %v17040_v7, %s15769_s20  ;;  %14510 = vrot.lane.b32.xlu1 %v17054_v5, %s15768_s19 }
 0x2d7   :  { %13696 = vmatprep.subr.msk.bf16.mxu1 %vm17058_vm2, %v13694_v63  ;;  %v12643_v28 = vpop.f32.mrb[34].mxu0  ;;  %v17075_v29 = vpack.i.bf16 %v17063_v36, %v1555_v25  ;;  %v17077_v17 = vmul.f32 0.25, %v1555_v25 }
 0x2d8   :  { %13699 = vmatpush3.bf16.xpose.msk.msra.mxu1 %vm17058_vm2, %v13694_v63  ;;  %v17080_v27 = vadd.f32 %v12643_v28, %v16811_v42  ;;  %v1564_v37 = vpop.f32.mrb[35].mxu0 }
 0x2d9   :  { %21375 = vst [vmem:[#allocation16_spill] sm:$0xff] %v17075_v29  ;;  %21376 = vst [vmem:[#allocation21_spill] sm:$0xff] %v17077_v17  ;;  %v17083_v51 = vadd.f32 %v16811_v42, %v1564_v37  ;;  %14515 = vrot.lane.b32.xlu0 %v17054_v5, %s15769_s20  ;;  %14525 = vrot.lane.b32.xlu1 %v17075_v29, %s15769_s20 }
 0x2da   :  { %v14371_v34 = vpop.permute.xlu1 %14370  ;;  %12806 = vmatprep.mubr.msk.f32.mxu0 %vm1793_vm1, %v17077_v17 }
 0x2db   :  { %v14373_v13 = vunpack.i.h.bf16 %v14371_v34  ;;  %v14372_v49 = vunpack.i.l.bf16 %v14371_v34  ;;  %v12646_v14 = vpop.f32.mrb[36].mxu0  ;;  %v17093_v58 = vpack.i.bf16 %v17080_v27, %v17083_v51 }
 0x2dc   :  { %v17096_v25 = vadd.f32 %v12646_v14, %v16811_v42  ;;  %v1574_v28 = vpop.f32.mrb[37].mxu0 }
 0x2dd   :  { %21377 = vst [vmem:[#allocation35_spill] sm:$0xff] %v17093_v58  ;;  %v13700_v63 = vpack.c.bf16 %v14373_v13, %v14372_v49  ;;  %v17099_v37 = vadd.f32 %v16811_v42, %v1574_v28  ;;  %14520 = vrot.lane.b32.xlu0 %v17075_v29, %s15768_s19  ;;  %14530 = vrot.lane.b32.xlu1 %v17093_v58, %s15768_s19 }
 0x2de   :  { %v17105_v34 = vpop.permute.xlu1 %14375 }
 0x2df   :  { %13702 = vmatprep.subr.msk.bf16.mxu1 %vm17058_vm2, %v13700_v63  ;;  %v12649_v17 = vpop.f32.mrb[38].mxu0  ;;  %v17113_v13 = vpack.i.bf16 %v17096_v25, %v17099_v37 }
 0x2e0   :  { %13705 = vmatpush3.bf16.xpose.msk.msra.mxu1 %vm17058_vm2, %v13700_v63  ;;  %v17116_v49 = vadd.f32 %v12649_v17, %v16811_v42  ;;  %v1584_v14 = vpop.f32.mrb[39].mxu0 }
 0x2e1   :  { %21378 = vst [vmem:[#allocation36_spill] sm:$0xff] %v17113_v13  ;;  %v17119_v28 = vadd.f32 %v16811_v42, %v1584_v14  ;;  %14535 = vrot.lane.b32.xlu1 %v17093_v58, %s15769_s20  ;;  %14540 = vrot.lane.b32.xlu0 %v17113_v13, %s15768_s19  ;;  %v17135_v58 = vpop.permute.xlu0 %14365 }
 0x2e2   :  { %v14381_v5 = vpop.permute.xlu1 %14380 }
 0x2e3   :  { %v14383_v29 = vunpack.i.h.bf16 %v14381_v5  ;;  %v14382_v63 = vunpack.i.l.bf16 %v14381_v5  ;;  %v12652_v45 = vpop.f32.mrb[40].mxu0  ;;  %v17127_v7 = vpack.i.bf16 %v17116_v49, %v17119_v28  ;;  %v17143_v5 = vmul.f32 0.25, %v16830_v53 }
 0x2e4   :  { %v17130_v52 = vadd.f32 %v12652_v45, %v16811_v42  ;;  %v1594_v14 = vpop.f32.mrb[41].mxu0 }
 0x2e5   :  { %21379 = vst [vmem:[#allocation37_spill] sm:$0xff] %v17127_v7  ;;  %v13706_v17 = vpack.c.bf16 %v14383_v29, %v14382_v63  ;;  %v17138_v30 = vadd.f32 %v16811_v42, %v1594_v14  ;;  %14545 = vrot.lane.b32.xlu1 %v17113_v13, %s15769_s20  ;;  %21381 = vst [vmem:[#allocation39_spill] sm:$0xff] %v17143_v5  ;;  %v17161_v63 = vmul.f32 0.25, %v16827_v26  ;;  %v17163_v14 = vpop.permute.xlu0 %14385 }
 0x2e7   :  { %12695 = vmatmul.mubr.msk.f32.vlgmr.msra.gmra.mrb[0].mxu1 %vm1793_vm1, %v17133_v40  ;;  %13708 = vmatprep.subr.msk.bf16.mxu1 %vm17058_vm2, %v13706_v17  ;;  %v12655_v45 = vpop.f32.mrb[42].mxu0  ;;  %v17155_v31 = vpack.i.bf16 %v17130_v52, %v17138_v30  ;;  %21383 = vst [vmem:[#allocation41_spill] sm:$0xff] %v17161_v63 }
 0x2e8   :  { %12697 = vmatprep.mubr.msk.f32.mxu1 %vm1793_vm1, %v17143_v5  ;;  %13711 = vmatpush3.bf16.xpose.msk.msra.mxu1 %vm17058_vm2, %v13706_v17  ;;  %v17158_v53 = vadd.f32 %v12655_v45, %v16811_v42  ;;  %v1604_v29 = vpop.f32.mrb[43].mxu0 }
 0x2e9   :  { %21382 = vst [vmem:[#allocation40_spill] sm:$0xff] %v17155_v31  ;;  %v17166_v13 = vadd.f32 %v16811_v42, %v1604_v29  ;;  %14550 = vrot.lane.b32.xlu1 %v17127_v7, %s15768_s19  ;;  %14560 = vrot.lane.b32.xlu0 %v17155_v31, %s15768_s19 }
 0x2ea   :  { %v14391_v17 = vpop.permute.xlu1 %14390  ;;  %v17186_v12 = vpop.permute.xlu0 %14395 }
 0x2eb   :  { %v14393_v45 = vunpack.i.h.bf16 %v14391_v17  ;;  %v14392_v44 = vunpack.i.l.bf16 %v14391_v17  ;;  %12698 = vmatmul.mubr.msk.f32.gmra.mrb[2].mxu1 %vm1793_vm1, %v17161_v63  ;;  %v12658_v26 = vpop.f32.mrb[44].mxu0  ;;  %v17181_v29 = vpack.i.bf16 %v17158_v53, %v17166_v13  ;;  %21386 = vst [vmem:[#allocation44_spill] sm:$0xff] %v17186_v12 }
 0x2ec   :  { %12708 = vmatprep.mubr.msk.f32.mxu1 %vm1793_vm1, %v17173_v33  ;;  %v17184_v5 = vadd.f32 %v12658_v26, %v16811_v42  ;;  %v1614_v46 = vpop.f32.mrb[45].mxu0 }
 0x2ed   :  { %21385 = vst [vmem:[#allocation43_spill] sm:$0xff] %v17181_v29  ;;  %v13712_v57 = vpack.c.bf16 %v14393_v45, %v14392_v44  ;;  %v17189_v17 = vadd.f32 %v16811_v42, %v1614_v46  ;;  %14555 = vrot.lane.b32.xlu1 %v17127_v7, %s15769_s20  ;;  %14565 = vrot.lane.b32.xlu0 %v17155_v31, %s15769_s20 }
 0x2ef   :  { %13714 = vmatprep.subr.msk.bf16.mxu1 %vm17058_vm2, %v13712_v57  ;;  %v12661_v63 = vpop.f32.mrb[46].mxu0  ;;  %v17201_v44 = vpack.i.bf16 %v17184_v5, %v17189_v17 }
 0x2f0   :  { %13717 = vmatpush3.bf16.xpose.msk.msra.mxu1 %vm17058_vm2, %v13712_v57  ;;  %v17204_v46 = vadd.f32 %v12661_v63, %v16811_v42  ;;  %v1624_v45 = vpop.f32.mrb[47].mxu0  ;;  %v17218_v63 = vmul.f32 0.25, %v16841_v8 }
 0x2f1   :  { %21387 = vst [vmem:[#allocation45_spill] sm:$0xff] %v17201_v44  ;;  %v17207_v26 = vadd.f32 %v16811_v42, %v1624_v45  ;;  %14575 = vrot.lane.b32.xlu0 %v17181_v29, %s15769_s20  ;;  %14570 = vrot.lane.b32.xlu1 %v17181_v29, %s15768_s19 }
 0x2f2   :  { %v14401_v7 = vpop.permute.xlu0 %14400  ;;  %21389 = vst [vmem:[#allocation47_spill] sm:$0xff] %v17218_v63  ;;  %v17223_v9 = vpop.permute.xlu1 %14405 }
 0x2f3   :  { %v14403_v31 = vunpack.i.h.bf16 %v14401_v7  ;;  %v14402_v57 = vunpack.i.l.bf16 %v14401_v7  ;;  %v12664_v33 = vpop.f32.mrb[48].mxu0  ;;  %v17215_v62 = vpack.i.bf16 %v17204_v46, %v17207_v26  ;;  %v17233_v7 = vmul.f32 0.25, %v16863_v3 }
 0x2f4   :  { %v17221_v45 = vadd.f32 %v12664_v33, %v16811_v42  ;;  %v1634_v40 = vpop.f32.mrb[49].mxu0 }
 0x2f5   :  { %21388 = vst [vmem:[#allocation46_spill] sm:$0xff] %v17215_v62  ;;  %v13718_v23 = vpack.c.bf16 %v14403_v31, %v14402_v57  ;;  %v17226_v29 = vadd.f32 %v16811_v42, %v1634_v40  ;;  %14585 = vrot.lane.b32.xlu1 %v17201_v44, %s15769_s20  ;;  %14580 = vrot.lane.b32.xlu0 %v17201_v44, %s15768_s19  ;;  %21390 = vst [vmem:[#allocation48_spill] sm:$0xff] %v17233_v7  ;;  %v17251_v31 = vmul.f32 0.25, %v16859_v38 }
 0x2f6   :  { %v17261_v44 = vmul.f32 0.25, %v16889_v1 }
 0x2f7   :  { %12709 = vmatmul.mubr.msk.f32.vlgmr.msra.gmra.mrb[4].mxu1 %vm1793_vm1, %v17218_v63  ;;  %13720 = vmatprep.subr.msk.bf16.mxu1 %vm17058_vm2, %v13718_v23  ;;  %v12667_v8 = vpop.f32.mrb[50].mxu0  ;;  %v17245_v33 = vpack.i.bf16 %v17221_v45, %v17226_v29  ;;  %21392 = vst [vmem:[#allocation50_spill] sm:$0xff] %v17251_v31 }
 0x2f8   :  { %12711 = vmatprep.mubr.msk.f32.mxu1 %vm1793_vm1, %v17233_v7  ;;  %13723 = vmatpush3.bf16.xpose.msk.msra.mxu1 %vm17058_vm2, %v13718_v23  ;;  %v17248_v3 = vadd.f32 %v12667_v8, %v16811_v42  ;;  %v1644_v40 = vpop.f32.mrb[51].mxu0  ;;  %21393 = vst [vmem:[#allocation51_spill] sm:$0xff] %v17261_v44 }
 0x2f9   :  { %21391 = vst [vmem:[#allocation49_spill] sm:$0xff] %v17245_v33  ;;  %v17254_v57 = vadd.f32 %v16811_v42, %v1644_v40  ;;  %14590 = vrot.lane.b32.xlu1 %v17215_v62, %s15768_s19  ;;  %14595 = vrot.lane.b32.xlu0 %v17245_v33, %s15768_s19 }
 0x2fa   :  { %v14411_v23 = vpop.permute.xlu1 %14410 }
 0x2fb   :  { %v14413_v7 = vunpack.i.h.bf16 %v14411_v23  ;;  %v14412_v8 = vunpack.i.l.bf16 %v14411_v23  ;;  %12712 = vmatmul.mubr.msk.f32.gmra.mrb[6].mxu1 %vm1793_vm1, %v17251_v31  ;;  %v12670_v38 = vpop.f32.mrb[52].mxu0  ;;  %v17269_v40 = vpack.i.bf16 %v17248_v3, %v17254_v57 }
 0x2fc   :  { %12722 = vmatprep.mubr.msk.f32.mxu1 %vm1793_vm1, %v17261_v44  ;;  %v17272_v61 = vadd.f32 %v12670_v38, %v16811_v42  ;;  %v1654_v56 = vpop.f32.mrb[53].mxu0 }
 0x2fd   :  { %21394 = vst [vmem:[#allocation52_spill] sm:$0xff] %v17269_v40  ;;  %v13724_v63 = vpack.c.bf16 %v14413_v7, %v14412_v8  ;;  %v17275_v1 = vadd.f32 %v16811_v42, %v1654_v56  ;;  %14600 = vrot.lane.b32.xlu0 %v17245_v33, %s15769_s20  ;;  %14605 = vrot.lane.b32.xlu1 %v17269_v40, %s15768_s19 }
 0x2fe   :  { %v17307_v40 = vpop.permute.xlu1 %14415 }
 0x2ff   :  { %13726 = vmatprep.subr.msk.bf16.mxu1 %vm17058_vm2, %v13724_v63  ;;  %v12673_v23 = vpop.f32.mrb[54].mxu0  ;;  %v17287_v7 = vpack.i.bf16 %v17272_v61, %v17275_v1 }
 0x300   :  { %13729 = vmatpush3.bf16.xpose.msk.msra.mxu1 %vm17058_vm2, %v13724_v63  ;;  %v17290_v56 = vadd.f32 %v12673_v23, %v16811_v42  ;;  %v1664_v8 = vpop.f32.mrb[55].mxu0 }
 0x301   :  { %21395 = vst [vmem:[#allocation53_spill] sm:$0xff] %v17287_v7  ;;  %v17293_v38 = vadd.f32 %v16811_v42, %v1664_v8  ;;  %14610 = vrot.lane.b32.xlu0 %v17287_v7, %s15768_s19 }
 0x302   :  { %v14421_v33 = vpop.permute.xlu0 %14420 }
 0x303   :  { %v14423_v31 = vunpack.i.h.bf16 %v14421_v33  ;;  %v14422_v44 = vunpack.i.l.bf16 %v14421_v33  ;;  %v12676_v41 = vpop.f32.mrb[56].mxu0  ;;  %v17299_v63 = vpack.i.bf16 %v17290_v56, %v17293_v38  ;;  %v17315_v33 = vmul.f32 0.25, %v16912_v11 }
 0x304   :  { %v17305_v62 = vadd.f32 %v12676_v41, %v16811_v42  ;;  %v1674_v8 = vpop.f32.mrb[57].mxu0  ;;  %v17332_v11 = vmul.f32 0.25, %v16909_v35 }
 0x305   :  { %21396 = vst [vmem:[#allocation54_spill] sm:$0xff] %v17299_v63  ;;  %v13730_v23 = vpack.c.bf16 %v14423_v31, %v14422_v44  ;;  %v17310_v7 = vadd.f32 %v16811_v42, %v1674_v8  ;;  %14615 = vrot.lane.b32.xlu1 %v17299_v63, %s15768_s19  ;;  %21398 = vst [vmem:[#allocation56_spill] sm:$0xff] %v17315_v33  ;;  %v17337_v31 = vmul.f32 0.25, %v16924_v60 }
 0x306   :  { %v17321_v41 = vpop.permute.xlu0 %14425  ;;  %21401 = vst [vmem:[#allocation59_spill] sm:$0xff] %v17332_v11 }
 0x307   :  { %12723 = vmatmul.mubr.msk.f32.vlgmr.msra.gmra.mrb[8].mxu1 %vm1793_vm1, %v17302_v19  ;;  %13732 = vmatprep.subr.msk.bf16.mxu1 %vm17058_vm2, %v13730_v23  ;;  %21399 = vst [vmem:[#allocation57_spill] sm:$0xff] %v17321_v41  ;;  %v17329_v22 = vpack.i.bf16 %v17305_v62, %v17310_v7  ;;  %21402 = vst [vmem:[#allocation60_spill] sm:$0xff] %v17337_v31 }
 0x308   :  { %12725 = vmatprep.mubr.msk.f32.mxu1 %vm1793_vm1, %v17315_v33  ;;  %13735 = vmatpush3.bf16.xpose.msk.msra.mxu1 %vm17058_vm2, %v13730_v23 }
 0x309   :  { %21400 = vst [vmem:[#allocation58_spill] sm:$0xff] %v17329_v22  ;;  %14620 = vrot.lane.b32.xlu0 %v17329_v22, %s15768_s19 }
 0x30a   :  { %v14431_v44 = vpop.permute.xlu1 %14430  ;;  %v17343_v33 = vpop.permute.xlu0 %14435 }
 0x30b   :  { %v14433_v8 = vunpack.i.h.bf16 %v14431_v44  ;;  %v14432_v19 = vunpack.i.l.bf16 %v14431_v44  ;;  %12726 = vmatmul.mubr.msk.f32.gmra.mrb[10].mxu1 %vm1793_vm1, %v17332_v11  ;;  %21403 = vst [vmem:[#allocation61_spill] sm:$0xff] %v17343_v33  ;;  %v17350_v44 = vmul.f32 0.25, %v16921_v59  ;;  %v17353_v11 = vmul.f32 0.25, %v16938_v20 }
 0x30c   :  { %12736 = vmatprep.mubr.msk.f32.mxu1 %vm1793_vm1, %v17337_v31  ;;  %v17369_v59 = vmul.f32 0.25, %v16954_v21 }
 0x30d   :  { %v13736_v23 = vpack.c.bf16 %v14433_v8, %v14432_v19  ;;  %21404 = vst [vmem:[#allocation62_spill] sm:$0xff] %v17350_v44  ;;  %21405 = vst [vmem:[#allocation63_spill] sm:$0xff] %v17353_v11  ;;  %v17366_v19 = vmul.f32 0.25, %v16935_v47 }
 0x30e   :  { %21407 = vst [vmem:[#allocation65_spill] sm:$0xff] %v17369_v59 }
 0x30f   :  { %13738 = vmatprep.subr.msk.bf16.mxu1 %vm17058_vm2, %v13736_v23  ;;  %21406 = vst [vmem:[#allocation64_spill] sm:$0xff] %v17366_v19 }
 0x310   :  { %13741 = vmatpush3.bf16.xpose.msk.msra.mxu1 %vm17058_vm2, %v13736_v23 }
 0x312   :  { %v14441_v35 = vpop.permute.xlu0 %14440  ;;  %v17355_v31 = vpop.permute.xlu1 %14445 }
 0x313   :  { %v14443_v60 = vunpack.i.h.bf16 %v14441_v35  ;;  %v14442_v63 = vunpack.i.l.bf16 %v14441_v35 }
 0x315   :  { %v13742_v22 = vpack.c.bf16 %v14443_v60, %v14442_v63  ;;  %v17380_v60 = vmul.f32 0.25, %v16951_v43  ;;  %v17396_v43 = vmul.f32 0.25, %v16965_v2 }
 0x317   :  { %12737 = vmatmul.mubr.msk.f32.vlgmr.msra.gmra.mrb[12].mxu1 %vm1793_vm1, %v17350_v44  ;;  %13744 = vmatprep.subr.msk.bf16.mxu1 %vm17058_vm2, %v13742_v22  ;;  %21408 = vst [vmem:[#allocation66_spill] sm:$0xff] %v17380_v60  ;;  %21411 = vst [vmem:[#allocation69_spill] sm:$0xff] %v17396_v43 }
 0x318   :  { %12739 = vmatprep.mubr.msk.f32.mxu1 %vm1793_vm1, %v17353_v11  ;;  %13747 = vmatpush3.bf16.xpose.msk.msra.mxu1 %vm17058_vm2, %v13742_v22 }
 0x31a   :  { %v14451_v20 = vpop.permute.xlu1 %14450 }
 0x31b   :  { %12740 = vmatmul.mubr.msk.f32.gmra.mrb[14].mxu1 %vm1793_vm1, %v17366_v19  ;;  %v14453_v63 = vunpack.i.h.bf16 %v14451_v20  ;;  %v14452_v8 = vunpack.i.l.bf16 %v14451_v20  ;;  %v17387_v20 = vmul.f32 0.25, %v16968_v10 }
 0x31c   :  { %12750 = vmatprep.mubr.msk.f32.mxu1 %vm1793_vm1, %v17369_v59 }
 0x31d   :  { %v13748_v23 = vpack.c.bf16 %v14453_v63, %v14452_v8  ;;  %21410 = vst [vmem:[#allocation68_spill] sm:$0xff] %v17387_v20  ;;  %v17399_v8 = vmul.f32 0.25, %v16980_v18  ;;  %v17414_v18 = vmul.f32 0.25, %v16977_v15  ;;  %v17429_v15 = vmul.f32 0.25, %v17010_v39 }
 0x31e   :  { %v17382_v11 = vpop.permute.xlu1 %14455 }
 0x31f   :  { %13750 = vmatprep.subr.msk.bf16.mxu1 %vm17058_vm2, %v13748_v23  ;;  %21409 = vst [vmem:[#allocation67_spill] sm:$0xff] %v17382_v11  ;;  %21412 = vst [vmem:[#allocation70_spill] sm:$0xff] %v17399_v8 }
 0x320   :  { %13753 = vmatpush3.bf16.xpose.msk.msra.mxu1 %vm17058_vm2, %v13748_v23  ;;  %21415 = vst [vmem:[#allocation73_spill] sm:$0xff] %v17414_v18  ;;  %21419 = vst [vmem:[#allocation77_spill] sm:$0xff] %v17429_v15 }
 0x322   :  { %v14461_v47 = vpop.permute.xlu0 %14460 }
 0x323   :  { %v14463_v22 = vunpack.i.h.bf16 %v14461_v47  ;;  %v14462_v21 = vunpack.i.l.bf16 %v14461_v47 }
 0x325   :  { %v13754_v35 = vpack.c.bf16 %v14463_v22, %v14462_v21 }
 0x326   :  { %v17403_v10 = vpop.permute.xlu0 %14465 }
 0x327   :  { %13756 = vmatprep.subr.msk.bf16.mxu1 %vm17058_vm2, %v13754_v35  ;;  %12751 = vmatmul.mubr.msk.f32.vlgmr.msra.gmra.mrb[16].mxu1 %vm1793_vm1, %v17380_v60  ;;  %21413 = vst [vmem:[#allocation71_spill] sm:$0xff] %v17403_v10 }
 0x328   :  { %12753 = vmatprep.mubr.msk.f32.mxu1 %vm1793_vm1, %v17387_v20  ;;  %13759 = vmatpush3.bf16.xpose.msk.msra.mxu1 %vm17058_vm2, %v13754_v35  ;;  %v17417_v35 = vmul.f32 0.25, %v16996_v54 }
 0x32a   :  { %v14471_v63 = vpop.permute.xlu1 %14470  ;;  %v17411_v2 = vpop.permute.xlu0 %14475  ;;  %21416 = vst [vmem:[#allocation74_spill] sm:$0xff] %v17417_v35 }
 0x32b   :  { %v14473_v23 = vunpack.i.h.bf16 %v14471_v63  ;;  %v14472_v47 = vunpack.i.l.bf16 %v14471_v63  ;;  %12754 = vmatmul.mubr.msk.f32.gmra.mrb[18].mxu1 %vm1793_vm1, %v17396_v43  ;;  %21414 = vst [vmem:[#allocation72_spill] sm:$0xff] %v17411_v2 }
 0x32c   :  { %12764 = vmatprep.mubr.msk.f32.mxu1 %vm1793_vm1, %v17399_v8 }
 0x32d   :  { %v13760_v22 = vpack.c.bf16 %v14473_v23, %v14472_v47  ;;  %v17424_v47 = vmul.f32 0.25, %v16991_v55 }
 0x32f   :  { %13762 = vmatprep.subr.msk.bf16.mxu1 %vm17058_vm2, %v13760_v22  ;;  %21417 = vst [vmem:[#allocation75_spill] sm:$0xff] %v17424_v47 }
 0x330   :  { %13765 = vmatpush3.bf16.xpose.msk.msra.mxu1 %vm17058_vm2, %v13760_v22 }
 0x336   :  { %v14481_v21 = vpop.permute.xlu0 %14480  ;;  %v17426_v22 = vpop.permute.xlu1 %14485 }
 0x337   :  { %v14483_v63 = vunpack.i.h.bf16 %v14481_v21  ;;  %v14482_v20 = vunpack.i.l.bf16 %v14481_v21  ;;  %12765 = vmatmul.mubr.msk.f32.vlgmr.msra.gmra.mrb[20].mxu1 %vm1793_vm1, %v17414_v18  ;;  %21418 = vst [vmem:[#allocation76_spill] sm:$0xff] %v17426_v22 }
 0x338   :  { %12767 = vmatprep.mubr.msk.f32.mxu1 %vm1793_vm1, %v17417_v35 }
 0x339   :  { %v13766_v23 = vpack.c.bf16 %v14483_v63, %v14482_v20 }
 0x33b   :  { %12768 = vmatmul.mubr.msk.f32.gmra.mrb[22].mxu1 %vm1793_vm1, %v17424_v47  ;;  %13768 = vmatprep.subr.msk.bf16.mxu1 %vm17058_vm2, %v13766_v23 }
 0x33c   :  { %13771 = vmatpush3.bf16.xpose.msk.msra.mxu1 %vm17058_vm2, %v13766_v23  ;;  %12778 = vmatprep.mubr.msk.f32.mxu1 %vm1793_vm1, %v17429_v15 }
 0x33e   :  { %v14491_v54 = vpop.permute.xlu1 %14490 }
 0x33f   :  { %v14493_v55 = vunpack.i.h.bf16 %v14491_v54  ;;  %v14492_v20 = vunpack.i.l.bf16 %v14491_v54  ;;  %v17450_v54 = vmul.f32 0.25, %v17007_v48 }
 0x341   :  { %v13772_v21 = vpack.c.bf16 %v14493_v55, %v14492_v20  ;;  %21422 = vst [vmem:[#allocation80_spill] sm:$0xff] %v17450_v54  ;;  %v17453_v20 = vmul.f32 0.25, %v17024_v50  ;;  %v17471_v50 = vmul.f32 0.25, %v17021_v24 }
 0x342   :  { %v17439_v63 = vpop.permute.xlu1 %14495 }
 0x343   :  { %21420 = vst [vmem:[#allocation78_spill] sm:$0xff] %v17439_v63  ;;  %v14501_v39 = vpop.permute.xlu0 %14500  ;;  %13774 = vmatprep.subr.msk.bf16.mxu1 %vm17058_vm2, %v13772_v21  ;;  %21423 = vst [vmem:[#allocation81_spill] sm:$0xff] %v17453_v20 }
 0x344   :  { %v14503_v35 = vunpack.i.h.bf16 %v14501_v39  ;;  %v14502_v47 = vunpack.i.l.bf16 %v14501_v39  ;;  %13777 = vmatpush3.bf16.xpose.msk.msra.mxu1 %vm17058_vm2, %v13772_v21  ;;  %21426 = vst [vmem:[#allocation84_spill] sm:$0xff] %v17471_v50  ;;  %v17479_v21 = vmul.f32 0.25, %v17036_v32 }
 0x346   :  { %v13778_v43 = vpack.c.bf16 %v14503_v35, %v14502_v47  ;;  %v15643_v47 = vld [vmem:[%s21025_s5] ss:$0 sm:$0xff]  ;;  %21427 = vst [vmem:[#allocation85_spill] sm:$0xff] %v17479_v21  ;;  %s15770_s5 = smov 80  }
 0x347   :  { %v14511_v23 = vpop.permute.xlu1 %14510  ;;  %v17445_v8 = vpop.permute.xlu0 %14505 }
 0x348   :  { %21421 = vst [vmem:[#allocation79_spill] sm:$0xff] %v17445_v8  ;;  %v14513_v15 = vunpack.i.h.bf16 %v14511_v23  ;;  %v14512_v18 = vunpack.i.l.bf16 %v14511_v23  ;;  %13780 = vmatprep.subr.msk.bf16.mxu1 %vm17058_vm2, %v13778_v43 }
 0x34a   :  { %v13784_v55 = vpack.c.bf16 %v14513_v15, %v14512_v18 }
 0x34b   :  { %v17455_v39 = vpop.permute.xlu1 %14525  ;;  %v17457_v19 = vpop.permute.xlu0 %14515  ;;  %12779 = vmatmul.mubr.msk.f32.vlgmr.msra.gmra.mrb[24].mxu1 %vm1793_vm1, %v17450_v54 }
 0x34c   :  { %21424 = vst [vmem:[#allocation82_spill] sm:$0xff] %v17455_v39  ;;  %21425 = vst [vmem:[#allocation83_spill] sm:$0xff] %v17457_v19  ;;  %12781 = vmatprep.mubr.msk.f32.mxu1 %vm1793_vm1, %v17453_v20  ;;  %13783 = vmatpush3.bf16.xpose.msk.msra.mxu1 %vm17058_vm2, %v13778_v43 }
 0x34d   :  { %v12679_v35 = vpop.f32.mrb[58].mxu0  ;;  %13786 = vmatprep.subr.msk.bf16.mxu1 %vm17058_vm2, %v13784_v55 }
 0x34e   :  { %v17466_v48 = vadd.f32 %v12679_v35, %v16811_v42  ;;  %v1684_v18 = vpop.f32.mrb[59].mxu0 }
 0x34f   :  { %v17476_v15 = vadd.f32 %v15643_v47, %v1684_v18  ;;  %v14531_v43 = vpop.permute.xlu1 %14530  ;;  %v14521_v23 = vpop.permute.xlu0 %14520  ;;  %12782 = vmatmul.mubr.msk.f32.gmra.mrb[26].mxu1 %vm1793_vm1, %v17471_v50 }
 0x350   :  { %v14533_v42 = vunpack.i.h.bf16 %v14531_v43  ;;  %v14532_v35 = vunpack.i.l.bf16 %v14531_v43  ;;  %v14523_v20 = vunpack.i.h.bf16 %v14521_v23  ;;  %v14522_v54 = vunpack.i.l.bf16 %v14521_v23  ;;  %12792 = vmatprep.mubr.msk.f32.mxu1 %vm1793_vm1, %v17479_v21 }
 0x351   :  { %v12682_v24 = vpop.f32.mrb[60].mxu0  ;;  %v17489_v32 = vpack.i.bf16 %v17466_v48, %v17476_v15 }
 0x352   :  { %v17485_v59 = vadd.f32 %v15643_v47, %v12682_v24  ;;  %v1694_v18 = vpop.f32.mrb[61].mxu0  ;;  %v13790_v60 = vpack.c.bf16 %v14523_v20, %v14522_v54  ;;  %v13796_v50 = vpack.c.bf16 %v14533_v42, %v14532_v35 }
 0x353   :  { %21428 = vst [vmem:[#allocation86_spill] sm:$0xff] %v17489_v32  ;;  %v17491_v44 = vadd.f32 %v15643_v47, %v1694_v18  ;;  %14625 = vrot.lane.b32.xlu1 %v17489_v32, %s15768_s19  ;;  %v17495_v43 = vpop.permute.xlu1 %14535  ;;  %v14541_v23 = vpop.permute.xlu0 %14540 }
 0x354   :  { %21429 = vst [vmem:[#allocation87_spill] sm:$0xff] %v17495_v43  ;;  %v14543_v19 = vunpack.i.h.bf16 %v14541_v23  ;;  %v14542_v8 = vunpack.i.l.bf16 %v14541_v23  ;;  %13789 = vmatpush3.bf16.xpose.msk.msra.mxu1 %vm17058_vm2, %v13784_v55  ;;  %13792 = vmatprep.subr.msk.bf16.mxu0 %vm17058_vm2, %v13790_v60 }
 0x355   :  { %v12685_v21 = vpop.f32.mrb[62].mxu0  ;;  %13795 = vmatpush3.bf16.xpose.msk.msra.mxu0 %vm17058_vm2, %v13790_v60  ;;  %v17507_v20 = vpack.i.bf16 %v17485_v59, %v17491_v44 }
 0x356   :  { %v17501_v24 = vadd.f32 %v15643_v47, %v12685_v21  ;;  %v1704_v54 = vpop.f32.mrb[63].mxu0  ;;  %v13802_v42 = vpack.c.bf16 %v14543_v19, %v14542_v8  ;;  %13798 = vmatprep.subr.msk.bf16.mxu0 %vm17058_vm2, %v13796_v50  ;;  %v17524_v21 = vmul.f32 0.25, %v17031_v16  ;;  %v17529_v19 = vmul.f32 0.25, %v17048_v4 }
 0x357   :  { %21430 = vst [vmem:[#allocation88_spill] sm:$0xff] %v17507_v20  ;;  %v17509_v35 = vadd.f32 %v15643_v47, %v1704_v54  ;;  %14630 = vrot.lane.b32.xlu0 %v17507_v20, %s15768_s19  ;;  %v17515_v55 = vpop.permute.xlu1 %14545  ;;  %v17540_v16 = vmul.f32 0.25, %v17043_v6  ;;  %v17558_v6 = vmul.f32 0.25, %v17063_v36 }
 0x358   :  { %21431 = vst [vmem:[#allocation89_spill] sm:$0xff] %v17515_v55  ;;  %13804 = vmatprep.subr.msk.bf16.mxu1 %vm17058_vm2, %v13802_v42  ;;  %21433 = vst [vmem:[#allocation91_spill] sm:$0xff] %v17524_v21 }
 0x359   :  { %v17521_v60 = vpack.i.bf16 %v17501_v24, %v17509_v35  ;;  %21434 = vst [vmem:[#allocation92_spill] sm:$0xff] %v17529_v19  ;;  %21435 = vst [vmem:[#allocation93_spill] sm:$0xff] %v17540_v16 }
 0x35a   :  { %21439 = vst [vmem:[#allocation97_spill] sm:$0xff] %v17558_v6 }
 0x35b   :  { %21432 = vst [vmem:[#allocation90_spill] sm:$0xff] %v17521_v60  ;;  %14635 = vrot.lane.b32.xlu1 %v17521_v60, %s15768_s19  ;;  %v14551_v8 = vpop.permute.xlu1 %14550  ;;  %v14561_v47 = vpop.permute.xlu0 %14560  ;;  %12793 = vmatmul.mubr.msk.f32.vlgmr.msra.gmra.mrb[28].mxu1 %vm1793_vm1, %v17524_v21  ;;  %v17543_v21 = vmul.f32 0.25, %v17099_v37 }
 0x35c   :  { %v14553_v18 = vunpack.i.h.bf16 %v14551_v8  ;;  %v14552_v23 = vunpack.i.l.bf16 %v14551_v8  ;;  %v14563_v54 = vunpack.i.h.bf16 %v14561_v47  ;;  %v14562_v20 = vunpack.i.l.bf16 %v14561_v47  ;;  %12795 = vmatprep.mubr.msk.f32.mxu1 %vm1793_vm1, %v17529_v19  ;;  %13807 = vmatpush3.bf16.xpose.msk.msra.mxu1 %vm17058_vm2, %v13802_v42 }
 0x35d   :  { %13801 = vmatpush3.bf16.xpose.msk.msra.mxu0 %vm17058_vm2, %v13796_v50  ;;  %21436 = vst [vmem:[#allocation94_spill] sm:$0xff] %v17543_v21 }
 0x35e   :  { %v13808_v4 = vpack.c.bf16 %v14553_v18, %v14552_v23  ;;  %v13814_v60 = vpack.c.bf16 %v14563_v54, %v14562_v20  ;;  %v17563_v20 = vmul.f32 0.25, %v17083_v51  ;;  %v17574_v23 = vmul.f32 0.25, %v17080_v27 }
 0x35f   :  { %v17545_v8 = vpop.permute.xlu1 %14555  ;;  %v17547_v47 = vpop.permute.xlu0 %14565  ;;  %12796 = vmatmul.mubr.msk.f32.gmra.mrb[30].mxu1 %vm1793_vm1, %v17540_v16 }
 0x360   :  { %21437 = vst [vmem:[#allocation95_spill] sm:$0xff] %v17545_v8  ;;  %21438 = vst [vmem:[#allocation96_spill] sm:$0xff] %v17547_v47  ;;  %13810 = vmatprep.subr.msk.bf16.mxu1 %vm17058_vm2, %v13808_v4  ;;  %12820 = vmatprep.mubr.msk.f32.mxu1 %vm1793_vm1, %v17543_v21 }
 0x361   :  { %13816 = vmatprep.subr.msk.bf16.mxu0 %vm17058_vm2, %v13814_v60  ;;  %21441 = vst [vmem:[#allocation99_spill] sm:$0xff] %v17563_v20  ;;  %21442 = vst [vmem:[#allocation100_spill] sm:$0xff] %v17574_v23 }
 0x363   :  { %v14571_v37 = vpop.permute.xlu1 %14570  ;;  %v17560_v50 = vpop.permute.xlu0 %14575 }
 0x364   :  { %21440 = vst [vmem:[#allocation98_spill] sm:$0xff] %v17560_v50  ;;  %v14573_v42 = vunpack.i.h.bf16 %v14571_v37  ;;  %v14572_v18 = vunpack.i.l.bf16 %v14571_v37  ;;  %12807 = vmatmul.mubr.msk.f32.vlgmr.msra.gmra.mrb[64].mxu0 %vm1793_vm1, %v17558_v6  ;;  %13813 = vmatpush3.bf16.xpose.msk.msra.mxu1 %vm17058_vm2, %v13808_v4  ;;  %v17579_v37 = vmul.f32 0.25, %v17138_v30  ;;  %v17591_v4 = vmul.f32 0.25, %v17119_v28 }
 0x365   :  { %12809 = vmatprep.mubr.msk.f32.mxu0 %vm1793_vm1, %v17563_v20  ;;  %13819 = vmatpush3.bf16.xpose.msk.msra.mxu0 %vm17058_vm2, %v13814_v60  ;;  %v17586_v60 = vmul.f32 0.25, %v17096_v25  ;;  %v17604_v25 = vmul.f32 0.25, %v17116_v49 }
 0x366   :  { %v13820_v36 = vpack.c.bf16 %v14573_v42, %v14572_v18  ;;  %21444 = vst [vmem:[#allocation102_spill] sm:$0xff] %v17579_v37  ;;  %21446 = vst [vmem:[#allocation104_spill] sm:$0xff] %v17591_v4 }
 0x367   :  { %v17576_v51 = vpop.permute.xlu1 %14585  ;;  %v14581_v54 = vpop.permute.xlu0 %14580  ;;  %21445 = vst [vmem:[#allocation103_spill] sm:$0xff] %v17586_v60  ;;  %21447 = vst [vmem:[#allocation105_spill] sm:$0xff] %v17604_v25 }
 0x368   :  { %21443 = vst [vmem:[#allocation101_spill] sm:$0xff] %v17576_v51  ;;  %v14583_v21 = vunpack.i.h.bf16 %v14581_v54  ;;  %v14582_v6 = vunpack.i.l.bf16 %v14581_v54  ;;  %12810 = vmatmul.mubr.msk.f32.gmra.mrb[66].mxu0 %vm1793_vm1, %v17574_v23  ;;  %13822 = vmatprep.subr.msk.bf16.mxu0 %vm17058_vm2, %v13820_v36 }
 0x369   :  { %12834 = vmatprep.mubr.msk.f32.mxu0 %vm1793_vm1, %v17579_v37 }
 0x36a   :  { %v13826_v27 = vpack.c.bf16 %v14583_v21, %v14582_v6  ;;  %v17607_v6 = vmul.f32 0.25, %v17189_v17  ;;  %v17620_v17 = vmul.f32 0.25, %v17130_v52  ;;  %v17634_v52 = vmul.f32 0.25, %v17158_v53 }
 0x36b   :  { %v14591_v30 = vpop.permute.xlu1 %14590  ;;  %v14596_v42 = vpop.permute.xlu0 %14595  ;;  %12821 = vmatmul.mubr.msk.f32.vlgmr.msra.gmra.mrb[32].mxu1 %vm1793_vm1, %v17586_v60  ;;  %v17648_v53 = vmul.f32 0.25, %v17184_v5  ;;  %v17664_v5 = vmul.f32 0.25, %v17204_v46  ;;  %v17690_v46 = vmul.f32 0.25, %v17248_v3  ;;  %v17710_v3 = vmul.f32 0.25, %v17290_v56 }
 0x36c   :  { %v14593_v18 = vunpack.i.h.bf16 %v14591_v30  ;;  %v14592_v54 = vunpack.i.l.bf16 %v14591_v30  ;;  %v14598_v20 = vunpack.i.h.bf16 %v14596_v42  ;;  %v14597_v23 = vunpack.i.l.bf16 %v14596_v42  ;;  %12823 = vmatprep.mubr.msk.f32.mxu1 %vm1793_vm1, %v17591_v4  ;;  %13828 = vmatprep.subr.msk.bf16.mxu1 %vm17058_vm2, %v13826_v27  ;;  %21448 = vst [vmem:[#allocation106_spill] sm:$0xff] %v17607_v6  ;;  %21450 = vst [vmem:[#allocation108_spill] sm:$0xff] %v17620_v17 }
 0x36d   :  { %13825 = vmatpush3.bf16.xpose.msk.msra.mxu0 %vm17058_vm2, %v13820_v36  ;;  %13831 = vmatpush3.bf16.xpose.msk.msra.mxu1 %vm17058_vm2, %v13826_v27  ;;  %21452 = vst [vmem:[#allocation110_spill] sm:$0xff] %v17634_v52  ;;  %21454 = vst [vmem:[#allocation112_spill] sm:$0xff] %v17648_v53 }
 0x36e   :  { %v13832_v28 = vpack.c.bf16 %v14593_v18, %v14592_v54  ;;  %v13838_v21 = vpack.c.bf16 %v14598_v20, %v14597_v23  ;;  %v17623_v23 = vmul.f32 0.25, %v17166_v13  ;;  %21456 = vst [vmem:[#allocation114_spill] sm:$0xff] %v17664_v5  ;;  %21460 = vst [vmem:[#allocation118_spill] sm:$0xff] %v17690_v46 }
 0x36f   :  { %v14606_v30 = vpop.permute.xlu1 %14605  ;;  %v17609_v42 = vpop.permute.xlu0 %14600  ;;  %12824 = vmatmul.mubr.msk.f32.gmra.mrb[34].mxu1 %vm1793_vm1, %v17604_v25  ;;  %21464 = vst [vmem:[#allocation122_spill] sm:$0xff] %v17710_v3 }
 0x370   :  { %21449 = vst [vmem:[#allocation107_spill] sm:$0xff] %v17609_v42  ;;  %13834 = vmatprep.subr.msk.bf16.mxu1 %vm17058_vm2, %v13832_v28  ;;  %12848 = vmatprep.mubr.msk.f32.mxu1 %vm1793_vm1, %v17607_v6  ;;  %v14608_v36 = vunpack.i.h.bf16 %v14606_v30  ;;  %v14607_v49 = vunpack.i.l.bf16 %v14606_v30  ;;  %21451 = vst [vmem:[#allocation109_spill] sm:$0xff] %v17623_v23 }
 0x371   :  { %13840 = vmatprep.subr.msk.bf16.mxu0 %vm17058_vm2, %v13838_v21 }
 0x372   :  { %v13844_v54 = vpack.c.bf16 %v14608_v36, %v14607_v49 }
 0x373   :  { %v14611_v20 = vpop.permute.xlu0 %14610 }
 0x374   :  { %v14613_v27 = vunpack.i.h.bf16 %v14611_v20  ;;  %v14612_v18 = vunpack.i.l.bf16 %v14611_v20  ;;  %12835 = vmatmul.mubr.msk.f32.vlgmr.msra.gmra.mrb[68].mxu0 %vm1793_vm1, %v17620_v17  ;;  %v17639_v20 = vmul.f32 0.25, %v17226_v29 }
 0x375   :  { %12837 = vmatprep.mubr.msk.f32.mxu0 %vm1793_vm1, %v17623_v23  ;;  %13837 = vmatpush3.bf16.xpose.msk.msra.mxu1 %vm17058_vm2, %v13832_v28 }
 0x376   :  { %v13850_v30 = vpack.c.bf16 %v14613_v27, %v14612_v18  ;;  %13843 = vmatpush3.bf16.xpose.msk.msra.mxu0 %vm17058_vm2, %v13838_v21  ;;  %21453 = vst [vmem:[#allocation111_spill] sm:$0xff] %v17639_v20  ;;  %v17651_v21 = vmul.f32 0.25, %v17207_v26  ;;  %v17667_v26 = vmul.f32 0.25, %v17275_v1  ;;  %v17703_v1 = vmul.f32 0.25, %v17293_v38  ;;  %v17721_v38 = vld [vmem:[#allocation5] sm:$0xff] }
 0x377   :  { %13846 = vmatprep.subr.msk.bf16.mxu0 %vm17058_vm2, %v13844_v54  ;;  %v14616_v13 = vpop.permute.xlu1 %14615 }
 0x378   :  { %v14618_v36 = vunpack.i.h.bf16 %v14616_v13  ;;  %v14617_v49 = vunpack.i.l.bf16 %v14616_v13  ;;  %12838 = vmatmul.mubr.msk.f32.gmra.mrb[70].mxu0 %vm1793_vm1, %v17634_v52  ;;  %13852 = vmatprep.subr.msk.bf16.mxu1 %vm17058_vm2, %v13850_v30  ;;  %21455 = vst [vmem:[#allocation113_spill] sm:$0xff] %v17651_v21  ;;  %21457 = vst [vmem:[#allocation115_spill] sm:$0xff] %v17667_v26 }
 0x379   :  { %12862 = vmatprep.mubr.msk.f32.mxu0 %vm1793_vm1, %v17639_v20  ;;  %21463 = vst [vmem:[#allocation121_spill] sm:$0xff] %v17703_v1 }
 0x37a   :  { %v13856_v29 = vpack.c.bf16 %v14618_v36, %v14617_v49 }
 0x37b   :  { %v14621_v28 = vpop.permute.xlu0 %14620 }
 0x37c   :  { %v14623_v27 = vunpack.i.h.bf16 %v14621_v28  ;;  %v14622_v18 = vunpack.i.l.bf16 %v14621_v28  ;;  %12849 = vmatmul.mubr.msk.f32.vlgmr.msra.gmra.mrb[36].mxu1 %vm1793_vm1, %v17648_v53 }
 0x37d   :  { %12851 = vmatprep.mubr.msk.f32.mxu1 %vm1793_vm1, %v17651_v21  ;;  %13855 = vmatpush3.bf16.xpose.msk.msra.mxu1 %vm17058_vm2, %v13850_v30  ;;  %v17679_v30 = vmul.f32 0.25, %v17254_v57  ;;  %v17698_v57 = vmul.f32 0.25, %v17272_v61  ;;  %v17719_v61 = vld [vmem:[#allocation5 + $0x8] sm:$0xff] }
 0x37e   :  { %v13862_v13 = vpack.c.bf16 %v14623_v27, %v14622_v18  ;;  %13849 = vmatpush3.bf16.xpose.msk.msra.mxu0 %vm17058_vm2, %v13844_v54  ;;  %13858 = vmatprep.subr.msk.bf16.mxu1 %vm17058_vm2, %v13856_v29  ;;  %v17676_v54 = vmul.f32 0.25, %v17221_v45  ;;  %v17693_v45 = vmul.f32 0.25, %v17310_v7  ;;  %v17713_v7 = vmul.f32 0.25, %v17491_v44  ;;  %v17729_v44 = vld [vmem:[#allocation5 + $0x18] sm:$0xff] }
 0x37f   :  { %21459 = vst [vmem:[#allocation117_spill] sm:$0xff] %v17679_v30  ;;  %21462 = vst [vmem:[#allocation120_spill] sm:$0xff] %v17698_v57 }
 0x380   :  { %12852 = vmatmul.mubr.msk.f32.gmra.mrb[38].mxu1 %vm1793_vm1, %v17664_v5  ;;  %13864 = vmatprep.subr.msk.bf16.mxu0 %vm17058_vm2, %v13862_v13  ;;  %21458 = vst [vmem:[#allocation116_spill] sm:$0xff] %v17676_v54  ;;  %21461 = vst [vmem:[#allocation119_spill] sm:$0xff] %v17693_v45 }
 0x381   :  { %12876 = vmatprep.mubr.msk.f32.mxu1 %vm1793_vm1, %v17667_v26  ;;  %21465 = vst [vmem:[#allocation123_spill] sm:$0xff] %v17713_v7 }
 0x385   :  { %12863 = vmatmul.mubr.msk.f32.vlgmr.msra.gmra.mrb[72].mxu0 %vm1793_vm1, %v17676_v54  ;;  %13861 = vmatpush3.bf16.xpose.msk.msra.mxu1 %vm17058_vm2, %v13856_v29 }
 0x386   :  { %12865 = vmatprep.mubr.msk.f32.mxu0 %vm1793_vm1, %v17679_v30  ;;  %13867 = vmatpush3.bf16.xpose.msk.msra.mxu0 %vm17058_vm2, %v13862_v13 }
 0x389   :  { %12866 = vmatmul.mubr.msk.f32.gmra.mrb[74].mxu0 %vm1793_vm1, %v17690_v46 }
 0x38a   :  { %12890 = vmatprep.mubr.msk.f32.mxu0 %vm1793_vm1, %v17693_v45 }
 0x38c   :  { %12877 = vmatmul.mubr.msk.f32.vlgmr.msra.gmra.mrb[40].mxu1 %vm1793_vm1, %v17698_v57 }
 0x38d   :  { %12879 = vmatprep.mubr.msk.f32.mxu1 %vm1793_vm1, %v17703_v1 }
 0x390   :  { %12880 = vmatmul.mubr.msk.f32.gmra.mrb[42].mxu1 %vm1793_vm1, %v17710_v3  ;;  %v14368_v3 = vunpack.i.h.bf16 %v17135_v58 }
 0x391   :  { %12904 = vmatprep.mubr.msk.f32.mxu1 %vm1793_vm1, %v17713_v7 }
 0x3ba   :  { %v12696_v36 = vpop.f32.mrb[0].mxu1 }
 0x3bb   :  { %v17724_v49 = vadd.f32 %v12696_v36, %v17719_v61  ;;  %v1880_v28 = vpop.f32.mrb[1].mxu1  ;;  %v17738_v36 = vld [vmem:[#allocation5 + $0x10] sm:$0xff] }
 0x3bc   :  { %v17727_v56 = vadd.f32 %v1880_v28, %v17721_v38 }
 0x3bd   :  { %v3657_v29 = vsel %vm149_vm0, %v17724_v49, -inf }
 0x3be   :  { %3658 = vmax.xlane.f32.xlu1 %v3657_v29  ;;  %v12699_v27 = vpop.f32.mrb[2].mxu1  ;;  %v3654_v18 = vsel %vm149_vm0, %v17727_v56, -inf }
 0x3bf   :  { %v17736_v13 = vadd.f32 %v12699_v27, %v17729_v44  ;;  %v1890_v7 = vpop.f32.mrb[3].mxu1  ;;  %3655 = vmax.xlane.f32.xlu0 %v3654_v18  ;;  %v14367_v27 = vunpack.i.l.bf16 %v17135_v58 }
 0x3c0   :  { %v17743_v45 = vadd.f32 %v1890_v7, %v17738_v36 }
 0x3c1   :  { %v3663_v28 = vsel %vm149_vm0, %v17736_v13, -inf  ;;  %v13886_v21 = vpack.c.bf16 %v14368_v3, %v14367_v27  ;;  %v17778_v27 = vmul.f32 0.25, %v17476_v15 }
 0x3c2   :  { %v3660_v29 = vsel %vm149_vm0, %v17743_v45, -inf }
 0x3c3   :  { %3664 = vmax.xlane.f32.xlu0 %v3663_v28  ;;  %21467 = vst [vmem:[#allocation125_spill] sm:$0xff] %v17778_v27 }
 0x3c5   :  { %v14626_v1 = vpop.permute.xlu1 %14625 }
 0x3c6   :  { %v14628_v26 = vunpack.i.h.bf16 %v14626_v1  ;;  %v14627_v57 = vunpack.i.l.bf16 %v14626_v1 }
 0x3c7   :  { %3661 = vmax.xlane.f32.xlu0 %v3660_v29  ;;  %v14378_v29 = vunpack.i.h.bf16 %v17105_v34 }
 0x3c8   :  { %v13868_v30 = vpack.c.bf16 %v14628_v26, %v14627_v57 }
 0x3c9   :  { %v14631_v18 = vpop.permute.xlu0 %14630 }
 0x3ca   :  { %v12710_v46 = vpop.f32.mrb[4].mxu1  ;;  %v14633_v20 = vunpack.i.h.bf16 %v14631_v18  ;;  %v14632_v54 = vunpack.i.l.bf16 %v14631_v18  ;;  %13870 = vmatprep.subr.msk.bf16.mxu0 %vm17058_vm2, %v13868_v30  ;;  %v14377_v18 = vunpack.i.l.bf16 %v17105_v34 }
 0x3cb   :  { %v17752_v7 = vadd.f32 %v12710_v46, %v17719_v61  ;;  %v1997_v28 = vpop.f32.mrb[5].mxu1  ;;  %13873 = vmatpush3.bf16.xpose.msk.msra.mxu0 %vm17058_vm2, %v13868_v30  ;;  %v17768_v30 = vmul.f32 0.25, %v17305_v62  ;;  %v14408_v62 = vunpack.i.h.bf16 %v17223_v9 }
 0x3cc   :  { %v13874_v58 = vpack.c.bf16 %v14633_v20, %v14632_v54  ;;  %v17757_v1 = vadd.f32 %v1997_v28, %v17721_v38  ;;  %13887 = vmatprep.subr.bf16.mxu0 %v13886_v21  ;;  %v14388_v28 = vunpack.i.h.bf16 %v17163_v14 }
 0x3cd   :  { %v14636_v26 = vpop.permute.xlu1 %14635  ;;  %v3669_v57 = vsel %vm149_vm0, %v17752_v7, -inf  ;;  %21466 = vst [vmem:[#allocation124_spill] sm:$0xff] %v17768_v30 }
 0x3ce   :  { %v14638_v46 = vunpack.i.h.bf16 %v14636_v26  ;;  %v14637_v5 = vunpack.i.l.bf16 %v14636_v26  ;;  %v12713_v6 = vpop.f32.mrb[6].mxu1  ;;  %3670 = vmax.xlane.f32.xlu0 %v3669_v57  ;;  %13876 = vmatprep.subr.msk.bf16.mxu1 %vm17058_vm2, %v13874_v58  ;;  %v3666_v34 = vsel %vm149_vm0, %v17757_v1, -inf  ;;  %v17792_v26 = vmul.f32 0.25, %v17466_v48 }
 0x3cf   :  { %v2007_v20 = vpop.f32.mrb[7].mxu1  ;;  %13879 = vmatpush3.bf16.xpose.msk.msra.mxu1 %vm17058_vm2, %v13874_v58  ;;  %v17771_v3 = vadd.f32 %v12713_v6, %v17729_v44  ;;  %v14387_v58 = vunpack.i.l.bf16 %v17163_v14  ;;  %v14407_v6 = vunpack.i.l.bf16 %v17223_v9 }
 0x3d0   :  { %v13880_v54 = vpack.c.bf16 %v14638_v46, %v14637_v5  ;;  %v13890_v5 = vpack.c.bf16 %v14378_v29, %v14377_v18  ;;  %v17789_v15 = vadd.f32 %v2007_v20, %v17738_v36  ;;  %21468 = vst [vmem:[#allocation126_spill] sm:$0xff] %v17792_v26  ;;  %v14418_v29 = vunpack.i.h.bf16 %v17307_v40 }
 0x3d1   :  { %v3675_v14 = vsel %vm149_vm0, %v17771_v3, -inf  ;;  %v17798_v9 = vpack.c.bf16 %v14388_v28, %v14387_v58  ;;  %v13902_v57 = vpack.c.bf16 %v14408_v62, %v14407_v6  ;;  %v14417_v18 = vunpack.i.l.bf16 %v17307_v40 }
 0x3d2   :  { %13882 = vmatprep.subr.msk.bf16.mxu1 %vm17058_vm2, %v13880_v54  ;;  %3667 = vmax.xlane.f32.xlu0 %v3666_v34  ;;  %v3672_v48 = vsel %vm149_vm0, %v17789_v15, -inf  ;;  %v17811_v34 = vmul.f32 0.25, %v17485_v59  ;;  %v17819_v28 = vmul.f32 0.25, %v17509_v35  ;;  %v14448_v40 = vunpack.i.h.bf16 %v17355_v31 }
 0x3d3   :  { %12891 = vmatmul.mubr.msk.f32.vlgmr.msra.gmra.mrb[76].mxu0 %vm1793_vm1, %v17768_v30  ;;  %21469 = vst [vmem:[#allocation127_spill] sm:$0xff] %v17798_v9  ;;  %v14447_v62 = vunpack.i.l.bf16 %v17355_v31  ;;  %v13906_v6 = vpack.c.bf16 %v14418_v29, %v14417_v18  ;;  %v17831_v35 = vmul.f32 0.25, %v17501_v24 }
 0x3d4   :  { %12893 = vmatprep.mubr.msk.f32.mxu0 %vm1793_vm1, %v17778_v27  ;;  %13889 = vmatpush3.bf16.msra.mxu0 %v13886_v21  ;;  %21470 = vst [vmem:[#allocation128_spill] sm:$0xff] %v17811_v34  ;;  %21471 = vst [vmem:[#allocation129_spill] sm:$0xff] %v17819_v28 }
 0x3d5   :  { %13891 = vmatprep.subr.bf16.mxu0 %v13890_v5  ;;  %21472 = vst [vmem:[#allocation130_spill] sm:$0xff] %v17831_v35  ;;  %v17837_v31 = vpack.c.bf16 %v14448_v40, %v14447_v62 }
 0x3d6   :  { %3676 = vmax.xlane.f32.xlu0 %v3675_v14 }
 0x3d7   :  { %12894 = vmatmul.mubr.msk.f32.gmra.mrb[78].mxu0 %vm1793_vm1, %v17792_v26  ;;  %13885 = vmatpush3.bf16.xpose.msk.msra.mxu1 %vm17058_vm2, %v13880_v54  ;;  %21473 = vst [vmem:[#allocation131_spill] sm:$0xff] %v17837_v31 }
 0x3d8   :  { %13893 = vmatpush3.bf16.msra.mxu0 %v13890_v5  ;;  %13903 = vmatprep.subr.bf16.mxu1 %v13902_v57 }
 0x3d9   :  { %13895 = vmatprep.subr.bf16.mxu0 %v17798_v9 }
 0x3da   :  { %v12724_v21 = vpop.f32.mrb[8].mxu1  ;;  %3673 = vmax.xlane.f32.xlu0 %v3672_v48 }
 0x3db   :  { %v17808_v46 = vadd.f32 %v12724_v21, %v17719_v61  ;;  %v2114_v20 = vpop.f32.mrb[9].mxu1 }
 0x3dc   :  { %v17814_v54 = vadd.f32 %v2114_v20, %v17721_v38 }
 0x3dd   :  { %v3681_v5 = vsel %vm149_vm0, %v17808_v46, -inf }
 0x3de   :  { %3682 = vmax.xlane.f32.xlu1 %v3681_v5  ;;  %v12727_v58 = vpop.f32.mrb[10].mxu1  ;;  %12905 = vmatmul.mubr.msk.f32.vlgmr.msra.gmra.mrb[44].mxu1 %vm1793_vm1, %v17811_v34  ;;  %v3678_v48 = vsel %vm149_vm0, %v17814_v54, -inf }
 0x3df   :  { %v2124_v59 = vpop.f32.mrb[11].mxu1  ;;  %12907 = vmatprep.mubr.msk.f32.mxu1 %vm1793_vm1, %v17819_v28  ;;  %13905 = vmatpush3.bf16.msra.mxu1 %v13902_v57  ;;  %v17828_v14 = vadd.f32 %v12727_v58, %v17729_v44 }
 0x3e0   :  { %13907 = vmatprep.subr.bf16.mxu1 %v13906_v6  ;;  %v17840_v21 = vadd.f32 %v2124_v59, %v17738_v36 }
 0x3e1   :  { %v3687_v57 = vsel %vm149_vm0, %v17828_v14, -inf }
 0x3e2   :  { %3679 = vmax.xlane.f32.xlu1 %v3678_v48  ;;  %12908 = vmatmul.mubr.msk.f32.gmra.mrb[46].mxu1 %vm1793_vm1, %v17831_v35  ;;  %v3684_v24 = vsel %vm149_vm0, %v17840_v21, -inf }
 0x3e3   :  { %13909 = vmatpush3.bf16.msra.mxu1 %v13906_v6 }
 0x3e4   :  { %13919 = vmatprep.subr.bf16.mxu1 %v17837_v31 }
 0x3e6   :  { %3688 = vmax.xlane.f32.xlu1 %v3687_v57 }
 0x3ea   :  { %v12738_v29 = vpop.f32.mrb[12].mxu1  ;;  %3685 = vmax.xlane.f32.xlu1 %v3684_v24 }
 0x3eb   :  { %v17848_v18 = vadd.f32 %v12738_v29, %v17719_v61  ;;  %v2231_v20 = vpop.f32.mrb[13].mxu1 }
 0x3ec   :  { %v17851_v5 = vadd.f32 %v2231_v20, %v17721_v38 }
 0x3ed   :  { %v3693_v58 = vsel %vm149_vm0, %v17848_v18, -inf }
 0x3ee   :  { %v12741_v40 = vpop.f32.mrb[14].mxu1  ;;  %3694 = vmax.xlane.f32.xlu0 %v3693_v58  ;;  %v3690_v6 = vsel %vm149_vm0, %v17851_v5, -inf }
 0x3ef   :  { %v2241_v62 = vpop.f32.mrb[15].mxu1  ;;  %v17856_v59 = vadd.f32 %v12741_v40, %v17729_v44 }
 0x3f0   :  { %v17861_v48 = vadd.f32 %v2241_v62, %v17738_v36 }
 0x3f1   :  { %v3699_v57 = vsel %vm149_vm0, %v17856_v59, -inf }
 0x3f2   :  { %3691 = vmax.xlane.f32.xlu0 %v3690_v6  ;;  %v3696_v24 = vsel %vm149_vm0, %v17861_v48, -inf }
 0x3f6   :  { %3700 = vmax.xlane.f32.xlu0 %v3699_v57 }
 0x3fa   :  { %3697 = vmax.xlane.f32.xlu0 %v3696_v24  ;;  %v12752_v29 = vpop.f32.mrb[16].mxu1 }
 0x3fb   :  { %v17868_v20 = vadd.f32 %v12752_v29, %v17719_v61  ;;  %v2348_v58 = vpop.f32.mrb[17].mxu1 }
 0x3fd   :  { %v3705_v40 = vsel %vm149_vm0, %v17868_v20, -inf }
 0x3fe   :  { %v12755_v6 = vpop.f32.mrb[18].mxu1  ;;  %3706 = vmax.xlane.f32.xlu1 %v3705_v40 }
 0x3ff   :  { %v2358_v62 = vpop.f32.mrb[19].mxu1 }
 0x40a   :  { %v12766_v35 = vpop.f32.mrb[20].mxu1 }
 0x40b   :  { %v17873_v34 = vadd.f32 %v12766_v35, %v17719_v61  ;;  %v2465_v57 = vpop.f32.mrb[21].mxu1 }
 0x40c   :  { %v17876_v28 = vadd.f32 %v2465_v57, %v17721_v38 }
 0x40d   :  { %v3717_v24 = vsel %vm149_vm0, %v17873_v34, -inf }
 0x40e   :  { %21474 = vst [vmem:[#allocation132_spill] sm:$0xff] %v17876_v28  ;;  %v12769_v29 = vpop.f32.mrb[22].mxu1  ;;  %3718 = vmax.xlane.f32.xlu0 %v3717_v24  ;;  %v3714_v40 = vsel %vm149_vm0, %v17876_v28, -inf }
 0x40f   :  { %v2475_v26 = vpop.f32.mrb[23].mxu1  ;;  %v17881_v30 = vadd.f32 %v12769_v29, %v17729_v44 }
 0x410   :  { %v17886_v35 = vadd.f32 %v2475_v26, %v17738_v36 }
 0x411   :  { %21475 = vst [vmem:[#allocation133_spill] sm:$0xff] %v17881_v30  ;;  %v3723_v57 = vsel %vm149_vm0, %v17881_v30, -inf }
 0x412   :  { %3715 = vmax.xlane.f32.xlu0 %v3714_v40  ;;  %21476 = vst [vmem:[#allocation134_spill] sm:$0xff] %v17886_v35  ;;  %v3720_v27 = vsel %vm149_vm0, %v17886_v35, -inf }
 0x416   :  { %3724 = vmax.xlane.f32.xlu0 %v3723_v57 }
 0x41a   :  { %3721 = vmax.xlane.f32.xlu0 %v3720_v27 }
 0x41e   :  { %v17892_v24 = vpop.f32.mrb[24].mxu1 }
 0x41f   :  { %v17894_v53 = vpop.f32.mrb[25].mxu1 }
 0x422   :  { %v17896_v29 = vpop.f32.mrb[26].mxu1 }
 0x423   :  { %v17898_v23 = vpop.f32.mrb[27].mxu1 }
 0x42e   :  { %v12794_v40 = vpop.f32.mrb[28].mxu1 }
 0x42f   :  { %v17901_v26 = vadd.f32 %v12794_v40, %v17719_v61  ;;  %v2699_v52 = vpop.f32.mrb[29].mxu1 }
 0x430   :  { %v17904_v37 = vadd.f32 %v2699_v52, %v17721_v38  ;;  %v17918_v52 = vadd.f32 %v2348_v58, %v17721_v38  ;;  %v17932_v58 = vadd.f32 %v12755_v6, %v17729_v44  ;;  %v17946_v6 = vadd.f32 %v2358_v62, %v17738_v36 }
 0x431   :  { %21477 = vst [vmem:[#allocation135_spill] sm:$0xff] %v17901_v26  ;;  %v3741_v57 = vsel %vm149_vm0, %v17901_v26, -inf }
 0x432   :  { %21478 = vst [vmem:[#allocation136_spill] sm:$0xff] %v17904_v37  ;;  %v17908_v27 = vpop.f32.mrb[30].mxu1  ;;  %3742 = vmax.xlane.f32.xlu0 %v3741_v57  ;;  %v3738_v0 = vsel %vm149_vm0, %v17904_v37, -inf  ;;  %v3711_v42 = vsel %vm149_vm0, %v17932_v58, -inf  ;;  %v18004_v37 = vadd.f32 %v17894_v53, %v17721_v38 }
 0x433   :  { %v17910_v17 = vpop.f32.mrb[31].mxu1 }
 0x436   :  { %3739 = vmax.xlane.f32.xlu0 %v3738_v0  ;;  %v3702_v0 = vsel %vm149_vm0, %v17918_v52, -inf }
 0x437   :  { %v12808_v4 = vpop.f32.mrb[64].mxu0 }
 0x438   :  { %v17915_v40 = vadd.f32 %v12808_v4, %v17719_v61  ;;  %v2816_v25 = vpop.f32.mrb[65].mxu0 }
 0x439   :  { %v17923_v19 = vadd.f32 %v2816_v25, %v17721_v38 }
 0x43a   :  { %v3753_v60 = vsel %vm149_vm0, %v17915_v40, -inf }
 0x43b   :  { %v12811_v16 = vpop.f32.mrb[66].mxu0  ;;  %3754 = vmax.xlane.f32.xlu1 %v3753_v60  ;;  %v3750_v60 = vsel %vm149_vm0, %v17923_v19, -inf }
 0x43c   :  { %v2826_v57 = vpop.f32.mrb[67].mxu0  ;;  %v17941_v25 = vadd.f32 %v12811_v16, %v17729_v44  ;;  %v3708_v16 = vsel %vm149_vm0, %v17946_v6, -inf }
 0x43e   :  { %v17925_v51 = vpop.f32.mrb[32].mxu1  ;;  %v3759_v47 = vsel %vm149_vm0, %v17941_v25, -inf }
 0x43f   :  { %v17929_v4 = vpop.f32.mrb[33].mxu1  ;;  %3703 = vmax.xlane.f32.xlu1 %v3702_v0 }
 0x442   :  { %v17934_v8 = vpop.f32.mrb[34].mxu1 }
 0x443   :  { %v17938_v32 = vpop.f32.mrb[35].mxu1  ;;  %3751 = vmax.xlane.f32.xlu1 %v3750_v60  ;;  %v17951_v60 = vadd.f32 %v2826_v57, %v17738_v36 }
 0x445   :  { %v3756_v10 = vsel %vm149_vm0, %v17951_v60, -inf }
 0x447   :  { %v12836_v50 = vpop.f32.mrb[68].mxu0  ;;  %3712 = vmax.xlane.f32.xlu1 %v3711_v42 }
 0x448   :  { %v3050_v0 = vpop.f32.mrb[69].mxu0  ;;  %v17960_v62 = vadd.f32 %v12836_v50, %v17719_v61 }
 0x449   :  { %v17969_v57 = vadd.f32 %v3050_v0, %v17721_v38 }
 0x44a   :  { %v3777_v39 = vsel %vm149_vm0, %v17960_v62, -inf }
 0x44b   :  { %v12839_v43 = vpop.f32.mrb[70].mxu0  ;;  %3760 = vmax.xlane.f32.xlu1 %v3759_v47  ;;  %21479 = vst [vmem:[#allocation137_spill] sm:$0xff] %v17969_v57  ;;  %v3774_v9 = vsel %vm149_vm0, %v17969_v57, -inf }
 0x44c   :  { %v3060_v55 = vpop.f32.mrb[71].mxu0  ;;  %v17974_v50 = vadd.f32 %v12839_v43, %v17729_v44  ;;  %v17989_v43 = vadd.f32 %v17892_v24, %v17719_v61 }
 0x44d   :  { %v17979_v12 = vadd.f32 %v3060_v55, %v17738_v36 }
 0x44e   :  { %v3783_v0 = vsel %vm149_vm0, %v17974_v50, -inf  ;;  %21481 = vst [vmem:[#allocation139_spill] sm:$0xff] %v17989_v43 }
 0x44f   :  { %v17955_v2 = vpop.f32.mrb[36].mxu1  ;;  %3709 = vmax.xlane.f32.xlu1 %v3708_v16  ;;  %21480 = vst [vmem:[#allocation138_spill] sm:$0xff] %v17979_v12 }
 0x450   :  { %v17957_v42 = vpop.f32.mrb[37].mxu1 }
 0x453   :  { %v17964_v33 = vpop.f32.mrb[38].mxu1  ;;  %3757 = vmax.xlane.f32.xlu1 %v3756_v10 }
 0x454   :  { %v17966_v47 = vpop.f32.mrb[39].mxu1 }
 0x457   :  { %3778 = vmax.xlane.f32.xlu1 %v3777_v39 }
 0x458   :  { %v12864_v16 = vpop.f32.mrb[72].mxu0 }
 0x459   :  { %v3284_v63 = vpop.f32.mrb[73].mxu0  ;;  %v17998_v11 = vadd.f32 %v12864_v16, %v17719_v61  ;;  %v18015_v16 = vadd.f32 %v17896_v29, %v17729_v44 }
 0x45a   :  { %v18009_v26 = vadd.f32 %v3284_v63, %v17721_v38  ;;  %v18026_v63 = vadd.f32 %v17898_v23, %v17738_v36 }
 0x45b   :  { %3775 = vmax.xlane.f32.xlu1 %v3774_v9  ;;  %v3780_v9 = vsel %vm149_vm0, %v17979_v12, -inf  ;;  %v3801_v24 = vsel %vm149_vm0, %v17998_v11, -inf  ;;  %21483 = vst [vmem:[#allocation141_spill] sm:$0xff] %v18015_v16 }
 0x45c   :  { %v12867_v41 = vpop.f32.mrb[74].mxu0  ;;  %21482 = vst [vmem:[#allocation140_spill] sm:$0xff] %v18009_v26  ;;  %21485 = vst [vmem:[#allocation143_spill] sm:$0xff] %v18026_v63 }
 0x45d   :  { %v3294_v10 = vpop.f32.mrb[75].mxu0  ;;  %v18020_v53 = vadd.f32 %v12867_v41, %v17729_v44 }
 0x45e   :  { %v18031_v29 = vadd.f32 %v3294_v10, %v17738_v36 }
 0x45f   :  { %v17983_v31 = vpop.f32.mrb[40].mxu1  ;;  %3784 = vmax.xlane.f32.xlu1 %v3783_v0  ;;  %v3729_v0 = vsel %vm149_vm0, %v17989_v43, -inf  ;;  %21484 = vst [vmem:[#allocation142_spill] sm:$0xff] %v18020_v53 }
 0x460   :  { %v17985_v39 = vpop.f32.mrb[41].mxu1  ;;  %21486 = vst [vmem:[#allocation144_spill] sm:$0xff] %v18031_v29  ;;  %v3804_v41 = vsel %vm149_vm0, %v18031_v29, -inf }
 0x463   :  { %v17993_v22 = vpop.f32.mrb[42].mxu1  ;;  %3781 = vmax.xlane.f32.xlu1 %v3780_v9  ;;  %v3726_v9 = vsel %vm149_vm0, %v18004_v37, -inf }
 0x464   :  { %v17995_v55 = vpop.f32.mrb[43].mxu1 }
 0x467   :  { %3730 = vmax.xlane.f32.xlu1 %v3729_v0  ;;  %v3798_v0 = vsel %vm149_vm0, %v18009_v26, -inf  ;;  %v3659_v26 = vpop.xlane.xlu1 %3658 }
 0x46b   :  { %3802 = vmax.xlane.f32.xlu1 %v3801_v24  ;;  %v3735_v24 = vsel %vm149_vm0, %v18015_v16, -inf }
 0x46f   :  { %3727 = vmax.xlane.f32.xlu1 %v3726_v9  ;;  %v3807_v9 = vsel %vm149_vm0, %v18020_v53, -inf }
 0x473   :  { %3799 = vmax.xlane.f32.xlu1 %v3798_v0  ;;  %v3732_v0 = vsel %vm149_vm0, %v18026_v63, -inf }
 0x477   :  { %3736 = vmax.xlane.f32.xlu1 %v3735_v24  ;;  %v18037_v24 = vpop.xlane.xlu0 %3655 }
 0x47b   :  { %3808 = vmax.xlane.f32.xlu1 %v3807_v9  ;;  %v3665_v16 = vpop.xlane.xlu0 %3664  ;;  %v3847_v9 = vsub.f32 %v17724_v49, %v3659_v26  ;;  %v18059_v26 = vadd.f32 %v17908_v27, %v17729_v44 }
 0x47c   :  { %v3849_v63 = vsub.f32 %v17736_v13, %v3665_v16 }
 0x47d   :  { %v3912_v12 = vmul.f32 1.442695, %v3847_v9  ;;  %21489 = vst [vmem:[#allocation147_spill] sm:$0xff] %v18059_v26  ;;  %v3683_v9 = vpop.xlane.xlu1 %3682 }
 0x47e   :  { %v3916_v29 = vmul.f32 1.442695, %v3849_v63 }
 0x47f   :  { %3733 = vmax.xlane.f32.xlu1 %v3732_v0  ;;  %v18039_v23 = vpop.xlane.xlu0 %3661  ;;  %15127 = vpow2.f32 %v3912_v12 }
 0x480   :  { %15129 = vpow2.f32 %v3916_v29 }
 0x483   :  { %3805 = vmax.xlane.f32.xlu1 %v3804_v41  ;;  %v18041_v43 = vpop.xlane.xlu0 %3670 }
 0x487   :  { %v18044_v10 = vpop.xlane.xlu0 %3667 }
 0x48b   :  { %v18053_v30 = vpop.xlane.xlu0 %3676 }
 0x4a6   :  { %v12892_v0 = vpop.f32.mrb[76].mxu0 }
 0x4a7   :  { %v18048_v35 = vadd.f32 %v12892_v0, %v17719_v61  ;;  %v3518_v41 = vpop.f32.mrb[77].mxu0  ;;  %v18068_v0 = vadd.f32 %v17964_v33, %v17729_v44  ;;  %v18082_v33 = vpop.eup %15127 }
 0x4a8   :  { %v18051_v53 = vadd.f32 %v3518_v41, %v17721_v38  ;;  %v18074_v41 = vadd.f32 %v17910_v17, %v17738_v36  ;;  %21493 = vst [vmem:[#allocation151_spill] sm:$0xff] %v18082_v33 }
 0x4a9   :  { %21487 = vst [vmem:[#allocation145_spill] sm:$0xff] %v18048_v35  ;;  %v3825_v49 = vsel %vm149_vm0, %v18048_v35, -inf  ;;  %21491 = vst [vmem:[#allocation149_spill] sm:$0xff] %v18068_v0  ;;  %v3795_v29 = vsel %vm149_vm0, %v18068_v0, -inf  ;;  %v4041_v0 = vsel %vm149_vm0, %v18082_v33, 0.0  ;;  %v18096_v35 = vpop.eup %15129 }
 0x4aa   :  { %21488 = vst [vmem:[#allocation146_spill] sm:$0xff] %v18051_v53  ;;  %v12895_v13 = vpop.f32.mrb[78].mxu0  ;;  %3826 = vmax.xlane.f32.xlu1 %v3825_v49  ;;  %v3822_v16 = vsel %vm149_vm0, %v18051_v53, -inf  ;;  %21492 = vst [vmem:[#allocation150_spill] sm:$0xff] %v18074_v41  ;;  %v3747_v49 = vsel %vm149_vm0, %v18059_v26, -inf  ;;  %v3744_v17 = vsel %vm149_vm0, %v18074_v41, -inf }
 0x4ab   :  { %v18064_v12 = vadd.f32 %v12895_v13, %v17729_v44  ;;  %v3528_v63 = vpop.f32.mrb[79].mxu0  ;;  %3823 = vmax.xlane.f32.xlu0 %v3822_v16  ;;  %v18078_v13 = vpop.xlane.xlu0 %3673 }
 0x4ac   :  { %v3680_v16 = vpop.xlane.xlu1 %3679  ;;  %v18085_v53 = vadd.f32 %v3528_v63, %v17738_v36  ;;  %v18100_v63 = vadd.f32 %v17925_v51, %v17719_v61  ;;  %v4047_v51 = vsel %vm149_vm0, %v18096_v35, 0.0 }
 0x4ad   :  { %21490 = vst [vmem:[#allocation148_spill] sm:$0xff] %v18064_v12  ;;  %v3831_v27 = vsel %vm149_vm0, %v18064_v12, -inf }
 0x4ae   :  { %3832 = vmax.xlane.f32.xlu1 %v3831_v27  ;;  %21494 = vst [vmem:[#allocation152_spill] sm:$0xff] %v18085_v53  ;;  %v3828_v41 = vsel %vm149_vm0, %v18085_v53, -inf }
 0x4af   :  { %3748 = vmax.xlane.f32.xlu0 %v3747_v49  ;;  %v18089_v27 = vpop.xlane.xlu0 %3694  ;;  %v3855_v49 = vsub.f32 %v17808_v46, %v3683_v9  ;;  %v3854_v46 = vsub.f32 %v17814_v54, %v3680_v16  ;;  %v18109_v9 = vadd.f32 %v17993_v22, %v17729_v44 }
 0x4b0   :  { %v3689_v57 = vpop.xlane.xlu1 %3688 }
 0x4b1   :  { %v12906_v12 = vpop.f32.mrb[44].mxu1  ;;  %v3926_v54 = vmul.f32 1.442695, %v3854_v46  ;;  %v3857_v16 = vsub.f32 %v17828_v14, %v3689_v57  ;;  %v3819_v53 = vsel %vm149_vm0, %v18109_v9, -inf  ;;  %v3846_v57 = vsub.f32 %v17727_v56, %v18037_v24 }
 0x4b2   :  { %3796 = vmax.xlane.f32.xlu1 %v3795_v29  ;;  %v18091_v26 = vpop.f32.mrb[45].mxu1 }
 0x4b3   :  { %3745 = vmax.xlane.f32.xlu0 %v3744_v17  ;;  %v3928_v17 = vmul.f32 1.442695, %v3855_v49  ;;  %v18111_v33 = vpop.xlane.xlu0 %3691  ;;  %v18123_v49 = vadd.f32 %v12906_v12, %v17719_v61  ;;  %v3910_v56 = vmul.f32 1.442695, %v3846_v57 }
 0x4b4   :  { %v3686_v22 = vpop.xlane.xlu1 %3685 }
 0x4b5   :  { %v12909_v29 = vpop.f32.mrb[46].mxu1  ;;  %15131 = vpow2.f32 %v3928_v17  ;;  %v3932_v17 = vmul.f32 1.442695, %v3857_v16  ;;  %v3856_v14 = vsub.f32 %v17840_v21, %v3686_v22 }
 0x4b6   :  { %4042 = vadd.xlane.f32.xlu1 %v4041_v0  ;;  %v18104_v28 = vpop.f32.mrb[47].mxu1  ;;  %v18117_v0 = vadd.f32 %v17929_v4, %v17721_v38  ;;  %v18129_v4 = vadd.f32 %v17934_v8, %v17729_v44  ;;  %15133 = vpow2.f32 %v3926_v54  ;;  %v18137_v12 = vadd.f32 %v12909_v29, %v17729_v44 }
 0x4b7   :  { %3829 = vmax.xlane.f32.xlu0 %v3828_v41  ;;  %v3765_v41 = vsel %vm149_vm0, %v18100_v63, -inf  ;;  %v3837_v8 = vsel %vm149_vm0, %v18123_v49, -inf  ;;  %15135 = vpow2.f32 %v3932_v17  ;;  %v3930_v21 = vmul.f32 1.442695, %v3856_v14 }
 0x4b8   :  { %21495 = vst [vmem:[#allocation153_spill] sm:$0xff] %v18137_v12  ;;  %v3771_v46 = vsel %vm149_vm0, %v18129_v4, -inf  ;;  %v3707_v44 = vpop.xlane.xlu1 %3706  ;;  %v3843_v29 = vsel %vm149_vm0, %v18137_v12, -inf }
 0x4b9   :  { %15137 = vpow2.f32 %v3930_v21 }
 0x4ba   :  { %4048 = vadd.xlane.f32.xlu1 %v4047_v51  ;;  %v3762_v51 = vsel %vm149_vm0, %v18117_v0, -inf  ;;  %15139 = vpow2.f32 %v3910_v56 }
 0x4bb   :  { %3766 = vmax.xlane.f32.xlu0 %v3765_v41  ;;  %v3701_v41 = vpop.xlane.xlu0 %3700 }
 0x4bc   :  { %v3861_v54 = vsub.f32 %v17856_v59, %v3701_v41 }
 0x4be   :  { %3820 = vmax.xlane.f32.xlu1 %v3819_v53  ;;  %v18143_v53 = vadd.f32 %v17938_v32, %v17738_v36  ;;  %v18154_v32 = vadd.f32 %v17955_v2, %v17719_v61  ;;  %v18165_v2 = vadd.f32 %v17957_v42, %v17721_v38  ;;  %v18178_v42 = vadd.f32 %v17966_v47, %v17738_v36 }
 0x4bf   :  { %3763 = vmax.xlane.f32.xlu0 %v3762_v51  ;;  %v3698_v24 = vpop.xlane.xlu0 %3697  ;;  %v18150_v16 = vpop.eup %15131  ;;  %v3940_v51 = vmul.f32 1.442695, %v3861_v54 }
 0x4c0   :  { %v3768_v22 = vsel %vm149_vm0, %v18143_v53, -inf  ;;  %v3860_v59 = vsub.f32 %v17861_v48, %v3698_v24  ;;  %v4065_v17 = vsel %vm149_vm0, %v18150_v16, 0.0  ;;  %v18161_v14 = vpop.eup %15133  ;;  %v3789_v57 = vsel %vm149_vm0, %v18154_v32, -inf }
 0x4c1   :  { %15141 = vpow2.f32 %v3940_v51  ;;  %v3863_v48 = vsub.f32 %v17868_v20, %v3707_v44  ;;  %v4062_v54 = vsel %vm149_vm0, %v18161_v14, 0.0  ;;  %v18174_v56 = vpop.eup %15135  ;;  %v3786_v24 = vsel %vm149_vm0, %v18165_v2, -inf }
 0x4c2   :  { %3838 = vmax.xlane.f32.xlu1 %v3837_v8  ;;  %v3938_v8 = vmul.f32 1.442695, %v3860_v59  ;;  %v3792_v47 = vsel %vm149_vm0, %v18178_v42, -inf }
 0x4c3   :  { %3772 = vmax.xlane.f32.xlu0 %v3771_v46  ;;  %v3848_v46 = vsub.f32 %v17743_v45, %v18039_v23  ;;  %v3944_v20 = vmul.f32 1.442695, %v3863_v48  ;;  %v18202_v48 = vadd.f32 %v17983_v31, %v17719_v61  ;;  %v18215_v61 = vadd.f32 %v17985_v39, %v17721_v38 }
 0x4c4   :  { %15143 = vpow2.f32 %v3938_v8 }
 0x4c5   :  { %v3914_v45 = vmul.f32 1.442695, %v3848_v46  ;;  %15145 = vpow2.f32 %v3944_v20  ;;  %v3813_v31 = vsel %vm149_vm0, %v18202_v48, -inf  ;;  %v3810_v39 = vsel %vm149_vm0, %v18215_v61, -inf }
 0x4c6   :  { %3844 = vmax.xlane.f32.xlu1 %v3843_v29  ;;  %v4071_v29 = vsel %vm149_vm0, %v18174_v56, 0.0 }
 0x4c7   :  { %3769 = vmax.xlane.f32.xlu0 %v3768_v22  ;;  %v18187_v22 = vpop.eup %15137  ;;  %15147 = vpow2.f32 %v3914_v45 }
 0x4c8   :  { %v3755_v41 = vpop.xlane.xlu1 %3754  ;;  %v18191_v51 = vpop.eup %15139 }
 0x4c9   :  { %v3879_v44 = vsub.f32 %v17915_v40, %v3755_v41  ;;  %v3851_v40 = vsub.f32 %v17752_v7, %v18041_v43  ;;  %v4038_v46 = vsel %vm149_vm0, %v18191_v51, 0.0  ;;  %v3850_v43 = vsub.f32 %v17757_v1, %v18044_v10 }
 0x4ca   :  { %4066 = vadd.xlane.f32.xlu1 %v4065_v17 }
 0x4cb   :  { %3790 = vmax.xlane.f32.xlu0 %v3789_v57  ;;  %v3976_v59 = vmul.f32 1.442695, %v3879_v44  ;;  %v4068_v57 = vsel %vm149_vm0, %v18187_v22, 0.0  ;;  %v18198_v8 = vpop.eup %15141  ;;  %v3920_v7 = vmul.f32 1.442695, %v3851_v40 }
 0x4cc   :  { %v3704_v21 = vpop.xlane.xlu1 %3703  ;;  %v3918_v1 = vmul.f32 1.442695, %v3850_v43 }
 0x4cd   :  { %v3862_v17 = vsub.f32 %v17918_v52, %v3704_v21  ;;  %15149 = vpow2.f32 %v3976_v59 }
 0x4ce   :  { %4063 = vadd.xlane.f32.xlu1 %v4062_v54  ;;  %v18211_v20 = vpop.eup %15143 }
 0x4cf   :  { %3787 = vmax.xlane.f32.xlu0 %v3786_v24  ;;  %v3942_v52 = vmul.f32 1.442695, %v3862_v17  ;;  %v4083_v24 = vsel %vm149_vm0, %v18198_v8, 0.0  ;;  %v4080_v45 = vsel %vm149_vm0, %v18211_v20, 0.0 }
 0x4d0   :  { %v18183_v23 = vpop.xlane.xlu1 %3751 }
 0x4d1   :  { %15151 = vpow2.f32 %v3942_v52 }
 0x4d2   :  { %4072 = vadd.xlane.f32.xlu1 %v4071_v29  ;;  %15153 = vpow2.f32 %v3920_v7  ;;  %v18222_v29 = vpop.eup %15145 }
 0x4d3   :  { %3793 = vmax.xlane.f32.xlu0 %v3792_v47  ;;  %v18226_v47 = vpop.eup %15147 }
 0x4d4   :  { %v3713_v41 = vpop.xlane.xlu1 %3712  ;;  %v4044_v52 = vsel %vm149_vm0, %v18226_v47, 0.0 }
 0x4d5   :  { %v3865_v21 = vsub.f32 %v17932_v58, %v3713_v41  ;;  %v4089_v41 = vsel %vm149_vm0, %v18222_v29, 0.0 }
 0x4d6   :  { %4069 = vadd.xlane.f32.xlu1 %v4068_v57 }
 0x4d7   :  { %4039 = vadd.xlane.f32.xlu0 %v4038_v46  ;;  %v3948_v58 = vmul.f32 1.442695, %v3865_v21  ;;  %v18235_v57 = vpop.eup %15149  ;;  %v18239_v46 = vadd.f32 %v17995_v55, %v17738_v36 }
 0x4d8   :  { %v3761_v54 = vpop.xlane.xlu1 %3760  ;;  %v4137_v7 = vsel %vm149_vm0, %v18235_v57, 0.0 }
 0x4d9   :  { %v3881_v44 = vsub.f32 %v17941_v25, %v3761_v54  ;;  %15155 = vpow2.f32 %v3948_v58  ;;  %v3853_v25 = vsub.f32 %v17771_v3, %v18053_v30  ;;  %v3852_v30 = vsub.f32 %v17789_v15, %v18078_v13 }
 0x4da   :  { %4084 = vadd.xlane.f32.xlu1 %v4083_v24  ;;  %15157 = vpow2.f32 %v3918_v1  ;;  %v3816_v54 = vsel %vm149_vm0, %v18239_v46, -inf }
 0x4db   :  { %3814 = vmax.xlane.f32.xlu0 %v3813_v31  ;;  %v3980_v59 = vmul.f32 1.442695, %v3881_v44  ;;  %v3924_v21 = vmul.f32 1.442695, %v3853_v25  ;;  %v18247_v43 = vpop.eup %15151  ;;  %v3922_v58 = vmul.f32 1.442695, %v3852_v30 }
 0x4dc   :  { %v3710_v10 = vpop.xlane.xlu1 %3709  ;;  %v18252_v24 = vpop.eup %15153  ;;  %v4086_v13 = vsel %vm149_vm0, %v18247_v43, 0.0 }
 0x4dd   :  { %v3864_v17 = vsub.f32 %v17946_v6, %v3710_v10  ;;  %15159 = vpow2.f32 %v3980_v59  ;;  %v3859_v10 = vsub.f32 %v17848_v18, %v18089_v27  ;;  %v3858_v18 = vsub.f32 %v17851_v5, %v18111_v33 }
 0x4de   :  { %4081 = vadd.xlane.f32.xlu1 %v4080_v45  ;;  %v3878_v5 = vsub.f32 %v17923_v19, %v18183_v23 }
 0x4df   :  { %3811 = vmax.xlane.f32.xlu0 %v3810_v39  ;;  %v3946_v6 = vmul.f32 1.442695, %v3864_v17  ;;  %v18272_v17 = vadd.f32 %v18091_v26, %v17721_v38  ;;  %v3934_v26 = vmul.f32 1.442695, %v3858_v18 }
 0x4e0   :  { %v18231_v40 = vpop.xlane.xlu1 %3757 }
 0x4e1   :  { %15161 = vpow2.f32 %v3946_v6  ;;  %v3936_v6 = vmul.f32 1.442695, %v3859_v10  ;;  %v3834_v38 = vsel %vm149_vm0, %v18272_v17, -inf  ;;  %v3880_v19 = vsub.f32 %v17951_v60, %v18231_v40 }
 0x4e2   :  { %4090 = vadd.xlane.f32.xlu1 %v4089_v41  ;;  %15163 = vpow2.f32 %v3924_v21 }
 0x4e3   :  { %4045 = vadd.xlane.f32.xlu0 %v4044_v52  ;;  %v18258_v44 = vpop.eup %15155  ;;  %v3978_v40 = vmul.f32 1.442695, %v3880_v19 }
 0x4e4   :  { %v3779_v3 = vpop.xlane.xlu1 %3778  ;;  %v18262_v1 = vpop.eup %15157  ;;  %v4095_v39 = vsel %vm149_vm0, %v18258_v44, 0.0 }
 0x4e5   :  { %v3887_v55 = vsub.f32 %v17960_v62, %v3779_v3  ;;  %v4053_v62 = vsel %vm149_vm0, %v18252_v24, 0.0  ;;  %v4050_v41 = vsel %vm149_vm0, %v18262_v1, 0.0 }
 0x4e6   :  { %4138 = vadd.xlane.f32.xlu1 %v4137_v7 }
 0x4e7   :  { %3817 = vmax.xlane.f32.xlu0 %v3816_v54  ;;  %v3992_v31 = vmul.f32 1.442695, %v3887_v55  ;;  %v18268_v59 = vpop.eup %15159 }
 0x4e8   :  { %v18254_v15 = vpop.xlane.xlu1 %3775  ;;  %v4143_v21 = vsel %vm149_vm0, %v18268_v59, 0.0 }
 0x4e9   :  { %15165 = vpow2.f32 %v3992_v31  ;;  %v3719_v31 = vpop.xlane.xlu0 %3718 }
 0x4ea   :  { %4087 = vadd.xlane.f32.xlu1 %v4086_v13  ;;  %15167 = vpow2.f32 %v3922_v58  ;;  %v3974_v58 = vmul.f32 1.442695, %v3878_v5  ;;  %v3867_v60 = vsub.f32 %v17873_v34, %v3719_v31  ;;  %v21499_v34 = vld [vmem:[#allocation132_spill] sm:$0xff]  ;;  %v21500_v31 = vld [vmem:[#allocation137_spill] sm:$0xff] }
 0x4eb   :  { %4054 = vadd.xlane.f32.xlu0 %v4053_v62  ;;  %v18283_v30 = vpop.eup %15161  ;;  %v18307_v62 = vadd.f32 %v18104_v28, %v17738_v36 }
 0x4ec   :  { %v3785_v45 = vpop.xlane.xlu1 %3784  ;;  %v4092_v3 = vsel %vm149_vm0, %v18283_v30, 0.0 }
 0x4ed   :  { %v3889_v25 = vsub.f32 %v17974_v50, %v3785_v45  ;;  %v18287_v50 = vpop.eup %15163  ;;  %21497 = vst [vmem:[#allocation155_spill] sm:$0xff] %v18307_v62  ;;  %v3716_v36 = vpop.xlane.xlu0 %3715  ;;  %v3840_v28 = vsel %vm149_vm0, %v18307_v62, -inf }
 0x4ee   :  { %4096 = vadd.xlane.f32.xlu1 %v4095_v39  ;;  %v4059_v55 = vsel %vm149_vm0, %v18287_v50, 0.0 }
 0x4ef   :  { %4051 = vadd.xlane.f32.xlu0 %v4050_v41  ;;  %v3996_v52 = vmul.f32 1.442695, %v3889_v25 }
 0x4f0   :  { %v18279_v27 = vpop.xlane.xlu1 %3781 }
 0x4f1   :  { %15169 = vpow2.f32 %v3996_v52 }
 0x4f2   :  { %4144 = vadd.xlane.f32.xlu1 %v4143_v21  ;;  %15171 = vpow2.f32 %v3936_v6  ;;  %v3952_v21 = vmul.f32 1.442695, %v3867_v60 }
 0x4f3   :  { %3835 = vmax.xlane.f32.xlu0 %v3834_v38  ;;  %v18295_v7 = vpop.eup %15165  ;;  %15173 = vpow2.f32 %v3934_v26  ;;  %v3866_v38 = vsub.f32 %v21499_v34, %v3716_v36 }
 0x4f4   :  { %v18291_v33 = vpop.xlane.xlu1 %3730  ;;  %21496 = vst [vmem:[#allocation154_spill] sm:$0xff] %v18295_v7  ;;  %v18299_v54 = vpop.eup %15167  ;;  %v4161_v13 = vsel %vm149_vm0, %v18295_v7, 0.0  ;;  %15175 = vpow2.f32 %v3974_v58  ;;  %v3886_v58 = vsub.f32 %v21500_v31, %v18254_v15  ;;  %v21503_v15 = vld [vmem:[#allocation142_spill] sm:$0xff]  ;;  %v21505_v31 = vld [vmem:[#allocation143_spill] sm:$0xff] }
 0x4f5   :  { %v4056_v45 = vsel %vm149_vm0, %v18299_v54, 0.0 }
 0x4f6   :  { %4093 = vadd.xlane.f32.xlu1 %v4092_v3  ;;  %v3990_v60 = vmul.f32 1.442695, %v3886_v58 }
 0x4f7   :  { %4060 = vadd.xlane.f32.xlu0 %v4059_v55  ;;  %v3950_v55 = vmul.f32 1.442695, %v3866_v38  ;;  %v21504_v38 = vld [vmem:[#allocation134_spill] sm:$0xff] }
 0x4f8   :  { %v3803_v23 = vpop.xlane.xlu1 %3802 }
 0x4f9   :  { %v3895_v10 = vsub.f32 %v17998_v11, %v3803_v23 }
 0x4fa   :  { %4162 = vadd.xlane.f32.xlu1 %v4161_v13 }
 0x4fb   :  { %4057 = vadd.xlane.f32.xlu0 %v4056_v45  ;;  %v18312_v39 = vpop.eup %15169  ;;  %v4008_v25 = vmul.f32 1.442695, %v3895_v10  ;;  %v21502_v45 = vld [vmem:[#allocation133_spill] sm:$0xff] }
 0x4fc   :  { %21498 = vst [vmem:[#allocation156_spill] sm:$0xff] %v18312_v39  ;;  %v3728_v41 = vpop.xlane.xlu1 %3727  ;;  %v4167_v52 = vsel %vm149_vm0, %v18312_v39, 0.0  ;;  %v18320_v6 = vpop.eup %15171 }
 0x4fd   :  { %15177 = vpow2.f32 %v4008_v25  ;;  %v3870_v11 = vsub.f32 %v18004_v37, %v3728_v41  ;;  %v4077_v5 = vsel %vm149_vm0, %v18320_v6, 0.0  ;;  %v18327_v3 = vpop.eup %15173  ;;  %v3725_v37 = vpop.xlane.xlu0 %3724 }
 0x4fe   :  { %4168 = vadd.xlane.f32.xlu1 %v4167_v52  ;;  %15179 = vpow2.f32 %v3978_v40  ;;  %v4074_v23 = vsel %vm149_vm0, %v18327_v3, 0.0  ;;  %v18335_v13 = vpop.eup %15175  ;;  %v3869_v25 = vsub.f32 %v21502_v45, %v3725_v37 }
 0x4ff   :  { %3841 = vmax.xlane.f32.xlu0 %v3840_v28  ;;  %v3958_v18 = vmul.f32 1.442695, %v3870_v11  ;;  %v4134_v11 = vsel %vm149_vm0, %v18335_v13, 0.0 }
 0x500   :  { %v18323_v26 = vpop.xlane.xlu1 %3799  ;;  %v3956_v34 = vmul.f32 1.442695, %v3869_v25 }
 0x501   :  { %15181 = vpow2.f32 %v3958_v18  ;;  %v3722_v52 = vpop.xlane.xlu0 %3721 }
 0x502   :  { %15183 = vpow2.f32 %v3952_v21 }
 0x503   :  { %4078 = vadd.xlane.f32.xlu0 %v4077_v5  ;;  %15185 = vpow2.f32 %v3950_v55  ;;  %v3868_v5 = vsub.f32 %v21504_v38, %v3722_v52 }
 0x504   :  { %v18331_v19 = vpop.xlane.xlu1 %3736  ;;  %15187 = vpow2.f32 %v3990_v60 }
 0x505   :  { %v3954_v25 = vmul.f32 1.442695, %v3868_v5 }
 0x507   :  { %4075 = vadd.xlane.f32.xlu0 %v4074_v23  ;;  %v18337_v10 = vpop.eup %15177 }
 0x508   :  { %21501 = vst [vmem:[#allocation132_spill] sm:$0xff] %v18337_v10  ;;  %v3809_v40 = vpop.xlane.xlu1 %3808  ;;  %v4185_v41 = vsel %vm149_vm0, %v18337_v10, 0.0  ;;  %v18345_v28 = vpop.eup %15179 }
 0x509   :  { %v3897_v36 = vsub.f32 %v21503_v15, %v3809_v40  ;;  %4186 = vadd.xlane.f32.xlu1 %v4185_v41  ;;  %v4140_v23 = vsel %vm149_vm0, %v18345_v28, 0.0  ;;  %v21506_v41 = vld [vmem:[#allocation138_spill] sm:$0xff] }
 0x50a   :  { %v3888_v60 = vsub.f32 %v21506_v41, %v18279_v27 }
 0x50b   :  { %4135 = vadd.xlane.f32.xlu0 %v4134_v11  ;;  %v18347_v18 = vpop.eup %15181  ;;  %v4012_v21 = vmul.f32 1.442695, %v3897_v36  ;;  %v21507_v11 = vld [vmem:[#allocation139_spill] sm:$0xff] }
 0x50c   :  { %v3734_v37 = vpop.xlane.xlu1 %3733  ;;  %v4110_v55 = vsel %vm149_vm0, %v18347_v18, 0.0  ;;  %v18355_v45 = vpop.eup %15183  ;;  %v3994_v36 = vmul.f32 1.442695, %v3888_v60 }
 0x50d   :  { %15189 = vpow2.f32 %v4012_v21  ;;  %v3872_v58 = vsub.f32 %v21505_v31, %v3734_v37  ;;  %4111 = vadd.xlane.f32.xlu1 %v4110_v55  ;;  %v4101_v52 = vsel %vm149_vm0, %v18355_v45, 0.0  ;;  %v18361_v15 = vpop.eup %15185  ;;  %v3871_v21 = vsub.f32 %v21507_v11, %v18291_v33  ;;  %v21510_v37 = vld [vmem:[#allocation140_spill] sm:$0xff] }
 0x50e   :  { %15191 = vpow2.f32 %v3956_v34  ;;  %v4098_v38 = vsel %vm149_vm0, %v18361_v15, 0.0  ;;  %v18367_v34 = vpop.eup %15187  ;;  %v3894_v55 = vsub.f32 %v21510_v37, %v18323_v26 }
 0x50f   :  { %4141 = vadd.xlane.f32.xlu0 %v4140_v23  ;;  %v3962_v40 = vmul.f32 1.442695, %v3872_v58  ;;  %21508 = vst [vmem:[#allocation137_spill] sm:$0xff] %v18367_v34  ;;  %v3960_v27 = vmul.f32 1.442695, %v3871_v21  ;;  %v4158_v33 = vsel %vm149_vm0, %v18367_v34, 0.0 }
 0x510   :  { %v3806_v60 = vpop.xlane.xlu1 %3805  ;;  %v21512_v21 = vld [vmem:[#allocation144_spill] sm:$0xff] }
 0x511   :  { %15193 = vpow2.f32 %v3962_v40  ;;  %v4006_v40 = vmul.f32 1.442695, %v3894_v55  ;;  %v21514_v55 = vld [vmem:[#allocation135_spill] sm:$0xff] }
 0x512   :  { %15195 = vpow2.f32 %v3954_v25  ;;  %v21511_v25 = vld [vmem:[#allocation141_spill] sm:$0xff] }
 0x513   :  { %4102 = vadd.xlane.f32.xlu0 %v4101_v52  ;;  %15197 = vpow2.f32 %v3994_v36  ;;  %v3873_v41 = vsub.f32 %v21511_v25, %v18331_v19 }
 0x514   :  { %15199 = vpow2.f32 %v3960_v27  ;;  %v3743_v27 = vpop.xlane.xlu0 %3742 }
 0x515   :  { %15201 = vpow2.f32 %v4006_v40  ;;  %v3964_v11 = vmul.f32 1.442695, %v3873_v41 }
 0x517   :  { %4099 = vadd.xlane.f32.xlu0 %v4098_v38  ;;  %v18369_v5 = vpop.eup %15189  ;;  %v3896_v38 = vsub.f32 %v21512_v21, %v3806_v60  ;;  %15203 = vpow2.f32 %v3964_v11 }
 0x518   :  { %21509 = vst [vmem:[#allocation133_spill] sm:$0xff] %v18369_v5  ;;  %v4191_v31 = vsel %vm149_vm0, %v18369_v5, 0.0  ;;  %v18377_v58 = vpop.eup %15191 }
 0x519   :  { %4192 = vadd.xlane.f32.xlu1 %v4191_v31  ;;  %v4107_v52 = vsel %vm149_vm0, %v18377_v58, 0.0  ;;  %v3875_v31 = vsub.f32 %v21514_v55, %v3743_v27  ;;  %v3740_v27 = vpop.xlane.xlu0 %3739 }
 0x51b   :  { %4159 = vadd.xlane.f32.xlu0 %v4158_v33  ;;  %v18379_v23 = vpop.eup %15193  ;;  %v4010_v33 = vmul.f32 1.442695, %v3896_v38  ;;  %v3968_v40 = vmul.f32 1.442695, %v3875_v31 }
 0x51c   :  { %v4116_v26 = vsel %vm149_vm0, %v18379_v23, 0.0  ;;  %v18387_v36 = vpop.eup %15195 }
 0x51d   :  { %4117 = vadd.xlane.f32.xlu1 %v4116_v26  ;;  %v4104_v37 = vsel %vm149_vm0, %v18387_v36, 0.0  ;;  %v18392_v19 = vpop.eup %15197  ;;  %15205 = vpow2.f32 %v4010_v33 }
 0x51e   :  { %21513 = vst [vmem:[#allocation142_spill] sm:$0xff] %v18392_v19  ;;  %v4164_v25 = vsel %vm149_vm0, %v18392_v19, 0.0  ;;  %v18397_v26 = vpop.eup %15199  ;;  %15207 = vpow2.f32 %v3968_v40  ;;  %v21519_v40 = vld [vmem:[#allocation145_spill] sm:$0xff] }
 0x51f   :  { %4108 = vadd.xlane.f32.xlu0 %v4107_v52  ;;  %v4113_v41 = vsel %vm149_vm0, %v18397_v26, 0.0  ;;  %v18401_v60 = vpop.eup %15201 }
 0x520   :  { %21515 = vst [vmem:[#allocation134_spill] sm:$0xff] %v18401_v60  ;;  %v4182_v52 = vsel %vm149_vm0, %v18401_v60, 0.0 }
 0x521   :  { %v18405_v11 = vpop.eup %15203 }
 0x522   :  { %v4119_v21 = vsel %vm149_vm0, %v18405_v11, 0.0 }
 0x523   :  { %4105 = vadd.xlane.f32.xlu0 %v4104_v37  ;;  %v21517_v37 = vld [vmem:[#allocation136_spill] sm:$0xff] }
 0x524   :  { %v3874_v55 = vsub.f32 %v21517_v37, %v3740_v27  ;;  %v21521_v37 = vld [vmem:[#allocation147_spill] sm:$0xff] }
 0x526   :  { %v3966_v12 = vmul.f32 1.442695, %v3874_v55 }
 0x527   :  { %4165 = vadd.xlane.f32.xlu0 %v4164_v25  ;;  %v18409_v38 = vpop.eup %15205 }
 0x528   :  { %21516 = vst [vmem:[#allocation143_spill] sm:$0xff] %v18409_v38  ;;  %v4188_v31 = vsel %vm149_vm0, %v18409_v38, 0.0  ;;  %v18414_v33 = vpop.eup %15207 }
 0x529   :  { %21518 = vst [vmem:[#allocation138_spill] sm:$0xff] %v18414_v33  ;;  %v4125_v62 = vsel %vm149_vm0, %v18414_v33, 0.0 }
 0x52b   :  { %4114 = vadd.xlane.f32.xlu0 %v4113_v41 }
 0x52f   :  { %4183 = vadd.xlane.f32.xlu0 %v4182_v52  ;;  %v21520_v52 = vld [vmem:[#allocation146_spill] sm:$0xff] }
 0x533   :  { %4120 = vadd.xlane.f32.xlu0 %v4119_v21 }
 0x537   :  { %v3827_v25 = vpop.xlane.xlu1 %3826  ;;  %4189 = vadd.xlane.f32.xlu0 %v4188_v31 }
 0x538   :  { %v3903_v41 = vsub.f32 %v21519_v40, %v3827_v25  ;;  %v3824_v5 = vpop.xlane.xlu0 %3823 }
 0x539   :  { %v3902_v10 = vsub.f32 %v21520_v52, %v3824_v5  ;;  %v21522_v5 = vld [vmem:[#allocation150_spill] sm:$0xff] }
 0x53a   :  { %v4024_v60 = vmul.f32 1.442695, %v3903_v41 }
 0x53b   :  { %v4022_v21 = vmul.f32 1.442695, %v3902_v10  ;;  %v18420_v39 = vpop.xlane.xlu1 %3832  ;;  %4126 = vadd.xlane.f32.xlu0 %v4125_v62 }
 0x53c   :  { %15209 = vpow2.f32 %v4024_v60  ;;  %v3749_v27 = vpop.xlane.xlu0 %3748 }
 0x53d   :  { %15211 = vpow2.f32 %v4022_v21  ;;  %v3877_v38 = vsub.f32 %v21521_v37, %v3749_v27 }
 0x53e   :  { %15213 = vpow2.f32 %v3966_v12 }
 0x53f   :  { %v3972_v31 = vmul.f32 1.442695, %v3877_v38  ;;  %v3797_v25 = vpop.xlane.xlu1 %3796 }
 0x540   :  { %v3746_v40 = vpop.xlane.xlu0 %3745 }
 0x541   :  { %15215 = vpow2.f32 %v3972_v31  ;;  %v3876_v55 = vsub.f32 %v21522_v5, %v3746_v40 }
 0x543   :  { %v3970_v41 = vmul.f32 1.442695, %v3876_v55  ;;  %v18424_v52 = vpop.xlane.xlu1 %4042 }
 0x544   :  { %v18426_v33 = vpop.xlane.xlu0 %3829 }
 0x545   :  { %15217 = vpow2.f32 %v3970_v41 }
 0x546   :  { %v18428_v10 = vpop.eup %15209 }
 0x547   :  { %21523 = vst [vmem:[#allocation139_spill] sm:$0xff] %v18428_v10  ;;  %v18430_v62 = vpop.eup %15211  ;;  %v18432_v60 = vpop.xlane.xlu1 %4048  ;;  %v4209_v12 = vsel %vm149_vm0, %v18428_v10, 0.0 }
 0x548   :  { %21524 = vst [vmem:[#allocation140_spill] sm:$0xff] %v18430_v62  ;;  %v18436_v38 = vpop.eup %15213  ;;  %4210 = vadd.xlane.f32.xlu1 %v4209_v12  ;;  %v3767_v21 = vpop.xlane.xlu0 %3766  ;;  %v4206_v27 = vsel %vm149_vm0, %v18430_v62, 0.0 }
 0x549   :  { %21525 = vst [vmem:[#allocation141_spill] sm:$0xff] %v18436_v38  ;;  %v3883_v37 = vsub.f32 %v18100_v63, %v3767_v21  ;;  %4207 = vadd.xlane.f32.xlu0 %v4206_v27  ;;  %v4122_v55 = vsel %vm149_vm0, %v18436_v38, 0.0 }
 0x54b   :  { %v18441_v31 = vpop.eup %15215  ;;  %v3984_v40 = vmul.f32 1.442695, %v3883_v37  ;;  %v18443_v5 = vpop.xlane.xlu1 %3820 }
 0x54c   :  { %21526 = vst [vmem:[#allocation144_spill] sm:$0xff] %v18441_v31  ;;  %4123 = vadd.xlane.f32.xlu1 %v4122_v55  ;;  %v3764_v41 = vpop.xlane.xlu0 %3763  ;;  %v4131_v12 = vsel %vm149_vm0, %v18441_v31, 0.0 }
 0x54d   :  { %15219 = vpow2.f32 %v3984_v40  ;;  %v3882_v10 = vsub.f32 %v18117_v0, %v3764_v41  ;;  %4132 = vadd.xlane.f32.xlu0 %v4131_v12 }
 0x54f   :  { %v18450_v62 = vpop.eup %15217  ;;  %v3982_v63 = vmul.f32 1.442695, %v3882_v10  ;;  %v18452_v21 = vpop.xlane.xlu1 %3838  ;;  %v21527_v10 = vld [vmem:[#allocation149_spill] sm:$0xff] }
 0x550   :  { %v3773_v27 = vpop.xlane.xlu0 %3772  ;;  %v4128_v37 = vsel %vm149_vm0, %v18450_v62, 0.0  ;;  %v3893_v12 = vsub.f32 %v21527_v10, %v3797_v25 }
 0x551   :  { %15221 = vpow2.f32 %v3982_v63  ;;  %v3885_v55 = vsub.f32 %v18129_v4, %v3773_v27  ;;  %4129 = vadd.xlane.f32.xlu1 %v4128_v37 }
 0x552   :  { %v4004_v37 = vmul.f32 1.442695, %v3893_v12 }
 0x553   :  { %v3988_v38 = vmul.f32 1.442695, %v3885_v55  ;;  %v18457_v19 = vpop.xlane.xlu1 %3844 }
 0x554   :  { %v3770_v40 = vpop.xlane.xlu0 %3769 }
 0x555   :  { %15223 = vpow2.f32 %v3988_v38  ;;  %v3884_v0 = vsub.f32 %v18143_v53, %v3770_v40 }
 0x557   :  { %v18460_v41 = vpop.eup %15219  ;;  %v3986_v31 = vmul.f32 1.442695, %v3884_v0  ;;  %v4067_v7 = vpop.xlane.xlu1 %4066 }
 0x558   :  { %v3791_v34 = vpop.xlane.xlu0 %3790  ;;  %v4149_v63 = vsel %vm149_vm0, %v18460_v41, 0.0 }
 0x559   :  { %15225 = vpow2.f32 %v3986_v31  ;;  %v3891_v4 = vsub.f32 %v18154_v32, %v3791_v34  ;;  %4150 = vadd.xlane.f32.xlu0 %v4149_v63 }
 0x55a   :  { %15227 = vrcp.f32 %v4067_v7 }
 0x55b   :  { %v18466_v27 = vpop.eup %15221  ;;  %v4000_v38 = vmul.f32 1.442695, %v3891_v4  ;;  %v4064_v53 = vpop.xlane.xlu1 %4063 }
 0x55c   :  { %15229 = vrcp.f32 %v4064_v53  ;;  %v3788_v55 = vpop.xlane.xlu0 %3787  ;;  %v4146_v25 = vsel %vm149_vm0, %v18466_v27, 0.0 }
 0x55d   :  { %15231 = vpow2.f32 %v4000_v38  ;;  %v3890_v40 = vsub.f32 %v18165_v2, %v3788_v55  ;;  %4147 = vadd.xlane.f32.xlu1 %v4146_v25  ;;  %v21530_v55 = vld [vmem:[#allocation67_spill] sm:$0xff] }
 0x55e   :  { %15233 = vpow2.f32 %v4004_v37  ;;  %v14458_v25 = vunpack.i.h.bf16 %v21530_v55 }
 0x55f   :  { %v18471_v0 = vpop.eup %15223  ;;  %v3998_v32 = vmul.f32 1.442695, %v3890_v40  ;;  %v4073_v34 = vpop.xlane.xlu1 %4072 }
 0x560   :  { %21528 = vst [vmem:[#allocation135_spill] sm:$0xff] %v18471_v0  ;;  %v3794_v31 = vpop.xlane.xlu0 %3793  ;;  %v4155_v7 = vsel %vm149_vm0, %v18471_v0, 0.0 }
 0x561   :  { %15235 = vpow2.f32 %v3998_v32  ;;  %v3892_v10 = vsub.f32 %v18178_v42, %v3794_v31  ;;  %4156 = vadd.xlane.f32.xlu0 %v4155_v7  ;;  %v14457_v42 = vunpack.i.l.bf16 %v21530_v55  ;;  %v21535_v55 = vld [vmem:[#allocation131_spill] sm:$0xff] }
 0x562   :  { %15237 = vrcp.f32 %v18424_v52 }
 0x563   :  { %v18477_v12 = vpop.eup %15225  ;;  %15239 = vrcp.f32 %v4073_v34  ;;  %v4002_v2 = vmul.f32 1.442695, %v3892_v10  ;;  %v4070_v63 = vpop.xlane.xlu1 %4069 }
 0x564   :  { %21529 = vst [vmem:[#allocation136_spill] sm:$0xff] %v18477_v12  ;;  %15241 = vrcp.f32 %v4070_v63  ;;  %v4040_v4 = vpop.xlane.xlu0 %4039  ;;  %v4152_v37 = vsel %vm149_vm0, %v18477_v12, 0.0  ;;  %v15228_v38 = vpop.eup %15227  ;;  %v21533_v63 = vld [vmem:[#allocation76_spill] sm:$0xff] }
 0x565   :  { %15243 = vpow2.f32 %v4002_v2  ;;  %4153 = vadd.xlane.f32.xlu1 %v4152_v37  ;;  %v4303_v34 = vmul.f32 %v15228_v38, %v18150_v16  ;;  %v14487_v37 = vunpack.i.l.bf16 %v21533_v63  ;;  %v3901_v16 = vsub.f32 %v18109_v9, %v18443_v5 }
 0x566   :  { %v15230_v53 = vpop.eup %15229  ;;  %15245 = vrcp.f32 %v4040_v4  ;;  %v14488_v4 = vunpack.i.h.bf16 %v21533_v63 }
 0x567   :  { %v18483_v52 = vpop.eup %15231  ;;  %v18485_v40 = vpop.xlane.xlu1 %4084  ;;  %v4302_v32 = vmul.f32 %v15230_v53, %v18161_v14  ;;  %v13922_v14 = vpack.c.bf16 %v14458_v25, %v14457_v42 }
 0x568   :  { %21531 = vst [vmem:[#allocation145_spill] sm:$0xff] %v18483_v52  ;;  %v3815_v31 = vpop.xlane.xlu0 %3814  ;;  %v4173_v7 = vsel %vm149_vm0, %v18483_v52, 0.0  ;;  %v18491_v10 = vpop.eup %15233  ;;  %v18510_v5 = vpack.c.bf16 %v14488_v4, %v14487_v37 }
 0x569   :  { %21532 = vst [vmem:[#allocation146_spill] sm:$0xff] %v18491_v10  ;;  %v3899_v2 = vsub.f32 %v18202_v48, %v3815_v31  ;;  %12946 = vmatprep.mubr.msk.f32.mxu1 %vm149_vm0, %v4302_v32  ;;  %4174 = vadd.xlane.f32.xlu0 %v4173_v7  ;;  %v4179_v31 = vsel %vm149_vm0, %v18491_v10, 0.0 }
 0x56a   :  { %12947 = vmatmul.mubr.msk.f32.vlgmr.msra.gmra.mrb[48].mxu1 %vm149_vm0, %v4303_v34 }
 0x56b   :  { %v18498_v53 = vpop.eup %15235  ;;  %v4016_v38 = vmul.f32 1.442695, %v3899_v2  ;;  %13921 = vmatpush3.bf16.msra.mxu1 %v21535_v55  ;;  %v18503_v52 = vpop.xlane.xlu1 %4081  ;;  %v21536_v2 = vld [vmem:[#allocation44_spill] sm:$0xff]  ;;  %v4020_v55 = vmul.f32 1.442695, %v3901_v16 }
 0x56c   :  { %21534 = vst [vmem:[#allocation147_spill] sm:$0xff] %v18498_v53  ;;  %v15238_v48 = vpop.eup %15237  ;;  %13923 = vmatprep.subr.bf16.mxu1 %v13922_v14  ;;  %v3812_v32 = vpop.xlane.xlu0 %3811  ;;  %v4170_v34 = vsel %vm149_vm0, %v18498_v53, 0.0  ;;  %v14398_v63 = vunpack.i.h.bf16 %v21536_v2 }
 0x56d   :  { %v15240_v25 = vpop.eup %15239  ;;  %15247 = vpow2.f32 %v4016_v38  ;;  %v3898_v42 = vsub.f32 %v18215_v61, %v3812_v32  ;;  %4180 = vadd.xlane.f32.xlu0 %v4179_v31  ;;  %4171 = vadd.xlane.f32.xlu1 %v4170_v34  ;;  %v14397_v38 = vunpack.i.l.bf16 %v21536_v2  ;;  %v21538_v32 = vld [vmem:[#allocation57_spill] sm:$0xff] }
 0x56e   :  { %v15242_v9 = vpop.eup %15241  ;;  %15249 = vrcp.f32 %v18432_v60  ;;  %v4305_v37 = vmul.f32 %v15240_v25, %v18174_v56  ;;  %v14428_v31 = vunpack.i.h.bf16 %v21538_v32  ;;  %v14427_v56 = vunpack.i.l.bf16 %v21538_v32 }
 0x56f   :  { %v18512_v7 = vpop.eup %15243  ;;  %v4014_v0 = vmul.f32 1.442695, %v3898_v42  ;;  %13925 = vmatpush3.bf16.msra.mxu1 %v13922_v14  ;;  %v4091_v10 = vpop.xlane.xlu1 %4090  ;;  %v4304_v12 = vmul.f32 %v15242_v9, %v18187_v22  ;;  %v21537_v22 = vld [vmem:[#allocation151_spill] sm:$0xff] }
 0x570   :  { %v15246_v53 = vpop.eup %15245  ;;  %13935 = vmatprep.subr.bf16.mxu1 %v18510_v5  ;;  %v4046_v61 = vpop.xlane.xlu0 %4045  ;;  %v4176_v4 = vsel %vm149_vm0, %v18512_v7, 0.0  ;;  %v4295_v16 = vmul.f32 %v15238_v48, %v21537_v22  ;;  %v13910_v34 = vpack.c.bf16 %v14428_v31, %v14427_v56  ;;  %v21540_v56 = vld [vmem:[#allocation78_spill] sm:$0xff] }
 0x571   :  { %15251 = vpow2.f32 %v4014_v0  ;;  %12949 = vmatprep.mubr.msk.f32.mxu1 %vm149_vm0, %v4304_v12  ;;  %4177 = vadd.xlane.f32.xlu1 %v4176_v4  ;;  %v4294_v14 = vmul.f32 %v15246_v53, %v18191_v51  ;;  %v13898_v0 = vpack.c.bf16 %v14398_v63, %v14397_v38  ;;  %v21539_v51 = vld [vmem:[#allocation127_spill] sm:$0xff] }
 0x572   :  { %15253 = vrcp.f32 %v4046_v61  ;;  %12950 = vmatmul.mubr.msk.f32.gmra.mrb[50].mxu1 %vm149_vm0, %v4305_v37 }
 0x573   :  { %15255 = vpow2.f32 %v4020_v55  ;;  %12918 = vmatprep.mubr.msk.f32.mxu0 %vm149_vm0, %v4294_v14  ;;  %v18527_v60 = vpop.xlane.xlu1 %4138 }
 0x574   :  { %12919 = vmatmul.mubr.msk.f32.vlgmr.msra.gmra.mrb[80].mxu0 %vm149_vm0, %v4295_v16  ;;  %v18532_v12 = vpop.xlane.xlu0 %3817  ;;  %15257 = vrcp.f32 %v4091_v10 }
 0x575   :  { %13897 = vmatpush3.bf16.msra.mxu0 %v21539_v51 }
 0x576   :  { %13899 = vmatprep.subr.bf16.mxu0 %v13898_v0 }
 0x577   :  { %v18535_v53 = vpop.eup %15247  ;;  %v4088_v48 = vpop.xlane.xlu1 %4087 }
 0x578   :  { %15259 = vrcp.f32 %v4088_v48  ;;  %v4055_v25 = vpop.xlane.xlu0 %4054  ;;  %v4197_v42 = vsel %vm149_vm0, %v18535_v53, 0.0  ;;  %v15250_v9 = vpop.eup %15249 }
 0x579   :  { %13901 = vmatpush3.bf16.msra.mxu0 %v13898_v0  ;;  %4198 = vadd.xlane.f32.xlu0 %v4197_v42  ;;  %15261 = vrcp.f32 %v4055_v25  ;;  %v4297_v37 = vmul.f32 %v15250_v9, %v18096_v35  ;;  %v14498_v0 = vunpack.i.h.bf16 %v21540_v56  ;;  %v21541_v9 = vld [vmem:[#allocation82_spill] sm:$0xff] }
 0x57a   :  { %13911 = vmatprep.subr.bf16.mxu0 %v13910_v34 }
 0x57b   :  { %v18539_v2 = vpop.eup %15251  ;;  %v4097_v63 = vpop.xlane.xlu1 %4096 }
 0x57c   :  { %v15254_v55 = vpop.eup %15253  ;;  %v4052_v38 = vpop.xlane.xlu0 %4051  ;;  %v4194_v10 = vsel %vm149_vm0, %v18539_v2, 0.0 }
 0x57d   :  { %v18543_v61 = vpop.eup %15255  ;;  %15263 = vrcp.f32 %v4052_v38  ;;  %4195 = vadd.xlane.f32.xlu1 %v4194_v10  ;;  %v4296_v4 = vmul.f32 %v15254_v55, %v18226_v47  ;;  %v14497_v47 = vunpack.i.l.bf16 %v21540_v56  ;;  %v14528_v55 = vunpack.i.h.bf16 %v21541_v9  ;;  %v21543_v56 = vld [vmem:[#allocation71_spill] sm:$0xff] }
 0x57e   :  { %v4203_v16 = vsel %vm149_vm0, %v18543_v61, 0.0  ;;  %v15258_v32 = vpop.eup %15257  ;;  %15265 = vrcp.f32 %v4097_v63  ;;  %v14527_v38 = vunpack.i.l.bf16 %v21541_v9 }
 0x57f   :  { %12921 = vmatprep.mubr.msk.f32.mxu0 %vm149_vm0, %v4296_v4  ;;  %v18548_v14 = vpop.xlane.xlu1 %4144  ;;  %v4311_v48 = vmul.f32 %v15258_v32, %v18222_v29  ;;  %v13938_v10 = vpack.c.bf16 %v14498_v0, %v14497_v47  ;;  %v14468_v0 = vunpack.i.h.bf16 %v21543_v56  ;;  %v14467_v47 = vunpack.i.l.bf16 %v21543_v56 }
 0x580   :  { %12922 = vmatmul.mubr.msk.f32.gmra.mrb[82].mxu0 %vm149_vm0, %v4297_v37  ;;  %v18551_v22 = vpop.xlane.xlu0 %3835  ;;  %v21542_v37 = vld [vmem:[#allocation61_spill] sm:$0xff] }
 0x581   :  { %4204 = vadd.xlane.f32.xlu1 %v4203_v16  ;;  %v14438_v63 = vunpack.i.h.bf16 %v21542_v37  ;;  %v14437_v16 = vunpack.i.l.bf16 %v21542_v37 }
 0x582   :  { %v15260_v31 = vpop.eup %15259 }
 0x583   :  { %v4094_v35 = vpop.xlane.xlu1 %4093  ;;  %v4310_v51 = vmul.f32 %v15260_v31, %v18247_v43  ;;  %v15262_v42 = vpop.eup %15261  ;;  %v18569_v31 = vpack.c.bf16 %v14528_v55, %v14527_v38  ;;  %v21545_v38 = vld [vmem:[#allocation46_spill] sm:$0xff] }
 0x584   :  { %15267 = vrcp.f32 %v4094_v35  ;;  %v4061_v25 = vpop.xlane.xlu0 %4060  ;;  %v4299_v32 = vmul.f32 %v15262_v42, %v18252_v24 }
 0x585   :  { %12974 = vmatprep.mubr.msk.f32.mxu1 %vm149_vm0, %v4310_v51  ;;  %15269 = vrcp.f32 %v4061_v25  ;;  %v13926_v25 = vpack.c.bf16 %v14468_v0, %v14467_v47  ;;  %v21546_v0 = vld [vmem:[#allocation72_spill] sm:$0xff] }
 0x586   :  { %12975 = vmatmul.mubr.msk.f32.vlgmr.msra.gmra.mrb[52].mxu1 %vm149_vm0, %v4311_v48  ;;  %v21544_v48 = vld [vmem:[#allocation52_spill] sm:$0xff]  ;;  %v14478_v47 = vunpack.i.h.bf16 %v21546_v0 }
 0x587   :  { %v15264_v4 = vpop.eup %15263  ;;  %13937 = vmatpush3.bf16.msra.mxu1 %v18510_v5  ;;  %v13914_v5 = vpack.c.bf16 %v14438_v63, %v14437_v16  ;;  %v18577_v24 = vpop.xlane.xlu1 %4162 }
 0x588   :  { %13939 = vmatprep.subr.bf16.mxu1 %v13938_v10  ;;  %v4058_v29 = vpop.xlane.xlu0 %4057  ;;  %v4298_v43 = vmul.f32 %v15264_v4, %v18262_v1  ;;  %v15266_v1 = vpop.eup %15265 }
 0x589   :  { %15271 = vrcp.f32 %v4058_v29  ;;  %v4313_v55 = vmul.f32 %v15266_v1, %v18258_v44  ;;  %v3906_v29 = vsub.f32 %v18272_v17, %v18551_v22  ;;  %v21547_v1 = vld [vmem:[#allocation152_spill] sm:$0xff] }
 0x58a   :  { %12932 = vmatprep.mubr.msk.f32.mxu0 %vm149_vm0, %v4298_v43  ;;  %15273 = vrcp.f32 %v18503_v52  ;;  %v3900_v52 = vsub.f32 %v18239_v46, %v18532_v12  ;;  %v3904_v46 = vsub.f32 %v21547_v1, %v18426_v33 }
 0x58b   :  { %13941 = vmatpush3.bf16.msra.mxu1 %v13938_v10  ;;  %12933 = vmatmul.mubr.msk.f32.vlgmr.msra.gmra.mrb[84].mxu0 %vm149_vm0, %v4299_v32  ;;  %v18588_v4 = vpop.xlane.xlu1 %4168  ;;  %v4030_v12 = vmul.f32 1.442695, %v3906_v29 }
 0x58c   :  { %13913 = vmatpush3.bf16.msra.mxu0 %v13910_v34  ;;  %13951 = vmatprep.subr.bf16.mxu1 %v18569_v31  ;;  %v18575_v35 = vpop.xlane.xlu0 %3841  ;;  %v4018_v43 = vmul.f32 1.442695, %v3900_v52 }
 0x58d   :  { %13915 = vmatprep.subr.bf16.mxu0 %v13914_v5 }
 0x58e   :  { %v15268_v51 = vpop.eup %15267 }
 0x58f   :  { %14645 = vrot.lane.b32.xlu0 %v21544_v48, %s15769_s20  ;;  %v4312_v42 = vmul.f32 %v15268_v51, %v18283_v30  ;;  %v15270_v34 = vpop.eup %15269  ;;  %v3907_v51 = vsub.f32 %v18123_v49, %v18452_v21 }
 0x590   :  { %13917 = vmatpush3.bf16.msra.mxu0 %v13914_v5  ;;  %v4079_v9 = vpop.xlane.xlu0 %4078  ;;  %v4301_v44 = vmul.f32 %v15270_v34, %v18287_v50  ;;  %v14477_v5 = vunpack.i.l.bf16 %v21546_v0 }
 0x591   :  { %13927 = vmatprep.subr.bf16.mxu0 %v13926_v25  ;;  %12977 = vmatprep.mubr.msk.f32.mxu1 %vm149_vm0, %v4312_v42  ;;  %15275 = vrcp.f32 %v4079_v9  ;;  %v4032_v49 = vmul.f32 1.442695, %v3907_v51 }
 0x592   :  { %12978 = vmatmul.mubr.msk.f32.gmra.mrb[54].mxu1 %vm149_vm0, %v4313_v55  ;;  %14640 = vrot.lane.b32.xlu1 %v21545_v38, %s15769_s20  ;;  %v13930_v34 = vpack.c.bf16 %v14478_v47, %v14477_v5 }
 0x593   :  { %v15272_v10 = vpop.eup %15271 }
 0x594   :  { %v4076_v30 = vpop.xlane.xlu0 %4075  ;;  %v4300_v37 = vmul.f32 %v15272_v10, %v18299_v54  ;;  %v15274_v32 = vpop.eup %15273  ;;  %v21548_v10 = vld [vmem:[#allocation79_spill] sm:$0xff] }
 0x595   :  { %15277 = vrcp.f32 %v4076_v30  ;;  %v4308_v55 = vmul.f32 %v15274_v32, %v18211_v20  ;;  %v14508_v30 = vunpack.i.h.bf16 %v21548_v10  ;;  %v14507_v33 = vunpack.i.l.bf16 %v21548_v10 }
 0x596   :  { %12935 = vmatprep.mubr.msk.f32.mxu0 %vm149_vm0, %v4300_v37  ;;  %v18594_v63 = vpop.xlane.xlu1 %4186  ;;  %15279 = vrcp.f32 %v18485_v40  ;;  %v4026_v37 = vmul.f32 1.442695, %v3904_v46 }
 0x597   :  { %12936 = vmatmul.mubr.msk.f32.gmra.mrb[86].mxu0 %vm149_vm0, %v4301_v44  ;;  %v13942_v21 = vpack.c.bf16 %v14508_v30, %v14507_v33 }
 0x598   :  { %v18599_v16 = vpop.xlane.xlu0 %4135 }
 0x59a   :  { %v4112_v54 = vpop.xlane.xlu1 %4111 }
 0x59b   :  { %15281 = vrcp.f32 %v4112_v54  ;;  %v15276_v56 = vpop.eup %15275 }
 0x59c   :  { %v18603_v50 = vpop.xlane.xlu0 %4141  ;;  %15283 = vpow2.f32 %v4018_v43  ;;  %v4307_v42 = vmul.f32 %v15276_v56, %v18320_v6  ;;  %v21549_v56 = vld [vmem:[#allocation83_spill] sm:$0xff] }
 0x59d   :  { %15285 = vpow2.f32 %v4030_v12  ;;  %v14517_v0 = vunpack.i.l.bf16 %v21549_v56 }
 0x59f   :  { %v15278_v40 = vpop.eup %15277 }
 0x5a0   :  { %v4103_v17 = vpop.xlane.xlu0 %4102  ;;  %v4306_v22 = vmul.f32 %v15278_v40, %v18327_v3  ;;  %v15280_v9 = vpop.eup %15279 }
 0x5a1   :  { %15287 = vrcp.f32 %v4103_v17  ;;  %v4309_v3 = vmul.f32 %v15280_v9, %v18198_v8  ;;  %v21550_v17 = vld [vmem:[#allocation89_spill] sm:$0xff] }
 0x5a2   :  { %12960 = vmatprep.mubr.msk.f32.mxu0 %vm149_vm0, %v4306_v22  ;;  %v14548_v22 = vunpack.i.h.bf16 %v21550_v17 }
 0x5a3   :  { %12961 = vmatmul.mubr.msk.f32.vlgmr.msra.gmra.mrb[88].mxu0 %vm149_vm0, %v4307_v42  ;;  %v14547_v42 = vunpack.i.l.bf16 %v21550_v17 }
 0x5a4   :  { %13929 = vmatpush3.bf16.msra.mxu0 %v13926_v25  ;;  %12963 = vmatprep.mubr.msk.f32.mxu0 %vm149_vm0, %v4308_v55  ;;  %v4100_v6 = vpop.xlane.xlu0 %4099 }
 0x5a5   :  { %13931 = vmatprep.subr.bf16.mxu0 %v13930_v34  ;;  %15289 = vrcp.f32 %v4100_v6  ;;  %v15282_v20 = vpop.eup %15281  ;;  %v18651_v10 = vpack.c.bf16 %v14548_v22, %v14547_v42  ;;  %v21556_v22 = vld [vmem:[#allocation54_spill] sm:$0xff] }
 0x5a6   :  { %15291 = vpow2.f32 %v4026_v37  ;;  %v4318_v44 = vmul.f32 %v15282_v20, %v18347_v18  ;;  %v18625_v25 = vpop.eup %15283  ;;  %v14518_v18 = vunpack.i.h.bf16 %v21549_v56  ;;  %v18633_v47 = vpop.xlane.xlu1 %4192 }
 0x5a7   :  { %12964 = vmatmul.mubr.msk.f32.gmra.mrb[90].mxu0 %vm149_vm0, %v4309_v3  ;;  %15293 = vpow2.f32 %v4032_v49  ;;  %v18627_v54 = vpop.eup %15285  ;;  %v4200_v8 = vsel %vm149_vm0, %v18625_v25, 0.0 }
 0x5a8   :  { %13933 = vmatpush3.bf16.msra.mxu0 %v13930_v34  ;;  %v18622_v52 = vpop.xlane.xlu0 %4159  ;;  %13002 = vmatprep.mubr.msk.f32.mxu1 %vm149_vm0, %v4318_v44  ;;  %v4218_v12 = vsel %vm149_vm0, %v18627_v54, 0.0  ;;  %v21551_v44 = vld [vmem:[#allocation87_spill] sm:$0xff] }
 0x5a9   :  { %13943 = vmatprep.subr.bf16.mxu0 %v13942_v21 }
 0x5aa   :  { %v4118_v55 = vpop.xlane.xlu1 %4117 }
 0x5ab   :  { %v15288_v43 = vpop.eup %15287 }
 0x5ac   :  { %v4109_v29 = vpop.xlane.xlu0 %4108  ;;  %v4315_v46 = vmul.f32 %v15288_v43, %v18355_v45 }
 0x5ad   :  { %15295 = vrcp.f32 %v4109_v29  ;;  %v14538_v29 = vunpack.i.h.bf16 %v21551_v44 }
 0x5ae   :  { %4201 = vadd.xlane.f32.xlu0 %v4200_v8  ;;  %v14537_v8 = vunpack.i.l.bf16 %v21551_v44  ;;  %v21561_v44 = vld [vmem:[#allocation154_spill] sm:$0xff] }
 0x5af   :  { %v15290_v32 = vpop.eup %15289 }
 0x5b0   :  { %v4106_v5 = vpop.xlane.xlu0 %4105  ;;  %v4314_v40 = vmul.f32 %v15290_v32, %v18361_v15  ;;  %v18636_v1 = vpop.eup %15291  ;;  %v13946_v15 = vpack.c.bf16 %v14518_v18, %v14517_v0  ;;  %v13954_v18 = vpack.c.bf16 %v14538_v29, %v14537_v8  ;;  %v21553_v0 = vld [vmem:[#allocation53_spill] sm:$0xff] }
 0x5b1   :  { %15297 = vrcp.f32 %v4106_v5  ;;  %v18641_v51 = vpop.eup %15293  ;;  %v4212_v34 = vsel %vm149_vm0, %v18636_v1, 0.0 }
 0x5b2   :  { %4219 = vadd.xlane.f32.xlu0 %v4218_v12  ;;  %12988 = vmatprep.mubr.msk.f32.mxu0 %vm149_vm0, %v4314_v40  ;;  %v4221_v45 = vsel %vm149_vm0, %v18641_v51, 0.0  ;;  %15299 = vrcp.f32 %v4118_v55 }
 0x5b3   :  { %12989 = vmatmul.mubr.msk.f32.vlgmr.msra.gmra.mrb[92].mxu0 %vm149_vm0, %v4315_v46  ;;  %v21555_v46 = vld [vmem:[#allocation98_spill] sm:$0xff] }
 0x5b4   :  { %13945 = vmatpush3.bf16.msra.mxu0 %v13942_v21  ;;  %v4166_v9 = vpop.xlane.xlu0 %4165  ;;  %v14578_v12 = vunpack.i.h.bf16 %v21555_v46  ;;  %v14577_v17 = vunpack.i.l.bf16 %v21555_v46 }
 0x5b5   :  { %13947 = vmatprep.subr.bf16.mxu0 %v13946_v15 }
 0x5b6   :  { %4222 = vadd.xlane.f32.xlu1 %v4221_v45  ;;  %4213 = vadd.xlane.f32.xlu0 %v4212_v34 }
 0x5b7   :  { %v15296_v33 = vpop.eup %15295 }
 0x5b8   :  { %13949 = vmatpush3.bf16.msra.mxu0 %v13946_v15  ;;  %v4115_v30 = vpop.xlane.xlu0 %4114  ;;  %v4317_v3 = vmul.f32 %v15296_v33, %v18377_v58  ;;  %v21557_v15 = vld [vmem:[#allocation107_spill] sm:$0xff] }
 0x5b9   :  { %13959 = vmatprep.subr.bf16.mxu0 %v18651_v10  ;;  %15301 = vrcp.f32 %v4115_v30  ;;  %v14602_v55 = vunpack.i.l.bf16 %v21557_v15 }
 0x5ba   :  { %15303 = vrcp.f32 %v18599_v16 }
 0x5bb   :  { %v15298_v37 = vpop.eup %15297 }
 0x5bc   :  { %v4184_v49 = vpop.xlane.xlu0 %4183  ;;  %v4316_v6 = vmul.f32 %v15298_v37, %v18387_v36  ;;  %v15300_v21 = vpop.eup %15299  ;;  %v21552_v36 = vld [vmem:[#allocation96_spill] sm:$0xff] }
 0x5bd   :  { %v14568_v32 = vunpack.i.h.bf16 %v21552_v36  ;;  %v14567_v56 = vunpack.i.l.bf16 %v21552_v36  ;;  %v4320_v16 = vmul.f32 %v15300_v21, %v18379_v23 }
 0x5be   :  { %12991 = vmatprep.mubr.msk.f32.mxu0 %vm149_vm0, %v4316_v6 }
 0x5bf   :  { %12992 = vmatmul.mubr.msk.f32.gmra.mrb[94].mxu0 %vm149_vm0, %v4317_v3 }
 0x5c0   :  { %v4121_v20 = vpop.xlane.xlu0 %4120 }
 0x5c1   :  { %15305 = vrcp.f32 %v4121_v20 }
 0x5c2   :  { %15307 = vrcp.f32 %v18527_v60  ;;  %v13966_v60 = vpack.c.bf16 %v14568_v32, %v14567_v56  ;;  %v21563_v56 = vld [vmem:[#allocation156_spill] sm:$0xff] }
 0x5c3   :  { %v15302_v43 = vpop.eup %15301  ;;  %15309 = vrcp.f32 %v18603_v50 }
 0x5c4   :  { %v4319_v58 = vmul.f32 %v15302_v43, %v18397_v26  ;;  %15311 = vrcp.f32 %v18548_v14  ;;  %v15304_v26 = vpop.eup %15303  ;;  %v18675_v23 = vpop.xlane.xlu0 %4189  ;;  %v21554_v14 = vld [vmem:[#allocation58_spill] sm:$0xff] }
 0x5c5   :  { %15313 = vrcp.f32 %v18622_v52  ;;  %v4326_v52 = vmul.f32 %v15304_v26, %v18335_v13  ;;  %v21562_v43 = vld [vmem:[#allocation142_spill] sm:$0xff] }
 0x5c6   :  { %13003 = vmatmul.mubr.msk.f32.vlgmr.msra.gmra.mrb[56].mxu1 %vm149_vm0, %v4319_v58  ;;  %15315 = vrcp.f32 %v18577_v24 }
 0x5c7   :  { %13953 = vmatpush3.bf16.msra.mxu1 %v18569_v31  ;;  %14650 = vrot.lane.b32.xlu1 %v21553_v0, %s15769_s20  ;;  %15317 = vrcp.f32 %v4166_v9  ;;  %v14603_v9 = vunpack.i.h.bf16 %v21557_v15  ;;  %v21569_v15 = vld [vmem:[#allocation138_spill] sm:$0xff] }
 0x5c8   :  { %13005 = vmatprep.mubr.msk.f32.mxu1 %vm149_vm0, %v4320_v16  ;;  %13955 = vmatprep.subr.bf16.mxu1 %v13954_v18  ;;  %15319 = vrcp.f32 %v18588_v4  ;;  %v4127_v45 = vpop.xlane.xlu0 %4126  ;;  %v13970_v4 = vpack.c.bf16 %v14578_v12, %v14577_v17  ;;  %v21567_v17 = vld [vmem:[#allocation95_spill] sm:$0xff] }
 0x5c9   :  { %15321 = vrcp.f32 %v4184_v49  ;;  %v21560_v49 = vld [vmem:[#allocation137_spill] sm:$0xff]  ;;  %v13982_v21 = vpack.c.bf16 %v14603_v9, %v14602_v55 }
 0x5ca   :  { %15323 = vrcp.f32 %v4127_v45 }
 0x5cb   :  { %v15306_v50 = vpop.eup %15305  ;;  %13957 = vmatpush3.bf16.msra.mxu1 %v13954_v18  ;;  %v21564_v18 = vld [vmem:[#allocation155_spill] sm:$0xff] }
 0x5cc   :  { %13967 = vmatprep.subr.bf16.mxu1 %v13966_v60  ;;  %14655 = vrot.lane.b32.xlu0 %v21554_v14, %s15769_s20  ;;  %v4321_v31 = vmul.f32 %v15306_v50, %v18405_v11  ;;  %v15308_v5 = vpop.eup %15307  ;;  %v3908_v26 = vsub.f32 %v21564_v18, %v18575_v35 }
 0x5cd   :  { %v15310_v40 = vpop.eup %15309  ;;  %v4327_v24 = vmul.f32 %v15308_v5, %v18235_v57  ;;  %v21558_v57 = vld [vmem:[#allocation86_spill] sm:$0xff]  ;;  %v21566_v5 = vld [vmem:[#allocation153_spill] sm:$0xff] }
 0x5ce   :  { %13006 = vmatmul.mubr.msk.f32.gmra.mrb[58].mxu1 %vm149_vm0, %v4321_v31  ;;  %v15312_v11 = vpop.eup %15311  ;;  %v4328_v13 = vmul.f32 %v15310_v40, %v18345_v28  ;;  %v21559_v28 = vld [vmem:[#allocation148_spill] sm:$0xff]  ;;  %v4034_v40 = vmul.f32 1.442695, %v3908_v26 }
 0x5cf   :  { %13030 = vmatprep.mubr.msk.f32.mxu1 %vm149_vm0, %v4326_v52  ;;  %v15314_v42 = vpop.eup %15313  ;;  %v4329_v34 = vmul.f32 %v15312_v11, %v18268_v59  ;;  %v3905_v33 = vsub.f32 %v21559_v28, %v18420_v39  ;;  %v3909_v52 = vsub.f32 %v21566_v5, %v18457_v19  ;;  %v14557_v11 = vunpack.i.l.bf16 %v21567_v17  ;;  %v21570_v19 = vld [vmem:[#allocation101_spill] sm:$0xff] }
 0x5d0   :  { %14660 = vrot.lane.b32.xlu0 %v21556_v22, %s15769_s20  ;;  %v15316_v30 = vpop.eup %15315  ;;  %v4334_v6 = vmul.f32 %v15314_v42, %v21560_v49 }
 0x5d1   :  { %v15318_v3 = vpop.eup %15317  ;;  %v4335_v29 = vmul.f32 %v15316_v30, %v21561_v44  ;;  %v4028_v8 = vmul.f32 1.442695, %v3905_v33  ;;  %v4036_v35 = vmul.f32 1.442695, %v3909_v52  ;;  %v14587_v30 = vunpack.i.l.bf16 %v21570_v19  ;;  %v21574_v52 = vld [vmem:[#allocation135_spill] sm:$0xff] }
 0x5d2   :  { %13031 = vmatmul.mubr.msk.f32.vlgmr.msra.gmra.mrb[60].mxu1 %vm149_vm0, %v4327_v24  ;;  %v15320_v59 = vpop.eup %15319  ;;  %v4336_v58 = vmul.f32 %v15318_v3, %v21562_v43  ;;  %v14558_v24 = vunpack.i.h.bf16 %v21567_v17 }
 0x5d3   :  { %13969 = vmatpush3.bf16.msra.mxu1 %v13966_v60  ;;  %13033 = vmatprep.mubr.msk.f32.mxu1 %vm149_vm0, %v4328_v13  ;;  %v15322_v36 = vpop.eup %15321  ;;  %v4337_v16 = vmul.f32 %v15320_v59, %v21563_v56  ;;  %v21565_v60 = vld [vmem:[#allocation134_spill] sm:$0xff]  ;;  %v21568_v13 = vld [vmem:[#allocation141_spill] sm:$0xff] }
 0x5d4   :  { %13971 = vmatprep.subr.bf16.mxu1 %v13970_v4  ;;  %14665 = vrot.lane.b32.xlu0 %v21558_v57, %s15769_s20  ;;  %v4342_v50 = vmul.f32 %v15322_v36, %v21565_v60  ;;  %v15324_v46 = vpop.eup %15323  ;;  %v13962_v28 = vpack.c.bf16 %v14558_v24, %v14557_v11  ;;  %v21572_v60 = vld [vmem:[#allocation88_spill] sm:$0xff]  ;;  %v21577_v11 = vld [vmem:[#allocation147_spill] sm:$0xff] }
 0x5d5   :  { %v18699_v37 = vpop.xlane.xlu1 %4210  ;;  %v4323_v9 = vmul.f32 %v15324_v46, %v21569_v15  ;;  %v21576_v46 = vld [vmem:[#allocation22_spill] sm:$0xff] }
 0x5d6   :  { %13034 = vmatmul.mubr.msk.f32.gmra.mrb[62].mxu1 %vm149_vm0, %v4329_v34  ;;  %v18703_v20 = vpop.xlane.xlu0 %4207  ;;  %v14588_v34 = vunpack.i.h.bf16 %v21570_v19 }
 0x5d7   :  { %13973 = vmatpush3.bf16.msra.mxu1 %v13970_v4  ;;  %13058 = vmatprep.mubr.msk.f32.mxu1 %vm149_vm0, %v4334_v6 }
 0x5d8   :  { %13983 = vmatprep.subr.bf16.mxu1 %v13982_v21 }
 0x5d9   :  { %v4124_v39 = vpop.xlane.xlu1 %4123 }
 0x5da   :  { %15325 = vrcp.f32 %v4124_v39  ;;  %13059 = vmatmul.mubr.msk.f32.vlgmr.msra.gmra.mrb[64].mxu1 %vm149_vm0, %v4335_v29  ;;  %v4133_v32 = vpop.xlane.xlu0 %4132  ;;  %v13974_v29 = vpack.c.bf16 %v14588_v34, %v14587_v30  ;;  %v21582_v30 = vld [vmem:[#allocation132_spill] sm:$0xff] }
 0x5db   :  { %13985 = vmatpush3.bf16.msra.mxu1 %v13982_v21  ;;  %13061 = vmatprep.mubr.msk.f32.mxu1 %vm149_vm0, %v4336_v58  ;;  %15327 = vpow2.f32 %v4028_v8  ;;  %v21571_v21 = vld [vmem:[#allocation144_spill] sm:$0xff] }
 0x5dc   :  { %15329 = vrcp.f32 %v4133_v32 }
 0x5de   :  { %v4130_v31 = vpop.xlane.xlu1 %4129  ;;  %13062 = vmatmul.mubr.msk.f32.gmra.mrb[66].mxu1 %vm149_vm0, %v4337_v16 }
 0x5df   :  { %15331 = vrcp.f32 %v4130_v31  ;;  %13086 = vmatprep.mubr.msk.f32.mxu1 %vm149_vm0, %v4342_v50  ;;  %v21573_v31 = vld [vmem:[#allocation136_spill] sm:$0xff] }
 0x5e0   :  { %15333 = vpow2.f32 %v4034_v40 }
 0x5e1   :  { %15335 = vpow2.f32 %v4036_v35 }
 0x5e4   :  { %v15326_v12 = vpop.eup %15325 }
 0x5e5   :  { %v4322_v42 = vmul.f32 %v15326_v12, %v21568_v13  ;;  %v18722_v55 = vpop.eup %15327  ;;  %v21578_v13 = vld [vmem:[#allocation24_spill] sm:$0xff] }
 0x5e6   :  { %v4151_v45 = vpop.xlane.xlu0 %4150  ;;  %v15330_v4 = vpop.eup %15329  ;;  %v4215_v6 = vsel %vm149_vm0, %v18722_v55, 0.0 }
 0x5e7   :  { %13016 = vmatprep.mubr.msk.f32.mxu0 %vm149_vm0, %v4322_v42  ;;  %15337 = vrcp.f32 %v4151_v45  ;;  %v4325_v44 = vmul.f32 %v15330_v4, %v21571_v21  ;;  %v21580_v45 = vld [vmem:[#allocation90_spill] sm:$0xff] }
 0x5e8   :  { %13017 = vmatmul.mubr.msk.f32.vlgmr.msra.gmra.mrb[96].mxu0 %vm149_vm0, %v4323_v9 }
 0x5e9   :  { %v15332_v33 = vpop.eup %15331  ;;  %13961 = vmatpush3.bf16.msra.mxu0 %v18651_v10 }
 0x5ea   :  { %13963 = vmatprep.subr.bf16.mxu0 %v13962_v28  ;;  %v4148_v49 = vpop.xlane.xlu1 %4147  ;;  %v4324_v3 = vmul.f32 %v15332_v33, %v18450_v62  ;;  %v18735_v10 = vpop.eup %15333  ;;  %v21583_v33 = vld [vmem:[#allocation38_spill] sm:$0xff] }
 0x5eb   :  { %15339 = vrcp.f32 %v4148_v49  ;;  %4216 = vadd.xlane.f32.xlu1 %v4215_v6  ;;  %v4224_v39 = vsel %vm149_vm0, %v18735_v10, 0.0  ;;  %v18739_v62 = vpop.eup %15335 }
 0x5ec   :  { %13019 = vmatprep.mubr.msk.f32.mxu0 %vm149_vm0, %v4324_v3  ;;  %v4227_v36 = vsel %vm149_vm0, %v18739_v62, 0.0  ;;  %v21584_v3 = vld [vmem:[#allocation143_spill] sm:$0xff] }
 0x5ed   :  { %13965 = vmatpush3.bf16.msra.mxu0 %v13962_v28 }
 0x5ee   :  { %13020 = vmatmul.mubr.msk.f32.gmra.mrb[98].mxu0 %vm149_vm0, %v4325_v44  ;;  %13975 = vmatprep.subr.bf16.mxu0 %v13974_v29  ;;  %v4157_v59 = vpop.xlane.xlu0 %4156 }
 0x5ef   :  { %15341 = vrcp.f32 %v4157_v59 }
 0x5f1   :  { %v15338_v43 = vpop.eup %15337 }
 0x5f2   :  { %v4154_v8 = vpop.xlane.xlu1 %4153  ;;  %v4331_v56 = vmul.f32 %v15338_v43, %v18460_v41  ;;  %v21575_v41 = vld [vmem:[#allocation29_spill] sm:$0xff] }
 0x5f3   :  { %15343 = vrcp.f32 %v4154_v8  ;;  %4225 = vadd.xlane.f32.xlu0 %v4224_v39  ;;  %v21585_v8 = vld [vmem:[#allocation20_spill] sm:$0xff] }
 0x5f4   :  { %v21586_v39 = vld [vmem:[#allocation28_spill] sm:$0xff] }
 0x5f5   :  { %v15340_v58 = vpop.eup %15339 }
 0x5f6   :  { %v4330_v32 = vmul.f32 %v15340_v58, %v18466_v27  ;;  %v4175_v26 = vpop.xlane.xlu0 %4174  ;;  %v21587_v58 = vld [vmem:[#allocation133_spill] sm:$0xff] }
 0x5f7   :  { %4228 = vadd.xlane.f32.xlu0 %v4227_v36 }
 0x5f8   :  { %13044 = vmatprep.mubr.msk.f32.mxu0 %vm149_vm0, %v4330_v32 }
 0x5f9   :  { %13045 = vmatmul.mubr.msk.f32.vlgmr.msra.gmra.mrb[100].mxu0 %vm149_vm0, %v4331_v56  ;;  %v15342_v18 = vpop.eup %15341 }
 0x5fa   :  { %13977 = vmatpush3.bf16.msra.mxu0 %v13974_v29  ;;  %v4172_v16 = vpop.xlane.xlu1 %4171  ;;  %v4333_v27 = vmul.f32 %v15342_v18, %v21574_v52  ;;  %v4181_v40 = vpop.xlane.xlu0 %4180 }
 0x5fb   :  { %15345 = vrcp.f32 %v4172_v16  ;;  %v21588_v16 = vld [vmem:[#allocation140_spill] sm:$0xff] }
 0x5fc   :  { %14670 = vrot.lane.b32.xlu1 %v21572_v60, %s15769_s20  ;;  %15347 = vrcp.f32 %v18594_v63 }
 0x5fd   :  { %v15344_v50 = vpop.eup %15343  ;;  %15349 = vrcp.f32 %v18675_v23  ;;  %v21579_v23 = vld [vmem:[#allocation32_spill] sm:$0xff] }
 0x5fe   :  { %v4332_v5 = vmul.f32 %v15344_v50, %v21573_v31  ;;  %v4178_v17 = vpop.xlane.xlu1 %4177  ;;  %15351 = vrcp.f32 %v18633_v47  ;;  %v21590_v50 = vld [vmem:[#allocation145_spill] sm:$0xff] }
 0x5ff   :  { %15353 = vrcp.f32 %v18703_v20  ;;  %v21581_v20 = vld [vmem:[#allocation26_spill] sm:$0xff] }
 0x600   :  { %14680 = vrot.lane.b32.xlu1 %v21575_v41, %s15770_s5  ;;  %13047 = vmatprep.mubr.msk.f32.mxu0 %vm149_vm0, %v4332_v5  ;;  %15355 = vrcp.f32 %v4175_v26  ;;  %v21589_v26 = vld [vmem:[#allocation27_spill] sm:$0xff] }
 0x601   :  { %13048 = vmatmul.mubr.msk.f32.gmra.mrb[102].mxu0 %vm149_vm0, %v4333_v27  ;;  %15357 = vrcp.f32 %v4178_v17  ;;  %v21591_v5 = vld [vmem:[#allocation47_spill] sm:$0xff]  ;;  %v21593_v17 = vld [vmem:[#allocation41_spill] sm:$0xff] }
 0x602   :  { %15359 = vrcp.f32 %v4181_v40 }
 0x604   :  { %14685 = vrot.lane.b32.xlu1 %v21576_v46, %s15770_s5 }
 0x605   :  { %v15346_v12 = vpop.eup %15345 }
 0x606   :  { %v18759_v24 = vpop.xlane.xlu0 %4198  ;;  %v4338_v35 = vmul.f32 %v15346_v12, %v21577_v11  ;;  %v15348_v4 = vpop.eup %15347  ;;  %v21592_v12 = vld [vmem:[#allocation42_spill] sm:$0xff] }
 0x607   :  { %v15350_v34 = vpop.eup %15349  ;;  %v4343_v28 = vmul.f32 %v15348_v4, %v21582_v30  ;;  %v21594_v11 = vld [vmem:[#allocation146_spill] sm:$0xff]  ;;  %v21601_v4 = vld [vmem:[#allocation48_spill] sm:$0xff]  ;;  %v21603_v30 = vld [vmem:[#allocation33_spill] sm:$0xff] }
 0x608   :  { %14690 = vrot.lane.b32.xlu1 %v21578_v13, %s15770_s5  ;;  %13072 = vmatprep.mubr.msk.f32.mxu0 %vm149_vm0, %v4338_v35  ;;  %v15352_v49 = vpop.eup %15351  ;;  %v4344_v21 = vmul.f32 %v15350_v34, %v21584_v3  ;;  %v21602_v34 = vld [vmem:[#allocation15_spill] sm:$0xff]  ;;  %v21608_v3 = vld [vmem:[#allocation18_spill] sm:$0xff] }
 0x609   :  { %v15354_v59 = vpop.eup %15353  ;;  %v4345_v36 = vmul.f32 %v15352_v49, %v21587_v58  ;;  %v21606_v49 = vld [vmem:[#allocation59_spill] sm:$0xff]  ;;  %v21613_v58 = vld [vmem:[#allocation65_spill] sm:$0xff] }
 0x60a   :  { %v4196_v63 = vpop.xlane.xlu1 %4195  ;;  %v14646_v42 = vpop.permute.xlu0 %14645  ;;  %v4350_v18 = vmul.f32 %v15354_v59, %v21588_v16  ;;  %v21611_v59 = vld [vmem:[#allocation66_spill] sm:$0xff]  ;;  %v21615_v16 = vld [vmem:[#allocation63_spill] sm:$0xff] }
 0x60b   :  { %v14648_v15 = vunpack.i.h.bf16 %v14646_v42  ;;  %v14647_v9 = vunpack.i.l.bf16 %v14646_v42  ;;  %15361 = vrcp.f32 %v4196_v63  ;;  %v15356_v32 = vpop.eup %15355  ;;  %v21595_v42 = vld [vmem:[#allocation39_spill] sm:$0xff] }
 0x60c   :  { %14695 = vrot.lane.b32.xlu1 %v21579_v23, %s15770_s5  ;;  %v15358_v56 = vpop.eup %15357  ;;  %v4339_v31 = vmul.f32 %v15356_v32, %v21590_v50  ;;  %v21617_v50 = vld [vmem:[#allocation19_spill] sm:$0xff]  ;;  %15363 = vrcp.f32 %v18759_v24  ;;  %v21622_v24 = vld [vmem:[#allocation73_spill] sm:$0xff] }
 0x60d   :  { %14675 = vrot.lane.b32.xlu0 %v21580_v45, %s15769_s20  ;;  %v13986_v47 = vpack.c.bf16 %v14648_v15, %v14647_v9  ;;  %v15360_v52 = vpop.eup %15359  ;;  %v4340_v27 = vmul.f32 %v15358_v56, %v18512_v7  ;;  %v21596_v7 = vld [vmem:[#allocation31_spill] sm:$0xff]  ;;  %v21597_v15 = vld [vmem:[#allocation30_spill] sm:$0xff] }
 0x60e   :  { %v18771_v19 = vpop.xlane.xlu1 %4204  ;;  %v4341_v35 = vmul.f32 %v15360_v52, %v21594_v11  ;;  %v21598_v9 = vld [vmem:[#allocation55_spill] sm:$0xff]  ;;  %v21621_v11 = vld [vmem:[#allocation17_spill] sm:$0xff] }
 0x60f   :  { %13987 = vmatprep.subr.bf16.mxu1 %v13986_v47 }
 0x610   :  { %14700 = vrot.lane.b32.xlu1 %v21581_v20, %s15770_s5  ;;  %13989 = vmatpush3.bf16.msra.mxu1 %v13986_v47  ;;  %v21599_v47 = vld [vmem:[#allocation51_spill] sm:$0xff] }
 0x611   :  { %6109 = vrot.lane.b32.xlu0 %v21583_v33, %s15771_s30  ;;  %v21605_v33 = vld [vmem:[#allocation60_spill] sm:$0xff] }
 0x612   :  { %v14641_v6 = vpop.permute.xlu1 %14640 }
 0x613   :  { %v14643_v44 = vunpack.i.h.bf16 %v14641_v6  ;;  %v14642_v29 = vunpack.i.l.bf16 %v14641_v6  ;;  %13087 = vmatmul.mubr.msk.f32.vlgmr.msra.gmra.mrb[68].mxu1 %vm149_vm0, %v4343_v28  ;;  %v21604_v28 = vld [vmem:[#allocation62_spill] sm:$0xff]  ;;  %v21607_v6 = vld [vmem:[#allocation56_spill] sm:$0xff] }
 0x614   :  { %6107 = vrot.lane.b32.xlu1 %v21585_v8, %s15771_s30  ;;  %13089 = vmatprep.mubr.msk.f32.mxu1 %vm149_vm0, %v4344_v21 }
 0x615   :  { %14710 = vrot.lane.b32.xlu0 %v21586_v39, %s15770_s5  ;;  %v13978_v43 = vpack.c.bf16 %v14643_v44, %v14642_v29  ;;  %v15362_v40 = vpop.eup %15361  ;;  %v21609_v44 = vld [vmem:[#allocation34_spill] sm:$0xff] }
 0x616   :  { %v4346_v63 = vmul.f32 %v15362_v40, %v18539_v2  ;;  %v21600_v2 = vld [vmem:[#allocation50_spill] sm:$0xff] }
 0x617   :  { %13979 = vmatprep.subr.bf16.mxu0 %v13978_v43  ;;  %13090 = vmatmul.mubr.msk.f32.gmra.mrb[70].mxu1 %vm149_vm0, %v4345_v36  ;;  %v21614_v36 = vld [vmem:[#allocation64_spill] sm:$0xff] }
 0x618   :  { %14705 = vrot.lane.b32.xlu1 %v21589_v26, %s15770_s5  ;;  %13981 = vmatpush3.bf16.msra.mxu0 %v13978_v43 }
 0x619   :  { %13114 = vmatprep.mubr.msk.f32.mxu1 %vm149_vm0, %v4350_v18  ;;  %6226 = vrot.lane.b32.xlu0 %v21591_v5, %s15771_s30 }
 0x61b   :  { %13073 = vmatmul.mubr.msk.f32.vlgmr.msra.gmra.mrb[104].mxu0 %vm149_vm0, %v4339_v31 }
 0x61c   :  { %6224 = vrot.lane.b32.xlu1 %v21592_v12, %s15771_s30  ;;  %13075 = vmatprep.mubr.msk.f32.mxu0 %vm149_vm0, %v4340_v27 }
 0x61d   :  { %6113 = vrot.lane.b32.xlu0 %v21593_v17, %s15771_s30 }
 0x61f   :  { %13076 = vmatmul.mubr.msk.f32.gmra.mrb[106].mxu0 %vm149_vm0, %v4341_v35 }
 0x620   :  { %6111 = vrot.lane.b32.xlu1 %v21595_v42, %s15771_s30  ;;  %13100 = vmatprep.mubr.msk.f32.mxu0 %vm149_vm0, %v4346_v63 }
 0x621   :  { %14720 = vrot.lane.b32.xlu0 %v21596_v7, %s15770_s5 }
 0x624   :  { %14715 = vrot.lane.b32.xlu1 %v21597_v15, %s15770_s5 }
 0x625   :  { %6343 = vrot.lane.b32.xlu0 %v21598_v9, %s15771_s30 }
 0x628   :  { %6341 = vrot.lane.b32.xlu1 %v21599_v47, %s15771_s30 }
 0x629   :  { %6230 = vrot.lane.b32.xlu0 %v21600_v2, %s15771_s30  ;;  %v21623_v2 = vld [vmem:[#allocation70_spill] sm:$0xff] }
 0x62c   :  { %6228 = vrot.lane.b32.xlu1 %v21601_v4, %s15771_s30 }
 0x62d   :  { %14730 = vrot.lane.b32.xlu0 %v21602_v34, %s15770_s5 }
 0x630   :  { %14725 = vrot.lane.b32.xlu1 %v21603_v30, %s15770_s5 }
 0x631   :  { %6460 = vrot.lane.b32.xlu0 %v21604_v28, %s15771_s30 }
 0x634   :  { %6458 = vrot.lane.b32.xlu1 %v21605_v33, %s15771_s30 }
 0x635   :  { %6347 = vrot.lane.b32.xlu0 %v21606_v49, %s15771_s30  ;;  %v15364_v49 = vpop.eup %15363 }
 0x638   :  { %6345 = vrot.lane.b32.xlu1 %v21607_v6, %s15771_s30  ;;  %v21625_v6 = vld [vmem:[#allocation68_spill] sm:$0xff] }
 0x639   :  { %14740 = vrot.lane.b32.xlu0 %v21608_v3, %s15770_s5 }
 0x63b   :  { %v4202_v21 = vpop.xlane.xlu0 %4201 }
 0x63c   :  { %14735 = vrot.lane.b32.xlu1 %v21609_v44, %s15770_s5  ;;  %15365 = vrcp.f32 %v4202_v21 }
 0x63d   :  { %v18835_v29 = vpop.f32.mrb[48].mxu1  ;;  %6577 = vrot.lane.b32.xlu0 %v21611_v59, %s15771_s30  ;;  %15367 = vrcp.f32 %v18699_v37  ;;  %v21624_v37 = vld [vmem:[#allocation69_spill] sm:$0xff] }
 0x63e   :  { %21610 = vst [vmem:[#allocation150_spill] sm:$0xff] %v18835_v29  ;;  %v18839_v8 = vpop.f32.mrb[49].mxu1  ;;  %15369 = vrcp.f32 %v18771_v19 }
 0x63f   :  { %21612 = vst [vmem:[#allocation149_spill] sm:$0xff] %v18839_v8  ;;  %v4220_v43 = vpop.xlane.xlu0 %4219 }
 0x640   :  { %6575 = vrot.lane.b32.xlu1 %v21613_v58, %s15771_s30  ;;  %15371 = vrcp.f32 %v4220_v43  ;;  %v21626_v58 = vld [vmem:[#allocation16_spill] sm:$0xff] }
 0x641   :  { %6464 = vrot.lane.b32.xlu0 %v21614_v36, %s15771_s30 }
 0x643   :  { %v18845_v32 = vpop.xlane.xlu1 %4222  ;;  %v4214_v56 = vpop.xlane.xlu0 %4213 }
 0x644   :  { %6462 = vrot.lane.b32.xlu1 %v21615_v16, %s15771_s30  ;;  %15373 = vrcp.f32 %v4214_v56  ;;  %v4347_v56 = vmul.f32 %v15364_v49, %v18535_v53  ;;  %v21637_v49 = vld [vmem:[#allocation36_spill] sm:$0xff] }
 0x645   :  { %v18849_v18 = vpop.f32.mrb[50].mxu1  ;;  %14750 = vrot.lane.b32.xlu0 %v21617_v50, %s15770_s5 }
 0x646   :  { %21616 = vst [vmem:[#allocation67_spill] sm:$0xff] %v18849_v18  ;;  %v18854_v31 = vpop.f32.mrb[51].mxu1  ;;  %v15366_v21 = vpop.eup %15365 }
 0x647   :  { %21618 = vst [vmem:[#allocation76_spill] sm:$0xff] %v18854_v31  ;;  %v18856_v5 = vpop.f32.mrb[80].mxu0  ;;  %v14651_v52 = vpop.permute.xlu1 %14650 }
 0x648   :  { %21619 = vst [vmem:[#allocation131_spill] sm:$0xff] %v18856_v5  ;;  %v18858_v27 = vpop.f32.mrb[81].mxu0  ;;  %v14653_v40 = vunpack.i.h.bf16 %v14651_v52  ;;  %v14652_v12 = vunpack.i.l.bf16 %v14651_v52  ;;  %v14656_v17 = vpop.permute.xlu0 %14655  ;;  %14745 = vrot.lane.b32.xlu1 %v21621_v11, %s15770_s5 }
 0x649   :  { %21620 = vst [vmem:[#allocation44_spill] sm:$0xff] %v18858_v27  ;;  %v14658_v35 = vunpack.i.h.bf16 %v14656_v17  ;;  %v14657_v63 = vunpack.i.l.bf16 %v14656_v17  ;;  %6694 = vrot.lane.b32.xlu0 %v21622_v24, %s15771_s30  ;;  %v15368_v36 = vpop.eup %15367  ;;  %v21629_v17 = vld [vmem:[#allocation25_spill] sm:$0xff] }
 0x64a   :  { %v13990_v42 = vpack.c.bf16 %v14653_v40, %v14652_v12  ;;  %v15370_v40 = vpop.eup %15369 }
 0x64b   :  { %v13998_v9 = vpack.c.bf16 %v14658_v35, %v14657_v63  ;;  %v4348_v35 = vmul.f32 %v15366_v21, %v18625_v25  ;;  %v15372_v63 = vpop.eup %15371  ;;  %v4349_v53 = vmul.f32 %v15370_v40, %v18543_v61  ;;  %v21636_v61 = vld [vmem:[#allocation74_spill] sm:$0xff]  ;;  %v21642_v21 = vld [vmem:[#allocation85_spill] sm:$0xff] }
 0x64c   :  { %v14661_v47 = vpop.permute.xlu0 %14660  ;;  %6692 = vrot.lane.b32.xlu1 %v21623_v2, %s15771_s30  ;;  %13991 = vmatprep.subr.bf16.mxu0 %v13990_v42  ;;  %v21632_v2 = vld [vmem:[#allocation77_spill] sm:$0xff] }
 0x64d   :  { %v14663_v4 = vunpack.i.h.bf16 %v14661_v47  ;;  %v14662_v28 = vunpack.i.l.bf16 %v14661_v47  ;;  %13999 = vmatprep.subr.bf16.mxu1 %v13998_v9  ;;  %6581 = vrot.lane.b32.xlu0 %v21624_v37, %s15771_s30  ;;  %v21634_v37 = vld [vmem:[#allocation75_spill] sm:$0xff] }
 0x64e   :  { %13993 = vmatpush3.bf16.msra.mxu0 %v13990_v42  ;;  %14001 = vmatpush3.bf16.msra.mxu1 %v13998_v9  ;;  %v15374_v24 = vpop.eup %15373  ;;  %v21630_v42 = vld [vmem:[#allocation80_spill] sm:$0xff]  ;;  %v21631_v9 = vld [vmem:[#allocation139_spill] sm:$0xff] }
 0x64f   :  { %v13994_v33 = vpack.c.bf16 %v14663_v4, %v14662_v28  ;;  %v4351_v47 = vmul.f32 %v15368_v36, %v21631_v9  ;;  %v4352_v4 = vmul.f32 %v15374_v24, %v18636_v1  ;;  %v4354_v28 = vmul.f32 %v15372_v63, %v18627_v54  ;;  %v21650_v63 = vld [vmem:[#allocation84_spill] sm:$0xff]  ;;  %v21654_v9 = vld [vmem:[#allocation21_spill] sm:$0xff] }
 0x650   :  { %v14666_v19 = vpop.permute.xlu0 %14665  ;;  %6579 = vrot.lane.b32.xlu1 %v21625_v6, %s15771_s30  ;;  %v21641_v6 = vld [vmem:[#allocation91_spill] sm:$0xff]  ;;  %v21651_v24 = vld [vmem:[#allocation40_spill] sm:$0xff] }
 0x651   :  { %v14668_v59 = vunpack.i.h.bf16 %v14666_v19  ;;  %v14667_v43 = vunpack.i.l.bf16 %v14666_v19  ;;  %13995 = vmatprep.subr.bf16.mxu0 %v13994_v33  ;;  %14760 = vrot.lane.b32.xlu0 %v21626_v58, %s15770_s5  ;;  %v21640_v19 = vld [vmem:[#allocation35_spill] sm:$0xff] }
 0x652   :  { %13997 = vmatpush3.bf16.msra.mxu0 %v13994_v33 }
 0x653   :  { %v18875_v16 = vpop.f32.mrb[82].mxu0  ;;  %v14002_v52 = vpack.c.bf16 %v14668_v59, %v14667_v43  ;;  %v21644_v43 = vld [vmem:[#allocation92_spill] sm:$0xff] }
 0x654   :  { %21627 = vst [vmem:[#allocation151_spill] sm:$0xff] %v18875_v16  ;;  %v18877_v12 = vpop.f32.mrb[83].mxu0  ;;  %14755 = vrot.lane.b32.xlu1 %v21629_v17, %s15770_s5 }
 0x655   :  { %21628 = vst [vmem:[#allocation57_spill] sm:$0xff] %v18877_v12  ;;  %13101 = vmatmul.mubr.msk.f32.vlgmr.msra.gmra.mrb[108].mxu0 %vm149_vm0, %v4347_v56  ;;  %14003 = vmatprep.subr.bf16.mxu1 %v14002_v52  ;;  %v21646_v56 = vld [vmem:[#allocation81_spill] sm:$0xff] }
 0x656   :  { %6811 = vrot.lane.b32.xlu0 %v21630_v42, %s15771_s30  ;;  %13103 = vmatprep.mubr.msk.f32.mxu0 %vm149_vm0, %v4348_v35  ;;  %v21652_v42 = vld [vmem:[#allocation37_spill] sm:$0xff] }
 0x657   :  { %14005 = vmatpush3.bf16.msra.mxu1 %v14002_v52  ;;  %v21647_v52 = vld [vmem:[#allocation93_spill] sm:$0xff] }
 0x658   :  { %6809 = vrot.lane.b32.xlu1 %v21632_v2, %s15771_s30 }
 0x659   :  { %13104 = vmatmul.mubr.msk.f32.gmra.mrb[110].mxu0 %vm149_vm0, %v4349_v53  ;;  %v18891_v25 = vpop.f32.mrb[52].mxu1  ;;  %v21653_v53 = vld [vmem:[#allocation97_spill] sm:$0xff] }
 0x65a   :  { %21633 = vst [vmem:[#allocation127_spill] sm:$0xff] %v18891_v25  ;;  %13115 = vmatmul.mubr.msk.f32.vlgmr.msra.gmra.mrb[72].mxu1 %vm149_vm0, %v4351_v47  ;;  %6698 = vrot.lane.b32.xlu0 %v21634_v37, %s15771_s30  ;;  %v18898_v33 = vpop.f32.mrb[53].mxu1  ;;  %v21655_v47 = vld [vmem:[#allocation100_spill] sm:$0xff]  ;;  %v21665_v25 = vld [vmem:[#allocation105_spill] sm:$0xff] }
 0x65b   :  { %21635 = vst [vmem:[#allocation78_spill] sm:$0xff] %v18898_v33  ;;  %13117 = vmatprep.mubr.msk.f32.mxu1 %vm149_vm0, %v4352_v4  ;;  %13128 = vmatprep.mubr.msk.f32.mxu0 %vm149_vm0, %v4354_v28  ;;  %v21658_v28 = vld [vmem:[#allocation99_spill] sm:$0xff] }
 0x65c   :  { %6696 = vrot.lane.b32.xlu1 %v21636_v61, %s15771_s30  ;;  %v21659_v61 = vld [vmem:[#allocation45_spill] sm:$0xff] }
 0x65e   :  { %14770 = vrot.lane.b32.xlu0 %v21637_v49, %s15770_s5  ;;  %v18906_v1 = vpop.f32.mrb[84].mxu0 }
 0x65f   :  { %21638 = vst [vmem:[#allocation82_spill] sm:$0xff] %v18906_v1  ;;  %v18908_v54 = vpop.f32.mrb[85].mxu0 }
 0x660   :  { %21639 = vst [vmem:[#allocation61_spill] sm:$0xff] %v18908_v54  ;;  %14765 = vrot.lane.b32.xlu1 %v21640_v19, %s15770_s5 }
 0x662   :  { %6928 = vrot.lane.b32.xlu0 %v21641_v6, %s15771_s30 }
 0x664   :  { %6926 = vrot.lane.b32.xlu1 %v21642_v21, %s15771_s30 }
 0x665   :  { %v18916_v59 = vpop.f32.mrb[54].mxu1 }
 0x666   :  { %21643 = vst [vmem:[#allocation71_spill] sm:$0xff] %v18916_v59  ;;  %6930 = vrot.lane.b32.xlu0 %v21644_v43, %s15771_s30  ;;  %v18920_v36 = vpop.f32.mrb[55].mxu1  ;;  %v21662_v43 = vld [vmem:[#allocation43_spill] sm:$0xff] }
 0x667   :  { %21645 = vst [vmem:[#allocation72_spill] sm:$0xff] %v18920_v36 }
 0x668   :  { %6813 = vrot.lane.b32.xlu1 %v21646_v56, %s15771_s30 }
 0x66a   :  { %6932 = vrot.lane.b32.xlu0 %v21647_v52, %s15771_s30  ;;  %v18926_v40 = vpop.f32.mrb[86].mxu0 }
 0x66b   :  { %21648 = vst [vmem:[#allocation152_spill] sm:$0xff] %v18926_v40  ;;  %v18928_v35 = vpop.f32.mrb[87].mxu0 }
 0x66c   :  { %21649 = vst [vmem:[#allocation79_spill] sm:$0xff] %v18928_v35  ;;  %6815 = vrot.lane.b32.xlu1 %v21650_v63, %s15771_s30 }
 0x66e   :  { %14780 = vrot.lane.b32.xlu0 %v21651_v24, %s15770_s5 }
 0x670   :  { %14775 = vrot.lane.b32.xlu1 %v21652_v42, %s15770_s5 }
 0x672   :  { %7045 = vrot.lane.b32.xlu0 %v21653_v53, %s15771_s30  ;;  %v21663_v53 = vld [vmem:[#allocation103_spill] sm:$0xff] }
 0x674   :  { %7043 = vrot.lane.b32.xlu1 %v21654_v9, %s15771_s30 }
 0x676   :  { %7049 = vrot.lane.b32.xlu0 %v21655_v47, %s15771_s30  ;;  %v18942_v2 = vpop.f32.mrb[88].mxu0  ;;  %v21664_v47 = vld [vmem:[#allocation94_spill] sm:$0xff] }
 0x677   :  { %21656 = vst [vmem:[#allocation83_spill] sm:$0xff] %v18942_v2  ;;  %v18944_v4 = vpop.f32.mrb[89].mxu0 }
 0x678   :  { %21657 = vst [vmem:[#allocation89_spill] sm:$0xff] %v18944_v4  ;;  %7047 = vrot.lane.b32.xlu1 %v21658_v28, %s15771_s30  ;;  %v4217_v37 = vpop.xlane.xlu1 %4216 }
 0x679   :  { %15375 = vrcp.f32 %v4217_v37 }
 0x67a   :  { %14790 = vrot.lane.b32.xlu0 %v21659_v61, %s15770_s5  ;;  %v18950_v6 = vpop.f32.mrb[90].mxu0  ;;  %15377 = vrcp.f32 %v18845_v32  ;;  %v21668_v32 = vld [vmem:[#allocation49_spill] sm:$0xff] }
 0x67b   :  { %21660 = vst [vmem:[#allocation87_spill] sm:$0xff] %v18950_v6  ;;  %v18952_v21 = vpop.f32.mrb[91].mxu0 }
 0x67c   :  { %21661 = vst [vmem:[#allocation96_spill] sm:$0xff] %v18952_v21  ;;  %14785 = vrot.lane.b32.xlu1 %v21662_v43, %s15770_s5  ;;  %v14671_v56 = vpop.permute.xlu1 %14670 }
 0x67d   :  { %v14673_v52 = vunpack.i.h.bf16 %v14671_v56  ;;  %v14672_v63 = vunpack.i.l.bf16 %v14671_v56 }
 0x67e   :  { %7162 = vrot.lane.b32.xlu0 %v21663_v53, %s15771_s30  ;;  %v21666_v53 = vld [vmem:[#allocation104_spill] sm:$0xff] }
 0x67f   :  { %v14006_v9 = vpack.c.bf16 %v14673_v52, %v14672_v63 }
 0x680   :  { %7160 = vrot.lane.b32.xlu1 %v21664_v47, %s15771_s30  ;;  %v14681_v28 = vpop.permute.xlu1 %14680  ;;  %v4226_v37 = vpop.xlane.xlu0 %4225 }
 0x681   :  { %v14683_v59 = vunpack.i.h.bf16 %v14681_v28  ;;  %v14682_v36 = vunpack.i.l.bf16 %v14681_v28  ;;  %14007 = vmatprep.subr.bf16.mxu0 %v14006_v9  ;;  %15379 = vrcp.f32 %v4226_v37 }
 0x682   :  { %7166 = vrot.lane.b32.xlu0 %v21665_v25, %s15771_s30  ;;  %14009 = vmatpush3.bf16.msra.mxu0 %v14006_v9 }
 0x683   :  { %v15376_v33 = vpop.eup %15375  ;;  %v14014_v56 = vpack.c.bf16 %v14683_v59, %v14682_v36 }
 0x684   :  { %7164 = vrot.lane.b32.xlu1 %v21666_v53, %s15771_s30  ;;  %v14686_v52 = vpop.permute.xlu1 %14685  ;;  %v4229_v63 = vpop.xlane.xlu0 %4228  ;;  %v4353_v47 = vmul.f32 %v15376_v33, %v18722_v55 }
 0x685   :  { %v14688_v6 = vunpack.i.h.bf16 %v14686_v52  ;;  %v14687_v21 = vunpack.i.l.bf16 %v14686_v52  ;;  %14016 = vmatprep.subr.msk.bf16.mxu1 %vm17058_vm2, %v14014_v56  ;;  %15381 = vrcp.f32 %v4229_v63  ;;  %v21671_v63 = vld [vmem:[#allocation108_spill] sm:$0xff] }
 0x686   :  { %14800 = vrot.lane.b32.xlu0 %v21668_v32, %s15770_s5  ;;  %v18970_v25 = vpop.f32.mrb[92].mxu0  ;;  %13118 = vmatmul.mubr.msk.f32.gmra.mrb[74].mxu1 %vm149_vm0, %v4353_v47 }
 0x687   :  { %21669 = vst [vmem:[#allocation98_spill] sm:$0xff] %v18970_v25  ;;  %v14020_v59 = vpack.c.bf16 %v14688_v6, %v14687_v21  ;;  %14019 = vmatpush3.bf16.xpose.msk.msra.mxu1 %vm17058_vm2, %v14014_v56  ;;  %v18975_v36 = vpop.f32.mrb[93].mxu0  ;;  %v15378_v21 = vpop.eup %15377  ;;  %v21672_v56 = vld [vmem:[#allocation102_spill] sm:$0xff] }
 0x688   :  { %21670 = vst [vmem:[#allocation107_spill] sm:$0xff] %v18975_v36  ;;  %14795 = vrot.lane.b32.xlu1 %v21545_v38, %s15770_s5  ;;  %v14691_v55 = vpop.permute.xlu1 %14690  ;;  %v14676_v33 = vpop.permute.xlu0 %14675 }
 0x689   :  { %v14693_v9 = vunpack.i.h.bf16 %v14691_v55  ;;  %v14692_v37 = vunpack.i.l.bf16 %v14691_v55  ;;  %v14678_v53 = vunpack.i.h.bf16 %v14676_v33  ;;  %v14677_v52 = vunpack.i.l.bf16 %v14676_v33  ;;  %14022 = vmatprep.subr.msk.bf16.mxu1 %vm17058_vm2, %v14020_v59  ;;  %v21673_v55 = vld [vmem:[#allocation110_spill] sm:$0xff] }
 0x68a   :  { %7279 = vrot.lane.b32.xlu0 %v21671_v63, %s15771_s30  ;;  %v4355_v33 = vmul.f32 %v15378_v21, %v18641_v51 }
 0x68b   :  { %v14010_v6 = vpack.c.bf16 %v14678_v53, %v14677_v52  ;;  %v15380_v36 = vpop.eup %15379  ;;  %v14026_v2 = vpack.c.bf16 %v14693_v9, %v14692_v37  ;;  %v21674_v52 = vld [vmem:[#allocation109_spill] sm:$0xff] }
 0x68c   :  { %7277 = vrot.lane.b32.xlu1 %v21672_v56, %s15771_s30  ;;  %v14696_v47 = vpop.permute.xlu1 %14695  ;;  %v6110_v25 = vpop.permute.xlu0 %6109  ;;  %v4356_v9 = vmul.f32 %v15380_v36, %v18735_v10 }
 0x68d   :  { %14011 = vmatprep.subr.bf16.mxu0 %v14010_v6 }
 0x68e   :  { %7283 = vrot.lane.b32.xlu0 %v21673_v55, %s15771_s30  ;;  %14013 = vmatpush3.bf16.msra.mxu0 %v14010_v6  ;;  %v14697_v6 = vunpack.i.l.bf16 %v14696_v47 }
 0x68f   :  { %14025 = vmatpush3.bf16.xpose.msk.msra.mxu1 %vm17058_vm2, %v14020_v59  ;;  %14028 = vmatprep.subr.msk.bf16.mxu0 %vm17058_vm2, %v14026_v2  ;;  %v15382_v53 = vpop.eup %15381  ;;  %v14698_v59 = vunpack.i.h.bf16 %v14696_v47 }
 0x690   :  { %7281 = vrot.lane.b32.xlu1 %v21674_v52, %s15771_s30  ;;  %v14701_v63 = vpop.permute.xlu1 %14700  ;;  %v14711_v56 = vpop.permute.xlu0 %14710  ;;  %v4357_v52 = vmul.f32 %v15382_v53, %v18739_v62  ;;  %v21678_v62 = vld [vmem:[#allocation106_spill] sm:$0xff] }
 0x691   :  { %v14703_v37 = vunpack.i.h.bf16 %v14701_v63  ;;  %v14702_v4 = vunpack.i.l.bf16 %v14701_v63  ;;  %13129 = vmatmul.mubr.msk.f32.vlgmr.msra.gmra.mrb[112].mxu0 %vm149_vm0, %v4355_v33  ;;  %v21677_v33 = vld [vmem:[#allocation112_spill] sm:$0xff] }
 0x692   :  { %14810 = vrot.lane.b32.xlu0 %v21553_v0, %s15770_s5  ;;  %v18998_v51 = vpop.f32.mrb[94].mxu0  ;;  %13131 = vmatprep.mubr.msk.f32.mxu0 %vm149_vm0, %v4356_v9 }
 0x693   :  { %21675 = vst [vmem:[#allocation148_spill] sm:$0xff] %v18998_v51  ;;  %v14038_v21 = vpack.c.bf16 %v14703_v37, %v14702_v4  ;;  %v19001_v55 = vpop.f32.mrb[95].mxu0  ;;  %v14032_v4 = vpack.c.bf16 %v14698_v59, %v14697_v6  ;;  %v14712_v6 = vunpack.i.l.bf16 %v14711_v56 }
 0x694   :  { %21676 = vst [vmem:[#allocation137_spill] sm:$0xff] %v19001_v55  ;;  %14805 = vrot.lane.b32.xlu1 %v21544_v48, %s15770_s5  ;;  %v6108_v10 = vpop.permute.xlu1 %6107  ;;  %v6227_v36 = vpop.permute.xlu0 %6226 }
 0x695   :  { %13132 = vmatmul.mubr.msk.f32.gmra.mrb[114].mxu0 %vm149_vm0, %v4357_v52  ;;  %13142 = vmatprep.mubr.msk.f32.mxu1 %vm1793_vm1, %v6108_v10  ;;  %v21682_v52 = vld [vmem:[#allocation113_spill] sm:$0xff] }
 0x696   :  { %7396 = vrot.lane.b32.xlu0 %v21677_v33, %s15771_s30  ;;  %14040 = vmatprep.subr.msk.bf16.mxu1 %vm17058_vm2, %v14038_v21 }
 0x697   :  { %13143 = vmatmul.mubr.msk.f32.vlgmr.msra.gmra.mrb[76].mxu1 %vm1793_vm1, %v6110_v25  ;;  %14031 = vmatpush3.bf16.xpose.msk.msra.mxu0 %vm17058_vm2, %v14026_v2  ;;  %v21680_v25 = vld [vmem:[#allocation114_spill] sm:$0xff]  ;;  %v14713_v2 = vunpack.i.h.bf16 %v14711_v56 }
 0x698   :  { %14043 = vmatpush3.bf16.xpose.msk.msra.mxu1 %vm17058_vm2, %v14038_v21  ;;  %7394 = vrot.lane.b32.xlu1 %v21678_v62, %s15771_s30  ;;  %v14706_v47 = vpop.permute.xlu1 %14705  ;;  %v6114_v53 = vpop.permute.xlu0 %6113 }
 0x699   :  { %v14708_v63 = vunpack.i.h.bf16 %v14706_v47  ;;  %v14707_v9 = vunpack.i.l.bf16 %v14706_v47  ;;  %14034 = vmatprep.subr.msk.bf16.mxu0 %vm17058_vm2, %v14032_v4  ;;  %v19021_v37 = vpop.f32.mrb[56].mxu1 }
 0x69a   :  { %21679 = vst [vmem:[#allocation154_spill] sm:$0xff] %v19021_v37  ;;  %7400 = vrot.lane.b32.xlu0 %v21680_v25, %s15771_s30  ;;  %v19025_v59 = vpop.f32.mrb[57].mxu1  ;;  %v14050_v25 = vpack.c.bf16 %v14713_v2, %v14712_v6  ;;  %v21684_v2 = vld [vmem:[#allocation116_spill] sm:$0xff]  ;;  %v21686_v6 = vld [vmem:[#allocation111_spill] sm:$0xff] }
 0x69b   :  { %21681 = vst [vmem:[#allocation142_spill] sm:$0xff] %v19025_v59  ;;  %v14044_v21 = vpack.c.bf16 %v14708_v63, %v14707_v9 }
 0x69c   :  { %7398 = vrot.lane.b32.xlu1 %v21682_v52, %s15771_s30  ;;  %v6225_v10 = vpop.permute.xlu1 %6224  ;;  %v14721_v33 = vpop.permute.xlu0 %14720 }
 0x69d   :  { %v14723_v62 = vunpack.i.h.bf16 %v14721_v33  ;;  %v14722_v47 = vunpack.i.l.bf16 %v14721_v33  ;;  %13156 = vmatprep.mubr.msk.f32.mxu0 %vm1793_vm1, %v6225_v10  ;;  %14046 = vmatprep.subr.msk.bf16.mxu1 %vm17058_vm2, %v14044_v21 }
 0x69e   :  { %14820 = vrot.lane.b32.xlu0 %v21554_v14, %s15770_s5 }
 0x69f   :  { %v14062_v37 = vpack.c.bf16 %v14723_v62, %v14722_v47  ;;  %14037 = vmatpush3.bf16.xpose.msk.msra.mxu0 %vm17058_vm2, %v14032_v4  ;;  %v21688_v47 = vld [vmem:[#allocation118_spill] sm:$0xff] }
 0x6a0   :  { %14049 = vmatpush3.bf16.xpose.msk.msra.mxu1 %vm17058_vm2, %v14044_v21  ;;  %14815 = vrot.lane.b32.xlu1 %v21556_v22, %s15770_s5  ;;  %v6112_v56 = vpop.permute.xlu1 %6111  ;;  %v6344_v63 = vpop.permute.xlu0 %6343 }
 0x6a1   :  { %14052 = vmatprep.subr.msk.bf16.mxu0 %vm17058_vm2, %v14050_v25  ;;  %v19042_v9 = vpop.f32.mrb[58].mxu1  ;;  %13145 = vmatprep.mubr.msk.f32.mxu1 %vm1793_vm1, %v6112_v56 }
 0x6a2   :  { %21683 = vst [vmem:[#allocation156_spill] sm:$0xff] %v19042_v9  ;;  %7513 = vrot.lane.b32.xlu0 %v21684_v2, %s15771_s30  ;;  %14064 = vmatprep.subr.msk.bf16.mxu1 %vm17058_vm2, %v14062_v37  ;;  %v19049_v4 = vpop.f32.mrb[59].mxu1 }
 0x6a3   :  { %21685 = vst [vmem:[#allocation155_spill] sm:$0xff] %v19049_v4  ;;  %13146 = vmatmul.mubr.msk.f32.gmra.mrb[78].mxu1 %vm1793_vm1, %v6114_v53  ;;  %v21690_v53 = vld [vmem:[#allocation117_spill] sm:$0xff] }
 0x6a4   :  { %7511 = vrot.lane.b32.xlu1 %v21686_v6, %s15771_s30  ;;  %v14716_v21 = vpop.permute.xlu1 %14715  ;;  %v6231_v52 = vpop.permute.xlu0 %6230 }
 0x6a5   :  { %v14718_v10 = vunpack.i.h.bf16 %v14716_v21  ;;  %v14717_v33 = vunpack.i.l.bf16 %v14716_v21  ;;  %v19054_v62 = vpop.f32.mrb[60].mxu1 }
 0x6a6   :  { %21687 = vst [vmem:[#allocation134_spill] sm:$0xff] %v19054_v62  ;;  %7517 = vrot.lane.b32.xlu0 %v21688_v47, %s15771_s30  ;;  %v19058_v56 = vpop.f32.mrb[61].mxu1  ;;  %13157 = vmatmul.mubr.msk.f32.vlgmr.msra.gmra.mrb[116].mxu0 %vm1793_vm1, %v6227_v36 }
 0x6a7   :  { %21689 = vst [vmem:[#allocation153_spill] sm:$0xff] %v19058_v56  ;;  %v14056_v2 = vpack.c.bf16 %v14718_v10, %v14717_v33  ;;  %14055 = vmatpush3.bf16.xpose.msk.msra.mxu0 %vm17058_vm2, %v14050_v25 }
 0x6a8   :  { %7515 = vrot.lane.b32.xlu1 %v21690_v53, %s15771_s30  ;;  %v6342_v6 = vpop.permute.xlu1 %6341  ;;  %v14731_v9 = vpop.permute.xlu0 %14730  ;;  %v21694_v53 = vld [vmem:[#allocation120_spill] sm:$0xff] }
 0x6a9   :  { %v19065_v4 = vpop.f32.mrb[62].mxu1  ;;  %13170 = vmatprep.mubr.msk.f32.mxu1 %vm1793_vm1, %v6342_v6  ;;  %14058 = vmatprep.subr.msk.bf16.mxu0 %vm17058_vm2, %v14056_v2  ;;  %v14733_v21 = vunpack.i.h.bf16 %v14731_v9  ;;  %v14732_v47 = vunpack.i.l.bf16 %v14731_v9 }
 0x6aa   :  { %21691 = vst [vmem:[#allocation95_spill] sm:$0xff] %v19065_v4  ;;  %14830 = vrot.lane.b32.xlu0 %v21572_v60, %s15770_s5  ;;  %v19072_v36 = vpop.f32.mrb[63].mxu1  ;;  %13171 = vmatmul.mubr.msk.f32.vlgmr.msra.gmra.mrb[80].mxu1 %vm1793_vm1, %v6344_v63 }
 0x6ab   :  { %21692 = vst [vmem:[#allocation141_spill] sm:$0xff] %v19072_v36  ;;  %14067 = vmatpush3.bf16.xpose.msk.msra.mxu1 %vm17058_vm2, %v14062_v37  ;;  %v14074_v9 = vpack.c.bf16 %v14733_v21, %v14732_v47  ;;  %v21696_v37 = vld [vmem:[#allocation115_spill] sm:$0xff] }
 0x6ac   :  { %14825 = vrot.lane.b32.xlu1 %v21558_v57, %s15770_s5  ;;  %v6229_v25 = vpop.permute.xlu1 %6228  ;;  %v6461_v10 = vpop.permute.xlu0 %6460 }
 0x6ad   :  { %v19079_v33 = vpop.f32.mrb[64].mxu1  ;;  %13159 = vmatprep.mubr.msk.f32.mxu0 %vm1793_vm1, %v6229_v25 }
 0x6ae   :  { %21693 = vst [vmem:[#allocation138_spill] sm:$0xff] %v19079_v33  ;;  %7630 = vrot.lane.b32.xlu0 %v21694_v53, %s15771_s30  ;;  %v19084_v6 = vpop.f32.mrb[65].mxu1  ;;  %13160 = vmatmul.mubr.msk.f32.gmra.mrb[118].mxu0 %vm1793_vm1, %v6231_v52  ;;  %v21698_v53 = vld [vmem:[#allocation122_spill] sm:$0xff] }
 0x6af   :  { %21695 = vst [vmem:[#allocation101_spill] sm:$0xff] %v19084_v6  ;;  %14061 = vmatpush3.bf16.xpose.msk.msra.mxu0 %vm17058_vm2, %v14056_v2  ;;  %v21700_v2 = vld [vmem:[#allocation121_spill] sm:$0xff] }
 0x6b0   :  { %7628 = vrot.lane.b32.xlu1 %v21696_v37, %s15771_s30  ;;  %v14726_v63 = vpop.permute.xlu1 %14725  ;;  %v6348_v59 = vpop.permute.xlu0 %6347  ;;  %14076 = vmatprep.subr.msk.bf16.mxu0 %vm17058_vm2, %v14074_v9 }
 0x6b1   :  { %v14728_v25 = vunpack.i.h.bf16 %v14726_v63  ;;  %v14727_v21 = vunpack.i.l.bf16 %v14726_v63  ;;  %v19093_v47 = vpop.f32.mrb[66].mxu1  ;;  %v21701_v63 = vld [vmem:[#allocation119_spill] sm:$0xff] }
 0x6b2   :  { %21697 = vst [vmem:[#allocation144_spill] sm:$0xff] %v19093_v47  ;;  %7634 = vrot.lane.b32.xlu0 %v21698_v53, %s15771_s30  ;;  %v19097_v33 = vpop.f32.mrb[67].mxu1  ;;  %v21707_v47 = vld [vmem:[#allocation126_spill] sm:$0xff] }
 0x6b3   :  { %21699 = vst [vmem:[#allocation136_spill] sm:$0xff] %v19097_v33  ;;  %v14068_v52 = vpack.c.bf16 %v14728_v25, %v14727_v21  ;;  %v21702_v21 = vld [vmem:[#allocation125_spill] sm:$0xff] }
 0x6b4   :  { %7632 = vrot.lane.b32.xlu1 %v21700_v2, %s15771_s30  ;;  %v6459_v6 = vpop.permute.xlu1 %6458  ;;  %v14741_v37 = vpop.permute.xlu0 %14740  ;;  %v21710_v33 = vld [vmem:[#allocation129_spill] sm:$0xff] }
 0x6b5   :  { %v14743_v51 = vunpack.i.h.bf16 %v14741_v37  ;;  %v14742_v55 = vunpack.i.l.bf16 %v14741_v37  ;;  %13184 = vmatprep.mubr.msk.f32.mxu0 %vm1793_vm1, %v6459_v6  ;;  %14070 = vmatprep.subr.msk.bf16.mxu1 %vm17058_vm2, %v14068_v52 }
 0x6b6   :  { %7745 = vrot.lane.b32.xlu0 %v21701_v63, %s15771_s30  ;;  %13185 = vmatmul.mubr.msk.f32.vlgmr.msra.gmra.mrb[120].mxu0 %vm1793_vm1, %v6461_v10  ;;  %v21706_v63 = vld [vmem:[#allocation123_spill] sm:$0xff] }
 0x6b7   :  { %v14086_v53 = vpack.c.bf16 %v14743_v51, %v14742_v55  ;;  %14073 = vmatpush3.bf16.xpose.msk.msra.mxu1 %vm17058_vm2, %v14068_v52  ;;  %14079 = vmatpush3.bf16.xpose.msk.msra.mxu0 %vm17058_vm2, %v14074_v9  ;;  %v21704_v55 = vld [vmem:[#allocation124_spill] sm:$0xff] }
 0x6b8   :  { %14835 = vrot.lane.b32.xlu1 %v21580_v45, %s15770_s5  ;;  %v6346_v25 = vpop.permute.xlu1 %6345  ;;  %v6578_v6 = vpop.permute.xlu0 %6577 }
 0x6b9   :  { %13173 = vmatprep.mubr.msk.f32.mxu1 %vm1793_vm1, %v6346_v25  ;;  %14088 = vmatprep.subr.msk.bf16.mxu1 %vm17058_vm2, %v14086_v53 }
 0x6ba   :  { %7749 = vrot.lane.b32.xlu0 %v21702_v21, %s15771_s30  ;;  %13174 = vmatmul.mubr.msk.f32.gmra.mrb[82].mxu1 %vm1793_vm1, %v6348_v59 }
 0x6bb   :  { %v19119_v51 = vpop.f32.mrb[96].mxu0 }
 0x6bc   :  { %21703 = vst [vmem:[#allocation135_spill] sm:$0xff] %v19119_v51  ;;  %7747 = vrot.lane.b32.xlu1 %v21704_v55, %s15771_s30  ;;  %v14736_v10 = vpop.permute.xlu1 %14735  ;;  %v19123_v9 = vpop.f32.mrb[97].mxu0 }
 0x6bd   :  { %21705 = vst [vmem:[#allocation29_spill] sm:$0xff] %v19123_v9  ;;  %v14738_v52 = vunpack.i.h.bf16 %v14736_v10  ;;  %v14737_v2 = vunpack.i.l.bf16 %v14736_v10  ;;  %v6465_v37 = vpop.permute.xlu0 %6464 }
 0x6be   :  { %7862 = vrot.lane.b32.xlu0 %v21706_v63, %s15771_s30 }
 0x6bf   :  { %v14080_v25 = vpack.c.bf16 %v14738_v52, %v14737_v2  ;;  %v21711_v52 = vld [vmem:[#allocation128_spill] sm:$0xff] }
 0x6c0   :  { %7751 = vrot.lane.b32.xlu1 %v21707_v47, %s15771_s30  ;;  %v6576_v21 = vpop.permute.xlu1 %6575 }
 0x6c1   :  { %v19129_v59 = vpop.f32.mrb[98].mxu0  ;;  %v14751_v51 = vpop.permute.xlu0 %14750  ;;  %13198 = vmatprep.mubr.msk.f32.mxu1 %vm1793_vm1, %v6576_v21  ;;  %14082 = vmatprep.subr.msk.bf16.mxu0 %vm17058_vm2, %v14080_v25 }
 0x6c2   :  { %21708 = vst [vmem:[#allocation22_spill] sm:$0xff] %v19129_v59  ;;  %v14753_v55 = vunpack.i.h.bf16 %v14751_v51  ;;  %v14752_v9 = vunpack.i.l.bf16 %v14751_v51  ;;  %v19134_v10 = vpop.f32.mrb[99].mxu0  ;;  %7866 = vrot.lane.b32.xlu0 %v21710_v33, %s15771_s30  ;;  %13199 = vmatmul.mubr.msk.f32.vlgmr.msra.gmra.mrb[84].mxu1 %vm1793_vm1, %v6578_v6  ;;  %v21712_v33 = vld [vmem:[#allocation130_spill] sm:$0xff] }
 0x6c3   :  { %21709 = vst [vmem:[#allocation147_spill] sm:$0xff] %v19134_v10  ;;  %14085 = vmatpush3.bf16.xpose.msk.msra.mxu0 %vm17058_vm2, %v14080_v25  ;;  %14091 = vmatpush3.bf16.xpose.msk.msra.mxu1 %vm17058_vm2, %v14086_v53 }
 0x6c4   :  { %v14098_v47 = vpack.c.bf16 %v14753_v55, %v14752_v9  ;;  %7864 = vrot.lane.b32.xlu1 %v21711_v52, %s15771_s30  ;;  %v6463_v2 = vpop.permute.xlu1 %6462 }
 0x6c5   :  { %v6695_v63 = vpop.permute.xlu0 %6694  ;;  %13187 = vmatprep.mubr.msk.f32.mxu0 %vm1793_vm1, %v6463_v2 }
 0x6c6   :  { %14100 = vmatprep.subr.msk.bf16.mxu0 %vm17058_vm2, %v14098_v47  ;;  %13188 = vmatmul.mubr.msk.f32.gmra.mrb[122].mxu0 %vm1793_vm1, %v6465_v37 }
 0x6c8   :  { %7868 = vrot.lane.b32.xlu1 %v21712_v33, %s15771_s30  ;;  %v14746_v6 = vpop.permute.xlu1 %14745 }
 0x6c9   :  { %v14748_v51 = vunpack.i.h.bf16 %v14746_v6  ;;  %v14747_v25 = vunpack.i.l.bf16 %v14746_v6  ;;  %v6582_v53 = vpop.permute.xlu0 %6581 }
 0x6cb   :  { %v14092_v9 = vpack.c.bf16 %v14748_v51, %v14747_v25 }
 0x6cc   :  { %v6693_v21 = vpop.permute.xlu1 %6692  ;;  %v19151_v55 = vpop.f32.mrb[100].mxu0 }
 0x6cd   :  { %21713 = vst [vmem:[#allocation24_spill] sm:$0xff] %v19151_v55  ;;  %v14761_v52 = vpop.permute.xlu0 %14760  ;;  %v19153_v18 = vpop.f32.mrb[101].mxu0  ;;  %13212 = vmatprep.mubr.msk.f32.mxu0 %vm1793_vm1, %v6693_v21  ;;  %14094 = vmatprep.subr.msk.bf16.mxu1 %vm17058_vm2, %v14092_v9 }
 0x6ce   :  { %21714 = vst [vmem:[#allocation32_spill] sm:$0xff] %v19153_v18  ;;  %v14763_v37 = vunpack.i.h.bf16 %v14761_v52  ;;  %v14762_v2 = vunpack.i.l.bf16 %v14761_v52  ;;  %13213 = vmatmul.mubr.msk.f32.vlgmr.msra.gmra.mrb[124].mxu0 %vm1793_vm1, %v6695_v63  ;;  %14097 = vmatpush3.bf16.xpose.msk.msra.mxu1 %vm17058_vm2, %v14092_v9 }
 0x6cf   :  { %14103 = vmatpush3.bf16.xpose.msk.msra.mxu0 %vm17058_vm2, %v14098_v47 }
 0x6d0   :  { %v14110_v33 = vpack.c.bf16 %v14763_v37, %v14762_v2  ;;  %v6580_v6 = vpop.permute.xlu1 %6579 }
 0x6d1   :  { %v6812_v51 = vpop.permute.xlu0 %6811  ;;  %13201 = vmatprep.mubr.msk.f32.mxu1 %vm1793_vm1, %v6580_v6 }
 0x6d2   :  { %14112 = vmatprep.subr.msk.bf16.mxu1 %vm17058_vm2, %v14110_v33  ;;  %13202 = vmatmul.mubr.msk.f32.gmra.mrb[86].mxu1 %vm1793_vm1, %v6582_v53 }
 0x6d4   :  { %v14756_v25 = vpop.permute.xlu1 %14755  ;;  %v19167_v21 = vpop.f32.mrb[102].mxu0 }
 0x6d5   :  { %21715 = vst [vmem:[#allocation132_spill] sm:$0xff] %v19167_v21  ;;  %v14758_v63 = vunpack.i.h.bf16 %v14756_v25  ;;  %v14757_v52 = vunpack.i.l.bf16 %v14756_v25  ;;  %v6699_v55 = vpop.permute.xlu0 %6698  ;;  %v19169_v9 = vpop.f32.mrb[103].mxu0 }
 0x6d6   :  { %21716 = vst [vmem:[#allocation38_spill] sm:$0xff] %v19169_v9 }
 0x6d7   :  { %v14104_v18 = vpack.c.bf16 %v14758_v63, %v14757_v52 }
 0x6d8   :  { %v6810_v47 = vpop.permute.xlu1 %6809 }
 0x6d9   :  { %v14771_v37 = vpop.permute.xlu0 %14770  ;;  %13226 = vmatprep.mubr.msk.f32.mxu1 %vm1793_vm1, %v6810_v47  ;;  %14106 = vmatprep.subr.msk.bf16.mxu0 %vm17058_vm2, %v14104_v18 }
 0x6da   :  { %v14773_v2 = vunpack.i.h.bf16 %v14771_v37  ;;  %v14772_v6 = vunpack.i.l.bf16 %v14771_v37  ;;  %13227 = vmatmul.mubr.msk.f32.vlgmr.msra.gmra.mrb[88].mxu1 %vm1793_vm1, %v6812_v51  ;;  %14109 = vmatpush3.bf16.xpose.msk.msra.mxu0 %vm17058_vm2, %v14104_v18 }
 0x6db   :  { %14115 = vmatpush3.bf16.xpose.msk.msra.mxu1 %vm17058_vm2, %v14110_v33 }
 0x6dc   :  { %v14122_v53 = vpack.c.bf16 %v14773_v2, %v14772_v6  ;;  %v6697_v25 = vpop.permute.xlu1 %6696 }
 0x6dd   :  { %v6929_v63 = vpop.permute.xlu0 %6928  ;;  %13215 = vmatprep.mubr.msk.f32.mxu0 %vm1793_vm1, %v6697_v25 }
 0x6de   :  { %14124 = vmatprep.subr.msk.bf16.mxu0 %vm17058_vm2, %v14122_v53  ;;  %13216 = vmatmul.mubr.msk.f32.gmra.mrb[126].mxu0 %vm1793_vm1, %v6699_v55 }
 0x6e0   :  { %v14766_v52 = vpop.permute.xlu1 %14765 }
 0x6e1   :  { %v14768_v47 = vunpack.i.h.bf16 %v14766_v52  ;;  %v14767_v37 = vunpack.i.l.bf16 %v14766_v52  ;;  %v6931_v51 = vpop.permute.xlu0 %6930 }
 0x6e3   :  { %v14116_v21 = vpack.c.bf16 %v14768_v47, %v14767_v37 }
 0x6e4   :  { %v6927_v9 = vpop.permute.xlu1 %6926 }
 0x6e5   :  { %v6933_v18 = vpop.permute.xlu0 %6932  ;;  %13240 = vmatprep.mubr.msk.f32.mxu0 %vm1793_vm1, %v6927_v9  ;;  %14118 = vmatprep.subr.msk.bf16.mxu1 %vm17058_vm2, %v14116_v21 }
 0x6e6   :  { %v19186_v33 = vpop.f32.mrb[68].mxu1  ;;  %13241 = vmatmul.mubr.msk.f32.vlgmr.msra.gmra.mrb[128].mxu0 %vm1793_vm1, %v6929_v63  ;;  %14121 = vmatpush3.bf16.xpose.msk.msra.mxu1 %vm17058_vm2, %v14116_v21 }
 0x6e7   :  { %21717 = vst [vmem:[#allocation143_spill] sm:$0xff] %v19186_v33  ;;  %14127 = vmatpush3.bf16.xpose.msk.msra.mxu0 %vm17058_vm2, %v14122_v53  ;;  %v19193_v55 = vpop.f32.mrb[69].mxu1  ;;  %13243 = vmatprep.mubr.msk.f32.mxu0 %vm1793_vm1, %v6931_v51 }
 0x6e8   :  { %21718 = vst [vmem:[#allocation20_spill] sm:$0xff] %v19193_v55  ;;  %v6814_v2 = vpop.permute.xlu1 %6813 }
 0x6e9   :  { %v14781_v6 = vpop.permute.xlu0 %14780  ;;  %13229 = vmatprep.mubr.msk.f32.mxu1 %vm1793_vm1, %v6814_v2 }
 0x6ea   :  { %v14783_v9 = vunpack.i.h.bf16 %v14781_v6  ;;  %v14782_v25 = vunpack.i.l.bf16 %v14781_v6  ;;  %v19197_v52 = vpop.f32.mrb[70].mxu1  ;;  %13244 = vmatmul.mubr.msk.f32.gmra.mrb[130].mxu0 %vm1793_vm1, %v6933_v18 }
 0x6eb   :  { %21719 = vst [vmem:[#allocation133_spill] sm:$0xff] %v19197_v52  ;;  %v19200_v63 = vpop.f32.mrb[71].mxu1 }
 0x6ec   :  { %21720 = vst [vmem:[#allocation140_spill] sm:$0xff] %v19200_v63  ;;  %v14134_v21 = vpack.c.bf16 %v14783_v9, %v14782_v25  ;;  %v6816_v47 = vpop.permute.xlu1 %6815 }
 0x6ed   :  { %v7046_v37 = vpop.permute.xlu0 %7045  ;;  %13230 = vmatmul.mubr.msk.f32.gmra.mrb[90].mxu1 %vm1793_vm1, %v6816_v47 }
 0x6ee   :  { %14136 = vmatprep.subr.msk.bf16.mxu1 %vm17058_vm2, %v14134_v21  ;;  %v19205_v53 = vpop.f32.mrb[104].mxu0 }
 0x6ef   :  { %21721 = vst [vmem:[#allocation145_spill] sm:$0xff] %v19205_v53  ;;  %v19207_v51 = vpop.f32.mrb[105].mxu0 }
 0x6f0   :  { %21722 = vst [vmem:[#allocation47_spill] sm:$0xff] %v19207_v51  ;;  %v14776_v2 = vpop.permute.xlu1 %14775 }
 0x6f1   :  { %v14778_v6 = vunpack.i.h.bf16 %v14776_v2  ;;  %v14777_v33 = vunpack.i.l.bf16 %v14776_v2  ;;  %v7050_v52 = vpop.permute.xlu0 %7049 }
 0x6f2   :  { %v19209_v55 = vpop.f32.mrb[106].mxu0 }
 0x6f3   :  { %21723 = vst [vmem:[#allocation42_spill] sm:$0xff] %v19209_v55  ;;  %v14128_v18 = vpack.c.bf16 %v14778_v6, %v14777_v33  ;;  %v19211_v63 = vpop.f32.mrb[107].mxu0 }
 0x6f4   :  { %21724 = vst [vmem:[#allocation41_spill] sm:$0xff] %v19211_v63  ;;  %v7044_v9 = vpop.permute.xlu1 %7043 }
 0x6f5   :  { %v14791_v25 = vpop.permute.xlu0 %14790  ;;  %13254 = vmatprep.mubr.msk.f32.mxu1 %vm1793_vm1, %v7044_v9  ;;  %14130 = vmatprep.subr.msk.bf16.mxu0 %vm17058_vm2, %v14128_v18 }
 0x6f6   :  { %v14793_v47 = vunpack.i.h.bf16 %v14791_v25  ;;  %v14792_v53 = vunpack.i.l.bf16 %v14791_v25  ;;  %13255 = vmatmul.mubr.msk.f32.vlgmr.msra.gmra.mrb[92].mxu1 %vm1793_vm1, %v7046_v37  ;;  %14133 = vmatpush3.bf16.xpose.msk.msra.mxu0 %vm17058_vm2, %v14128_v18 }
 0x6f7   :  { %14139 = vmatpush3.bf16.xpose.msk.msra.mxu1 %vm17058_vm2, %v14134_v21 }
 0x6f8   :  { %v14146_v33 = vpack.c.bf16 %v14793_v47, %v14792_v53  ;;  %v7048_v2 = vpop.permute.xlu1 %7047 }
 0x6f9   :  { %v7163_v6 = vpop.permute.xlu0 %7162  ;;  %13257 = vmatprep.mubr.msk.f32.mxu1 %vm1793_vm1, %v7048_v2 }
 0x6fa   :  { %14148 = vmatprep.subr.msk.bf16.mxu0 %vm17058_vm2, %v14146_v33  ;;  %13258 = vmatmul.mubr.msk.f32.gmra.mrb[94].mxu1 %vm1793_vm1, %v7050_v52 }
 0x6fc   :  { %v14786_v9 = vpop.permute.xlu1 %14785 }
 0x6fd   :  { %v14788_v25 = vunpack.i.h.bf16 %v14786_v9  ;;  %v14787_v55 = vunpack.i.l.bf16 %v14786_v9  ;;  %v7167_v37 = vpop.permute.xlu0 %7166 }
 0x6ff   :  { %v14140_v63 = vpack.c.bf16 %v14788_v25, %v14787_v55 }
 0x700   :  { %v7161_v51 = vpop.permute.xlu1 %7160 }
 0x701   :  { %v14801_v18 = vpop.permute.xlu0 %14800  ;;  %13268 = vmatprep.mubr.msk.f32.mxu0 %vm1793_vm1, %v7161_v51  ;;  %14142 = vmatprep.subr.msk.bf16.mxu1 %vm17058_vm2, %v14140_v63 }
 0x702   :  { %v14803_v21 = vunpack.i.h.bf16 %v14801_v18  ;;  %v14802_v53 = vunpack.i.l.bf16 %v14801_v18  ;;  %13269 = vmatmul.mubr.msk.f32.vlgmr.msra.gmra.mrb[132].mxu0 %vm1793_vm1, %v7163_v6  ;;  %14145 = vmatpush3.bf16.xpose.msk.msra.mxu1 %vm17058_vm2, %v14140_v63 }
 0x703   :  { %14151 = vmatpush3.bf16.xpose.msk.msra.mxu0 %vm17058_vm2, %v14146_v33 }
 0x704   :  { %v14158_v52 = vpack.c.bf16 %v14803_v21, %v14802_v53  ;;  %v7165_v47 = vpop.permute.xlu1 %7164 }
 0x705   :  { %v7280_v55 = vpop.permute.xlu0 %7279  ;;  %13271 = vmatprep.mubr.msk.f32.mxu0 %vm1793_vm1, %v7165_v47 }
 0x706   :  { %14160 = vmatprep.subr.msk.bf16.mxu1 %vm17058_vm2, %v14158_v52  ;;  %13272 = vmatmul.mubr.msk.f32.gmra.mrb[134].mxu0 %vm1793_vm1, %v7167_v37 }
 0x708   :  { %v14796_v51 = vpop.permute.xlu1 %14795 }
 0x709   :  { %v14798_v2 = vunpack.i.h.bf16 %v14796_v51  ;;  %v14797_v9 = vunpack.i.l.bf16 %v14796_v51  ;;  %v7284_v6 = vpop.permute.xlu0 %7283 }
 0x70b   :  { %v14152_v25 = vpack.c.bf16 %v14798_v2, %v14797_v9 }
 0x70c   :  { %v7278_v18 = vpop.permute.xlu1 %7277 }
 0x70d   :  { %v14811_v63 = vpop.permute.xlu0 %14810  ;;  %13282 = vmatprep.mubr.msk.f32.mxu1 %vm1793_vm1, %v7278_v18  ;;  %14154 = vmatprep.subr.msk.bf16.mxu0 %vm17058_vm2, %v14152_v25 }
 0x70e   :  { %v14813_v33 = vunpack.i.h.bf16 %v14811_v63  ;;  %v14812_v21 = vunpack.i.l.bf16 %v14811_v63  ;;  %13283 = vmatmul.mubr.msk.f32.vlgmr.msra.gmra.mrb[96].mxu1 %vm1793_vm1, %v7280_v55  ;;  %14157 = vmatpush3.bf16.xpose.msk.msra.mxu0 %vm17058_vm2, %v14152_v25 }
 0x70f   :  { %14163 = vmatpush3.bf16.xpose.msk.msra.mxu1 %vm17058_vm2, %v14158_v52 }
 0x710   :  { %v14170_v37 = vpack.c.bf16 %v14813_v33, %v14812_v21  ;;  %v7282_v53 = vpop.permute.xlu1 %7281 }
 0x711   :  { %v7397_v47 = vpop.permute.xlu0 %7396  ;;  %13285 = vmatprep.mubr.msk.f32.mxu1 %vm1793_vm1, %v7282_v53 }
 0x712   :  { %14172 = vmatprep.subr.msk.bf16.mxu0 %vm17058_vm2, %v14170_v37  ;;  %13286 = vmatmul.mubr.msk.f32.gmra.mrb[98].mxu1 %vm1793_vm1, %v7284_v6 }
 0x714   :  { %v14806_v51 = vpop.permute.xlu1 %14805 }
 0x715   :  { %v14808_v2 = vunpack.i.h.bf16 %v14806_v51  ;;  %v14807_v9 = vunpack.i.l.bf16 %v14806_v51  ;;  %v7401_v55 = vpop.permute.xlu0 %7400 }
 0x717   :  { %v14164_v18 = vpack.c.bf16 %v14808_v2, %v14807_v9 }
 0x718   :  { %v7395_v63 = vpop.permute.xlu1 %7394 }
 0x719   :  { %v14821_v25 = vpop.permute.xlu0 %14820  ;;  %13296 = vmatprep.mubr.msk.f32.mxu0 %vm1793_vm1, %v7395_v63  ;;  %14166 = vmatprep.subr.msk.bf16.mxu1 %vm17058_vm2, %v14164_v18 }
 0x71a   :  { %v14823_v52 = vunpack.i.h.bf16 %v14821_v25  ;;  %v14822_v33 = vunpack.i.l.bf16 %v14821_v25  ;;  %13297 = vmatmul.mubr.msk.f32.vlgmr.msra.gmra.mrb[136].mxu0 %vm1793_vm1, %v7397_v47  ;;  %14169 = vmatpush3.bf16.xpose.msk.msra.mxu1 %vm17058_vm2, %v14164_v18 }
 0x71b   :  { %14175 = vmatpush3.bf16.xpose.msk.msra.mxu0 %vm17058_vm2, %v14170_v37 }
 0x71c   :  { %v14182_v6 = vpack.c.bf16 %v14823_v52, %v14822_v33  ;;  %v7399_v21 = vpop.permute.xlu1 %7398 }
 0x71d   :  { %v7514_v53 = vpop.permute.xlu0 %7513  ;;  %13299 = vmatprep.mubr.msk.f32.mxu0 %vm1793_vm1, %v7399_v21 }
 0x71e   :  { %14184 = vmatprep.subr.msk.bf16.mxu1 %vm17058_vm2, %v14182_v6  ;;  %13300 = vmatmul.mubr.msk.f32.gmra.mrb[138].mxu0 %vm1793_vm1, %v7401_v55 }
 0x720   :  { %v14816_v51 = vpop.permute.xlu1 %14815 }
 0x721   :  { %v14818_v2 = vunpack.i.h.bf16 %v14816_v51  ;;  %v14817_v9 = vunpack.i.l.bf16 %v14816_v51  ;;  %v7518_v47 = vpop.permute.xlu0 %7517 }
 0x723   :  { %v14176_v63 = vpack.c.bf16 %v14818_v2, %v14817_v9 }
 0x724   :  { %v7512_v25 = vpop.permute.xlu1 %7511 }
 0x725   :  { %v14831_v18 = vpop.permute.xlu0 %14830  ;;  %13310 = vmatprep.mubr.msk.f32.mxu1 %vm1793_vm1, %v7512_v25  ;;  %14178 = vmatprep.subr.msk.bf16.mxu0 %vm17058_vm2, %v14176_v63 }
 0x726   :  { %v14833_v37 = vunpack.i.h.bf16 %v14831_v18  ;;  %v14832_v52 = vunpack.i.l.bf16 %v14831_v18  ;;  %13311 = vmatmul.mubr.msk.f32.vlgmr.msra.gmra.mrb[100].mxu1 %vm1793_vm1, %v7514_v53  ;;  %14181 = vmatpush3.bf16.xpose.msk.msra.mxu0 %vm17058_vm2, %v14176_v63 }
 0x727   :  { %14187 = vmatpush3.bf16.xpose.msk.msra.mxu1 %vm17058_vm2, %v14182_v6 }
 0x728   :  { %v14194_v55 = vpack.c.bf16 %v14833_v37, %v14832_v52  ;;  %v19269_v33 = vpop.f32.mrb[108].mxu0  ;;  %v7516_v21 = vpop.permute.xlu1 %7515 }
 0x729   :  { %21725 = vst [vmem:[#allocation146_spill] sm:$0xff] %v19269_v33  ;;  %v7631_v51 = vpop.permute.xlu0 %7630  ;;  %v19271_v2 = vpop.f32.mrb[109].mxu0  ;;  %13313 = vmatprep.mubr.msk.f32.mxu1 %vm1793_vm1, %v7516_v21 }
 0x72a   :  { %21726 = vst [vmem:[#allocation39_spill] sm:$0xff] %v19271_v2  ;;  %14196 = vmatprep.subr.msk.bf16.mxu0 %vm17058_vm2, %v14194_v55  ;;  %13314 = vmatmul.mubr.msk.f32.gmra.mrb[102].mxu1 %vm1793_vm1, %v7518_v47 }
 0x72c   :  { %v19277_v53 = vpop.f32.mrb[110].mxu0  ;;  %v14826_v9 = vpop.permute.xlu1 %14825 }
 0x72d   :  { %21727 = vst [vmem:[#allocation55_spill] sm:$0xff] %v19277_v53  ;;  %v19279_v63 = vpop.f32.mrb[72].mxu1  ;;  %v14828_v6 = vunpack.i.h.bf16 %v14826_v9  ;;  %v14827_v25 = vunpack.i.l.bf16 %v14826_v9  ;;  %v7635_v18 = vpop.permute.xlu0 %7634 }
 0x72e   :  { %21728 = vst [vmem:[#allocation51_spill] sm:$0xff] %v19279_v63  ;;  %v19281_v37 = vpop.f32.mrb[111].mxu0  ;;  %v19283_v52 = vpop.f32.mrb[73].mxu1 }
 0x72f   :  { %21729 = vst [vmem:[#allocation50_spill] sm:$0xff] %v19281_v37  ;;  %21730 = vst [vmem:[#allocation48_spill] sm:$0xff] %v19283_v52  ;;  %v14188_v33 = vpack.c.bf16 %v14828_v6, %v14827_v25 }
 0x730   :  { %v7629_v2 = vpop.permute.xlu1 %7628 }
 0x731   :  { %v7746_v21 = vpop.permute.xlu0 %7745  ;;  %13324 = vmatprep.mubr.msk.f32.mxu0 %vm1793_vm1, %v7629_v2  ;;  %14190 = vmatprep.subr.msk.bf16.mxu1 %vm17058_vm2, %v14188_v33 }
 0x732   :  { %13338 = vmatprep.mubr.msk.f32.mxu1 %vm1793_vm1, %v7746_v21  ;;  %13325 = vmatmul.mubr.msk.f32.vlgmr.msra.gmra.mrb[140].mxu0 %vm1793_vm1, %v7631_v51 }
 0x733   :  { %14193 = vmatpush3.bf16.xpose.msk.msra.mxu1 %vm17058_vm2, %v14188_v33  ;;  %14199 = vmatpush3.bf16.xpose.msk.msra.mxu0 %vm17058_vm2, %v14194_v55 }
 0x734   :  { %v7633_v47 = vpop.permute.xlu1 %7632 }
 0x735   :  { %v7750_v9 = vpop.permute.xlu0 %7749  ;;  %13327 = vmatprep.mubr.msk.f32.mxu0 %vm1793_vm1, %v7633_v47 }
 0x736   :  { %13328 = vmatmul.mubr.msk.f32.gmra.mrb[142].mxu0 %vm1793_vm1, %v7635_v18 }
 0x738   :  { %v14836_v2 = vpop.permute.xlu1 %14835 }
 0x739   :  { %v14838_v6 = vunpack.i.h.bf16 %v14836_v2  ;;  %v14837_v25 = vunpack.i.l.bf16 %v14836_v2  ;;  %v7863_v63 = vpop.permute.xlu0 %7862 }
 0x73a   :  { %13352 = vmatprep.mubr.msk.f32.mxu0 %vm1793_vm1, %v7863_v63 }
 0x73b   :  { %v14200_v21 = vpack.c.bf16 %v14838_v6, %v14837_v25  ;;  %v19317_v25 = vld [vmem:[#allocation5 + $0x28] sm:$0xff] }
 0x73c   :  { %v7748_v51 = vpop.permute.xlu1 %7747 }
 0x73d   :  { %13339 = vmatmul.mubr.msk.f32.vlgmr.msra.gmra.mrb[104].mxu1 %vm1793_vm1, %v7748_v51  ;;  %14202 = vmatprep.subr.msk.bf16.mxu0 %vm17058_vm2, %v14200_v21  ;;  %v7867_v18 = vpop.permute.xlu0 %7866 }
 0x73e   :  { %13341 = vmatprep.mubr.msk.f32.mxu1 %vm1793_vm1, %v7750_v9  ;;  %14205 = vmatpush3.bf16.xpose.msk.msra.mxu0 %vm17058_vm2, %v14200_v21 }
 0x740   :  { %v7752_v55 = vpop.permute.xlu1 %7751 }
 0x741   :  { %13342 = vmatmul.mubr.msk.f32.gmra.mrb[106].mxu1 %vm1793_vm1, %v7752_v55  ;;  %v19321_v55 = vld [vmem:[#allocation5 + $0x20] sm:$0xff] }
 0x744   :  { %v7865_v33 = vpop.permute.xlu1 %7864 }
 0x745   :  { %13353 = vmatmul.mubr.msk.f32.vlgmr.msra.gmra.mrb[144].mxu0 %vm1793_vm1, %v7865_v33 }
 0x746   :  { %13355 = vmatprep.mubr.msk.f32.mxu0 %vm1793_vm1, %v7867_v18 }
 0x748   :  { %v7869_v63 = vpop.permute.xlu1 %7868 }
 0x749   :  { %13356 = vmatmul.mubr.msk.f32.gmra.mrb[146].mxu0 %vm1793_vm1, %v7869_v63 }
 0x759   :  { %v19307_v47 = vpop.f32.mrb[74].mxu1 }
 0x75a   :  { %21731 = vst [vmem:[#allocation62_spill] sm:$0xff] %v19307_v47  ;;  %v19309_v2 = vpop.f32.mrb[75].mxu1  ;;  %v19335_v47 = vld [vmem:[#allocation5 + $0x30] sm:$0xff] }
 0x75b   :  { %21732 = vst [vmem:[#allocation60_spill] sm:$0xff] %v19309_v2 }
 0x764   :  { %v19311_v9 = vpop.f32.mrb[112].mxu0 }
 0x765   :  { %21733 = vst [vmem:[#allocation59_spill] sm:$0xff] %v19311_v9  ;;  %v19313_v28 = vpop.f32.mrb[113].mxu0 }
 0x766   :  { %21734 = vst [vmem:[#allocation56_spill] sm:$0xff] %v19313_v28  ;;  %v19333_v28 = vld [vmem:[#allocation5 + $0x38] sm:$0xff] }
 0x768   :  { %v19315_v6 = vpop.f32.mrb[114].mxu0 }
 0x769   :  { %21735 = vst [vmem:[#allocation66_spill] sm:$0xff] %v19315_v6  ;;  %v19319_v21 = vpop.f32.mrb[115].mxu0 }
 0x76a   :  { %21736 = vst [vmem:[#allocation65_spill] sm:$0xff] %v19319_v21  ;;  %v13144_v51 = vpop.f32.mrb[76].mxu1 }
 0x76b   :  { %v19324_v33 = vadd.f32 %v13144_v51, %v19317_v25  ;;  %v6205_v18 = vpop.f32.mrb[77].mxu1 }
 0x76c   :  { %v19327_v63 = vadd.f32 %v6205_v18, %v19321_v55 }
 0x76d   :  { %v7982_v9 = vsel %vm149_vm0, %v19324_v33, -inf }
 0x76e   :  { %7983 = vmax.xlane.f32.xlu0 %v7982_v9  ;;  %v7979_v6 = vsel %vm149_vm0, %v19327_v63, -inf }
 0x772   :  { %7980 = vmax.xlane.f32.xlu0 %v7979_v6 }
 0x776   :  { %v13147_v21 = vpop.f32.mrb[78].mxu1 }
 0x777   :  { %v19338_v51 = vadd.f32 %v13147_v21, %v19333_v28  ;;  %v6215_v2 = vpop.f32.mrb[79].mxu1 }
 0x778   :  { %v19341_v18 = vadd.f32 %v6215_v2, %v19335_v47 }
 0x779   :  { %v19343_v52 = vpop.f32.mrb[116].mxu0  ;;  %v7988_v9 = vsel %vm149_vm0, %v19338_v51, -inf }
 0x77a   :  { %7989 = vmax.xlane.f32.xlu0 %v7988_v9  ;;  %v6322_v53 = vpop.f32.mrb[117].mxu0  ;;  %v7985_v31 = vsel %vm149_vm0, %v19341_v18, -inf }
 0x77b   :  { %v19348_v6 = vadd.f32 %v6322_v53, %v19321_v55 }
 0x77d   :  { %v13172_v37 = vpop.f32.mrb[80].mxu1  ;;  %v7991_v21 = vsel %vm149_vm0, %v19348_v6, -inf }
 0x77e   :  { %v19355_v2 = vadd.f32 %v13172_v37, %v19317_v25  ;;  %7986 = vmax.xlane.f32.xlu0 %v7985_v31  ;;  %7992 = vmax.xlane.f32.xlu1 %v7991_v21  ;;  %v6439_v29 = vpop.f32.mrb[81].mxu1 }
 0x77f   :  { %v19360_v8 = vadd.f32 %v6439_v29, %v19321_v55 }
 0x780   :  { %v8006_v9 = vsel %vm149_vm0, %v19355_v2, -inf }
 0x781   :  { %v13161_v53 = vpop.f32.mrb[118].mxu0  ;;  %v8003_v37 = vsel %vm149_vm0, %v19360_v8, -inf }
 0x782   :  { %v19363_v40 = vadd.f32 %v13161_v53, %v19333_v28  ;;  %8007 = vmax.xlane.f32.xlu0 %v8006_v9  ;;  %v6332_v35 = vpop.f32.mrb[119].mxu0 }
 0x783   :  { %v19366_v1 = vadd.f32 %v6332_v35, %v19335_v47 }
 0x784   :  { %v8000_v31 = vsel %vm149_vm0, %v19363_v40, -inf }
 0x785   :  { %8001 = vmax.xlane.f32.xlu1 %v8000_v31  ;;  %v7997_v29 = vsel %vm149_vm0, %v19366_v1, -inf }
 0x786   :  { %8004 = vmax.xlane.f32.xlu0 %v8003_v37 }
 0x789   :  { %v13186_v21 = vpop.f32.mrb[120].mxu0  ;;  %7998 = vmax.xlane.f32.xlu1 %v7997_v29 }
 0x78a   :  { %v19375_v53 = vadd.f32 %v13186_v21, %v19317_v25  ;;  %v6556_v9 = vpop.f32.mrb[121].mxu0 }
 0x78b   :  { %v19378_v35 = vadd.f32 %v6556_v9, %v19321_v55 }
 0x78c   :  { %v8018_v54 = vsel %vm149_vm0, %v19375_v53, -inf }
 0x78d   :  { %8019 = vmax.xlane.f32.xlu1 %v8018_v54  ;;  %v13175_v31 = vpop.f32.mrb[82].mxu1  ;;  %v8015_v29 = vsel %vm149_vm0, %v19378_v35, -inf }
 0x78e   :  { %v19383_v16 = vadd.f32 %v13175_v31, %v19333_v28  ;;  %v6449_v37 = vpop.f32.mrb[83].mxu1 }
 0x78f   :  { %v19386_v12 = vadd.f32 %v6449_v37, %v19335_v47 }
 0x790   :  { %v8012_v21 = vsel %vm149_vm0, %v19383_v16, -inf }
 0x791   :  { %8016 = vmax.xlane.f32.xlu1 %v8015_v29  ;;  %8013 = vmax.xlane.f32.xlu0 %v8012_v21  ;;  %v8009_v9 = vsel %vm149_vm0, %v19386_v12, -inf }
 0x795   :  { %v13200_v54 = vpop.f32.mrb[84].mxu1  ;;  %8010 = vmax.xlane.f32.xlu0 %v8009_v9 }
 0x796   :  { %v19395_v31 = vadd.f32 %v13200_v54, %v19317_v25  ;;  %v6673_v4 = vpop.f32.mrb[85].mxu1 }
 0x797   :  { %v19398_v37 = vadd.f32 %v6673_v4, %v19321_v55 }
 0x798   :  { %v8030_v5 = vsel %vm149_vm0, %v19395_v31, -inf }
 0x799   :  { %v13189_v36 = vpop.f32.mrb[122].mxu0  ;;  %8031 = vmax.xlane.f32.xlu0 %v8030_v5  ;;  %v8027_v54 = vsel %vm149_vm0, %v19398_v37, -inf }
 0x79a   :  { %v19403_v29 = vadd.f32 %v13189_v36, %v19333_v28  ;;  %v6566_v21 = vpop.f32.mrb[123].mxu0 }
 0x79b   :  { %v19406_v27 = vadd.f32 %v6566_v21, %v19335_v47 }
 0x79c   :  { %v8024_v9 = vsel %vm149_vm0, %v19403_v29, -inf }
 0x79d   :  { %21737 = vst [vmem:[#allocation64_spill] sm:$0xff] %v19406_v27  ;;  %8025 = vmax.xlane.f32.xlu1 %v8024_v9  ;;  %8028 = vmax.xlane.f32.xlu0 %v8027_v54  ;;  %v8021_v4 = vsel %vm149_vm0, %v19406_v27, -inf  ;;  %v19424_v9 = vadd.f32 %v19343_v52, %v19317_v25 }
 0x7a1   :  { %v13214_v62 = vpop.f32.mrb[124].mxu0  ;;  %8022 = vmax.xlane.f32.xlu1 %v8021_v4 }
 0x7a2   :  { %v6790_v5 = vpop.f32.mrb[125].mxu0  ;;  %v19475_v49 = vadd.f32 %v13214_v62, %v19317_v25 }
 0x7a3   :  { %v19482_v19 = vadd.f32 %v6790_v5, %v19321_v55 }
 0x7a4   :  { %21746 = vst [vmem:[#allocation75_spill] sm:$0xff] %v19475_v49 }
 0x7a5   :  { %v13203_v36 = vpop.f32.mrb[86].mxu1  ;;  %21747 = vst [vmem:[#allocation74_spill] sm:$0xff] %v19482_v19 }
 0x7a6   :  { %v19415_v56 = vadd.f32 %v13203_v36, %v19333_v28  ;;  %v6683_v21 = vpop.f32.mrb[87].mxu1 }
 0x7a7   :  { %v19418_v59 = vadd.f32 %v6683_v21, %v19335_v47  ;;  %v7994_v21 = vsel %vm149_vm0, %v19424_v9, -inf }
 0x7a8   :  { %v8036_v10 = vsel %vm149_vm0, %v19415_v56, -inf }
 0x7a9   :  { %8037 = vmax.xlane.f32.xlu0 %v8036_v10  ;;  %v8033_v54 = vsel %vm149_vm0, %v19418_v59, -inf }
 0x7ad   :  { %v13228_v4 = vpop.f32.mrb[88].mxu1  ;;  %8034 = vmax.xlane.f32.xlu0 %v8033_v54 }
 0x7ae   :  { %v6907_v14 = vpop.f32.mrb[89].mxu1  ;;  %v19429_v36 = vadd.f32 %v13228_v4, %v19317_v25 }
 0x7af   :  { %v19434_v10 = vadd.f32 %v6907_v14, %v19321_v55 }
 0x7b0   :  { %21738 = vst [vmem:[#allocation63_spill] sm:$0xff] %v19429_v36  ;;  %v8054_v52 = vsel %vm149_vm0, %v19429_v36, -inf }
 0x7b1   :  { %v13217_v45 = vpop.f32.mrb[126].mxu0  ;;  %7995 = vmax.xlane.f32.xlu0 %v7994_v21  ;;  %21739 = vst [vmem:[#allocation73_spill] sm:$0xff] %v19434_v10  ;;  %v8051_v54 = vsel %vm149_vm0, %v19434_v10, -inf }
 0x7b2   :  { %v6800_v60 = vpop.f32.mrb[127].mxu0  ;;  %v19491_v62 = vadd.f32 %v13217_v45, %v19333_v28 }
 0x7b3   :  { %v19500_v5 = vadd.f32 %v6800_v60, %v19335_v47 }
 0x7b4   :  { %21748 = vst [vmem:[#allocation91_spill] sm:$0xff] %v19491_v62  ;;  %v8048_v11 = vsel %vm149_vm0, %v19491_v62, -inf }
 0x7b5   :  { %8055 = vmax.xlane.f32.xlu0 %v8054_v52 }
 0x7b9   :  { %v19440_v57 = vpop.f32.mrb[128].mxu0  ;;  %8052 = vmax.xlane.f32.xlu0 %v8051_v54 }
 0x7ba   :  { %v19442_v4 = vpop.f32.mrb[129].mxu0 }
 0x7bb   :  { %v19567_v36 = vadd.f32 %v19442_v4, %v19321_v55 }
 0x7bd   :  { %v19444_v22 = vpop.f32.mrb[130].mxu0  ;;  %v8063_v4 = vsel %vm149_vm0, %v19567_v36, -inf }
 0x7be   :  { %v19446_v0 = vpop.f32.mrb[131].mxu0 }
 0x7c0   :  { %v13231_v21 = vpop.f32.mrb[90].mxu1 }
 0x7c1   :  { %v19449_v14 = vadd.f32 %v13231_v21, %v19333_v28  ;;  %v6917_v48 = vpop.f32.mrb[91].mxu1 }
 0x7c2   :  { %v19452_v32 = vadd.f32 %v6917_v48, %v19335_v47 }
 0x7c3   :  { %21740 = vst [vmem:[#allocation70_spill] sm:$0xff] %v19449_v14  ;;  %v8060_v52 = vsel %vm149_vm0, %v19449_v14, -inf }
 0x7c4   :  { %21741 = vst [vmem:[#allocation69_spill] sm:$0xff] %v19452_v32  ;;  %8061 = vmax.xlane.f32.xlu0 %v8060_v52  ;;  %v8057_v54 = vsel %vm149_vm0, %v19452_v32, -inf }
 0x7c8   :  { %8058 = vmax.xlane.f32.xlu0 %v8057_v54 }
 0x7c9   :  { %v13256_v38 = vpop.f32.mrb[92].mxu1 }
 0x7ca   :  { %v19459_v61 = vadd.f32 %v13256_v38, %v19317_v25  ;;  %v7141_v43 = vpop.f32.mrb[93].mxu1 }
 0x7cb   :  { %v19462_v21 = vadd.f32 %v7141_v43, %v19321_v55 }
 0x7cc   :  { %21742 = vst [vmem:[#allocation68_spill] sm:$0xff] %v19459_v61  ;;  %v8078_v48 = vsel %vm149_vm0, %v19459_v61, -inf }
 0x7cd   :  { %21743 = vst [vmem:[#allocation80_spill] sm:$0xff] %v19462_v21  ;;  %8079 = vmax.xlane.f32.xlu1 %v8078_v48  ;;  %v13259_v24 = vpop.f32.mrb[94].mxu1  ;;  %v8075_v52 = vsel %vm149_vm0, %v19462_v21, -inf }
 0x7ce   :  { %v19469_v42 = vadd.f32 %v13259_v24, %v19333_v28  ;;  %v7151_v54 = vpop.f32.mrb[95].mxu1  ;;  %8076 = vmax.xlane.f32.xlu0 %v8075_v52  ;;  %v8042_v24 = vsel %vm149_vm0, %v19475_v49, -inf  ;;  %v19582_v49 = vadd.f32 %v19444_v22, %v19333_v28 }
 0x7cf   :  { %v19472_v38 = vadd.f32 %v7151_v54, %v19335_v47 }
 0x7d0   :  { %21744 = vst [vmem:[#allocation139_spill] sm:$0xff] %v19469_v42  ;;  %v8084_v43 = vsel %vm149_vm0, %v19469_v42, -inf  ;;  %v8072_v22 = vsel %vm149_vm0, %v19582_v49, -inf }
 0x7d1   :  { %21745 = vst [vmem:[#allocation77_spill] sm:$0xff] %v19472_v38  ;;  %8085 = vmax.xlane.f32.xlu1 %v8084_v43  ;;  %v8081_v48 = vsel %vm149_vm0, %v19472_v38, -inf  ;;  %v8039_v43 = vsel %vm149_vm0, %v19482_v19, -inf }
 0x7d2   :  { %8082 = vmax.xlane.f32.xlu0 %v8081_v48 }
 0x7d5   :  { %v19486_v52 = vpop.f32.mrb[132].mxu0  ;;  %8043 = vmax.xlane.f32.xlu1 %v8042_v24  ;;  %v8045_v24 = vsel %vm149_vm0, %v19500_v5, -inf }
 0x7d6   :  { %v19488_v54 = vpop.f32.mrb[133].mxu0 }
 0x7d7   :  { %v19588_v27 = vadd.f32 %v19488_v54, %v19321_v55 }
 0x7d9   :  { %v19495_v58 = vpop.f32.mrb[134].mxu0  ;;  %8040 = vmax.xlane.f32.xlu1 %v8039_v43  ;;  %21755 = vst [vmem:[#allocation21_spill] sm:$0xff] %v19588_v27  ;;  %v8087_v54 = vsel %vm149_vm0, %v19588_v27, -inf }
 0x7da   :  { %v19497_v48 = vpop.f32.mrb[135].mxu0 }
 0x7dd   :  { %8049 = vmax.xlane.f32.xlu1 %v8048_v11 }
 0x7e1   :  { %8046 = vmax.xlane.f32.xlu1 %v8045_v24  ;;  %v13284_v45 = vpop.f32.mrb[96].mxu1 }
 0x7e2   :  { %v19507_v17 = vadd.f32 %v13284_v45, %v19317_v25  ;;  %v7375_v3 = vpop.f32.mrb[97].mxu1 }
 0x7e3   :  { %v19510_v43 = vadd.f32 %v7375_v3, %v19321_v55 }
 0x7e4   :  { %21749 = vst [vmem:[#allocation85_spill] sm:$0xff] %v19507_v17  ;;  %v8102_v60 = vsel %vm149_vm0, %v19507_v17, -inf }
 0x7e5   :  { %21750 = vst [vmem:[#allocation92_spill] sm:$0xff] %v19510_v43  ;;  %8103 = vmax.xlane.f32.xlu1 %v8102_v60  ;;  %v13287_v50 = vpop.f32.mrb[98].mxu1  ;;  %v8099_v11 = vsel %vm149_vm0, %v19510_v43, -inf }
 0x7e6   :  { %v19517_v30 = vadd.f32 %v13287_v50, %v19333_v28  ;;  %v7385_v24 = vpop.f32.mrb[99].mxu1  ;;  %8100 = vmax.xlane.f32.xlu0 %v8099_v11 }
 0x7e7   :  { %v19520_v45 = vadd.f32 %v7385_v24, %v19335_v47 }
 0x7e8   :  { %21751 = vst [vmem:[#allocation81_spill] sm:$0xff] %v19517_v30  ;;  %v8108_v3 = vsel %vm149_vm0, %v19517_v30, -inf }
 0x7e9   :  { %21752 = vst [vmem:[#allocation93_spill] sm:$0xff] %v19520_v45  ;;  %8109 = vmax.xlane.f32.xlu1 %v8108_v3  ;;  %v8105_v17 = vsel %vm149_vm0, %v19520_v45, -inf }
 0x7ea   :  { %8106 = vmax.xlane.f32.xlu0 %v8105_v17 }
 0x7ed   :  { %v19526_v60 = vpop.f32.mrb[136].mxu0 }
 0x7ee   :  { %v19528_v44 = vpop.f32.mrb[137].mxu0 }
 0x7f1   :  { %v19530_v43 = vpop.f32.mrb[138].mxu0 }
 0x7f2   :  { %v19532_v50 = vpop.f32.mrb[139].mxu0 }
 0x7f9   :  { %v13312_v11 = vpop.f32.mrb[100].mxu1 }
 0x7fa   :  { %14845 = vrot.lane.b32.xlu1 %v21578_v13, %s15772_s22  ;;  %v7609_v24 = vpop.f32.mrb[101].mxu1 }
 0x7fb   :  { %v7984_v7 = vpop.xlane.xlu0 %7983  ;;  %v19561_v20 = vadd.f32 %v7609_v24, %v19321_v55 }
 0x7fd   :  { %v13315_v30 = vpop.f32.mrb[102].mxu1  ;;  %21753 = vst [vmem:[#allocation84_spill] sm:$0xff] %v19561_v20  ;;  %v8123_v24 = vsel %vm149_vm0, %v19561_v20, -inf  ;;  %v19602_v20 = vadd.f32 %v19497_v48, %v19335_v47 }
 0x7fe   :  { %v7619_v3 = vpop.f32.mrb[103].mxu1 }
 0x7ff   :  { %v19546_v21 = vpop.xlane.xlu0 %7980  ;;  %v8093_v48 = vsel %vm149_vm0, %v19602_v20, -inf }
 0x800   :  { %14840 = vrot.lane.b32.xlu0 %v21575_v41, %s15772_s22  ;;  %v19556_v41 = vadd.f32 %v19440_v57, %v19317_v25  ;;  %v19576_v57 = vadd.f32 %v7619_v3, %v19335_v47 }
 0x802   :  { %v8066_v19 = vsel %vm149_vm0, %v19556_v41, -inf  ;;  %21754 = vst [vmem:[#allocation97_spill] sm:$0xff] %v19576_v57  ;;  %v8129_v3 = vsel %vm149_vm0, %v19576_v57, -inf }
 0x805   :  { %v19538_v17 = vpop.f32.mrb[140].mxu0 }
 0x806   :  { %v19540_v45 = vpop.f32.mrb[141].mxu0 }
 0x807   :  { %v19550_v15 = vpop.xlane.xlu0 %7989 }
 0x809   :  { %v19542_v42 = vpop.f32.mrb[142].mxu0 }
 0x80a   :  { %v19544_v38 = vpop.f32.mrb[143].mxu0 }
 0x80b   :  { %v19569_v10 = vpop.xlane.xlu0 %7986 }
 0x810   :  { %v13340_v34 = vpop.f32.mrb[104].mxu1 }
 0x811   :  { %v7843_v61 = vpop.f32.mrb[105].mxu1 }
 0x812   :  { %v19614_v57 = vadd.f32 %v7843_v61, %v19321_v55 }
 0x814   :  { %v19548_v13 = vpop.f32.mrb[106].mxu1  ;;  %21757 = vst [vmem:[#allocation99_spill] sm:$0xff] %v19614_v57  ;;  %v8147_v61 = vsel %vm149_vm0, %v19614_v57, -inf }
 0x815   :  { %v7853_v26 = vpop.f32.mrb[107].mxu1 }
 0x816   :  { %v19626_v27 = vadd.f32 %v7853_v26, %v19335_v47 }
 0x818   :  { %v19552_v14 = vpop.f32.mrb[144].mxu0  ;;  %21759 = vst [vmem:[#allocation94_spill] sm:$0xff] %v19626_v27  ;;  %v8153_v26 = vsel %vm149_vm0, %v19626_v27, -inf }
 0x819   :  { %v19558_v32 = vpop.f32.mrb[145].mxu0 }
 0x81c   :  { %v19563_v39 = vpop.f32.mrb[146].mxu0 }
 0x81d   :  { %v19571_v62 = vpop.f32.mrb[147].mxu0 }
 0x81e   :  { %8067 = vmax.xlane.f32.xlu1 %v8066_v19  ;;  %v19592_v19 = vpop.xlane.xlu0 %8007 }
 0x81f   :  { %8124 = vmax.xlane.f32.xlu0 %v8123_v24  ;;  %v19596_v24 = vadd.f32 %v19446_v0, %v19335_v47 }
 0x821   :  { %v8069_v0 = vsel %vm149_vm0, %v19596_v24, -inf }
 0x822   :  { %8064 = vmax.xlane.f32.xlu1 %v8063_v4  ;;  %v19607_v4 = vadd.f32 %v13312_v11, %v19317_v25 }
 0x823   :  { %8130 = vmax.xlane.f32.xlu0 %v8129_v3  ;;  %v19609_v3 = vpop.xlane.xlu0 %8004 }
 0x824   :  { %21756 = vst [vmem:[#allocation100_spill] sm:$0xff] %v19607_v4  ;;  %v8126_v11 = vsel %vm149_vm0, %v19607_v4, -inf }
 0x826   :  { %8073 = vmax.xlane.f32.xlu1 %v8072_v22  ;;  %v19619_v22 = vadd.f32 %v13315_v30, %v19333_v28 }
 0x827   :  { %8088 = vmax.xlane.f32.xlu0 %v8087_v54  ;;  %v19621_v54 = vpop.xlane.xlu0 %8013 }
 0x828   :  { %21758 = vst [vmem:[#allocation103_spill] sm:$0xff] %v19619_v22  ;;  %v8132_v30 = vsel %vm149_vm0, %v19619_v22, -inf }
 0x82a   :  { %8070 = vmax.xlane.f32.xlu1 %v8069_v0  ;;  %v19632_v0 = vadd.f32 %v19486_v52, %v19317_v25  ;;  %v8172_v52 = vsub.f32 %v19324_v33, %v7984_v7  ;;  %v19668_v33 = vadd.f32 %v19540_v45, %v19321_v55  ;;  %v19684_v45 = vadd.f32 %v19544_v38, %v19335_v47 }
 0x82b   :  { %8094 = vmax.xlane.f32.xlu0 %v8093_v48  ;;  %v19638_v48 = vadd.f32 %v19528_v44, %v19321_v55  ;;  %v19653_v44 = vadd.f32 %v19532_v50, %v19335_v47 }
 0x82c   :  { %v8090_v57 = vsel %vm149_vm0, %v19632_v0, -inf  ;;  %21763 = vst [vmem:[#allocation108_spill] sm:$0xff] %v19668_v33  ;;  %21765 = vst [vmem:[#allocation110_spill] sm:$0xff] %v19684_v45 }
 0x82d   :  { %21760 = vst [vmem:[#allocation105_spill] sm:$0xff] %v19638_v48  ;;  %21761 = vst [vmem:[#allocation104_spill] sm:$0xff] %v19653_v44  ;;  %v8111_v27 = vsel %vm149_vm0, %v19638_v48, -inf }
 0x82e   :  { %8127 = vmax.xlane.f32.xlu1 %v8126_v11  ;;  %v19642_v11 = vpop.xlane.xlu0 %8010 }
 0x82f   :  { %8148 = vmax.xlane.f32.xlu0 %v8147_v61  ;;  %v19646_v61 = vadd.f32 %v19495_v58, %v19333_v28  ;;  %v19660_v58 = vadd.f32 %v13340_v34, %v19317_v25  ;;  %v8174_v34 = vsub.f32 %v19338_v51, %v19550_v15  ;;  %v19692_v15 = vadd.f32 %v19526_v60, %v19317_v25 }
 0x830   :  { %v8171_v60 = vsub.f32 %v19327_v63, %v19546_v21  ;;  %v19726_v21 = vadd.f32 %v19538_v17, %v19317_v25  ;;  %v8173_v17 = vsub.f32 %v19341_v18, %v19569_v10 }
 0x831   :  { %21762 = vst [vmem:[#allocation23_spill] sm:$0xff] %v19660_v58  ;;  %v8096_v7 = vsel %vm149_vm0, %v19646_v61, -inf  ;;  %21766 = vst [vmem:[#allocation109_spill] sm:$0xff] %v19692_v15 }
 0x832   :  { %8133 = vmax.xlane.f32.xlu1 %v8132_v30  ;;  %v19655_v30 = vpop.xlane.xlu1 %7992  ;;  %v19662_v22 = vpop.xlane.xlu0 %8031  ;;  %v8235_v63 = vmul.f32 1.442695, %v8171_v60  ;;  %21769 = vst [vmem:[#allocation114_spill] sm:$0xff] %v19726_v21  ;;  %v8239_v10 = vmul.f32 1.442695, %v8173_v17 }
 0x833   :  { %8154 = vmax.xlane.f32.xlu0 %v8153_v26  ;;  %v8237_v26 = vmul.f32 1.442695, %v8172_v52  ;;  %v8150_v52 = vsel %vm149_vm0, %v19660_v58, -inf }
 0x835   :  { %15383 = vpow2.f32 %v8237_v26  ;;  %v8180_v26 = vsub.f32 %v19355_v2, %v19592_v19  ;;  %v8114_v2 = vsel %vm149_vm0, %v19692_v15, -inf  ;;  %v19714_v19 = vadd.f32 %v19530_v43, %v19333_v28 }
 0x836   :  { %8091 = vmax.xlane.f32.xlu1 %v8090_v57  ;;  %v19670_v50 = vpop.xlane.xlu1 %8001  ;;  %v8117_v57 = vsel %vm149_vm0, %v19653_v44, -inf }
 0x837   :  { %8112 = vmax.xlane.f32.xlu0 %v8111_v27  ;;  %v19678_v27 = vadd.f32 %v19548_v13, %v19333_v28  ;;  %v8241_v13 = vmul.f32 1.442695, %v8174_v34  ;;  %21768 = vst [vmem:[#allocation106_spill] sm:$0xff] %v19714_v19 }
 0x839   :  { %21764 = vst [vmem:[#allocation102_spill] sm:$0xff] %v19678_v27  ;;  %v8156_v38 = vsel %vm149_vm0, %v19678_v27, -inf  ;;  %15385 = vpow2.f32 %v8241_v13  ;;  %v8182_v13 = vsub.f32 %v19383_v16, %v19621_v54  ;;  %v8138_v16 = vsel %vm149_vm0, %v19726_v21, -inf }
 0x83a   :  { %8097 = vmax.xlane.f32.xlu1 %v8096_v7  ;;  %v8135_v7 = vsel %vm149_vm0, %v19668_v33, -inf  ;;  %v19694_v51 = vpop.xlane.xlu1 %7998  ;;  %v19748_v54 = vadd.f32 %v19542_v42, %v19333_v28  ;;  %v19762_v42 = vadd.f32 %v19552_v14, %v19317_v25 }
 0x83b   :  { %8118 = vmax.xlane.f32.xlu0 %v8117_v57  ;;  %v19688_v57 = vpop.xlane.xlu0 %8028 }
 0x83c   :  { %21771 = vst [vmem:[#allocation116_spill] sm:$0xff] %v19748_v54  ;;  %21772 = vst [vmem:[#allocation111_spill] sm:$0xff] %v19762_v42  ;;  %v8162_v25 = vsel %vm149_vm0, %v19762_v42, -inf }
 0x83e   :  { %8151 = vmax.xlane.f32.xlu1 %v8150_v52  ;;  %v19702_v52 = vadd.f32 %v19558_v32, %v19321_v55  ;;  %v8253_v32 = vmul.f32 1.442695, %v8180_v26  ;;  %v8179_v55 = vsub.f32 %v19360_v8, %v19609_v3  ;;  %v19718_v34 = vpop.xlane.xlu1 %8019  ;;  %v8120_v3 = vsel %vm149_vm0, %v19714_v19, -inf }
 0x83f   :  { %8136 = vmax.xlane.f32.xlu0 %v8135_v7  ;;  %v8141_v7 = vsel %vm149_vm0, %v19684_v45, -inf  ;;  %v19706_v58 = vpop.xlane.xlu0 %8037  ;;  %v19736_v26 = vadd.f32 %v19571_v62, %v19335_v47  ;;  %v8257_v47 = vmul.f32 1.442695, %v8182_v13  ;;  %v8181_v62 = vsub.f32 %v19386_v12, %v19642_v11 }
 0x840   :  { %21767 = vst [vmem:[#allocation112_spill] sm:$0xff] %v19702_v52  ;;  %15387 = vpow2.f32 %v8253_v32  ;;  %v8251_v43 = vmul.f32 1.442695, %v8179_v55  ;;  %v8144_v12 = vsel %vm149_vm0, %v19748_v54, -inf }
 0x841   :  { %21770 = vst [vmem:[#allocation113_spill] sm:$0xff] %v19736_v26  ;;  %15389 = vpow2.f32 %v8235_v63  ;;  %v8165_v32 = vsel %vm149_vm0, %v19736_v26, -inf  ;;  %v8255_v63 = vmul.f32 1.442695, %v8181_v62 }
 0x842   :  { %8157 = vmax.xlane.f32.xlu1 %v8156_v38  ;;  %v8159_v38 = vsel %vm149_vm0, %v19702_v52, -inf  ;;  %15391 = vpow2.f32 %v8251_v43 }
 0x843   :  { %8142 = vmax.xlane.f32.xlu0 %v8141_v7  ;;  %v19722_v7 = vpop.eup %15383  ;;  %v19730_v8 = vpop.xlane.xlu0 %8034  ;;  %15393 = vpow2.f32 %v8257_v47 }
 0x844   :  { %v8366_v60 = vsel %vm149_vm0, %v19722_v7, 0.0  ;;  %v19754_v55 = vpop.eup %15385  ;;  %15395 = vpow2.f32 %v8239_v10 }
 0x845   :  { %v8372_v11 = vsel %vm149_vm0, %v19754_v55, 0.0  ;;  %15397 = vpow2.f32 %v8255_v63 }
 0x846   :  { %8115 = vmax.xlane.f32.xlu1 %v8114_v2  ;;  %v19742_v2 = vpop.xlane.xlu1 %8016 }
 0x847   :  { %8160 = vmax.xlane.f32.xlu0 %v8159_v38  ;;  %v19756_v18 = vpop.xlane.xlu0 %7995 }
 0x84a   :  { %8121 = vmax.xlane.f32.xlu1 %v8120_v3  ;;  %v19758_v38 = vpop.xlane.xlu1 %8025  ;;  %v19768_v43 = vpop.eup %15387 }
 0x84b   :  { %8367 = vadd.xlane.f32.xlu0 %v8366_v60  ;;  %v19770_v13 = vpop.xlane.xlu0 %8055  ;;  %v19774_v14 = vpop.eup %15389  ;;  %v8390_v60 = vsel %vm149_vm0, %v19768_v43, 0.0 }
 0x84c   :  { %v19780_v17 = vpop.eup %15391  ;;  %v8363_v47 = vsel %vm149_vm0, %v19774_v14, 0.0 }
 0x84d   :  { %v19792_v10 = vpop.eup %15393 }
 0x84e   :  { %8139 = vmax.xlane.f32.xlu1 %v8138_v16  ;;  %v19776_v3 = vpop.xlane.xlu1 %8022  ;;  %v19784_v16 = vadd.f32 %v19563_v39, %v19333_v28  ;;  %v8396_v28 = vsel %vm149_vm0, %v19792_v10, 0.0 }
 0x84f   :  { %8166 = vmax.xlane.f32.xlu0 %v8165_v32  ;;  %v8387_v32 = vsel %vm149_vm0, %v19780_v17, 0.0  ;;  %v19794_v63 = vpop.xlane.xlu0 %8052 }
 0x850   :  { %21773 = vst [vmem:[#allocation118_spill] sm:$0xff] %v19784_v16 }
 0x852   :  { %8145 = vmax.xlane.f32.xlu1 %v8144_v12  ;;  %v8168_v12 = vsel %vm149_vm0, %v19784_v16, -inf }
 0x853   :  { %8373 = vadd.xlane.f32.xlu0 %v8372_v11  ;;  %v19798_v11 = vpop.eup %15395 }
 0x856   :  { %8163 = vmax.xlane.f32.xlu1 %v8162_v25  ;;  %v19804_v25 = vpop.eup %15397 }
 0x857   :  { %8391 = vadd.xlane.f32.xlu0 %v8390_v60  ;;  %v19806_v60 = vpop.xlane.xlu0 %8061  ;;  %v8393_v26 = vsel %vm149_vm0, %v19804_v25, 0.0 }
 0x85a   :  { %v19788_v62 = vpop.xlane.xlu1 %8079  ;;  %8364 = vadd.xlane.f32.xlu1 %v8363_v47  ;;  %v8369_v47 = vsel %vm149_vm0, %v19798_v11, 0.0 }
 0x85b   :  { %8388 = vadd.xlane.f32.xlu0 %v8387_v32  ;;  %v19814_v16 = vpop.xlane.xlu0 %8058 }
 0x85e   :  { %v19800_v39 = vpop.xlane.xlu1 %8085  ;;  %8169 = vmax.xlane.f32.xlu1 %v8168_v12 }
 0x85f   :  { %8397 = vadd.xlane.f32.xlu0 %v8396_v28  ;;  %v19818_v42 = vpop.xlane.xlu0 %8076 }
 0x862   :  { %v19810_v32 = vpop.xlane.xlu1 %8043  ;;  %8370 = vadd.xlane.f32.xlu1 %v8369_v47 }
 0x863   :  { %8394 = vadd.xlane.f32.xlu0 %v8393_v26  ;;  %v19822_v28 = vpop.xlane.xlu0 %8082 }
 0x866   :  { %v19816_v12 = vpop.xlane.xlu1 %8040 }
 0x86a   :  { %v19820_v52 = vpop.xlane.xlu1 %8049 }
 0x86e   :  { %v8047_v27 = vpop.xlane.xlu1 %8046 }
 0x872   :  { %v19824_v45 = vpop.xlane.xlu1 %8103 }
 0x873   :  { %21774 = vst [vmem:[#allocation117_spill] sm:$0xff] %v19824_v45  ;;  %14855 = vrot.lane.b32.xlu1 %v21579_v23, %s15772_s22  ;;  %v19828_v47 = vpop.xlane.xlu0 %8100  ;;  %v8189_v23 = vsub.f32 %v19418_v59, %v19730_v8  ;;  %v8190_v59 = vsub.f32 %v19415_v56, %v19706_v58 }
 0x876   :  { %v19830_v54 = vpop.xlane.xlu1 %8109 }
 0x877   :  { %21775 = vst [vmem:[#allocation120_spill] sm:$0xff] %v19830_v54  ;;  %v19832_v26 = vpop.xlane.xlu0 %8106  ;;  %v8188_v54 = vsub.f32 %v19395_v31, %v19662_v22  ;;  %v8184_v31 = vsub.f32 %v19375_v53, %v19718_v34 }
 0x878   :  { %21776 = vst [vmem:[#allocation115_spill] sm:$0xff] %v19832_v26  ;;  %v8271_v26 = vmul.f32 1.442695, %v8189_v23 }
 0x879   :  { %14850 = vrot.lane.b32.xlu0 %v21576_v46, %s15772_s22  ;;  %v8176_v46 = vsub.f32 %v19424_v9, %v19756_v18  ;;  %v8175_v9 = vsub.f32 %v19348_v6, %v19655_v30  ;;  %v8261_v22 = vmul.f32 1.442695, %v8184_v31  ;;  %v8186_v6 = vsub.f32 %v19403_v29, %v19758_v38  ;;  %v21777_v29 = vld [vmem:[#allocation64_spill] sm:$0xff] }
 0x87a   :  { %v14846_v21 = vpop.permute.xlu1 %14845  ;;  %15399 = vpow2.f32 %v8271_v26  ;;  %v8185_v8 = vsub.f32 %v21777_v29, %v19776_v3  ;;  %v21778_v26 = vld [vmem:[#allocation75_spill] sm:$0xff] }
 0x87b   :  { %v14848_v33 = vunpack.i.h.bf16 %v14846_v21  ;;  %v14847_v4 = vunpack.i.l.bf16 %v14846_v21  ;;  %v14841_v19 = vpop.permute.xlu0 %14840  ;;  %v8269_v21 = vmul.f32 1.442695, %v8188_v54  ;;  %v8265_v34 = vmul.f32 1.442695, %v8186_v6 }
 0x87c   :  { %v14843_v44 = vunpack.i.h.bf16 %v14841_v19  ;;  %v14842_v15 = vunpack.i.l.bf16 %v14841_v19  ;;  %v8187_v19 = vsub.f32 %v19398_v37, %v19688_v57  ;;  %v8273_v37 = vmul.f32 1.442695, %v8190_v59 }
 0x87d   :  { %v14214_v48 = vpack.c.bf16 %v14848_v33, %v14847_v4  ;;  %v8178_v4 = vsub.f32 %v19363_v40, %v19670_v50  ;;  %15401 = vpow2.f32 %v8269_v21  ;;  %v8183_v40 = vsub.f32 %v19378_v35, %v19742_v2 }
 0x87e   :  { %v14206_v45 = vpack.c.bf16 %v14843_v44, %v14842_v15  ;;  %v8267_v44 = vmul.f32 1.442695, %v8187_v19  ;;  %v8243_v50 = vmul.f32 1.442695, %v8175_v9  ;;  %v8193_v57 = vsub.f32 %v19500_v5, %v8047_v27 }
 0x87f   :  { %14215 = vmatprep.subr.bf16.mxu0 %v14214_v48  ;;  %v8249_v33 = vmul.f32 1.442695, %v8178_v4  ;;  %v8259_v53 = vmul.f32 1.442695, %v8183_v40  ;;  %v8263_v38 = vmul.f32 1.442695, %v8185_v8  ;;  %v8192_v23 = vsub.f32 %v21778_v26, %v19810_v32 }
 0x880   :  { %14207 = vmatprep.subr.bf16.mxu1 %v14206_v45  ;;  %14217 = vmatpush3.bf16.msra.mxu0 %v14214_v48  ;;  %v8245_v48 = vmul.f32 1.442695, %v8176_v46  ;;  %v8279_v2 = vmul.f32 1.442695, %v8193_v57 }
 0x881   :  { %14209 = vmatpush3.bf16.msra.mxu1 %v14206_v45  ;;  %v8177_v45 = vsub.f32 %v19366_v1, %v19694_v51  ;;  %v8277_v4 = vmul.f32 1.442695, %v8192_v23 }
 0x882   :  { %15403 = vpow2.f32 %v8245_v48  ;;  %v21779_v48 = vld [vmem:[#allocation74_spill] sm:$0xff] }
 0x883   :  { %15405 = vpow2.f32 %v8267_v44  ;;  %v8247_v30 = vmul.f32 1.442695, %v8177_v45  ;;  %v8191_v44 = vsub.f32 %v21779_v48, %v19816_v12 }
 0x884   :  { %15407 = vpow2.f32 %v8249_v33  ;;  %v19856_v56 = vpop.eup %15399 }
 0x885   :  { %15409 = vpow2.f32 %v8273_v37  ;;  %v8417_v35 = vsel %vm149_vm0, %v19856_v56, 0.0  ;;  %v8275_v9 = vmul.f32 1.442695, %v8191_v44  ;;  %v21780_v37 = vld [vmem:[#allocation91_spill] sm:$0xff] }
 0x886   :  { %15411 = vpow2.f32 %v8261_v22  ;;  %v8194_v22 = vsub.f32 %v21780_v37, %v19820_v52 }
 0x887   :  { %v19858_v58 = vpop.eup %15401  ;;  %15413 = vpow2.f32 %v8243_v50 }
 0x888   :  { %v8414_v1 = vsel %vm149_vm0, %v19858_v58, 0.0  ;;  %15415 = vpow2.f32 %v8259_v53  ;;  %v21781_v53 = vld [vmem:[#allocation73_spill] sm:$0xff] }
 0x889   :  { %15417 = vpow2.f32 %v8247_v30  ;;  %v8195_v6 = vsub.f32 %v21781_v53, %v19794_v63  ;;  %v8281_v30 = vmul.f32 1.442695, %v8194_v22  ;;  %v21783_v63 = vld [vmem:[#allocation63_spill] sm:$0xff] }
 0x88a   :  { %15419 = vpow2.f32 %v8265_v34 }
 0x88b   :  { %15421 = vpow2.f32 %v8279_v2  ;;  %v8283_v29 = vmul.f32 1.442695, %v8195_v6  ;;  %v8196_v2 = vsub.f32 %v21783_v63, %v19770_v13 }
 0x88c   :  { %v19865_v15 = vpop.eup %15403  ;;  %15423 = vpow2.f32 %v8263_v38 }
 0x88d   :  { %v19869_v51 = vpop.eup %15405  ;;  %v8378_v5 = vsel %vm149_vm0, %v19865_v15, 0.0  ;;  %15425 = vpow2.f32 %v8277_v4 }
 0x88e   :  { %v19875_v27 = vpop.eup %15407  ;;  %v8411_v54 = vsel %vm149_vm0, %v19869_v51, 0.0  ;;  %15427 = vpow2.f32 %v8275_v9 }
 0x88f   :  { %v19879_v18 = vpop.eup %15409  ;;  %v8384_v3 = vsel %vm149_vm0, %v19875_v27, 0.0  ;;  %15429 = vpow2.f32 %v8281_v30 }
 0x890   :  { %v19885_v46 = vpop.eup %15411  ;;  %v8420_v21 = vsel %vm149_vm0, %v19879_v18, 0.0  ;;  %15431 = vpow2.f32 %v8283_v29 }
 0x891   :  { %v19889_v19 = vpop.eup %15413  ;;  %v8402_v32 = vsel %vm149_vm0, %v19885_v46, 0.0 }
 0x892   :  { %v19895_v59 = vpop.eup %15415  ;;  %v8375_v33 = vsel %vm149_vm0, %v19889_v19, 0.0 }
 0x893   :  { %v19899_v31 = vpop.eup %15417  ;;  %v8399_v12 = vsel %vm149_vm0, %v19895_v59, 0.0 }
 0x894   :  { %v19905_v40 = vpop.eup %15419  ;;  %v8381_v50 = vsel %vm149_vm0, %v19899_v31, 0.0 }
 0x895   :  { %v19909_v45 = vpop.eup %15421  ;;  %v8408_v52 = vsel %vm149_vm0, %v19905_v40, 0.0 }
 0x896   :  { %v19915_v57 = vpop.eup %15423 }
 0x897   :  { %8418 = vadd.xlane.f32.xlu1 %v8417_v35 }
 0x898   :  { %8415 = vadd.xlane.f32.xlu0 %v8414_v1  ;;  %v8429_v1 = vsel %vm149_vm0, %v19909_v45, 0.0 }
 0x89b   :  { %8379 = vadd.xlane.f32.xlu1 %v8378_v5  ;;  %v8405_v5 = vsel %vm149_vm0, %v19915_v57, 0.0 }
 0x89c   :  { %8412 = vadd.xlane.f32.xlu0 %v8411_v54  ;;  %v19926_v54 = vpop.eup %15425 }
 0x89d   :  { %v19933_v48 = vpop.eup %15427 }
 0x89f   :  { %8385 = vadd.xlane.f32.xlu1 %v8384_v3 }
 0x8a0   :  { %8421 = vadd.xlane.f32.xlu0 %v8420_v21  ;;  %v8285_v21 = vmul.f32 1.442695, %v8196_v2 }
 0x8a3   :  { %8403 = vadd.xlane.f32.xlu1 %v8402_v32  ;;  %v19939_v32 = vpop.eup %15429 }
 0x8a4   :  { %8376 = vadd.xlane.f32.xlu0 %v8375_v33  ;;  %v8432_v37 = vsel %vm149_vm0, %v19939_v32, 0.0  ;;  %v19945_v22 = vpop.eup %15431 }
 0x8a5   :  { %v8435_v6 = vsel %vm149_vm0, %v19945_v22, 0.0 }
 0x8a7   :  { %8400 = vadd.xlane.f32.xlu1 %v8399_v12 }
 0x8a8   :  { %8382 = vadd.xlane.f32.xlu0 %v8381_v50 }
 0x8ab   :  { %v8068_v35 = vpop.xlane.xlu1 %8067  ;;  %8409 = vadd.xlane.f32.xlu1 %v8408_v52 }
 0x8ac   :  { %8430 = vadd.xlane.f32.xlu0 %v8429_v1  ;;  %v19919_v34 = vpop.xlane.xlu0 %8124  ;;  %v8200_v8 = vsub.f32 %v19556_v41, %v8068_v35  ;;  %v8426_v41 = vsel %vm149_vm0, %v19926_v54, 0.0 }
 0x8ad   :  { %21782 = vst [vmem:[#allocation122_spill] sm:$0xff] %v19919_v34 }
 0x8ae   :  { %v8293_v3 = vmul.f32 1.442695, %v8200_v8 }
 0x8af   :  { %v8065_v38 = vpop.xlane.xlu1 %8064  ;;  %8406 = vadd.xlane.f32.xlu1 %v8405_v5 }
 0x8b0   :  { %v8199_v26 = vsub.f32 %v19567_v36, %v8065_v38  ;;  %v19929_v23 = vpop.xlane.xlu0 %8130  ;;  %v8423_v36 = vsel %vm149_vm0, %v19933_v48, 0.0 }
 0x8b1   :  { %21784 = vst [vmem:[#allocation121_spill] sm:$0xff] %v19929_v23  ;;  %v21803_v23 = vld [vmem:[#allocation70_spill] sm:$0xff] }
 0x8b2   :  { %v8291_v4 = vmul.f32 1.442695, %v8199_v26 }
 0x8b3   :  { %v8074_v13 = vpop.xlane.xlu1 %8073  ;;  %8427 = vadd.xlane.f32.xlu1 %v8426_v41 }
 0x8b4   :  { %15433 = vpow2.f32 %v8291_v4  ;;  %v19935_v44 = vpop.xlane.xlu0 %8088 }
 0x8b5   :  { %15435 = vpow2.f32 %v8293_v3 }
 0x8b6   :  { %15437 = vpow2.f32 %v8285_v21 }
 0x8b7   :  { %v8071_v33 = vpop.xlane.xlu1 %8070  ;;  %8424 = vadd.xlane.f32.xlu1 %v8423_v36 }
 0x8b8   :  { %v19941_v9 = vpop.xlane.xlu0 %8094 }
 0x8bb   :  { %v19947_v12 = vpop.xlane.xlu1 %8127  ;;  %8433 = vadd.xlane.f32.xlu1 %v8432_v37  ;;  %v21795_v37 = vld [vmem:[#allocation28_spill] sm:$0xff] }
 0x8bc   :  { %21785 = vst [vmem:[#allocation119_spill] sm:$0xff] %v19947_v12  ;;  %v19949_v50 = vpop.xlane.xlu0 %8148 }
 0x8bd   :  { %21786 = vst [vmem:[#allocation125_spill] sm:$0xff] %v19949_v50 }
 0x8be   :  { %v19951_v53 = vpop.eup %15433 }
 0x8bf   :  { %v19955_v30 = vpop.eup %15435  ;;  %v19957_v52 = vpop.xlane.xlu1 %8133  ;;  %8436 = vadd.xlane.f32.xlu1 %v8435_v6  ;;  %v8447_v35 = vsel %vm149_vm0, %v19951_v53, 0.0 }
 0x8c0   :  { %21787 = vst [vmem:[#allocation124_spill] sm:$0xff] %v19955_v30  ;;  %21788 = vst [vmem:[#allocation123_spill] sm:$0xff] %v19957_v52  ;;  %v19961_v1 = vpop.eup %15437  ;;  %8448 = vadd.xlane.f32.xlu0 %v8447_v35  ;;  %v19963_v29 = vpop.xlane.xlu0 %8154  ;;  %v8450_v8 = vsel %vm149_vm0, %v19955_v30, 0.0 }
 0x8c1   :  { %21789 = vst [vmem:[#allocation126_spill] sm:$0xff] %v19961_v1  ;;  %21790 = vst [vmem:[#allocation129_spill] sm:$0xff] %v19963_v29  ;;  %v8438_v2 = vsel %vm149_vm0, %v19961_v1, 0.0  ;;  %v8198_v1 = vsub.f32 %v21803_v23, %v19806_v60 }
 0x8c3   :  { %v19967_v63 = vpop.xlane.xlu1 %8091  ;;  %8451 = vadd.xlane.f32.xlu1 %v8450_v8 }
 0x8c4   :  { %8439 = vadd.xlane.f32.xlu0 %v8438_v2  ;;  %v19971_v5 = vpop.xlane.xlu0 %8112  ;;  %v21797_v2 = vld [vmem:[#allocation26_spill] sm:$0xff] }
 0x8c7   :  { %v19973_v38 = vpop.xlane.xlu1 %8097 }
 0x8c8   :  { %v19975_v26 = vpop.xlane.xlu0 %8118 }
 0x8cb   :  { %v19977_v3 = vpop.xlane.xlu1 %8151 }
 0x8cc   :  { %21791 = vst [vmem:[#allocation128_spill] sm:$0xff] %v19977_v3  ;;  %v19979_v21 = vpop.xlane.xlu0 %8136 }
 0x8cd   :  { %21792 = vst [vmem:[#allocation130_spill] sm:$0xff] %v19979_v21 }
 0x8cf   :  { %v19981_v4 = vpop.xlane.xlu1 %8157 }
 0x8d0   :  { %21793 = vst [vmem:[#allocation64_spill] sm:$0xff] %v19981_v4  ;;  %v19983_v41 = vpop.xlane.xlu0 %8142 }
 0x8d1   :  { %21794 = vst [vmem:[#allocation75_spill] sm:$0xff] %v19983_v41  ;;  %v21801_v41 = vld [vmem:[#allocation69_spill] sm:$0xff] }
 0x8d2   :  { %v8197_v21 = vsub.f32 %v21801_v41, %v19814_v16 }
 0x8d3   :  { %v19985_v36 = vpop.xlane.xlu1 %8115 }
 0x8d4   :  { %14865 = vrot.lane.b32.xlu1 %v21795_v37, %s15772_s22  ;;  %v19989_v6 = vpop.xlane.xlu0 %8160  ;;  %v8201_v37 = vsub.f32 %v19596_v24, %v8071_v33 }
 0x8d5   :  { %21796 = vst [vmem:[#allocation74_spill] sm:$0xff] %v19989_v6 }
 0x8d6   :  { %v8295_v12 = vmul.f32 1.442695, %v8201_v37 }
 0x8d7   :  { %v19991_v35 = vpop.xlane.xlu1 %8121 }
 0x8d8   :  { %v8368_v8 = vpop.xlane.xlu0 %8367 }
 0x8da   :  { %14860 = vrot.lane.b32.xlu0 %v21797_v2, %s15772_s22  ;;  %v8287_v2 = vmul.f32 1.442695, %v8197_v21 }
 0x8db   :  { %v19995_v29 = vpop.xlane.xlu1 %8139 }
 0x8dc   :  { %21798 = vst [vmem:[#allocation91_spill] sm:$0xff] %v19995_v29  ;;  %v19997_v3 = vpop.xlane.xlu0 %8166  ;;  %v8202_v29 = vsub.f32 %v19582_v49, %v8074_v13 }
 0x8dd   :  { %21799 = vst [vmem:[#allocation73_spill] sm:$0xff] %v19997_v3 }
 0x8de   :  { %v8297_v34 = vmul.f32 1.442695, %v8202_v29 }
 0x8df   :  { %v19999_v4 = vpop.xlane.xlu1 %8145 }
 0x8e0   :  { %21800 = vst [vmem:[#allocation63_spill] sm:$0xff] %v19999_v4  ;;  %v8374_v50 = vpop.xlane.xlu0 %8373  ;;  %v8289_v4 = vmul.f32 1.442695, %v8198_v1 }
 0x8e3   :  { %v20004_v52 = vpop.xlane.xlu1 %8163 }
 0x8e4   :  { %21802 = vst [vmem:[#allocation28_spill] sm:$0xff] %v20004_v52  ;;  %v20006_v6 = vpop.xlane.xlu0 %8391 }
 0x8e7   :  { %v8365_v3 = vpop.xlane.xlu1 %8364 }
 0x8e8   :  { %v8389_v30 = vpop.xlane.xlu0 %8388  ;;  %15439 = vrcp.f32 %v8365_v3 }
 0x8e9   :  { %15441 = vpow2.f32 %v8287_v2 }
 0x8ea   :  { %15443 = vpow2.f32 %v8295_v12 }
 0x8eb   :  { %v20011_v16 = vpop.xlane.xlu1 %8169  ;;  %15445 = vpow2.f32 %v8289_v4 }
 0x8ec   :  { %21804 = vst [vmem:[#allocation26_spill] sm:$0xff] %v20011_v16  ;;  %v20013_v24 = vpop.xlane.xlu0 %8397  ;;  %15447 = vpow2.f32 %v8297_v34 }
 0x8ed   :  { %15449 = vrcp.f32 %v8368_v8 }
 0x8ef   :  { %v8371_v33 = vpop.xlane.xlu1 %8370 }
 0x8f0   :  { %v20015_v60 = vpop.xlane.xlu0 %8394  ;;  %15451 = vrcp.f32 %v8371_v33 }
 0x8f1   :  { %15453 = vrcp.f32 %v8374_v50 }
 0x8f2   :  { %v15440_v49 = vpop.eup %15439  ;;  %15455 = vrcp.f32 %v8389_v30 }
 0x8f3   :  { %v14856_v23 = vpop.permute.xlu1 %14855  ;;  %v20017_v13 = vpop.eup %15441  ;;  %v8619_v3 = vmul.f32 %v15440_v49, %v19774_v14 }
 0x8f4   :  { %v14858_v1 = vunpack.i.h.bf16 %v14856_v23  ;;  %v14857_v29 = vunpack.i.l.bf16 %v14856_v23  ;;  %v14851_v12 = vpop.permute.xlu0 %14850  ;;  %v20020_v21 = vpop.eup %15443  ;;  %v8441_v50 = vsel %vm149_vm0, %v20017_v13, 0.0 }
 0x8f5   :  { %v14853_v4 = vunpack.i.h.bf16 %v14851_v12  ;;  %v14852_v34 = vunpack.i.l.bf16 %v14851_v12  ;;  %13366 = vmatprep.mubr.msk.f32.mxu1 %vm149_vm0, %v8619_v3  ;;  %v20023_v8 = vpop.eup %15445  ;;  %v8453_v14 = vsel %vm149_vm0, %v20020_v21, 0.0 }
 0x8f6   :  { %v14218_v41 = vpack.c.bf16 %v14858_v1, %v14857_v29  ;;  %21805 = vst [vmem:[#allocation69_spill] sm:$0xff] %v20023_v8  ;;  %v20027_v2 = vpop.eup %15447  ;;  %v8444_v1 = vsel %vm149_vm0, %v20023_v8, 0.0 }
 0x8f7   :  { %v14210_v37 = vpack.c.bf16 %v14853_v4, %v14852_v34  ;;  %21806 = vst [vmem:[#allocation70_spill] sm:$0xff] %v20027_v2  ;;  %v15450_v30 = vpop.eup %15449  ;;  %v8456_v49 = vsel %vm149_vm0, %v20027_v2, 0.0 }
 0x8f8   :  { %14219 = vmatprep.subr.bf16.mxu0 %v14218_v41  ;;  %8442 = vadd.xlane.f32.xlu1 %v8441_v50  ;;  %v8620_v23 = vmul.f32 %v15450_v30, %v19722_v7  ;;  %v21807_v7 = vld [vmem:[#allocation30_spill] sm:$0xff] }
 0x8f9   :  { %14221 = vmatpush3.bf16.msra.mxu0 %v14218_v41  ;;  %8454 = vadd.xlane.f32.xlu0 %v8453_v14  ;;  %v21809_v41 = vld [vmem:[#allocation80_spill] sm:$0xff] }
 0x8fa   :  { %14211 = vmatprep.subr.bf16.mxu1 %v14210_v37  ;;  %v15452_v33 = vpop.eup %15451  ;;  %v8203_v50 = vsub.f32 %v21809_v41, %v19818_v42 }
 0x8fb   :  { %14213 = vmatpush3.bf16.msra.mxu1 %v14210_v37  ;;  %v8621_v29 = vmul.f32 %v15452_v33, %v19798_v11  ;;  %v15454_v12 = vpop.eup %15453  ;;  %v21808_v11 = vld [vmem:[#allocation27_spill] sm:$0xff]  ;;  %v21810_v37 = vld [vmem:[#allocation68_spill] sm:$0xff] }
 0x8fc   :  { %8457 = vadd.xlane.f32.xlu1 %v8456_v49  ;;  %v15456_v3 = vpop.eup %15455  ;;  %v8622_v4 = vmul.f32 %v15454_v12, %v19754_v55  ;;  %v8204_v14 = vsub.f32 %v21810_v37, %v19788_v62  ;;  %v8299_v30 = vmul.f32 1.442695, %v8203_v50 }
 0x8fd   :  { %8445 = vadd.xlane.f32.xlu0 %v8444_v1  ;;  %v8627_v34 = vmul.f32 %v15456_v3, %v19780_v17 }
 0x8fe   :  { %13367 = vmatmul.mubr.msk.f32.vlgmr.msra.gmra.mrb[108].mxu1 %vm149_vm0, %v8620_v23  ;;  %v8301_v55 = vmul.f32 1.442695, %v8204_v14  ;;  %15457 = vpow2.f32 %v8299_v30 }
 0x8ff   :  { %13369 = vmatprep.mubr.msk.f32.mxu1 %vm149_vm0, %v8621_v29 }
 0x900   :  { %15459 = vpow2.f32 %v8301_v55 }
 0x902   :  { %13370 = vmatmul.mubr.msk.f32.gmra.mrb[110].mxu1 %vm149_vm0, %v8622_v4 }
 0x903   :  { %13394 = vmatprep.mubr.msk.f32.mxu1 %vm149_vm0, %v8627_v34 }
 0x908   :  { %v20057_v29 = vpop.eup %15457 }
 0x909   :  { %21811 = vst [vmem:[#allocation30_spill] sm:$0xff] %v20057_v29  ;;  %v8459_v62 = vsel %vm149_vm0, %v20057_v29, 0.0 }
 0x90a   :  { %v20061_v42 = vpop.eup %15459 }
 0x90b   :  { %21812 = vst [vmem:[#allocation27_spill] sm:$0xff] %v20061_v42  ;;  %v8462_v34 = vsel %vm149_vm0, %v20061_v42, 0.0 }
 0x90d   :  { %14875 = vrot.lane.b32.xlu1 %v21807_v7, %s15772_s22 }
 0x913   :  { %14870 = vrot.lane.b32.xlu0 %v21808_v11, %s15772_s22 }
 0x924   :  { %v20051_v17 = vpop.xlane.xlu1 %8418 }
 0x925   :  { %v20053_v33 = vpop.xlane.xlu0 %8415 }
 0x928   :  { %v8380_v49 = vpop.xlane.xlu1 %8379 }
 0x929   :  { %v20055_v23 = vpop.xlane.xlu0 %8412  ;;  %15461 = vrcp.f32 %v8380_v49 }
 0x92c   :  { %v8386_v1 = vpop.xlane.xlu1 %8385 }
 0x92d   :  { %v20059_v12 = vpop.xlane.xlu0 %8421 }
 0x930   :  { %v20063_v3 = vpop.xlane.xlu1 %8403 }
 0x931   :  { %8460 = vadd.xlane.f32.xlu1 %v8459_v62  ;;  %v8377_v4 = vpop.xlane.xlu0 %8376 }
 0x932   :  { %15463 = vrcp.f32 %v8377_v4  ;;  %8463 = vadd.xlane.f32.xlu0 %v8462_v34 }
 0x933   :  { %15465 = vrcp.f32 %v8386_v1  ;;  %v15462_v50 = vpop.eup %15461 }
 0x934   :  { %v8401_v7 = vpop.xlane.xlu1 %8400  ;;  %v8624_v49 = vmul.f32 %v15462_v50, %v19865_v15 }
 0x935   :  { %15467 = vrcp.f32 %v8401_v7  ;;  %v8383_v11 = vpop.xlane.xlu0 %8382  ;;  %v21813_v7 = vld [vmem:[#allocation15_spill] sm:$0xff] }
 0x936   :  { %15469 = vrcp.f32 %v8383_v11 }
 0x938   :  { %v20069_v41 = vpop.xlane.xlu1 %8409 }
 0x93c   :  { %v15464_v37 = vpop.eup %15463  ;;  %v8407_v14 = vpop.xlane.xlu1 %8406 }
 0x93d   :  { %v8623_v30 = vmul.f32 %v15464_v37, %v19889_v19  ;;  %v15466_v55 = vpop.eup %15465  ;;  %v21814_v37 = vld [vmem:[#allocation31_spill] sm:$0xff] }
 0x93e   :  { %v8626_v11 = vmul.f32 %v15466_v55, %v19875_v27  ;;  %v21815_v27 = vld [vmem:[#allocation77_spill] sm:$0xff] }
 0x93f   :  { %v15468_v62 = vpop.eup %15467  ;;  %13380 = vmatprep.mubr.msk.f32.mxu0 %vm149_vm0, %v8623_v30  ;;  %v8205_v55 = vsub.f32 %v21815_v27, %v19822_v28 }
 0x940   :  { %v15470_v4 = vpop.eup %15469  ;;  %v20074_v34 = vpop.xlane.xlu1 %8427  ;;  %13381 = vmatmul.mubr.msk.f32.vlgmr.msra.gmra.mrb[148].mxu0 %vm149_vm0, %v8624_v49  ;;  %v8631_v19 = vmul.f32 %v15468_v62, %v19895_v59  ;;  %v21816_v62 = vld [vmem:[#allocation139_spill] sm:$0xff] }
 0x941   :  { %v8625_v1 = vmul.f32 %v15470_v4, %v19899_v31  ;;  %v20089_v31 = vpop.xlane.xlu0 %8430  ;;  %v8206_v4 = vsub.f32 %v21816_v62, %v19800_v39 }
 0x942   :  { %14885 = vrot.lane.b32.xlu1 %v21813_v7, %s15772_s22  ;;  %v8303_v7 = vmul.f32 1.442695, %v8205_v55 }
 0x943   :  { %13383 = vmatprep.mubr.msk.f32.mxu0 %vm149_vm0, %v8625_v1 }
 0x944   :  { %v8425_v15 = vpop.xlane.xlu1 %8424  ;;  %13384 = vmatmul.mubr.msk.f32.gmra.mrb[150].mxu0 %vm149_vm0, %v8626_v11  ;;  %15471 = vpow2.f32 %v8303_v7 }
 0x945   :  { %13408 = vmatprep.mubr.msk.f32.mxu0 %vm149_vm0, %v8631_v19  ;;  %v8305_v19 = vmul.f32 1.442695, %v8206_v4 }
 0x947   :  { %15473 = vpow2.f32 %v8305_v19 }
 0x948   :  { %v20085_v50 = vpop.xlane.xlu1 %8433  ;;  %14880 = vrot.lane.b32.xlu0 %v21814_v37, %s15772_s22 }
 0x94c   :  { %v20091_v30 = vpop.xlane.xlu1 %8436 }
 0x94d   :  { %v20093_v49 = vpop.xlane.xlu0 %8448 }
 0x94e   :  { %v20103_v28 = vpop.eup %15471 }
 0x94f   :  { %v8465_v27 = vsel %vm149_vm0, %v20103_v28, 0.0 }
 0x950   :  { %v20097_v59 = vpop.xlane.xlu1 %8451 }
 0x951   :  { %v20101_v1 = vpop.xlane.xlu0 %8439  ;;  %v20105_v39 = vpop.eup %15473 }
 0x952   :  { %v8468_v55 = vsel %vm149_vm0, %v20105_v39, 0.0 }
 0x954   :  { %v14866_v11 = vpop.permute.xlu1 %14865 }
 0x955   :  { %v14868_v37 = vunpack.i.h.bf16 %v14866_v11  ;;  %v14867_v16 = vunpack.i.l.bf16 %v14866_v11  ;;  %v14861_v52 = vpop.permute.xlu0 %14860 }
 0x956   :  { %v14863_v42 = vunpack.i.h.bf16 %v14861_v52  ;;  %v14862_v29 = vunpack.i.l.bf16 %v14861_v52  ;;  %v21817_v52 = vld [vmem:[#allocation34_spill] sm:$0xff] }
 0x957   :  { %v14230_v8 = vpack.c.bf16 %v14868_v37, %v14867_v16  ;;  %v21818_v16 = vld [vmem:[#allocation21_spill] sm:$0xff] }
 0x958   :  { %v14222_v2 = vpack.c.bf16 %v14863_v42, %v14862_v29  ;;  %v8207_v29 = vsub.f32 %v21818_v16, %v19935_v44  ;;  %v8208_v42 = vsub.f32 %v19632_v0, %v19967_v63 }
 0x959   :  { %14231 = vmatprep.subr.bf16.mxu0 %v14230_v8 }
 0x95a   :  { %14223 = vmatprep.subr.bf16.mxu1 %v14222_v2  ;;  %14233 = vmatpush3.bf16.msra.mxu0 %v14230_v8  ;;  %v21819_v8 = vld [vmem:[#allocation33_spill] sm:$0xff]  ;;  %v8309_v4 = vmul.f32 1.442695, %v8208_v42 }
 0x95b   :  { %14225 = vmatpush3.bf16.msra.mxu1 %v14222_v2  ;;  %v8307_v2 = vmul.f32 1.442695, %v8207_v29 }
 0x95d   :  { %15475 = vpow2.f32 %v8307_v2 }
 0x95e   :  { %15477 = vrcp.f32 %v20006_v6 }
 0x95f   :  { %15479 = vrcp.f32 %v20063_v3 }
 0x960   :  { %15481 = vrcp.f32 %v8407_v14 }
 0x961   :  { %15483 = vrcp.f32 %v20015_v60 }
 0x962   :  { %15485 = vpow2.f32 %v8309_v4 }
 0x963   :  { %15487 = vrcp.f32 %v20069_v41 }
 0x964   :  { %15489 = vrcp.f32 %v20013_v24 }
 0x965   :  { %15491 = vrcp.f32 %v8425_v15 }
 0x966   :  { %8466 = vadd.xlane.f32.xlu1 %v8465_v27  ;;  %15493 = vrcp.f32 %v20055_v23 }
 0x967   :  { %8469 = vadd.xlane.f32.xlu0 %v8468_v55  ;;  %v20133_v3 = vpop.eup %15475 }
 0x968   :  { %v15478_v37 = vpop.eup %15477 }
 0x969   :  { %v15480_v55 = vpop.eup %15479  ;;  %v8628_v29 = vmul.f32 %v15478_v37, %v19768_v43  ;;  %v8471_v43 = vsel %vm149_vm0, %v20133_v3, 0.0 }
 0x96a   :  { %v15482_v16 = vpop.eup %15481  ;;  %v8632_v23 = vmul.f32 %v15480_v55, %v19885_v46 }
 0x96b   :  { %v15484_v41 = vpop.eup %15483 }
 0x96c   :  { %v20135_v24 = vpop.eup %15485  ;;  %v8629_v42 = vmul.f32 %v15484_v41, %v19804_v25 }
 0x96d   :  { %v15488_v15 = vpop.eup %15487  ;;  %v8474_v25 = vsel %vm149_vm0, %v20135_v24, 0.0 }
 0x96e   :  { %v15490_v2 = vpop.eup %15489  ;;  %v8634_v46 = vmul.f32 %v15488_v15, %v19905_v40  ;;  %v21821_v40 = vld [vmem:[#allocation18_spill] sm:$0xff] }
 0x96f   :  { %v15492_v4 = vpop.eup %15491 }
 0x977   :  { %14895 = vrot.lane.b32.xlu1 %v21817_v52, %s15772_s22 }
 0x97d   :  { %14890 = vrot.lane.b32.xlu0 %v21819_v8, %s15772_s22  ;;  %v8633_v8 = vmul.f32 %v15482_v16, %v19915_v57  ;;  %v8639_v57 = vmul.f32 %v15492_v4, %v19933_v48  ;;  %v8209_v48 = vsub.f32 %v19602_v20, %v19941_v9 }
 0x985   :  { %v20119_v62 = vpop.xlane.xlu1 %8442 }
 0x986   :  { %v20122_v7 = vpop.xlane.xlu0 %8454 }
 0x989   :  { %v20126_v44 = vpop.xlane.xlu1 %8457 }
 0x98a   :  { %v20128_v11 = vpop.xlane.xlu0 %8445 }
 0x98d   :  { %v14876_v0 = vpop.permute.xlu1 %14875 }
 0x98e   :  { %v14878_v63 = vunpack.i.h.bf16 %v14876_v0  ;;  %v14877_v6 = vunpack.i.l.bf16 %v14876_v0  ;;  %v14871_v19 = vpop.permute.xlu0 %14870  ;;  %v15494_v0 = vpop.eup %15493 }
 0x98f   :  { %v14873_v14 = vunpack.i.h.bf16 %v14871_v19  ;;  %v14872_v60 = vunpack.i.l.bf16 %v14871_v19  ;;  %v8210_v19 = vsub.f32 %v19646_v61, %v19973_v38 }
 0x990   :  { %v14234_v27 = vpack.c.bf16 %v14878_v63, %v14877_v6  ;;  %v8630_v63 = vmul.f32 %v15490_v2, %v19792_v10  ;;  %v8635_v6 = vmul.f32 %v15494_v0, %v19869_v51  ;;  %v21820_v10 = vld [vmem:[#allocation19_spill] sm:$0xff]  ;;  %v21822_v0 = vld [vmem:[#allocation25_spill] sm:$0xff] }
 0x991   :  { %v14226_v52 = vpack.c.bf16 %v14873_v14, %v14872_v60  ;;  %v8311_v14 = vmul.f32 1.442695, %v8209_v48  ;;  %v8313_v51 = vmul.f32 1.442695, %v8210_v19  ;;  %v21827_v48 = vld [vmem:[#allocation115_spill] sm:$0xff]  ;;  %v21828_v19 = vld [vmem:[#allocation93_spill] sm:$0xff] }
 0x992   :  { %14235 = vmatprep.subr.bf16.mxu0 %v14234_v27 }
 0x993   :  { %14227 = vmatprep.subr.bf16.mxu1 %v14226_v52  ;;  %14237 = vmatpush3.bf16.msra.mxu0 %v14234_v27  ;;  %15495 = vpow2.f32 %v8311_v14  ;;  %v8213_v14 = vsub.f32 %v21828_v19, %v21827_v48 }
 0x994   :  { %14229 = vmatpush3.bf16.msra.mxu1 %v14226_v52  ;;  %15497 = vpow2.f32 %v8313_v51 }
 0x996   :  { %13409 = vmatmul.mubr.msk.f32.vlgmr.msra.gmra.mrb[152].mxu0 %vm149_vm0, %v8632_v23 }
 0x997   :  { %13395 = vmatmul.mubr.msk.f32.vlgmr.msra.gmra.mrb[112].mxu1 %vm149_vm0, %v8628_v29  ;;  %13411 = vmatprep.mubr.msk.f32.mxu0 %vm149_vm0, %v8633_v8 }
 0x998   :  { %13397 = vmatprep.mubr.msk.f32.mxu1 %vm149_vm0, %v8629_v42 }
 0x99a   :  { %13412 = vmatmul.mubr.msk.f32.gmra.mrb[154].mxu0 %vm149_vm0, %v8634_v46  ;;  %v21823_v46 = vld [vmem:[#allocation117_spill] sm:$0xff] }
 0x99b   :  { %8472 = vadd.xlane.f32.xlu1 %v8471_v43  ;;  %13398 = vmatmul.mubr.msk.f32.gmra.mrb[114].mxu1 %vm149_vm0, %v8630_v63  ;;  %v21824_v63 = vld [vmem:[#allocation85_spill] sm:$0xff] }
 0x99c   :  { %13436 = vmatprep.mubr.msk.f32.mxu0 %vm149_vm0, %v8639_v57  ;;  %8475 = vadd.xlane.f32.xlu0 %v8474_v25  ;;  %v8212_v43 = vsub.f32 %v21824_v63, %v21823_v46  ;;  %v21825_v57 = vld [vmem:[#allocation17_spill] sm:$0xff] }
 0x99d   :  { %13422 = vmatprep.mubr.msk.f32.mxu1 %vm149_vm0, %v8635_v6  ;;  %v20169_v20 = vpop.eup %15495  ;;  %v21826_v6 = vld [vmem:[#allocation92_spill] sm:$0xff] }
 0x99e   :  { %v20171_v61 = vpop.eup %15497  ;;  %v8477_v9 = vsel %vm149_vm0, %v20169_v20, 0.0  ;;  %v8317_v25 = vmul.f32 1.442695, %v8212_v43 }
 0x99f   :  { %v8480_v38 = vsel %vm149_vm0, %v20171_v61, 0.0 }
 0x9a0   :  { %15499 = vpow2.f32 %v8317_v25 }
 0x9a1   :  { %15501 = vrcp.f32 %v20053_v33  ;;  %v21830_v33 = vld [vmem:[#allocation81_spill] sm:$0xff] }
 0x9a2   :  { %15503 = vrcp.f32 %v20074_v34  ;;  %v8319_v34 = vmul.f32 1.442695, %v8213_v14 }
 0x9a3   :  { %15505 = vrcp.f32 %v20089_v31 }
 0x9a4   :  { %15507 = vrcp.f32 %v20051_v17 }
 0x9ac   :  { %14905 = vrot.lane.b32.xlu1 %v21820_v10, %s15772_s22  ;;  %v8211_v10 = vsub.f32 %v21826_v6, %v19828_v47  ;;  %v21829_v47 = vld [vmem:[#allocation120_spill] sm:$0xff] }
 0x9b2   :  { %14900 = vrot.lane.b32.xlu0 %v21821_v40, %s15772_s22  ;;  %v8315_v40 = vmul.f32 1.442695, %v8211_v10 }
 0x9b4   :  { %15509 = vpow2.f32 %v8315_v40 }
 0x9b5   :  { %15511 = vrcp.f32 %v20085_v50 }
 0x9b6   :  { %15513 = vrcp.f32 %v20059_v12 }
 0x9b7   :  { %15515 = vrcp.f32 %v20093_v49 }
 0x9b8   :  { %15517 = vrcp.f32 %v20091_v30 }
 0x9b9   :  { %15519 = vpow2.f32 %v8319_v34  ;;  %v21831_v34 = vld [vmem:[#allocation16_spill] sm:$0xff] }
 0x9be   :  { %v20165_v60 = vpop.xlane.xlu1 %8460 }
 0x9bf   :  { %v20167_v37 = vpop.xlane.xlu0 %8463 }
 0x9c2   :  { %v14886_v27 = vpop.permute.xlu1 %14885 }
 0x9c3   :  { %v14888_v55 = vunpack.i.h.bf16 %v14886_v27  ;;  %v14887_v52 = vunpack.i.l.bf16 %v14886_v27  ;;  %v14881_v16 = vpop.permute.xlu0 %14880 }
 0x9c4   :  { %v14883_v41 = vunpack.i.h.bf16 %v14881_v16  ;;  %v14882_v23 = vunpack.i.l.bf16 %v14881_v16 }
 0x9c5   :  { %v14246_v15 = vpack.c.bf16 %v14888_v55, %v14887_v52  ;;  %v8214_v55 = vsub.f32 %v21830_v33, %v21829_v47 }
 0x9c6   :  { %v14238_v29 = vpack.c.bf16 %v14883_v41, %v14882_v23  ;;  %v20209_v41 = vpop.eup %15499 }
 0x9c7   :  { %14247 = vmatprep.subr.bf16.mxu0 %v14246_v15  ;;  %v8321_v12 = vmul.f32 1.442695, %v8214_v55  ;;  %v8486_v19 = vsel %vm149_vm0, %v20209_v41, 0.0 }
 0x9c8   :  { %14239 = vmatprep.subr.bf16.mxu1 %v14238_v29  ;;  %14249 = vmatpush3.bf16.msra.mxu0 %v14246_v15 }
 0x9c9   :  { %14241 = vmatpush3.bf16.msra.mxu1 %v14238_v29  ;;  %v15502_v29 = vpop.eup %15501  ;;  %15521 = vpow2.f32 %v8321_v12 }
 0x9ca   :  { %v8636_v43 = vmul.f32 %v15502_v29, %v19858_v58  ;;  %v21834_v29 = vld [vmem:[#allocation109_spill] sm:$0xff] }
 0x9d0   :  { %8478 = vadd.xlane.f32.xlu1 %v8477_v9  ;;  %v15504_v9 = vpop.eup %15503 }
 0x9d1   :  { %v20177_v8 = vpop.f32.mrb[108].mxu1  ;;  %8481 = vadd.xlane.f32.xlu0 %v8480_v38  ;;  %v8640_v30 = vmul.f32 %v15504_v9, %v19926_v54 }
 0x9d2   :  { %v20179_v2 = vpop.f32.mrb[109].mxu1 }
 0x9d5   :  { %v20181_v42 = vpop.f32.mrb[110].mxu1 }
 0x9d6   :  { %v20183_v4 = vpop.f32.mrb[111].mxu1 }
 0x9e1   :  { %14915 = vrot.lane.b32.xlu1 %v21822_v0, %s15772_s22  ;;  %v15506_v0 = vpop.eup %15505 }
 0x9e2   :  { %v15508_v46 = vpop.eup %15507 }
 0x9e3   :  { %v20211_v49 = vpop.eup %15509  ;;  %v8637_v6 = vmul.f32 %v15508_v46, %v19856_v56 }
 0x9e4   :  { %v15512_v63 = vpop.eup %15511  ;;  %v8483_v58 = vsel %vm149_vm0, %v20211_v49, 0.0 }
 0x9e5   :  { %v15514_v25 = vpop.eup %15513  ;;  %v8642_v54 = vmul.f32 %v15512_v63, %v19939_v32 }
 0x9e6   :  { %v15516_v10 = vpop.eup %15515  ;;  %v8638_v48 = vmul.f32 %v15514_v25, %v19879_v18 }
 0x9e7   :  { %14910 = vrot.lane.b32.xlu0 %v21825_v57, %s15772_s22  ;;  %v8641_v57 = vmul.f32 %v15506_v0, %v19909_v45  ;;  %v15518_v40 = vpop.eup %15517  ;;  %v8647_v45 = vmul.f32 %v15516_v10, %v19951_v53 }
 0x9e8   :  { %v20227_v56 = vpop.eup %15519  ;;  %v8643_v14 = vmul.f32 %v15518_v40, %v19945_v22 }
 0x9e9   :  { %v8489_v18 = vsel %vm149_vm0, %v20227_v56, 0.0  ;;  %v20237_v32 = vpop.eup %15521 }
 0x9ea   :  { %v8492_v53 = vsel %vm149_vm0, %v20237_v32, 0.0 }
 0x9f3   :  { %v20199_v51 = vpop.xlane.xlu1 %8466 }
 0x9f4   :  { %v20201_v27 = vpop.xlane.xlu0 %8469 }
 0x9f7   :  { %v14896_v31 = vpop.permute.xlu1 %14895 }
 0x9f8   :  { %v14898_v52 = vunpack.i.h.bf16 %v14896_v31  ;;  %v14897_v17 = vunpack.i.l.bf16 %v14896_v31  ;;  %v14891_v16 = vpop.permute.xlu0 %14890  ;;  %v21832_v31 = vld [vmem:[#allocation35_spill] sm:$0xff] }
 0x9f9   :  { %v14893_v23 = vunpack.i.h.bf16 %v14891_v16  ;;  %v14892_v15 = vunpack.i.l.bf16 %v14891_v16 }
 0x9fa   :  { %v14250_v50 = vpack.c.bf16 %v14898_v52, %v14897_v17  ;;  %v21833_v52 = vld [vmem:[#allocation105_spill] sm:$0xff] }
 0x9fb   :  { %v14242_v38 = vpack.c.bf16 %v14893_v23, %v14892_v15  ;;  %v8215_v17 = vsub.f32 %v21833_v52, %v19971_v5  ;;  %v21840_v52 = vld [vmem:[#allocation37_spill] sm:$0xff] }
 0x9fc   :  { %14251 = vmatprep.subr.bf16.mxu0 %v14250_v50 }
 0x9fd   :  { %14243 = vmatprep.subr.bf16.mxu1 %v14242_v38  ;;  %14253 = vmatpush3.bf16.msra.mxu0 %v14250_v50  ;;  %v8323_v23 = vmul.f32 1.442695, %v8215_v17  ;;  %v8216_v50 = vsub.f32 %v21834_v29, %v19985_v36  ;;  %v21836_v36 = vld [vmem:[#allocation106_spill] sm:$0xff] }
 0x9fe   :  { %14245 = vmatpush3.bf16.msra.mxu1 %v14242_v38  ;;  %v8218_v10 = vsub.f32 %v21836_v36, %v19991_v35 }
 0x9ff   :  { %15523 = vpow2.f32 %v8323_v23  ;;  %v8325_v25 = vmul.f32 1.442695, %v8216_v50 }
 0xa00   :  { %13437 = vmatmul.mubr.msk.f32.vlgmr.msra.gmra.mrb[156].mxu0 %vm149_vm0, %v8640_v30 }
 0xa01   :  { %13423 = vmatmul.mubr.msk.f32.vlgmr.msra.gmra.mrb[116].mxu1 %vm149_vm0, %v8636_v43  ;;  %13439 = vmatprep.mubr.msk.f32.mxu0 %vm149_vm0, %v8641_v57  ;;  %v21835_v43 = vld [vmem:[#allocation104_spill] sm:$0xff]  ;;  %15525 = vpow2.f32 %v8325_v25 }
 0xa02   :  { %13425 = vmatprep.mubr.msk.f32.mxu1 %vm149_vm0, %v8637_v6  ;;  %v8217_v57 = vsub.f32 %v21835_v43, %v19975_v26  ;;  %v21842_v43 = vld [vmem:[#allocation119_spill] sm:$0xff] }
 0xa04   :  { %13440 = vmatmul.mubr.msk.f32.gmra.mrb[158].mxu0 %vm149_vm0, %v8642_v54  ;;  %v8327_v6 = vmul.f32 1.442695, %v8217_v57  ;;  %v8329_v54 = vmul.f32 1.442695, %v8218_v10  ;;  %v21843_v57 = vld [vmem:[#allocation100_spill] sm:$0xff] }
 0xa05   :  { %8484 = vadd.xlane.f32.xlu1 %v8483_v58  ;;  %13426 = vmatmul.mubr.msk.f32.gmra.mrb[118].mxu1 %vm149_vm0, %v8638_v48  ;;  %v8220_v25 = vsub.f32 %v21843_v57, %v21842_v43 }
 0xa06   :  { %13464 = vmatprep.mubr.msk.f32.mxu0 %vm149_vm0, %v8647_v45  ;;  %8487 = vadd.xlane.f32.xlu0 %v8486_v19  ;;  %15527 = vpow2.f32 %v8327_v6 }
 0xa07   :  { %13450 = vmatprep.mubr.msk.f32.mxu1 %vm149_vm0, %v8643_v14  ;;  %15529 = vpow2.f32 %v8329_v54 }
 0xa08   :  { %15531 = vrcp.f32 %v20097_v59 }
 0xa09   :  { %8490 = vadd.xlane.f32.xlu1 %v8489_v18  ;;  %v20263_v40 = vpop.eup %15523  ;;  %v21837_v18 = vld [vmem:[#allocation36_spill] sm:$0xff]  ;;  %15533 = vrcp.f32 %v20101_v1 }
 0xa0a   :  { %v8495_v48 = vsel %vm149_vm0, %v20263_v40, 0.0  ;;  %15535 = vrcp.f32 %v20122_v7 }
 0xa0b   :  { %v20267_v26 = vpop.eup %15525  ;;  %15537 = vrcp.f32 %v20119_v62 }
 0xa0c   :  { %v8498_v58 = vsel %vm149_vm0, %v20267_v26, 0.0  ;;  %15539 = vrcp.f32 %v20126_v44 }
 0xa0d   :  { %8493 = vadd.xlane.f32.xlu1 %v8492_v53  ;;  %v21838_v53 = vld [vmem:[#allocation122_spill] sm:$0xff]  ;;  %15541 = vrcp.f32 %v20128_v11 }
 0xa10   :  { %v20271_v45 = vpop.eup %15527 }
 0xa11   :  { %v8501_v35 = vsel %vm149_vm0, %v20271_v45, 0.0  ;;  %v20275_v19 = vpop.eup %15529 }
 0xa12   :  { %v8504_v14 = vsel %vm149_vm0, %v20275_v19, 0.0  ;;  %v15532_v62 = vpop.eup %15531 }
 0xa13   :  { %v20241_v47 = vpop.f32.mrb[148].mxu0 }
 0xa14   :  { %v20243_v33 = vpop.f32.mrb[149].mxu0 }
 0xa17   :  { %v20245_v22 = vpop.f32.mrb[150].mxu0 }
 0xa18   :  { %v20247_v55 = vpop.f32.mrb[151].mxu0 }
 0xa1c   :  { %14920 = vrot.lane.b32.xlu0 %v21831_v34, %s15772_s22  ;;  %v21839_v34 = vld [vmem:[#allocation84_spill] sm:$0xff] }
 0xa1e   :  { %14925 = vrot.lane.b32.xlu1 %v21832_v31, %s15772_s22  ;;  %v8219_v31 = vsub.f32 %v21839_v34, %v21838_v53 }
 0xa20   :  { %v8331_v23 = vmul.f32 1.442695, %v8219_v31  ;;  %v21846_v31 = vld [vmem:[#allocation121_spill] sm:$0xff] }
 0xa28   :  { %v8473_v16 = vpop.xlane.xlu1 %8472 }
 0xa29   :  { %v20255_v15 = vpop.xlane.xlu0 %8475  ;;  %15543 = vrcp.f32 %v8473_v16  ;;  %v21841_v16 = vld [vmem:[#allocation124_spill] sm:$0xff] }
 0xa2a   :  { %15545 = vrcp.f32 %v20165_v60 }
 0xa2b   :  { %15547 = vpow2.f32 %v8331_v23 }
 0xa2c   :  { %v14906_v9 = vpop.permute.xlu1 %14905 }
 0xa2d   :  { %v14908_v12 = vunpack.i.h.bf16 %v14906_v9  ;;  %v14907_v38 = vunpack.i.l.bf16 %v14906_v9  ;;  %v14901_v0 = vpop.permute.xlu0 %14900 }
 0xa2e   :  { %v14903_v46 = vunpack.i.h.bf16 %v14901_v0  ;;  %v14902_v30 = vunpack.i.l.bf16 %v14901_v0  ;;  %v15534_v0 = vpop.eup %15533 }
 0xa2f   :  { %v14262_v63 = vpack.c.bf16 %v14908_v12, %v14907_v38 }
 0xa30   :  { %v14254_v5 = vpack.c.bf16 %v14903_v46, %v14902_v30  ;;  %v15536_v30 = vpop.eup %15535 }
 0xa31   :  { %14263 = vmatprep.subr.bf16.mxu0 %v14262_v63  ;;  %v15538_v44 = vpop.eup %15537  ;;  %v8649_v10 = vmul.f32 %v15536_v30, %v20020_v21  ;;  %v21845_v21 = vld [vmem:[#allocation70_spill] sm:$0xff]  ;;  %v21850_v30 = vld [vmem:[#allocation123_spill] sm:$0xff] }
 0xa32   :  { %14255 = vmatprep.subr.bf16.mxu1 %v14254_v5  ;;  %14265 = vmatpush3.bf16.msra.mxu0 %v14262_v63  ;;  %v15540_v11 = vpop.eup %15539  ;;  %v8648_v63 = vmul.f32 %v15532_v62, %v21841_v16  ;;  %v21849_v62 = vld [vmem:[#allocation30_spill] sm:$0xff] }
 0xa33   :  { %14257 = vmatpush3.bf16.msra.mxu1 %v14254_v5  ;;  %v15542_v60 = vpop.eup %15541  ;;  %v21844_v5 = vld [vmem:[#allocation126_spill] sm:$0xff]  ;;  %v8650_v34 = vmul.f32 %v15540_v11, %v21845_v21 }
 0xa34   :  { %v8644_v6 = vmul.f32 %v15534_v0, %v21844_v5  ;;  %v15544_v54 = vpop.eup %15543 }
 0xa3b   :  { %8496 = vadd.xlane.f32.xlu0 %v8495_v48 }
 0xa42   :  { %8499 = vadd.xlane.f32.xlu1 %v8498_v58 }
 0xa46   :  { %8502 = vadd.xlane.f32.xlu1 %v8501_v35  ;;  %v8645_v35 = vmul.f32 %v15538_v44, %v20017_v13  ;;  %v21848_v13 = vld [vmem:[#allocation69_spill] sm:$0xff]  ;;  %v21851_v44 = vld [vmem:[#allocation103_spill] sm:$0xff] }
 0xa47   :  { %v8222_v11 = vsub.f32 %v21851_v44, %v21850_v30 }
 0xa49   :  { %v8337_v16 = vmul.f32 1.442695, %v8222_v11 }
 0xa4a   :  { %8505 = vadd.xlane.f32.xlu1 %v8504_v14  ;;  %v15546_v14 = vpop.eup %15545 }
 0xa4b   :  { %v20313_v53 = vpop.eup %15547 }
 0xa51   :  { %14930 = vrot.lane.b32.xlu0 %v21837_v18, %s15772_s22 }
 0xa5b   :  { %14935 = vrot.lane.b32.xlu1 %v21840_v52, %s15772_s22  ;;  %v21847_v52 = vld [vmem:[#allocation97_spill] sm:$0xff] }
 0xa5c   :  { %v8221_v23 = vsub.f32 %v21847_v52, %v21846_v31 }
 0xa5d   :  { %v20289_v17 = vpop.xlane.xlu1 %8478 }
 0xa5e   :  { %v20292_v29 = vpop.xlane.xlu0 %8481 }
 0xa61   :  { %v14916_v59 = vpop.permute.xlu1 %14915 }
 0xa62   :  { %v14918_v1 = vunpack.i.h.bf16 %v14916_v59  ;;  %v14917_v50 = vunpack.i.l.bf16 %v14916_v59  ;;  %v14911_v9 = vpop.permute.xlu0 %14910  ;;  %v8333_v59 = vmul.f32 1.442695, %v8220_v25 }
 0xa63   :  { %v14913_v7 = vunpack.i.h.bf16 %v14911_v9  ;;  %v14912_v12 = vunpack.i.l.bf16 %v14911_v9  ;;  %v8655_v9 = vmul.f32 %v15544_v54, %v20133_v3  ;;  %v8335_v3 = vmul.f32 1.442695, %v8221_v23  ;;  %v21856_v23 = vld [vmem:[#allocation91_spill] sm:$0xff] }
 0xa64   :  { %v14266_v38 = vpack.c.bf16 %v14918_v1, %v14917_v50  ;;  %v8646_v50 = vmul.f32 %v15542_v60, %v21848_v13  ;;  %15549 = vpow2.f32 %v8333_v59  ;;  %v21853_v60 = vld [vmem:[#allocation108_spill] sm:$0xff]  ;;  %v21857_v59 = vld [vmem:[#allocation114_spill] sm:$0xff] }
 0xa65   :  { %v14258_v46 = vpack.c.bf16 %v14913_v7, %v14912_v12  ;;  %15551 = vpow2.f32 %v8335_v3  ;;  %v8224_v13 = vsub.f32 %v21857_v59, %v21856_v23 }
 0xa66   :  { %14267 = vmatprep.subr.bf16.mxu0 %v14266_v38  ;;  %15553 = vpow2.f32 %v8337_v16 }
 0xa67   :  { %14259 = vmatprep.subr.bf16.mxu1 %v14258_v46  ;;  %14269 = vmatpush3.bf16.msra.mxu0 %v14266_v38  ;;  %v8651_v38 = vmul.f32 %v15546_v14, %v21849_v62  ;;  %v8341_v62 = vmul.f32 1.442695, %v8224_v13 }
 0xa68   :  { %14261 = vmatpush3.bf16.msra.mxu1 %v14258_v46  ;;  %v8507_v46 = vsel %vm149_vm0, %v20313_v53, 0.0 }
 0xa69   :  { %v20300_v36 = vpop.f32.mrb[152].mxu0 }
 0xa6a   :  { %v20303_v48 = vpop.f32.mrb[112].mxu1  ;;  %v20305_v58 = vpop.f32.mrb[153].mxu0  ;;  %13465 = vmatmul.mubr.msk.f32.vlgmr.msra.gmra.mrb[160].mxu0 %vm149_vm0, %v8648_v63  ;;  %v21852_v63 = vld [vmem:[#allocation130_spill] sm:$0xff] }
 0xa6b   :  { %v20309_v18 = vpop.f32.mrb[113].mxu1  ;;  %13451 = vmatmul.mubr.msk.f32.vlgmr.msra.gmra.mrb[120].mxu1 %vm149_vm0, %v8644_v6  ;;  %13467 = vmatprep.mubr.msk.f32.mxu0 %vm149_vm0, %v8649_v10  ;;  %v8223_v43 = vsub.f32 %v21853_v60, %v21852_v63 }
 0xa6c   :  { %13453 = vmatprep.mubr.msk.f32.mxu1 %vm149_vm0, %v8645_v35  ;;  %v21854_v35 = vld [vmem:[#allocation40_spill] sm:$0xff] }
 0xa6d   :  { %v20319_v1 = vpop.f32.mrb[154].mxu0  ;;  %v8339_v57 = vmul.f32 1.442695, %v8223_v43  ;;  %v21860_v43 = vld [vmem:[#allocation45_spill] sm:$0xff] }
 0xa6e   :  { %v20323_v7 = vpop.f32.mrb[114].mxu1  ;;  %v20325_v12 = vpop.f32.mrb[155].mxu0  ;;  %13468 = vmatmul.mubr.msk.f32.gmra.mrb[162].mxu0 %vm149_vm0, %v8650_v34  ;;  %v21855_v34 = vld [vmem:[#allocation43_spill] sm:$0xff] }
 0xa6f   :  { %v20329_v0 = vpop.f32.mrb[115].mxu1  ;;  %13454 = vmatmul.mubr.msk.f32.gmra.mrb[122].mxu1 %vm149_vm0, %v8646_v50  ;;  %13492 = vmatprep.mubr.msk.f32.mxu0 %vm149_vm0, %v8655_v9  ;;  %v20340_v25 = vpop.eup %15549  ;;  %15555 = vpow2.f32 %v8339_v57 }
 0xa70   :  { %8508 = vadd.xlane.f32.xlu0 %v8507_v46  ;;  %13478 = vmatprep.mubr.msk.f32.mxu1 %vm149_vm0, %v8651_v38  ;;  %v8510_v5 = vsel %vm149_vm0, %v20340_v25, 0.0  ;;  %v20344_v6 = vpop.eup %15551  ;;  %v21858_v38 = vld [vmem:[#allocation63_spill] sm:$0xff]  ;;  %v21859_v46 = vld [vmem:[#allocation116_spill] sm:$0xff]  ;;  %15557 = vrcp.f32 %v20167_v37 }
 0xa71   :  { %v8513_v10 = vsel %vm149_vm0, %v20344_v6, 0.0  ;;  %v20348_v54 = vpop.eup %15553  ;;  %v8226_v3 = vsub.f32 %v21859_v46, %v21858_v38  ;;  %15559 = vrcp.f32 %v20199_v51  ;;  %v21862_v38 = vld [vmem:[#allocation75_spill] sm:$0xff]  ;;  %v21863_v46 = vld [vmem:[#allocation110_spill] sm:$0xff] }
 0xa72   :  { %v8516_v14 = vsel %vm149_vm0, %v20348_v54, 0.0  ;;  %15561 = vpow2.f32 %v8341_v62 }
 0xa73   :  { %v8345_v60 = vmul.f32 1.442695, %v8226_v3  ;;  %15563 = vrcp.f32 %v20201_v27  ;;  %v8225_v3 = vsub.f32 %v21863_v46, %v21862_v38  ;;  %v21869_v38 = vld [vmem:[#allocation64_spill] sm:$0xff]  ;;  %v21870_v46 = vld [vmem:[#allocation102_spill] sm:$0xff] }
 0xa79   :  { %v20354_v21 = vpop.eup %15555 }
 0xa7a   :  { %v8519_v31 = vsel %vm149_vm0, %v20354_v21, 0.0 }
 0xa7f   :  { %8511 = vadd.xlane.f32.xlu1 %v8510_v5 }
 0xa83   :  { %8514 = vadd.xlane.f32.xlu1 %v8513_v10 }
 0xa86   :  { %14940 = vrot.lane.b32.xlu0 %v21854_v35, %s15772_s22  ;;  %v15558_v35 = vpop.eup %15557 }
 0xa87   :  { %8517 = vadd.xlane.f32.xlu1 %v8516_v14  ;;  %v15560_v51 = vpop.eup %15559 }
 0xa88   :  { %v20375_v14 = vpop.eup %15561  ;;  %v8653_v23 = vmul.f32 %v15560_v51, %v20103_v28  ;;  %v21868_v51 = vld [vmem:[#allocation23_spill] sm:$0xff] }
 0xa89   :  { %v15564_v27 = vpop.eup %15563 }
 0xa8a   :  { %14945 = vrot.lane.b32.xlu0 %v21855_v34, %s15772_s22  ;;  %v21861_v34 = vld [vmem:[#allocation27_spill] sm:$0xff]  ;;  %v8654_v62 = vmul.f32 %v15564_v27, %v20105_v39 }
 0xa8b   :  { %8520 = vadd.xlane.f32.xlu1 %v8519_v31  ;;  %v8652_v31 = vmul.f32 %v15558_v35, %v21861_v34  ;;  %v21867_v35 = vld [vmem:[#allocation128_spill] sm:$0xff] }
 0xa8c   :  { %v8228_v34 = vsub.f32 %v21868_v51, %v21867_v35 }
 0xa92   :  { %v8485_v52 = vpop.xlane.xlu1 %8484 }
 0xa93   :  { %v20362_v50 = vpop.xlane.xlu0 %8487  ;;  %15565 = vrcp.f32 %v8485_v52  ;;  %v8522_v52 = vsel %vm149_vm0, %v20375_v14, 0.0 }
 0xa94   :  { %15567 = vpow2.f32 %v8345_v60  ;;  %v8343_v60 = vmul.f32 1.442695, %v8225_v3  ;;  %v8230_v3 = vsub.f32 %v21870_v46, %v21869_v38 }
 0xa96   :  { %v20364_v9 = vpop.xlane.xlu1 %8490  ;;  %15569 = vpow2.f32 %v8343_v60  ;;  %v21871_v60 = vld [vmem:[#allocation49_spill] sm:$0xff] }
 0xa97   :  { %v14921_v30 = vpop.permute.xlu0 %14920 }
 0xa98   :  { %v14923_v44 = vunpack.i.h.bf16 %v14921_v30  ;;  %v14922_v11 = vunpack.i.l.bf16 %v14921_v30 }
 0xa9a   :  { %v20370_v16 = vpop.xlane.xlu1 %8493  ;;  %v14270_v63 = vpack.c.bf16 %v14923_v44, %v14922_v11  ;;  %v21864_v44 = vld [vmem:[#allocation125_spill] sm:$0xff]  ;;  %v21865_v11 = vld [vmem:[#allocation99_spill] sm:$0xff] }
 0xa9c   :  { %14950 = vrot.lane.b32.xlu1 %v21860_v43, %s15772_s22  ;;  %14271 = vmatprep.subr.bf16.mxu1 %v14270_v63 }
 0xa9d   :  { %14273 = vmatpush3.bf16.msra.mxu1 %v14270_v63  ;;  %v15566_v59 = vpop.eup %15565  ;;  %v8227_v63 = vsub.f32 %v21865_v11, %v21864_v44  ;;  %v8353_v44 = vmul.f32 1.442695, %v8230_v3  ;;  %v21874_v3 = vld [vmem:[#allocation94_spill] sm:$0xff] }
 0xa9e   :  { %v14926_v57 = vpop.permute.xlu1 %14925  ;;  %v20383_v13 = vpop.eup %15567  ;;  %v8659_v30 = vmul.f32 %v15566_v59, %v20211_v49 }
 0xa9f   :  { %v14928_v37 = vunpack.i.h.bf16 %v14926_v57  ;;  %v14927_v5 = vunpack.i.l.bf16 %v14926_v57  ;;  %v8528_v28 = vsel %vm149_vm0, %v20383_v13, 0.0  ;;  %v8347_v43 = vmul.f32 1.442695, %v8227_v63 }
 0xaa0   :  { %v20395_v39 = vpop.eup %15569 }
 0xaa1   :  { %v14274_v10 = vpack.c.bf16 %v14928_v37, %v14927_v5  ;;  %15571 = vpow2.f32 %v8347_v43  ;;  %v8525_v49 = vsel %vm149_vm0, %v20395_v39, 0.0  ;;  %v21866_v37 = vld [vmem:[#allocation46_spill] sm:$0xff] }
 0xaa3   :  { %14275 = vmatprep.subr.bf16.mxu1 %v14274_v10 }
 0xaa4   :  { %14277 = vmatpush3.bf16.msra.mxu1 %v14274_v10 }
 0xaa7   :  { %13479 = vmatmul.mubr.msk.f32.vlgmr.msra.gmra.mrb[124].mxu1 %vm149_vm0, %v8652_v31 }
 0xaa8   :  { %13481 = vmatprep.mubr.msk.f32.mxu1 %vm149_vm0, %v8653_v23 }
 0xaa9   :  { %8523 = vadd.xlane.f32.xlu0 %v8522_v52 }
 0xaab   :  { %13482 = vmatmul.mubr.msk.f32.gmra.mrb[126].mxu1 %vm149_vm0, %v8654_v62  ;;  %v20399_v57 = vpop.eup %15571  ;;  %v8349_v62 = vmul.f32 1.442695, %v8228_v34 }
 0xaac   :  { %13506 = vmatprep.mubr.msk.f32.mxu1 %vm149_vm0, %v8659_v30  ;;  %v8531_v5 = vsel %vm149_vm0, %v20399_v57, 0.0 }
 0xaad   :  { %8529 = vadd.xlane.f32.xlu0 %v8528_v28  ;;  %15573 = vpow2.f32 %v8349_v62 }
 0xaae   :  { %15575 = vrcp.f32 %v20255_v15 }
 0xaaf   :  { %15577 = vrcp.f32 %v20289_v17 }
 0xab0   :  { %15579 = vpow2.f32 %v8353_v44 }
 0xab1   :  { %15581 = vrcp.f32 %v20292_v29 }
 0xac0   :  { %8526 = vadd.xlane.f32.xlu1 %v8525_v49 }
 0xac3   :  { %14955 = vrot.lane.b32.xlu0 %v21866_v37, %s15772_s22 }
 0xac4   :  { %8532 = vadd.xlane.f32.xlu1 %v8531_v5 }
 0xac8   :  { %v8497_v10 = vpop.xlane.xlu0 %8496 }
 0xac9   :  { %15583 = vrcp.f32 %v8497_v10  ;;  %v21873_v10 = vld [vmem:[#allocation129_spill] sm:$0xff] }
 0xaca   :  { %v8229_v44 = vsub.f32 %v21874_v3, %v21873_v10 }
 0xacc   :  { %v14931_v31 = vpop.permute.xlu0 %14930 }
 0xacd   :  { %v14933_v27 = vunpack.i.h.bf16 %v14931_v31  ;;  %v14932_v23 = vunpack.i.l.bf16 %v14931_v31 }
 0xacf   :  { %v14278_v59 = vpack.c.bf16 %v14933_v27, %v14932_v23  ;;  %v20407_v52 = vpop.xlane.xlu1 %8499  ;;  %v20436_v27 = vpop.eup %15573 }
 0xad0   :  { %v15576_v23 = vpop.eup %15575  ;;  %v8534_v62 = vsel %vm149_vm0, %v20436_v27, 0.0 }
 0xad1   :  { %14279 = vmatprep.subr.bf16.mxu0 %v14278_v59  ;;  %v8656_v29 = vmul.f32 %v15576_v23, %v20135_v24  ;;  %v21875_v24 = vld [vmem:[#allocation74_spill] sm:$0xff]  ;;  %v21876_v23 = vld [vmem:[#allocation112_spill] sm:$0xff] }
 0xad2   :  { %14281 = vmatpush3.bf16.msra.mxu0 %v14278_v59  ;;  %v15578_v59 = vpop.eup %15577 }
 0xad3   :  { %v20411_v30 = vpop.xlane.xlu1 %8502  ;;  %v20413_v28 = vpop.f32.mrb[156].mxu0 }
 0xad4   :  { %v20415_v11 = vpop.f32.mrb[116].mxu1  ;;  %v20417_v63 = vpop.f32.mrb[157].mxu0 }
 0xad5   :  { %14960 = vrot.lane.b32.xlu1 %v21871_v60, %s15772_s22  ;;  %v20422_v43 = vpop.f32.mrb[117].mxu1  ;;  %v20440_v38 = vpop.eup %15579  ;;  %v8657_v60 = vmul.f32 %v15578_v59, %v20169_v20 }
 0xad6   :  { %v15582_v46 = vpop.eup %15581 }
 0xad7   :  { %v20425_v49 = vpop.xlane.xlu1 %8505  ;;  %v20427_v37 = vpop.f32.mrb[158].mxu0 }
 0xad8   :  { %21872 = vst [vmem:[#allocation80_spill] sm:$0xff] %v20427_v37  ;;  %v20429_v5 = vpop.f32.mrb[118].mxu1  ;;  %v20431_v35 = vpop.f32.mrb[159].mxu0 }
 0xad9   :  { %v20434_v51 = vpop.f32.mrb[119].mxu1 }
 0xadb   :  { %v14936_v15 = vpop.permute.xlu1 %14935 }
 0xadc   :  { %v14938_v34 = vunpack.i.h.bf16 %v14936_v15  ;;  %v14937_v31 = vunpack.i.l.bf16 %v14936_v15  ;;  %v15584_v15 = vpop.eup %15583 }
 0xadd   :  { %v8663_v37 = vmul.f32 %v15584_v15, %v20263_v40  ;;  %v21878_v15 = vld [vmem:[#allocation28_spill] sm:$0xff] }
 0xade   :  { %v14282_v17 = vpack.c.bf16 %v14938_v34, %v14937_v31  ;;  %v8540_v34 = vsel %vm149_vm0, %v20440_v38, 0.0  ;;  %v8658_v31 = vmul.f32 %v15582_v46, %v20171_v61  ;;  %v21877_v61 = vld [vmem:[#allocation52_spill] sm:$0xff] }
 0xae0   :  { %14283 = vmatprep.subr.bf16.mxu0 %v14282_v17 }
 0xae1   :  { %14285 = vmatpush3.bf16.msra.mxu0 %v14282_v17  ;;  %v8351_v17 = vmul.f32 1.442695, %v8229_v44 }
 0xae2   :  { %8535 = vadd.xlane.f32.xlu0 %v8534_v62  ;;  %v8231_v62 = vsub.f32 %v21876_v23, %v21875_v24 }
 0xae3   :  { %15585 = vpow2.f32 %v8351_v17 }
 0xae4   :  { %13493 = vmatmul.mubr.msk.f32.vlgmr.msra.gmra.mrb[164].mxu0 %vm149_vm0, %v8656_v29  ;;  %v8355_v20 = vmul.f32 1.442695, %v8231_v62 }
 0xae5   :  { %13495 = vmatprep.mubr.msk.f32.mxu0 %vm149_vm0, %v8657_v60 }
 0xae6   :  { %8541 = vadd.xlane.f32.xlu0 %v8540_v34  ;;  %15587 = vpow2.f32 %v8355_v20  ;;  %v21879_v34 = vld [vmem:[#allocation111_spill] sm:$0xff] }
 0xae7   :  { %15589 = vrcp.f32 %v20362_v50 }
 0xae8   :  { %13496 = vmatmul.mubr.msk.f32.gmra.mrb[166].mxu0 %vm149_vm0, %v8658_v31  ;;  %15591 = vrcp.f32 %v20364_v9  ;;  %v8232_v31 = vsub.f32 %v21879_v34, %v21878_v15  ;;  %v21881_v9 = vld [vmem:[#allocation118_spill] sm:$0xff] }
 0xae9   :  { %13520 = vmatprep.mubr.msk.f32.mxu0 %vm149_vm0, %v8663_v37  ;;  %15593 = vrcp.f32 %v20370_v16 }
 0xaea   :  { %v8357_v50 = vmul.f32 1.442695, %v8232_v31 }
 0xaed   :  { %v20456_v59 = vpop.eup %15585 }
 0xaee   :  { %v8537_v29 = vsel %vm149_vm0, %v20456_v59, 0.0 }
 0xaf0   :  { %v20460_v10 = vpop.eup %15587 }
 0xaf1   :  { %v8543_v40 = vsel %vm149_vm0, %v20460_v10, 0.0  ;;  %v15590_v20 = vpop.eup %15589 }
 0xaf2   :  { %v8660_v16 = vmul.f32 %v15590_v20, %v20209_v41  ;;  %v21883_v20 = vld [vmem:[#allocation73_spill] sm:$0xff] }
 0xaf9   :  { %8538 = vadd.xlane.f32.xlu1 %v8537_v29  ;;  %v21880_v29 = vld [vmem:[#allocation26_spill] sm:$0xff] }
 0xafc   :  { %14965 = vrot.lane.b32.xlu0 %v21877_v61, %s15772_s22  ;;  %v8234_v61 = vsub.f32 %v21881_v9, %v21880_v29 }
 0xafd   :  { %8544 = vadd.xlane.f32.xlu1 %v8543_v40  ;;  %v8509_v46 = vpop.xlane.xlu0 %8508  ;;  %v15592_v40 = vpop.eup %15591 }
 0xafe   :  { %15595 = vrcp.f32 %v8509_v46 }
 0xaff   :  { %15597 = vpow2.f32 %v8357_v50 }
 0xb01   :  { %v14941_v37 = vpop.permute.xlu0 %14940 }
 0xb02   :  { %v14943_v3 = vunpack.i.h.bf16 %v14941_v37  ;;  %v14942_v44 = vunpack.i.l.bf16 %v14941_v37  ;;  %v15594_v37 = vpop.eup %15593 }
 0xb03   :  { %v8662_v31 = vmul.f32 %v15594_v37, %v20237_v32  ;;  %v21884_v32 = vld [vmem:[#allocation113_spill] sm:$0xff] }
 0xb04   :  { %v14286_v60 = vpack.c.bf16 %v14943_v3, %v14942_v44  ;;  %v8361_v3 = vmul.f32 1.442695, %v8234_v61  ;;  %v8661_v44 = vmul.f32 %v15592_v40, %v20227_v56  ;;  %v8233_v50 = vsub.f32 %v21884_v32, %v21883_v20 }
 0xb05   :  { %v14946_v17 = vpop.permute.xlu0 %14945 }
 0xb06   :  { %v14948_v24 = vunpack.i.h.bf16 %v14946_v17  ;;  %v14947_v23 = vunpack.i.l.bf16 %v14946_v17  ;;  %14287 = vmatprep.subr.bf16.mxu1 %v14286_v60  ;;  %15599 = vpow2.f32 %v8361_v3 }
 0xb07   :  { %14289 = vmatpush3.bf16.msra.mxu1 %v14286_v60  ;;  %v21882_v60 = vld [vmem:[#allocation53_spill] sm:$0xff] }
 0xb08   :  { %v14290_v62 = vpack.c.bf16 %v14948_v24, %v14947_v23  ;;  %v15596_v15 = vpop.eup %15595 }
 0xb09   :  { %v8667_v41 = vmul.f32 %v15596_v15, %v20313_v53  ;;  %v20489_v17 = vpop.eup %15597 }
 0xb0a   :  { %14291 = vmatprep.subr.bf16.mxu1 %v14290_v62  ;;  %v8546_v23 = vsel %vm149_vm0, %v20489_v17, 0.0 }
 0xb0b   :  { %14293 = vmatpush3.bf16.msra.mxu1 %v14290_v62 }
 0xb0c   :  { %v20474_v46 = vpop.xlane.xlu1 %8511 }
 0xb0e   :  { %14970 = vrot.lane.b32.xlu1 %v21882_v60, %s15772_s22  ;;  %13507 = vmatmul.mubr.msk.f32.vlgmr.msra.gmra.mrb[128].mxu1 %vm149_vm0, %v8660_v16  ;;  %v8359_v16 = vmul.f32 1.442695, %v8233_v50  ;;  %v21886_v60 = vld [vmem:[#allocation86_spill] sm:$0xff] }
 0xb0f   :  { %13509 = vmatprep.mubr.msk.f32.mxu1 %vm149_vm0, %v8661_v44  ;;  %v21885_v44 = vld [vmem:[#allocation54_spill] sm:$0xff] }
 0xb10   :  { %v20481_v34 = vpop.xlane.xlu1 %8514  ;;  %v20493_v62 = vpop.eup %15599  ;;  %15601 = vpow2.f32 %v8359_v16 }
 0xb11   :  { %v8552_v61 = vsel %vm149_vm0, %v20493_v62, 0.0  ;;  %15603 = vrcp.f32 %v20407_v52 }
 0xb12   :  { %13510 = vmatmul.mubr.msk.f32.gmra.mrb[130].mxu1 %vm149_vm0, %v8662_v31  ;;  %15605 = vrcp.f32 %v20411_v30 }
 0xb13   :  { %13534 = vmatprep.mubr.msk.f32.mxu1 %vm149_vm0, %v8667_v41  ;;  %15607 = vrcp.f32 %v20425_v49  ;;  %v21887_v41 = vld [vmem:[#allocation88_spill] sm:$0xff] }
 0xb14   :  { %v20487_v56 = vpop.xlane.xlu1 %8517 }
 0xb18   :  { %v8521_v24 = vpop.xlane.xlu1 %8520 }
 0xb19   :  { %15609 = vrcp.f32 %v8521_v24 }
 0xb1a   :  { %v20499_v37 = vpop.eup %15601  ;;  %15611 = vrcp.f32 %v20474_v46 }
 0xb1b   :  { %8547 = vadd.xlane.f32.xlu0 %v8546_v23  ;;  %v8549_v3 = vsel %vm149_vm0, %v20499_v37, 0.0  ;;  %v15604_v24 = vpop.eup %15603  ;;  %15613 = vrcp.f32 %v20481_v34 }
 0xb1c   :  { %v14951_v29 = vpop.permute.xlu1 %14950  ;;  %v15606_v16 = vpop.eup %15605  ;;  %15615 = vrcp.f32 %v20487_v56 }
 0xb1d   :  { %v14953_v53 = vunpack.i.h.bf16 %v14951_v29  ;;  %v14952_v9 = vunpack.i.l.bf16 %v14951_v29 }
 0xb1f   :  { %v14294_v40 = vpack.c.bf16 %v14953_v53, %v14952_v9  ;;  %8553 = vadd.xlane.f32.xlu0 %v8552_v61  ;;  %v21888_v9 = vld [vmem:[#allocation90_spill] sm:$0xff] }
 0xb21   :  { %14295 = vmatprep.subr.bf16.mxu0 %v14294_v40 }
 0xb22   :  { %14297 = vmatpush3.bf16.msra.mxu0 %v14294_v40 }
 0xb32   :  { %8550 = vadd.xlane.f32.xlu1 %v8549_v3  ;;  %v21889_v3 = vld [vmem:[#allocation58_spill] sm:$0xff] }
 0xb35   :  { %14975 = vrot.lane.b32.xlu0 %v21885_v44, %s15772_s22 }
 0xb36   :  { %v20505_v15 = vpop.xlane.xlu0 %8523 }
 0xb39   :  { %14985 = vrot.lane.b32.xlu0 %v21886_v60, %s15772_s22  ;;  %v8664_v60 = vmul.f32 %v15604_v24, %v20267_v26 }
 0xb3a   :  { %v20511_v31 = vpop.xlane.xlu0 %8529 }
 0xb3d   :  { %14990 = vrot.lane.b32.xlu0 %v21887_v41, %s15772_s22  ;;  %v20516_v23 = vpop.f32.mrb[160].mxu0  ;;  %v15608_v41 = vpop.eup %15607 }
 0xb3e   :  { %v20518_v20 = vpop.f32.mrb[161].mxu0  ;;  %v14956_v32 = vpop.permute.xlu0 %14955 }
 0xb3f   :  { %v14958_v50 = vunpack.i.h.bf16 %v14956_v32  ;;  %v14957_v52 = vunpack.i.l.bf16 %v14956_v32  ;;  %v20520_v29 = vpop.f32.mrb[120].mxu1  ;;  %v8665_v32 = vmul.f32 %v15606_v16, %v20271_v45 }
 0xb40   :  { %v20522_v30 = vpop.f32.mrb[121].mxu1 }
 0xb41   :  { %v14298_v53 = vpack.c.bf16 %v14958_v50, %v14957_v52  ;;  %14995 = vrot.lane.b32.xlu0 %v21888_v9, %s15772_s22  ;;  %v13469_v49 = vpop.f32.mrb[162].mxu0  ;;  %v15610_v50 = vpop.eup %15609  ;;  %v8666_v52 = vmul.f32 %v15608_v41, %v20275_v19 }
 0xb42   :  { %v20526_v61 = vpop.f32.mrb[122].mxu1  ;;  %v9546_v40 = vpop.f32.mrb[163].mxu0  ;;  %v8671_v9 = vmul.f32 %v15610_v50, %v20354_v21 }
 0xb43   :  { %14980 = vrot.lane.b32.xlu1 %v21889_v3, %s15772_s22  ;;  %v20530_v44 = vpop.f32.mrb[123].mxu1  ;;  %14299 = vmatprep.subr.bf16.mxu0 %v14298_v53  ;;  %v15612_v50 = vpop.eup %15611 }
 0xb44   :  { %14301 = vmatpush3.bf16.msra.mxu0 %v14298_v53  ;;  %v8668_v46 = vmul.f32 %v15612_v50, %v20340_v25 }
 0xb45   :  { %10551 = vrot.lane.b32.xlu0 %v9546_v40, %s15773_s23 }
 0xb47   :  { %10553 = vrot.lane.b32.xlu1 %v13469_v49, %s15773_s23  ;;  %13521 = vmatmul.mubr.msk.f32.vlgmr.msra.gmra.mrb[168].mxu0 %vm149_vm0, %v8664_v60 }
 0xb48   :  { %13523 = vmatprep.mubr.msk.f32.mxu0 %vm149_vm0, %v8665_v32 }
 0xb4b   :  { %13524 = vmatmul.mubr.msk.f32.gmra.mrb[170].mxu0 %vm149_vm0, %v8666_v52 }
 0xb4c   :  { %13548 = vmatprep.mubr.msk.f32.mxu0 %vm149_vm0, %v8671_v9  ;;  %v15614_v9 = vpop.eup %15613 }
 0xb4d   :  { %v8527_v26 = vpop.xlane.xlu1 %8526 }
 0xb51   :  { %v8533_v53 = vpop.xlane.xlu1 %8532 }
 0xb52   :  { %15617 = vrcp.f32 %v8533_v53  ;;  %v8669_v53 = vmul.f32 %v15614_v9, %v20344_v6 }
 0xb53   :  { %15619 = vrcp.f32 %v20505_v15 }
 0xb54   :  { %15621 = vrcp.f32 %v8527_v26 }
 0xb55   :  { %v14961_v24 = vpop.permute.xlu1 %14960  ;;  %15623 = vrcp.f32 %v20511_v31 }
 0xb56   :  { %v14963_v40 = vunpack.i.h.bf16 %v14961_v24  ;;  %v14962_v45 = vunpack.i.l.bf16 %v14961_v24  ;;  %v15616_v24 = vpop.eup %15615 }
 0xb58   :  { %v14302_v16 = vpack.c.bf16 %v14963_v40, %v14962_v45  ;;  %v8670_v45 = vmul.f32 %v15616_v24, %v20348_v54 }
 0xb5a   :  { %14303 = vmatprep.subr.bf16.mxu1 %v14302_v16 }
 0xb5b   :  { %14305 = vmatpush3.bf16.msra.mxu1 %v14302_v16 }
 0xb5c   :  { %v15618_v40 = vpop.eup %15617 }
 0xb5d   :  { %v8675_v16 = vmul.f32 %v15618_v40, %v20399_v57 }
 0xb6f   :  { %v20542_v49 = vpop.xlane.xlu0 %8535 }
 0xb73   :  { %v20546_v19 = vpop.xlane.xlu0 %8541 }
 0xb77   :  { %v14966_v21 = vpop.permute.xlu0 %14965 }
 0xb78   :  { %v14968_v3 = vunpack.i.h.bf16 %v14966_v21  ;;  %v14967_v60 = vunpack.i.l.bf16 %v14966_v21 }
 0xb7a   :  { %v14306_v41 = vpack.c.bf16 %v14968_v3, %v14967_v60  ;;  %v13480_v32 = vpop.f32.mrb[124].mxu1 }
 0xb7b   :  { %10557 = vrot.lane.b32.xlu1 %v13480_v32, %s15773_s23  ;;  %v9645_v52 = vpop.f32.mrb[125].mxu1 }
 0xb7c   :  { %14307 = vmatprep.subr.bf16.mxu1 %v14306_v41  ;;  %10555 = vrot.lane.b32.xlu0 %v9645_v52, %s15773_s23 }
 0xb7d   :  { %14309 = vmatpush3.bf16.msra.mxu1 %v14306_v41 }
 0xb7e   :  { %v13483_v34 = vpop.f32.mrb[126].mxu1 }
 0xb7f   :  { %v9655_v56 = vpop.f32.mrb[127].mxu1 }
 0xb80   :  { %13535 = vmatmul.mubr.msk.f32.vlgmr.msra.gmra.mrb[132].mxu1 %vm149_vm0, %v8668_v46  ;;  %10491 = vrot.lane.b32.xlu0 %v20179_v2, %s15773_s23  ;;  %v10747_v46 = vld [vmem:[#allocation8] sm:$0xff] }
 0xb81   :  { %10559 = vrot.lane.b32.xlu1 %v9655_v56, %s15773_s23  ;;  %13537 = vmatprep.mubr.msk.f32.mxu1 %vm149_vm0, %v8669_v53  ;;  %v10750_v53 = vld [vmem:[#allocation8 + $0x18] sm:$0xff] }
 0xb84   :  { %13538 = vmatmul.mubr.msk.f32.gmra.mrb[134].mxu1 %vm149_vm0, %v8670_v45  ;;  %10493 = vrot.lane.b32.xlu0 %v20177_v8, %s15773_s23 }
 0xb85   :  { %10561 = vrot.lane.b32.xlu1 %v13483_v34, %s15773_s23  ;;  %13562 = vmatprep.mubr.msk.f32.mxu1 %vm149_vm0, %v8675_v16  ;;  %v10748_v34 = vld [vmem:[#allocation8 + $0x8] sm:$0xff] }
 0xb86   :  { %v20565_v25 = vpop.xlane.xlu1 %8538 }
 0xb88   :  { %10495 = vrot.lane.b32.xlu0 %v20183_v4, %s15773_s23 }
 0xb8a   :  { %v8545_v2 = vpop.xlane.xlu1 %8544 }
 0xb8b   :  { %15625 = vrcp.f32 %v8545_v2 }
 0xb8c   :  { %10497 = vrot.lane.b32.xlu0 %v20181_v42, %s15773_s23 }
 0xb8e   :  { %v14971_v6 = vpop.permute.xlu1 %14970 }
 0xb8f   :  { %v14973_v54 = vunpack.i.h.bf16 %v14971_v6  ;;  %v14972_v57 = vunpack.i.l.bf16 %v14971_v6 }
 0xb90   :  { %10499 = vrot.lane.b32.xlu0 %v20243_v33, %s15773_s23 }
 0xb91   :  { %v14310_v8 = vpack.c.bf16 %v14973_v54, %v14972_v57 }
 0xb93   :  { %14311 = vmatprep.subr.bf16.mxu0 %v14310_v8 }
 0xb94   :  { %14313 = vmatpush3.bf16.msra.mxu0 %v14310_v8  ;;  %10501 = vrot.lane.b32.xlu0 %v20241_v47, %s15773_s23 }
 0xb98   :  { %10503 = vrot.lane.b32.xlu0 %v20247_v55, %s15773_s23 }
 0xb9c   :  { %10505 = vrot.lane.b32.xlu0 %v20245_v22, %s15773_s23 }
 0xba0   :  { %10507 = vrot.lane.b32.xlu0 %v20309_v18, %s15773_s23 }
 0xba4   :  { %10509 = vrot.lane.b32.xlu0 %v20303_v48, %s15773_s23  ;;  %v15620_v48 = vpop.eup %15619 }
 0xba8   :  { %v8548_v42 = vpop.xlane.xlu0 %8547  ;;  %10511 = vrot.lane.b32.xlu0 %v20329_v0, %s15773_s23  ;;  %v15622_v0 = vpop.eup %15621 }
 0xba9   :  { %15627 = vrcp.f32 %v8548_v42  ;;  %v15624_v31 = vpop.eup %15623 }
 0xbaa   :  { %v8674_v32 = vmul.f32 %v15624_v31, %v20383_v13 }
 0xbac   :  { %v8554_v4 = vpop.xlane.xlu0 %8553  ;;  %10513 = vrot.lane.b32.xlu0 %v20323_v7, %s15773_s23  ;;  %v8672_v7 = vmul.f32 %v15620_v48, %v20375_v14 }
 0xbad   :  { %15629 = vrcp.f32 %v8554_v4 }
 0xbb0   :  { %v14976_v47 = vpop.permute.xlu0 %14975  ;;  %10515 = vrot.lane.b32.xlu0 %v20305_v58, %s15773_s23  ;;  %v8673_v58 = vmul.f32 %v15622_v0, %v20395_v39 }
 0xbb1   :  { %v14978_v33 = vunpack.i.h.bf16 %v14976_v47  ;;  %v14977_v22 = vunpack.i.l.bf16 %v14976_v47 }
 0xbb3   :  { %v14314_v55 = vpack.c.bf16 %v14978_v33, %v14977_v22 }
 0xbb4   :  { %v20591_v18 = vpop.permute.xlu0 %14985  ;;  %10517 = vrot.lane.b32.xlu0 %v20300_v36, %s15773_s23  ;;  %v15626_v36 = vpop.eup %15625 }
 0xbb5   :  { %14315 = vmatprep.subr.bf16.mxu0 %v14314_v55  ;;  %v8679_v9 = vmul.f32 %v15626_v36, %v20460_v10  ;;  %v15628_v56 = vpop.eup %15627  ;;  %v10749_v10 = vld [vmem:[#allocation8 + $0x10] sm:$0xff]  ;;  %v14988_v16 = vunpack.i.h.bf16 %v20591_v18  ;;  %v14987_v2 = vunpack.i.l.bf16 %v20591_v18  ;;  %v21898_v36 = vld [vmem:[#allocation95_spill] sm:$0xff] }
 0xbb6   :  { %14317 = vmatpush3.bf16.msra.mxu0 %v14314_v55  ;;  %v8680_v40 = vmul.f32 %v15628_v56, %v20489_v17  ;;  %v21893_v18 = vld [vmem:[#allocation153_spill] sm:$0xff] }
 0xbb7   :  { %v13494_v15 = vpop.f32.mrb[164].mxu0  ;;  %v14322_v17 = vpack.c.bf16 %v14988_v16, %v14987_v2  ;;  %v15630_v54 = vpop.eup %15629  ;;  %v21905_v2 = vld [vmem:[#allocation149_spill] sm:$0xff] }
 0xbb8   :  { %v14991_v26 = vpop.permute.xlu0 %14990  ;;  %v9754_v21 = vpop.f32.mrb[165].mxu0  ;;  %10519 = vrot.lane.b32.xlu0 %v20325_v12, %s15773_s23  ;;  %v8682_v42 = vmul.f32 %v15630_v54, %v20493_v62  ;;  %v21890_v62 = vld [vmem:[#allocation147_spill] sm:$0xff] }
 0xbb9   :  { %v14993_v3 = vunpack.i.h.bf16 %v14991_v26  ;;  %v14992_v60 = vunpack.i.l.bf16 %v14991_v26  ;;  %13549 = vmatmul.mubr.msk.f32.vlgmr.msra.gmra.mrb[172].mxu0 %vm149_vm0, %v8672_v7  ;;  %10563 = vrot.lane.b32.xlu1 %v9754_v21, %s15773_s23  ;;  %v21896_v26 = vld [vmem:[#allocation141_spill] sm:$0xff] }
 0xbba   :  { %13551 = vmatprep.mubr.msk.f32.mxu0 %vm149_vm0, %v8673_v58  ;;  %v21897_v58 = vld [vmem:[#allocation131_spill] sm:$0xff] }
 0xbbb   :  { %v14326_v41 = vpack.c.bf16 %v14993_v3, %v14992_v60  ;;  %v13497_v14 = vpop.f32.mrb[166].mxu0 }
 0xbbc   :  { %v14996_v50 = vpop.permute.xlu0 %14995  ;;  %v9764_v52 = vpop.f32.mrb[167].mxu0  ;;  %10521 = vrot.lane.b32.xlu0 %v20319_v1, %s15773_s23  ;;  %v14334_v1 = vpack.c.bf16 %v10748_v34, %v10747_v46 }
 0xbbd   :  { %v14998_v12 = vunpack.i.h.bf16 %v14996_v50  ;;  %v14997_v39 = vunpack.i.l.bf16 %v14996_v50  ;;  %13552 = vmatmul.mubr.msk.f32.gmra.mrb[174].mxu0 %vm149_vm0, %v8674_v32  ;;  %14327 = vmatprep.subr.bf16.mxu0 %v14326_v41  ;;  %v21899_v32 = vld [vmem:[#allocation57_spill] sm:$0xff] }
 0xbbe   :  { %10565 = vrot.lane.b32.xlu1 %v13494_v15, %s15773_s23  ;;  %14329 = vmatpush3.bf16.msra.mxu0 %v14326_v41  ;;  %v21895_v15 = vld [vmem:[#allocation44_spill] sm:$0xff] }
 0xbbf   :  { %v14330_v24 = vpack.c.bf16 %v14998_v12, %v14997_v39  ;;  %13576 = vmatprep.mubr.msk.f32.mxu0 %vm149_vm0, %v8679_v9  ;;  %v8551_v13 = vpop.xlane.xlu1 %8550  ;;  %v21901_v9 = vld [vmem:[#allocation61_spill] sm:$0xff] }
 0xbc0   :  { %15631 = vrcp.f32 %v8551_v13  ;;  %10523 = vrot.lane.b32.xlu0 %v20422_v43, %s15773_s23 }
 0xbc1   :  { %15633 = vrcp.f32 %v20542_v49  ;;  %14331 = vmatprep.subr.bf16.mxu0 %v14330_v24  ;;  %v14338_v49 = vpack.c.bf16 %v10750_v53, %v10749_v10 }
 0xbc2   :  { %15635 = vrcp.f32 %v20565_v25  ;;  %10567 = vrot.lane.b32.xlu1 %v9764_v52, %s15773_s23  ;;  %14333 = vmatpush3.bf16.msra.mxu0 %v14330_v24  ;;  %v21900_v52 = vld [vmem:[#allocation151_spill] sm:$0xff]  ;;  %v21902_v24 = vld [vmem:[#allocation82_spill] sm:$0xff] }
 0xbc3   :  { %v14981_v45 = vpop.permute.xlu1 %14980  ;;  %14335 = vmatprep.subr.bf16.mxu0 %v14334_v1  ;;  %15637 = vrcp.f32 %v20546_v19 }
 0xbc4   :  { %v14983_v43 = vunpack.i.h.bf16 %v14981_v45  ;;  %v14982_v6 = vunpack.i.l.bf16 %v14981_v45  ;;  %10525 = vrot.lane.b32.xlu0 %v20415_v11, %s15773_s23 }
 0xbc5   :  { %13577 = vmatmul.mubr.msk.f32.vlgmr.msra.gmra.mrb[176].mxu0 %vm149_vm0, %v8680_v40  ;;  %v21904_v40 = vld [vmem:[#allocation152_spill] sm:$0xff] }
 0xbc6   :  { %v14318_v25 = vpack.c.bf16 %v14983_v43, %v14982_v6  ;;  %10569 = vrot.lane.b32.xlu1 %v13497_v14, %s15773_s23  ;;  %14337 = vmatpush3.bf16.msra.mxu0 %v14334_v1 }
 0xbc7   :  { %14339 = vmatprep.subr.bf16.mxu0 %v14338_v49  ;;  %v10554_v33 = vpop.permute.xlu1 %10553 }
 0xbc8   :  { %14319 = vmatprep.subr.bf16.mxu1 %v14318_v25  ;;  %10527 = vrot.lane.b32.xlu0 %v20434_v51, %s15773_s23 }
 0xbc9   :  { %14321 = vmatpush3.bf16.msra.mxu1 %v14318_v25 }
 0xbca   :  { %v15632_v57 = vpop.eup %15631  ;;  %14323 = vmatprep.subr.bf16.mxu1 %v14322_v17  ;;  %14341 = vmatpush3.bf16.msra.mxu0 %v14338_v49 }
 0xbcb   :  { %v15634_v11 = vpop.eup %15633  ;;  %v8681_v19 = vmul.f32 %v15632_v57, %v20499_v37  ;;  %v10552_v37 = vpop.permute.xlu0 %10551  ;;  %v21907_v57 = vld [vmem:[#allocation76_spill] sm:$0xff] }
 0xbcc   :  { %v15636_v8 = vpop.eup %15635  ;;  %10529 = vrot.lane.b32.xlu0 %v20429_v5, %s15773_s23  ;;  %v8676_v4 = vmul.f32 %v15634_v11, %v20436_v27  ;;  %v10713_v27 = vsel %vm1793_vm1, %v21890_v62, %v10552_v37 }
 0xbcd   :  { %14325 = vmatpush3.bf16.msra.mxu1 %v14322_v17  ;;  %13579 = vmatprep.mubr.msk.f32.mxu0 %vm149_vm0, %v8681_v19  ;;  %v15638_v51 = vpop.eup %15637  ;;  %v8677_v47 = vmul.f32 %v15636_v8, %v20456_v59 }
 0xbce   :  { %13580 = vmatmul.mubr.msk.f32.gmra.mrb[178].mxu0 %vm149_vm0, %v8682_v42  ;;  %14342 = vmatprep.subr.bf16.mxu1 %v14334_v1  ;;  %v8678_v5 = vmul.f32 %v15638_v51, %v20440_v38  ;;  %v21892_v38 = vld [vmem:[#allocation80_spill] sm:$0xff] }
 0xbd0   :  { %13563 = vmatmul.mubr.msk.f32.vlgmr.msra.gmra.mrb[136].mxu1 %vm149_vm0, %v8676_v4  ;;  %10531 = vrot.lane.b32.xlu0 %v20417_v63, %s15773_s23  ;;  %v21891_v63 = vld [vmem:[#allocation22_spill] sm:$0xff]  ;;  %v21908_v4 = vld [vmem:[#allocation67_spill] sm:$0xff] }
 0xbd1   :  { %13565 = vmatprep.mubr.msk.f32.mxu1 %vm149_vm0, %v8677_v47  ;;  %14344 = vmatpush3.bf16.msra.mxu1 %v14334_v1  ;;  %v10714_v59 = vsel %vm1793_vm1, %v21891_v63, %v10554_v33  ;;  %v21903_v1 = vld [vmem:[#allocation79_spill] sm:$0xff] }
 0xbd2   :  { %14343 = vmatprep.subr.bf16.mxu1 %v14338_v49  ;;  %v21910_v33 = vld [vmem:[#allocation83_spill] sm:$0xff] }
 0xbd4   :  { %13566 = vmatmul.mubr.msk.f32.gmra.mrb[138].mxu1 %vm149_vm0, %v8678_v5  ;;  %10533 = vrot.lane.b32.xlu0 %v20413_v28, %s15773_s23  ;;  %v21909_v5 = vld [vmem:[#allocation89_spill] sm:$0xff] }
 0xbd5   :  { %14345 = vmatpush3.bf16.msra.mxu1 %v14338_v49  ;;  %13635 = vmatprep.mubr.msk.f32.mxu1 %vm149_vm0, %v10713_v27  ;;  %v21906_v49 = vld [vmem:[#allocation150_spill] sm:$0xff] }
 0xbd8   :  { %13636 = vmatmul.mubr.msk.f32.vlgmr.msra.gmra.mrb[140].mxu1 %vm149_vm0, %v10714_v59  ;;  %10535 = vrot.lane.b32.xlu0 %v20431_v35, %s15773_s23 }
 0xbdc   :  { %10537 = vrot.lane.b32.xlu0 %v21892_v38, %s15773_s23  ;;  %v21911_v38 = vld [vmem:[#allocation96_spill] sm:$0xff] }
 0xbe0   :  { %10539 = vrot.lane.b32.xlu0 %v20522_v30, %s15773_s23 }
 0xbe1   :  { %v13508_v22 = vpop.f32.mrb[128].mxu1 }
 0xbe2   :  { %v9863_v55 = vpop.f32.mrb[129].mxu1 }
 0xbe3   :  { %10571 = vrot.lane.b32.xlu1 %v9863_v55, %s15773_s23 }
 0xbe4   :  { %10541 = vrot.lane.b32.xlu0 %v20520_v29, %s15773_s23  ;;  %v21894_v29 = vld [vmem:[#allocation134_spill] sm:$0xff] }
 0xbe5   :  { %v13511_v28 = vpop.f32.mrb[130].mxu1 }
 0xbe6   :  { %v9873_v48 = vpop.f32.mrb[131].mxu1 }
 0xbe7   :  { %10573 = vrot.lane.b32.xlu1 %v13508_v22, %s15773_s23 }
 0xbe8   :  { %10543 = vrot.lane.b32.xlu0 %v20530_v44, %s15773_s23 }
 0xbeb   :  { %10575 = vrot.lane.b32.xlu1 %v9873_v48, %s15773_s23 }
 0xbec   :  { %10545 = vrot.lane.b32.xlu0 %v20526_v61, %s15773_s23 }
 0xbed   :  { %v10558_v35 = vpop.permute.xlu1 %10557 }
 0xbee   :  { %v10556_v30 = vpop.permute.xlu0 %10555  ;;  %v10716_v7 = vsel %vm1793_vm1, %v21894_v29, %v10558_v35  ;;  %v21914_v29 = vld [vmem:[#allocation24_spill] sm:$0xff] }
 0xbef   :  { %v10715_v0 = vsel %vm1793_vm1, %v21893_v18, %v10556_v30  ;;  %10577 = vrot.lane.b32.xlu1 %v13511_v28, %s15773_s23  ;;  %v21912_v28 = vld [vmem:[#allocation32_spill] sm:$0xff]  ;;  %v21913_v30 = vld [vmem:[#allocation87_spill] sm:$0xff] }
 0xbf0   :  { %10547 = vrot.lane.b32.xlu0 %v20518_v20, %s15773_s23  ;;  %13638 = vmatprep.mubr.msk.f32.mxu1 %vm149_vm0, %v10715_v0 }
 0xbf1   :  { %13639 = vmatmul.mubr.msk.f32.gmra.mrb[142].mxu1 %vm149_vm0, %v10716_v7 }
 0xbf2   :  { %v10492_v44 = vpop.permute.xlu0 %10491 }
 0xbf3   :  { %v10683_v61 = vsel %vm1793_vm1, %v21895_v15, %v10492_v44  ;;  %v10560_v31 = vpop.permute.xlu1 %10559  ;;  %v21915_v15 = vld [vmem:[#allocation78_spill] sm:$0xff] }
 0xbf4   :  { %v10717_v21 = vsel %vm1793_vm1, %v21896_v26, %v10560_v31  ;;  %10549 = vrot.lane.b32.xlu0 %v20516_v23, %s15773_s23  ;;  %13590 = vmatprep.mubr.msk.f32.mxu0 %vm149_vm0, %v10683_v61  ;;  %v21916_v26 = vld [vmem:[#allocation38_spill] sm:$0xff] }
 0xbf5   :  { %13641 = vmatprep.mubr.msk.f32.mxu1 %vm149_vm0, %v10717_v21 }
 0xbf6   :  { %v10494_v20 = vpop.permute.xlu0 %10493 }
 0xbf7   :  { %v10684_v3 = vsel %vm1793_vm1, %v21897_v58, %v10494_v20  ;;  %v10562_v60 = vpop.permute.xlu1 %10561  ;;  %v21917_v58 = vld [vmem:[#allocation127_spill] sm:$0xff] }
 0xbf8   :  { %v10718_v41 = vsel %vm1793_vm1, %v21898_v36, %v10562_v60  ;;  %13591 = vmatmul.mubr.msk.f32.vlgmr.msra.gmra.mrb[180].mxu0 %vm149_vm0, %v10684_v3  ;;  %v21918_v36 = vld [vmem:[#allocation132_spill] sm:$0xff] }
 0xbf9   :  { %13642 = vmatmul.mubr.msk.f32.gmra.mrb[144].mxu1 %vm149_vm0, %v10718_v41 }
 0xbfa   :  { %v10496_v14 = vpop.permute.xlu0 %10495 }
 0xbfb   :  { %v10685_v23 = vsel %vm1793_vm1, %v21899_v32, %v10496_v14  ;;  %v21919_v32 = vld [vmem:[#allocation72_spill] sm:$0xff] }
 0xbfc   :  { %13593 = vmatprep.mubr.msk.f32.mxu0 %vm149_vm0, %v10685_v23 }
 0xbfe   :  { %v10498_v50 = vpop.permute.xlu0 %10497 }
 0xbff   :  { %v10686_v12 = vsel %vm1793_vm1, %v21900_v52, %v10498_v50  ;;  %v21920_v52 = vld [vmem:[#allocation71_spill] sm:$0xff] }
 0xc00   :  { %13594 = vmatmul.mubr.msk.f32.gmra.mrb[182].mxu0 %vm149_vm0, %v10686_v12 }
 0xc02   :  { %v10500_v39 = vpop.permute.xlu0 %10499 }
 0xc03   :  { %v10687_v46 = vsel %vm1793_vm1, %v21901_v9, %v10500_v39  ;;  %v21921_v9 = vld [vmem:[#allocation107_spill] sm:$0xff] }
 0xc04   :  { %13596 = vmatprep.mubr.msk.f32.mxu0 %vm149_vm0, %v10687_v46 }
 0xc06   :  { %v10502_v34 = vpop.permute.xlu0 %10501 }
 0xc07   :  { %v10688_v13 = vsel %vm1793_vm1, %v21902_v24, %v10502_v34  ;;  %v21922_v24 = vld [vmem:[#allocation98_spill] sm:$0xff] }
 0xc08   :  { %13597 = vmatmul.mubr.msk.f32.gmra.mrb[184].mxu0 %vm149_vm0, %v10688_v13 }
 0xc0a   :  { %v10504_v56 = vpop.permute.xlu0 %10503 }
 0xc0b   :  { %v10689_v10 = vsel %vm1793_vm1, %v21903_v1, %v10504_v56  ;;  %v21923_v1 = vld [vmem:[#allocation137_spill] sm:$0xff] }
 0xc0c   :  { %13599 = vmatprep.mubr.msk.f32.mxu0 %vm149_vm0, %v10689_v10 }
 0xc0e   :  { %v10506_v53 = vpop.permute.xlu0 %10505 }
 0xc0f   :  { %v10690_v45 = vsel %vm1793_vm1, %v21904_v40, %v10506_v53  ;;  %v21924_v40 = vld [vmem:[#allocation148_spill] sm:$0xff] }
 0xc10   :  { %13600 = vmatmul.mubr.msk.f32.gmra.mrb[186].mxu0 %vm149_vm0, %v10690_v45 }
 0xc12   :  { %v10508_v16 = vpop.permute.xlu0 %10507 }
 0xc13   :  { %v10691_v43 = vsel %vm1793_vm1, %v21905_v2, %v10508_v16  ;;  %v21925_v2 = vld [vmem:[#allocation142_spill] sm:$0xff] }
 0xc14   :  { %13602 = vmatprep.mubr.msk.f32.mxu0 %vm149_vm0, %v10691_v43 }
 0xc16   :  { %v10510_v6 = vpop.permute.xlu0 %10509 }
 0xc17   :  { %v10692_v25 = vsel %vm1793_vm1, %v21906_v49, %v10510_v6 }
 0xc18   :  { %13603 = vmatmul.mubr.msk.f32.gmra.mrb[188].mxu0 %vm149_vm0, %v10692_v25 }
 0xc1a   :  { %v13522_v17 = vpop.f32.mrb[168].mxu0  ;;  %v10512_v54 = vpop.permute.xlu0 %10511 }
 0xc1b   :  { %v10693_v11 = vsel %vm1793_vm1, %v21907_v57, %v10512_v54  ;;  %v9972_v19 = vpop.f32.mrb[169].mxu0 }
 0xc1c   :  { %13605 = vmatprep.mubr.msk.f32.mxu0 %vm149_vm0, %v10693_v11  ;;  %10579 = vrot.lane.b32.xlu1 %v9972_v19, %s15773_s23  ;;  %v21927_v11 = vld [vmem:[#allocation154_spill] sm:$0xff] }
 0xc1e   :  { %v13525_v8 = vpop.f32.mrb[170].mxu0  ;;  %v10514_v42 = vpop.permute.xlu0 %10513 }
 0xc1f   :  { %v10694_v51 = vsel %vm1793_vm1, %v21908_v4, %v10514_v42  ;;  %v9982_v47 = vpop.f32.mrb[171].mxu0 }
 0xc20   :  { %13606 = vmatmul.mubr.msk.f32.gmra.mrb[190].mxu0 %vm149_vm0, %v10694_v51  ;;  %10581 = vrot.lane.b32.xlu1 %v13522_v17, %s15773_s23  ;;  %v21926_v17 = vld [vmem:[#allocation101_spill] sm:$0xff]  ;;  %v21928_v51 = vld [vmem:[#allocation138_spill] sm:$0xff] }
 0xc22   :  { %v10516_v37 = vpop.permute.xlu0 %10515 }
 0xc23   :  { %v10695_v62 = vsel %vm1793_vm1, %v21909_v5, %v10516_v37  ;;  %v21929_v5 = vld [vmem:[#allocation155_spill] sm:$0xff] }
 0xc24   :  { %13608 = vmatprep.mubr.msk.f32.mxu0 %vm149_vm0, %v10695_v62  ;;  %10583 = vrot.lane.b32.xlu1 %v9982_v47, %s15773_s23 }
 0xc26   :  { %v10518_v27 = vpop.permute.xlu0 %10517 }
 0xc27   :  { %v10696_v63 = vsel %vm1793_vm1, %v21910_v33, %v10518_v27  ;;  %v21930_v33 = vld [vmem:[#allocation136_spill] sm:$0xff] }
 0xc28   :  { %13609 = vmatmul.mubr.msk.f32.gmra.mrb[192].mxu0 %vm149_vm0, %v10696_v63  ;;  %10585 = vrot.lane.b32.xlu1 %v13525_v8, %s15773_s23 }
 0xc2a   :  { %v10520_v59 = vpop.permute.xlu0 %10519 }
 0xc2b   :  { %v10697_v22 = vsel %vm1793_vm1, %v21911_v38, %v10520_v59  ;;  %v10564_v55 = vpop.permute.xlu1 %10563  ;;  %v21931_v38 = vld [vmem:[#allocation156_spill] sm:$0xff] }
 0xc2c   :  { %v10719_v48 = vsel %vm1793_vm1, %v21912_v28, %v10564_v55  ;;  %13611 = vmatprep.mubr.msk.f32.mxu0 %vm149_vm0, %v10697_v22  ;;  %v21932_v28 = vld [vmem:[#allocation144_spill] sm:$0xff] }
 0xc2d   :  { %13644 = vmatprep.mubr.msk.f32.mxu1 %vm149_vm0, %v10719_v48 }
 0xc2e   :  { %v10522_v35 = vpop.permute.xlu0 %10521 }
 0xc2f   :  { %v10698_v18 = vsel %vm1793_vm1, %v21913_v30, %v10522_v35  ;;  %v21933_v30 = vld [vmem:[#allocation29_spill] sm:$0xff] }
 0xc30   :  { %v10566_v0 = vpop.permute.xlu1 %10565  ;;  %13612 = vmatmul.mubr.msk.f32.gmra.mrb[194].mxu0 %vm149_vm0, %v10698_v18 }
 0xc31   :  { %v10720_v7 = vsel %vm1793_vm1, %v21914_v29, %v10566_v0  ;;  %v21934_v29 = vld [vmem:[#allocation135_spill] sm:$0xff] }
 0xc32   :  { %13645 = vmatmul.mubr.msk.f32.gmra.mrb[146].mxu1 %vm149_vm0, %v10720_v7  ;;  %v10524_v44 = vpop.permute.xlu0 %10523 }
 0xc33   :  { %v10699_v61 = vsel %vm1793_vm1, %v21915_v15, %v10524_v44 }
 0xc34   :  { %v10568_v31 = vpop.permute.xlu1 %10567  ;;  %13614 = vmatprep.mubr.msk.f32.mxu0 %vm149_vm0, %v10699_v61 }
 0xc35   :  { %v10721_v21 = vsel %vm1793_vm1, %v21916_v26, %v10568_v31  ;;  %v21935_v31 = vld [vmem:[#allocation47_spill] sm:$0xff] }
 0xc36   :  { %13647 = vmatprep.mubr.msk.f32.mxu1 %vm149_vm0, %v10721_v21  ;;  %v10526_v20 = vpop.permute.xlu0 %10525 }
 0xc37   :  { %v10700_v3 = vsel %vm1793_vm1, %v21917_v58, %v10526_v20 }
 0xc38   :  { %v10570_v60 = vpop.permute.xlu1 %10569  ;;  %13615 = vmatmul.mubr.msk.f32.gmra.mrb[196].mxu0 %vm149_vm0, %v10700_v3  ;;  %v21936_v3 = vld [vmem:[#allocation145_spill] sm:$0xff] }
 0xc39   :  { %v10722_v41 = vsel %vm1793_vm1, %v21918_v36, %v10570_v60 }
 0xc3a   :  { %13648 = vmatmul.mubr.msk.f32.gmra.mrb[148].mxu1 %vm149_vm0, %v10722_v41  ;;  %v10528_v14 = vpop.permute.xlu0 %10527  ;;  %v21937_v41 = vld [vmem:[#allocation41_spill] sm:$0xff] }
 0xc3b   :  { %v10701_v23 = vsel %vm1793_vm1, %v21919_v32, %v10528_v14 }
 0xc3c   :  { %13617 = vmatprep.mubr.msk.f32.mxu0 %vm149_vm0, %v10701_v23 }
 0xc3e   :  { %v10530_v50 = vpop.permute.xlu0 %10529 }
 0xc3f   :  { %v10702_v12 = vsel %vm1793_vm1, %v21920_v52, %v10530_v50  ;;  %v21938_v52 = vld [vmem:[#allocation42_spill] sm:$0xff] }
 0xc40   :  { %13618 = vmatmul.mubr.msk.f32.gmra.mrb[198].mxu0 %vm149_vm0, %v10702_v12 }
 0xc42   :  { %v10532_v39 = vpop.permute.xlu0 %10531 }
 0xc43   :  { %v10703_v46 = vsel %vm1793_vm1, %v21921_v9, %v10532_v39 }
 0xc44   :  { %13620 = vmatprep.mubr.msk.f32.mxu0 %vm149_vm0, %v10703_v46 }
 0xc46   :  { %v10534_v34 = vpop.permute.xlu0 %10533 }
 0xc47   :  { %v10704_v13 = vsel %vm1793_vm1, %v21922_v24, %v10534_v34 }
 0xc48   :  { %13621 = vmatmul.mubr.msk.f32.gmra.mrb[200].mxu0 %vm149_vm0, %v10704_v13 }
 0xc4a   :  { %v10536_v56 = vpop.permute.xlu0 %10535 }
 0xc4b   :  { %v10705_v10 = vsel %vm1793_vm1, %v21923_v1, %v10536_v56  ;;  %v20821_v56 = vld [vmem:[%s21027_s7] ss:$0 sm:$0xff]  ;;  %s15774_s7 = smov [#allocation10]  }
 0xc4c   :  { %13623 = vmatprep.mubr.msk.f32.mxu0 %vm149_vm0, %v10705_v10  ;;  %s11404_s26 = sshll.u32 %s15774_s7, 4  ;;  %s11405_s26 = int_to_ptr.vmem [resolvable:$true] %s11404_s26 }
 0xc4d   :  { %s15732_s27 = scalar_lea.vmem %s11405_s26, 8192  ;;  %p15737_p5 = scmp.lt.s32.totalorder %s11405_s26, %s11405_s26 }
 0xc4e   :  { %v10538_v53 = vpop.permute.xlu0 %10537  ;;  %p15733_p4 = scmp.ne.s32.totalorder %s11405_s26, %s15732_s27  ;;  %p15738_p6 = scmp.lt.s32.totalorder %s15732_s27, %s15732_s27 }
 0xc4f   :  { %v10706_v45 = vsel %vm1793_vm1, %v21924_v40, %v10538_v53 }
 0xc50   :  { %13624 = vmatmul.mubr.msk.f32.gmra.mrb[202].mxu0 %vm149_vm0, %v10706_v45  ;;  %p15739_p7 = por %p15738_p6, %p15737_p5 }
 0xc52   :  { %v10540_v16 = vpop.permute.xlu0 %10539  ;;  %p15740_p8 = pnand %p15739_p7, %p15733_p4 }
 0xc53   :  { %v10707_v43 = vsel %vm1793_vm1, %v21925_v2, %v10540_v16  ;;  %v13536_v6 = vpop.f32.mrb[132].mxu1 }
 0xc54   :  { %v10081_v49 = vpop.f32.mrb[133].mxu1  ;;  %13626 = vmatprep.mubr.msk.f32.mxu0 %vm149_vm0, %v10707_v43 }
 0xc55   :  { %v10572_v25 = vpop.permute.xlu1 %10571  ;;  %10587 = vrot.lane.b32.xlu1 %v10081_v49, %s15773_s23  ;;  %v21939_v49 = vld [vmem:[#allocation20_spill] sm:$0xff] }
 0xc56   :  { %v10723_v54 = vsel %vm1793_vm1, %v21926_v17, %v10572_v25  ;;  %v10542_v57 = vpop.permute.xlu0 %10541 }
 0xc57   :  { %v10708_v19 = vsel %vm1793_vm1, %v21927_v11, %v10542_v57  ;;  %v13539_v8 = vpop.f32.mrb[134].mxu1  ;;  %13650 = vmatprep.mubr.msk.f32.mxu1 %vm149_vm0, %v10723_v54  ;;  %v21940_v11 = vld [vmem:[#allocation143_spill] sm:$0xff] }
 0xc58   :  { %v10091_v42 = vpop.f32.mrb[135].mxu1  ;;  %13627 = vmatmul.mubr.msk.f32.gmra.mrb[204].mxu0 %vm149_vm0, %v10708_v19 }
 0xc59   :  { %v10574_v4 = vpop.permute.xlu1 %10573  ;;  %10589 = vrot.lane.b32.xlu1 %v13536_v6, %s15773_s23 }
 0xc5a   :  { %v10724_v47 = vsel %vm1793_vm1, %v21928_v51, %v10574_v4  ;;  %v10544_v37 = vpop.permute.xlu0 %10543 }
 0xc5b   :  { %v10709_v62 = vsel %vm1793_vm1, %v21929_v5, %v10544_v37  ;;  %13651 = vmatmul.mubr.msk.f32.gmra.mrb[150].mxu1 %vm149_vm0, %v10724_v47 }
 0xc5c   :  { %13629 = vmatprep.mubr.msk.f32.mxu0 %vm149_vm0, %v10709_v62  ;;  %v21941_v62 = vld [vmem:[#allocation140_spill] sm:$0xff] }
 0xc5d   :  { %v10576_v27 = vpop.permute.xlu1 %10575  ;;  %10591 = vrot.lane.b32.xlu1 %v10091_v42, %s15773_s23 }
 0xc5e   :  { %v10725_v63 = vsel %vm1793_vm1, %v21930_v33, %v10576_v27  ;;  %v10546_v59 = vpop.permute.xlu0 %10545 }
 0xc5f   :  { %v10710_v22 = vsel %vm1793_vm1, %v21931_v38, %v10546_v59  ;;  %13653 = vmatprep.mubr.msk.f32.mxu1 %vm149_vm0, %v10725_v63  ;;  %v21942_v38 = vld [vmem:[#allocation133_spill] sm:$0xff] }
 0xc60   :  { %13630 = vmatmul.mubr.msk.f32.gmra.mrb[206].mxu0 %vm149_vm0, %v10710_v22 }
 0xc61   :  { %v10578_v55 = vpop.permute.xlu1 %10577  ;;  %10593 = vrot.lane.b32.xlu1 %v13539_v8, %s15773_s23 }
 0xc62   :  { %v10726_v48 = vsel %vm1793_vm1, %v21932_v28, %v10578_v55  ;;  %v10548_v35 = vpop.permute.xlu0 %10547 }
 0xc63   :  { %v10711_v18 = vsel %vm1793_vm1, %v21933_v30, %v10548_v35  ;;  %13654 = vmatmul.mubr.msk.f32.gmra.mrb[152].mxu1 %vm149_vm0, %v10726_v48 }
 0xc64   :  { %13632 = vmatprep.mubr.msk.f32.mxu0 %vm149_vm0, %v10711_v18 }
 0xc66   :  { %v10550_v0 = vpop.permute.xlu0 %10549 }
 0xc67   :  { %v10712_v7 = vsel %vm1793_vm1, %v21934_v29, %v10550_v0 }
 0xc68   :  { %13633 = vmatmul.mubr.msk.f32.gmra.mrb[208].mxu0 %vm149_vm0, %v10712_v7 }
 0xc8c   :  { %v13550_v44 = vpop.f32.mrb[172].mxu0 }
 0xc8d   :  { %v10190_v15 = vpop.f32.mrb[173].mxu0 }
 0xc8e   :  { %v10580_v61 = vpop.permute.xlu1 %10579  ;;  %10595 = vrot.lane.b32.xlu1 %v10190_v15, %s15773_s23 }
 0xc8f   :  { %v10727_v26 = vsel %vm1793_vm1, %v21935_v31, %v10580_v61 }
 0xc90   :  { %v13553_v21 = vpop.f32.mrb[174].mxu0  ;;  %13656 = vmatprep.mubr.msk.f32.mxu1 %vm149_vm0, %v10727_v26 }
 0xc91   :  { %v10200_v20 = vpop.f32.mrb[175].mxu0 }
 0xc92   :  { %v10582_v58 = vpop.permute.xlu1 %10581  ;;  %10597 = vrot.lane.b32.xlu1 %v13550_v44, %s15773_s23 }
 0xc93   :  { %v10728_v60 = vsel %vm1793_vm1, %v21936_v3, %v10582_v58 }
 0xc94   :  { %13657 = vmatmul.mubr.msk.f32.gmra.mrb[154].mxu1 %vm149_vm0, %v10728_v60 }
 0xc96   :  { %v10584_v36 = vpop.permute.xlu1 %10583  ;;  %10599 = vrot.lane.b32.xlu1 %v10200_v20, %s15773_s23 }
 0xc97   :  { %v10729_v14 = vsel %vm1793_vm1, %v21937_v41, %v10584_v36 }
 0xc98   :  { %v13578_v32 = vpop.f32.mrb[176].mxu0  ;;  %13659 = vmatprep.mubr.msk.f32.mxu1 %vm149_vm0, %v10729_v14 }
 0xc99   :  { %v10408_v23 = vpop.f32.mrb[177].mxu0 }
 0xc9a   :  { %v10586_v50 = vpop.permute.xlu1 %10585  ;;  %10601 = vrot.lane.b32.xlu1 %v13553_v21, %s15773_s23 }
 0xc9b   :  { %v10730_v12 = vsel %vm1793_vm1, %v21938_v52, %v10586_v50 }
 0xc9c   :  { %13660 = vmatmul.mubr.msk.f32.gmra.mrb[156].mxu1 %vm149_vm0, %v10730_v12 }
 0xca1   :  { %v13581_v39 = vpop.f32.mrb[178].mxu0 }
 0xca2   :  { %v10418_v9 = vpop.f32.mrb[179].mxu0 }
 0xca3   :  { %v13564_v46 = vpop.f32.mrb[136].mxu1 }
 0xca4   :  { %v10299_v34 = vpop.f32.mrb[137].mxu1 }
 0xca5   :  { %10603 = vrot.lane.b32.xlu1 %v10299_v34, %s15773_s23  ;;  %v21944_v34 = vld [vmem:[#allocation146_spill] sm:$0xff] }
 0xca7   :  { %v13567_v24 = vpop.f32.mrb[138].mxu1 }
 0xca8   :  { %v10309_v13 = vpop.f32.mrb[139].mxu1 }
 0xca9   :  { %10605 = vrot.lane.b32.xlu1 %v13564_v46, %s15773_s23 }
 0xcab   :  { %v13637_v1 = vpop.f32.mrb[140].mxu1 }
 0xcac   :  { %v11172_v10 = vadd.f32 %v13637_v1, %v20821_v56  ;;  %v11166_v53 = vpop.f32.mrb[141].mxu1 }
 0xcad   :  { %v11167_v40 = vadd.f32 %v20821_v56, %v11166_v53  ;;  %10607 = vrot.lane.b32.xlu1 %v10309_v13, %s15773_s23 }
 0xcae   :  { %11366 = vst.msk [vmem:[#allocation10 + $0xf8] sm:$0xff] %vm149_vm0, %v11172_v10 }
 0xcaf   :  { %11365 = vst.msk [vmem:[#allocation10 + $0xf0] sm:$0xff] %vm149_vm0, %v11167_v40 }
 0xcb1   :  { %10609 = vrot.lane.b32.xlu1 %v13567_v24, %s15773_s23 }
 0xcb5   :  { %10611 = vrot.lane.b32.xlu1 %v10408_v23, %s15773_s23  ;;  %v21943_v23 = vld [vmem:[#allocation39_spill] sm:$0xff] }
 0xcb9   :  { %10613 = vrot.lane.b32.xlu1 %v13578_v32, %s15773_s23 }
 0xcbd   :  { %10615 = vrot.lane.b32.xlu1 %v10418_v9, %s15773_s23 }
 0xcc1   :  { %10617 = vrot.lane.b32.xlu1 %v13581_v39, %s15773_s23 }
 0xcc4   :  { %v13640_v45 = vpop.f32.mrb[142].mxu1 }
 0xcc5   :  { %v11182_v16 = vadd.f32 %v13640_v45, %v20821_v56  ;;  %v11176_v2 = vpop.f32.mrb[143].mxu1  ;;  %v21945_v45 = vld [vmem:[#allocation50_spill] sm:$0xff] }
 0xcc6   :  { %v11177_v43 = vadd.f32 %v20821_v56, %v11176_v2 }
 0xcc7   :  { %11368 = vst.msk [vmem:[#allocation10 + $0x108] sm:$0xff] %vm149_vm0, %v11182_v16  ;;  %v10588_v6 = vpop.permute.xlu1 %10587 }
 0xcc8   :  { %11367 = vst.msk [vmem:[#allocation10 + $0x100] sm:$0xff] %vm149_vm0, %v11177_v43  ;;  %v10731_v25 = vsel %vm1793_vm1, %v21939_v49, %v10588_v6 }
 0xcc9   :  { %13662 = vmatprep.mubr.msk.f32.mxu1 %vm149_vm0, %v10731_v25 }
 0xccb   :  { %v13592_v17 = vpop.f32.mrb[180].mxu0  ;;  %v10590_v54 = vpop.permute.xlu1 %10589 }
 0xccc   :  { %v11022_v57 = vadd.f32 %v13592_v17, %v20821_v56  ;;  %v10732_v19 = vsel %vm1793_vm1, %v21940_v11, %v10590_v54  ;;  %v13643_v8 = vpop.f32.mrb[144].mxu1  ;;  %v11016_v42 = vpop.f32.mrb[181].mxu0  ;;  %v21946_v17 = vld [vmem:[#allocation55_spill] sm:$0xff] }
 0xccd   :  { %v11192_v4 = vadd.f32 %v13643_v8, %v20821_v56  ;;  %v11017_v51 = vadd.f32 %v20821_v56, %v11016_v42  ;;  %v11186_v47 = vpop.f32.mrb[145].mxu1  ;;  %13663 = vmatmul.mubr.msk.f32.gmra.mrb[158].mxu1 %vm149_vm0, %v10732_v19 }
 0xcce   :  { %11336 = vst.msk [vmem:[#allocation10 + $0x8] sm:$0xff] %vm149_vm0, %v11022_v57  ;;  %v11187_v37 = vadd.f32 %v20821_v56, %v11186_v47 }
 0xccf   :  { %11370 = vst.msk [vmem:[#allocation10 + $0x118] sm:$0xff] %vm149_vm0, %v11192_v4  ;;  %11335 = vst.msk [vmem:[#allocation10] sm:$0xff] %vm149_vm0, %v11017_v51  ;;  %v10592_v5 = vpop.permute.xlu1 %10591 }
 0xcd0   :  { %11369 = vst.msk [vmem:[#allocation10 + $0x110] sm:$0xff] %vm149_vm0, %v11187_v37  ;;  %v10733_v27 = vsel %vm1793_vm1, %v21941_v62, %v10592_v5  ;;  %v21947_v5 = vld [vmem:[#allocation48_spill] sm:$0xff] }
 0xcd1   :  { %13665 = vmatprep.mubr.msk.f32.mxu1 %vm149_vm0, %v10733_v27 }
 0xcd3   :  { %v13595_v33 = vpop.f32.mrb[182].mxu0  ;;  %v10594_v63 = vpop.permute.xlu1 %10593 }
 0xcd4   :  { %v11032_v59 = vadd.f32 %v13595_v33, %v20821_v56  ;;  %v10734_v22 = vsel %vm1793_vm1, %v21942_v38, %v10594_v63  ;;  %v11026_v55 = vpop.f32.mrb[183].mxu0 }
 0xcd5   :  { %v11027_v28 = vadd.f32 %v20821_v56, %v11026_v55  ;;  %13666 = vmatmul.mubr.msk.f32.gmra.mrb[160].mxu1 %vm149_vm0, %v10734_v22 }
 0xcd6   :  { %11338 = vst.msk [vmem:[#allocation10 + $0x18] sm:$0xff] %vm149_vm0, %v11032_v59  ;;  %v21948_v59 = vld [vmem:[#allocation51_spill] sm:$0xff] }
 0xcd7   :  { %11337 = vst.msk [vmem:[#allocation10 + $0x10] sm:$0xff] %vm149_vm0, %v11027_v28 }
 0xcdb   :  { %v13598_v48 = vpop.f32.mrb[184].mxu0 }
 0xcdc   :  { %v11042_v35 = vadd.f32 %v13598_v48, %v20821_v56  ;;  %v11036_v30 = vpop.f32.mrb[185].mxu0  ;;  %v21949_v48 = vld [vmem:[#allocation60_spill] sm:$0xff] }
 0xcdd   :  { %v11037_v18 = vadd.f32 %v20821_v56, %v11036_v30 }
 0xcde   :  { %11340 = vst.msk [vmem:[#allocation10 + $0x28] sm:$0xff] %vm149_vm0, %v11042_v35 }
 0xcdf   :  { %11339 = vst.msk [vmem:[#allocation10 + $0x20] sm:$0xff] %vm149_vm0, %v11037_v18 }
 0xce3   :  { %v13601_v0 = vpop.f32.mrb[186].mxu0 }
 0xce4   :  { %v11052_v29 = vadd.f32 %v13601_v0, %v20821_v56  ;;  %v11046_v7 = vpop.f32.mrb[187].mxu0 }
 0xce5   :  { %v11047_v44 = vadd.f32 %v20821_v56, %v11046_v7 }
 0xce6   :  { %11342 = vst.msk [vmem:[#allocation10 + $0x38] sm:$0xff] %vm149_vm0, %v11052_v29  ;;  %v21950_v29 = vld [vmem:[#allocation62_spill] sm:$0xff] }
 0xce7   :  { %11341 = vst.msk [vmem:[#allocation10 + $0x30] sm:$0xff] %vm149_vm0, %v11047_v44 }
 0xceb   :  { %v13604_v15 = vpop.f32.mrb[188].mxu0 }
 0xcec   :  { %v11062_v61 = vadd.f32 %v13604_v15, %v20821_v56  ;;  %v11056_v31 = vpop.f32.mrb[189].mxu0 }
 0xced   :  { %v11057_v26 = vadd.f32 %v20821_v56, %v11056_v31  ;;  %v21951_v31 = vld [vmem:[#allocation56_spill] sm:$0xff] }
 0xcee   :  { %11344 = vst.msk [vmem:[#allocation10 + $0x48] sm:$0xff] %vm149_vm0, %v11062_v61 }
 0xcef   :  { %11343 = vst.msk [vmem:[#allocation10 + $0x40] sm:$0xff] %vm149_vm0, %v11057_v26 }
 0xcf3   :  { %v13607_v21 = vpop.f32.mrb[190].mxu0 }
 0xcf4   :  { %v11072_v20 = vadd.f32 %v13607_v21, %v20821_v56  ;;  %v11066_v58 = vpop.f32.mrb[191].mxu0 }
 0xcf5   :  { %v11067_v3 = vadd.f32 %v20821_v56, %v11066_v58 }
 0xcf6   :  { %11346 = vst.msk [vmem:[#allocation10 + $0x58] sm:$0xff] %vm149_vm0, %v11072_v20 }
 0xcf7   :  { %11345 = vst.msk [vmem:[#allocation10 + $0x50] sm:$0xff] %vm149_vm0, %v11067_v3  ;;  %v21952_v3 = vld [vmem:[#allocation59_spill] sm:$0xff] }
 0xcfb   :  { %v13610_v60 = vpop.f32.mrb[192].mxu0 }
 0xcfc   :  { %v11082_v36 = vadd.f32 %v13610_v60, %v20821_v56  ;;  %v11076_v41 = vpop.f32.mrb[193].mxu0 }
 0xcfd   :  { %v11077_v14 = vadd.f32 %v20821_v56, %v11076_v41 }
 0xcfe   :  { %11348 = vst.msk [vmem:[#allocation10 + $0x68] sm:$0xff] %vm149_vm0, %v11082_v36 }
 0xcff   :  { %11347 = vst.msk [vmem:[#allocation10 + $0x60] sm:$0xff] %vm149_vm0, %v11077_v14 }
 0xd00   :  { %v10596_v32 = vpop.permute.xlu1 %10595 }
 0xd01   :  { %v10735_v50 = vsel %vm1793_vm1, %v21943_v23, %v10596_v32 }
 0xd02   :  { %13668 = vmatprep.mubr.msk.f32.mxu1 %vm149_vm0, %v10735_v50 }
 0xd03   :  { %v13613_v52 = vpop.f32.mrb[194].mxu0 }
 0xd04   :  { %v11092_v12 = vadd.f32 %v13613_v52, %v20821_v56  ;;  %v11086_v39 = vpop.f32.mrb[195].mxu0  ;;  %v10598_v9 = vpop.permute.xlu1 %10597  ;;  %v21953_v52 = vld [vmem:[#allocation65_spill] sm:$0xff] }
 0xd05   :  { %v11087_v46 = vadd.f32 %v20821_v56, %v11086_v39  ;;  %v10736_v24 = vsel %vm1793_vm1, %v21944_v34, %v10598_v9  ;;  %v13646_v13 = vpop.f32.mrb[146].mxu1 }
 0xd06   :  { %11350 = vst.msk [vmem:[#allocation10 + $0x78] sm:$0xff] %vm149_vm0, %v11092_v12  ;;  %v11202_v1 = vadd.f32 %v13646_v13, %v20821_v56  ;;  %v11196_v10 = vpop.f32.mrb[147].mxu1  ;;  %13669 = vmatmul.mubr.msk.f32.gmra.mrb[162].mxu1 %vm149_vm0, %v10736_v24  ;;  %v21954_v24 = vld [vmem:[#allocation66_spill] sm:$0xff] }
 0xd07   :  { %11349 = vst.msk [vmem:[#allocation10 + $0x70] sm:$0xff] %vm149_vm0, %v11087_v46  ;;  %v11197_v53 = vadd.f32 %v20821_v56, %v11196_v10 }
 0xd08   :  { %11372 = vst.msk [vmem:[#allocation10 + $0x128] sm:$0xff] %vm149_vm0, %v11202_v1  ;;  %v10600_v40 = vpop.permute.xlu1 %10599 }
 0xd09   :  { %11371 = vst.msk [vmem:[#allocation10 + $0x120] sm:$0xff] %vm149_vm0, %v11197_v53  ;;  %v10737_v16 = vsel %vm1793_vm1, %v21945_v45, %v10600_v40 }
 0xd0a   :  { %13671 = vmatprep.mubr.msk.f32.mxu1 %vm149_vm0, %v10737_v16 }
 0xd0b   :  { %v13616_v2 = vpop.f32.mrb[196].mxu0 }
 0xd0c   :  { %v11102_v43 = vadd.f32 %v13616_v2, %v20821_v56  ;;  %v11096_v6 = vpop.f32.mrb[197].mxu0  ;;  %v10602_v49 = vpop.permute.xlu1 %10601 }
 0xd0d   :  { %v11097_v25 = vadd.f32 %v20821_v56, %v11096_v6  ;;  %v10738_v54 = vsel %vm1793_vm1, %v21946_v17, %v10602_v49  ;;  %v13649_v57 = vpop.f32.mrb[148].mxu1 }
 0xd0e   :  { %11352 = vst.msk [vmem:[#allocation10 + $0x88] sm:$0xff] %vm149_vm0, %v11102_v43  ;;  %v11212_v11 = vadd.f32 %v13649_v57, %v20821_v56  ;;  %v11206_v19 = vpop.f32.mrb[149].mxu1  ;;  %13672 = vmatmul.mubr.msk.f32.gmra.mrb[164].mxu1 %vm149_vm0, %v10738_v54 }
 0xd0f   :  { %11351 = vst.msk [vmem:[#allocation10 + $0x80] sm:$0xff] %vm149_vm0, %v11097_v25  ;;  %v11207_v8 = vadd.f32 %v20821_v56, %v11206_v19 }
 0xd10   :  { %11374 = vst.msk [vmem:[#allocation10 + $0x138] sm:$0xff] %vm149_vm0, %v11212_v11 }
 0xd11   :  { %11373 = vst.msk [vmem:[#allocation10 + $0x130] sm:$0xff] %vm149_vm0, %v11207_v8 }
 0xd13   :  { %v13619_v42 = vpop.f32.mrb[198].mxu0 }
 0xd14   :  { %v11112_v4 = vadd.f32 %v13619_v42, %v20821_v56  ;;  %v11106_v51 = vpop.f32.mrb[199].mxu0 }
 0xd15   :  { %v11107_v47 = vadd.f32 %v20821_v56, %v11106_v51 }
 0xd16   :  { %11354 = vst.msk [vmem:[#allocation10 + $0x98] sm:$0xff] %vm149_vm0, %v11112_v4 }
 0xd17   :  { %11353 = vst.msk [vmem:[#allocation10 + $0x90] sm:$0xff] %vm149_vm0, %v11107_v47  ;;  %v10604_v37 = vpop.permute.xlu1 %10603 }
 0xd18   :  { %v10739_v62 = vsel %vm1793_vm1, %v21947_v5, %v10604_v37 }
 0xd19   :  { %13674 = vmatprep.mubr.msk.f32.mxu1 %vm149_vm0, %v10739_v62 }
 0xd1b   :  { %v13622_v27 = vpop.f32.mrb[200].mxu0  ;;  %v10606_v33 = vpop.permute.xlu1 %10605 }
 0xd1c   :  { %v11122_v63 = vadd.f32 %v13622_v27, %v20821_v56  ;;  %v10740_v38 = vsel %vm1793_vm1, %v21948_v59, %v10606_v33  ;;  %v11116_v22 = vpop.f32.mrb[201].mxu0 }
 0xd1d   :  { %v11117_v55 = vadd.f32 %v20821_v56, %v11116_v22  ;;  %13675 = vmatmul.mubr.msk.f32.gmra.mrb[166].mxu1 %vm149_vm0, %v10740_v38 }
 0xd1e   :  { %11356 = vst.msk [vmem:[#allocation10 + $0xa8] sm:$0xff] %vm149_vm0, %v11122_v63 }
 0xd1f   :  { %11355 = vst.msk [vmem:[#allocation10 + $0xa0] sm:$0xff] %vm149_vm0, %v11117_v55  ;;  %v10608_v28 = vpop.permute.xlu1 %10607 }
 0xd20   :  { %v10741_v35 = vsel %vm1793_vm1, %v21949_v48, %v10608_v28 }
 0xd21   :  { %13677 = vmatprep.mubr.msk.f32.mxu1 %vm149_vm0, %v10741_v35 }
 0xd23   :  { %v13625_v30 = vpop.f32.mrb[202].mxu0  ;;  %v10610_v18 = vpop.permute.xlu1 %10609 }
 0xd24   :  { %v11132_v0 = vadd.f32 %v13625_v30, %v20821_v56  ;;  %v10742_v7 = vsel %vm1793_vm1, %v21950_v29, %v10610_v18  ;;  %v11126_v44 = vpop.f32.mrb[203].mxu0 }
 0xd25   :  { %v11127_v15 = vadd.f32 %v20821_v56, %v11126_v44  ;;  %13678 = vmatmul.mubr.msk.f32.gmra.mrb[168].mxu1 %vm149_vm0, %v10742_v7 }
 0xd26   :  { %11358 = vst.msk [vmem:[#allocation10 + $0xb8] sm:$0xff] %vm149_vm0, %v11132_v0 }
 0xd27   :  { %11357 = vst.msk [vmem:[#allocation10 + $0xb0] sm:$0xff] %vm149_vm0, %v11127_v15  ;;  %v10612_v61 = vpop.permute.xlu1 %10611 }
 0xd28   :  { %v10743_v26 = vsel %vm1793_vm1, %v21951_v31, %v10612_v61 }
 0xd29   :  { %13680 = vmatprep.mubr.msk.f32.mxu1 %vm149_vm0, %v10743_v26 }
 0xd2b   :  { %v13628_v21 = vpop.f32.mrb[204].mxu0  ;;  %v10614_v20 = vpop.permute.xlu1 %10613 }
 0xd2c   :  { %v11142_v58 = vadd.f32 %v13628_v21, %v20821_v56  ;;  %v10744_v60 = vsel %vm1793_vm1, %v21952_v3, %v10614_v20  ;;  %v11136_v36 = vpop.f32.mrb[205].mxu0 }
 0xd2d   :  { %v11137_v41 = vadd.f32 %v20821_v56, %v11136_v36  ;;  %13681 = vmatmul.mubr.msk.f32.gmra.mrb[170].mxu1 %vm149_vm0, %v10744_v60 }
 0xd2e   :  { %11360 = vst.msk [vmem:[#allocation10 + $0xc8] sm:$0xff] %vm149_vm0, %v11142_v58  ;;  %v13652_v14 = vpop.f32.mrb[150].mxu1 }
 0xd2f   :  { %11359 = vst.msk [vmem:[#allocation10 + $0xc0] sm:$0xff] %vm149_vm0, %v11137_v41  ;;  %v11222_v32 = vadd.f32 %v13652_v14, %v20821_v56  ;;  %v10616_v23 = vpop.permute.xlu1 %10615  ;;  %v11216_v50 = vpop.f32.mrb[151].mxu1 }
 0xd30   :  { %v10745_v12 = vsel %vm1793_vm1, %v21953_v52, %v10616_v23  ;;  %v11217_v39 = vadd.f32 %v20821_v56, %v11216_v50 }
 0xd31   :  { %11376 = vst.msk [vmem:[#allocation10 + $0x148] sm:$0xff] %vm149_vm0, %v11222_v32  ;;  %13683 = vmatprep.mubr.msk.f32.mxu1 %vm149_vm0, %v10745_v12 }
 0xd32   :  { %11375 = vst.msk [vmem:[#allocation10 + $0x140] sm:$0xff] %vm149_vm0, %v11217_v39 }
 0xd33   :  { %v13631_v9 = vpop.f32.mrb[206].mxu0  ;;  %v10618_v46 = vpop.permute.xlu1 %10617 }
 0xd34   :  { %v11152_v34 = vadd.f32 %v13631_v9, %v20821_v56  ;;  %v10746_v13 = vsel %vm1793_vm1, %v21954_v24, %v10618_v46  ;;  %v11146_v1 = vpop.f32.mrb[207].mxu0 }
 0xd35   :  { %v11147_v10 = vadd.f32 %v20821_v56, %v11146_v1  ;;  %13684 = vmatmul.mubr.msk.f32.gmra.mrb[172].mxu1 %vm149_vm0, %v10746_v13 }
 0xd36   :  { %11362 = vst.msk [vmem:[#allocation10 + $0xd8] sm:$0xff] %vm149_vm0, %v11152_v34  ;;  %v13655_v53 = vpop.f32.mrb[152].mxu1 }
 0xd37   :  { %11361 = vst.msk [vmem:[#allocation10 + $0xd0] sm:$0xff] %vm149_vm0, %v11147_v10  ;;  %v11232_v40 = vadd.f32 %v13655_v53, %v20821_v56  ;;  %v11226_v45 = vpop.f32.mrb[153].mxu1 }
 0xd38   :  { %v11227_v16 = vadd.f32 %v20821_v56, %v11226_v45 }
 0xd39   :  { %11378 = vst.msk [vmem:[#allocation10 + $0x158] sm:$0xff] %vm149_vm0, %v11232_v40 }
 0xd3a   :  { %11377 = vst.msk [vmem:[#allocation10 + $0x150] sm:$0xff] %vm149_vm0, %v11227_v16 }
 0xd3b   :  { %v13634_v2 = vpop.f32.mrb[208].mxu0 }
 0xd3c   :  { %v11162_v43 = vadd.f32 %v13634_v2, %v20821_v56  ;;  %v11156_v6 = vpop.f32.mrb[209].mxu0 }
 0xd3d   :  { %v11157_v49 = vadd.f32 %v20821_v56, %v11156_v6 }
 0xd3e   :  { %11364 = vst.msk [vmem:[#allocation10 + $0xe8] sm:$0xff] %vm149_vm0, %v11162_v43 }
 0xd3f   :  { %11363 = vst.msk [vmem:[#allocation10 + $0xe0] sm:$0xff] %vm149_vm0, %v11157_v49 }
 0xd67   :  { %v13658_v25 = vpop.f32.mrb[154].mxu1 }
 0xd68   :  { %v11242_v17 = vadd.f32 %v13658_v25, %v20821_v56  ;;  %v11236_v54 = vpop.f32.mrb[155].mxu1 }
 0xd69   :  { %v11237_v57 = vadd.f32 %v20821_v56, %v11236_v54 }
 0xd6a   :  { %11380 = vst.msk [vmem:[#allocation10 + $0x168] sm:$0xff] %vm149_vm0, %v11242_v17 }
 0xd6b   :  { %11379 = vst.msk [vmem:[#allocation10 + $0x160] sm:$0xff] %vm149_vm0, %v11237_v57 }
 0xd6f   :  { %v13661_v11 = vpop.f32.mrb[156].mxu1 }
 0xd70   :  { %v11252_v19 = vadd.f32 %v13661_v11, %v20821_v56  ;;  %v11246_v8 = vpop.f32.mrb[157].mxu1 }
 0xd71   :  { %v11247_v42 = vadd.f32 %v20821_v56, %v11246_v8 }
 0xd72   :  { %11382 = vst.msk [vmem:[#allocation10 + $0x178] sm:$0xff] %vm149_vm0, %v11252_v19 }
 0xd73   :  { %11381 = vst.msk [vmem:[#allocation10 + $0x170] sm:$0xff] %vm149_vm0, %v11247_v42 }
 0xda0   :  { %v13664_v4 = vpop.f32.mrb[158].mxu1 }
 0xda1   :  { %v11262_v51 = vadd.f32 %v13664_v4, %v20821_v56  ;;  %v11256_v47 = vpop.f32.mrb[159].mxu1 }
 0xda2   :  { %v11257_v37 = vadd.f32 %v20821_v56, %v11256_v47 }
 0xda3   :  { %11384 = vst.msk [vmem:[#allocation10 + $0x188] sm:$0xff] %vm149_vm0, %v11262_v51 }
 0xda4   :  { %11383 = vst.msk [vmem:[#allocation10 + $0x180] sm:$0xff] %vm149_vm0, %v11257_v37 }
 0xda8   :  { %v13667_v5 = vpop.f32.mrb[160].mxu1 }
 0xda9   :  { %v11272_v62 = vadd.f32 %v13667_v5, %v20821_v56  ;;  %v11266_v27 = vpop.f32.mrb[161].mxu1 }
 0xdaa   :  { %v11267_v33 = vadd.f32 %v20821_v56, %v11266_v27 }
 0xdab   :  { %11386 = vst.msk [vmem:[#allocation10 + $0x198] sm:$0xff] %vm149_vm0, %v11272_v62 }
 0xdac   :  { %11385 = vst.msk [vmem:[#allocation10 + $0x190] sm:$0xff] %vm149_vm0, %v11267_v33 }
 0xdd9   :  { %v13670_v63 = vpop.f32.mrb[162].mxu1 }
 0xdda   :  { %v11282_v59 = vadd.f32 %v13670_v63, %v20821_v56  ;;  %v11276_v38 = vpop.f32.mrb[163].mxu1 }
 0xddb   :  { %v11277_v22 = vadd.f32 %v20821_v56, %v11276_v38 }
 0xddc   :  { %11388 = vst.msk [vmem:[#allocation10 + $0x1a8] sm:$0xff] %vm149_vm0, %v11282_v59 }
 0xddd   :  { %11387 = vst.msk [vmem:[#allocation10 + $0x1a0] sm:$0xff] %vm149_vm0, %v11277_v22 }
 0xde1   :  { %v13673_v55 = vpop.f32.mrb[164].mxu1 }
 0xde2   :  { %v11292_v28 = vadd.f32 %v13673_v55, %v20821_v56  ;;  %v11286_v48 = vpop.f32.mrb[165].mxu1 }
 0xde3   :  { %v11287_v35 = vadd.f32 %v20821_v56, %v11286_v48 }
 0xde4   :  { %11390 = vst.msk [vmem:[#allocation10 + $0x1b8] sm:$0xff] %vm149_vm0, %v11292_v28 }
 0xde5   :  { %11389 = vst.msk [vmem:[#allocation10 + $0x1b0] sm:$0xff] %vm149_vm0, %v11287_v35 }
 0xdf0   :  { %v13676_v30 = vpop.f32.mrb[166].mxu1 }
 0xdf1   :  { %v11302_v18 = vadd.f32 %v13676_v30, %v20821_v56  ;;  %v11296_v0 = vpop.f32.mrb[167].mxu1 }
 0xdf2   :  { %v11297_v29 = vadd.f32 %v20821_v56, %v11296_v0 }
 0xdf3   :  { %11392 = vst.msk [vmem:[#allocation10 + $0x1c8] sm:$0xff] %vm149_vm0, %v11302_v18 }
 0xdf4   :  { %11391 = vst.msk [vmem:[#allocation10 + $0x1c0] sm:$0xff] %vm149_vm0, %v11297_v29 }
 0xdf8   :  { %v13679_v7 = vpop.f32.mrb[168].mxu1 }
 0xdf9   :  { %v11312_v44 = vadd.f32 %v13679_v7, %v20821_v56  ;;  %v11306_v15 = vpop.f32.mrb[169].mxu1 }
 0xdfa   :  { %v11307_v61 = vadd.f32 %v20821_v56, %v11306_v15 }
 0xdfb   :  { %11394 = vst.msk [vmem:[#allocation10 + $0x1d8] sm:$0xff] %vm149_vm0, %v11312_v44 }
 0xdfc   :  { %11393 = vst.msk [vmem:[#allocation10 + $0x1d0] sm:$0xff] %vm149_vm0, %v11307_v61 }
 0xe00   :  { %v13682_v31 = vpop.f32.mrb[170].mxu1 }
 0xe01   :  { %v11322_v26 = vadd.f32 %v13682_v31, %v20821_v56  ;;  %v11316_v21 = vpop.f32.mrb[171].mxu1 }
 0xe02   :  { %v11317_v20 = vadd.f32 %v20821_v56, %v11316_v21 }
 0xe03   :  { %11396 = vst.msk [vmem:[#allocation10 + $0x1e8] sm:$0xff] %vm149_vm0, %v11322_v26 }
 0xe04   :  { %11395 = vst.msk [vmem:[#allocation10 + $0x1e0] sm:$0xff] %vm149_vm0, %v11317_v20 }
 0xe08   :  { %v13685_v58 = vpop.f32.mrb[172].mxu1 }
 0xe09   :  { %v11332_v3 = vadd.f32 %v13685_v58, %v20821_v56  ;;  %v11326_v60 = vpop.f32.mrb[173].mxu1 }
 0xe0a   :  { %v11327_v36 = vadd.f32 %v20821_v56, %v11326_v60 }
 0xe0b   :  { %11398 = vst.msk [vmem:[#allocation10 + $0x1f8] sm:$0xff] %vm149_vm0, %v11332_v3 }
 0xe0c   :  { %11397 = vst.msk [vmem:[#allocation10 + $0x1f0] sm:$0xff] %vm149_vm0, %v11327_v36 }
 0xe0d   :  { %15743 = shalt.err (!%p15740_p8)
}
 0xe0e   :  { %s15744_s28 = scalar_lea.hbm %s21028_s8, 8192 }
 0xe0f   :  { %p15745_p9 = scmp.ne.s32.totalorder %s21028_s8, %s15744_s28  ;;  %p15748_p10 = scmp.lt.u32.totalorder %s15744_s28, %s21028_s8 }
 0xe11   :  { %p15750_p11 = pnand %p15748_p10, %p15745_p9 }
 0xe13   :  { %15753 = shalt.err (!%p15750_p11)
}
 0xe14   :  { %11410 = dma.vmem_to_hbm [thread:$0]  %s11405_s26, 8192, %s21028_s8, [#allocation4], %s15764_s17, %s15764_s17, %s15765_s18  }
 0xe15   :  { %15760 = dma.done.wait [#allocation4], 8192  }
 0xe16   :  { %15761 = vsyncadd [#allocation4], 4294959104 }
 0xe17   :  { %11414 = vsyncpa [#allocation3], 1 }
 0xe18   :  { %11415 = vsyncpa [#allocation6], 1 }
 0xe19   :  { %11416 = vsyncpa [#allocation9], 1 }
 0xe1a   :  { %11417 = vsyncpa [#allocation4], 1 }

</bundles_post_ra>
